<compile_context>
chip_gen: v5e
topology: v5e:2x2
jax: 0.10.0
libtpu: 0.0.40
codegen_flags: <defaults>
</compile_context>

<pallas_src>
import functools

import jax
import jax.numpy as jnp
from jax.experimental import pallas as pl
from jax.experimental.pallas import tpu as pltpu


D_IN, D_H, D_OUT = 128, 1024, 784
D_OUT_PAD = 896  # 7 * 128: lane-dense output width


def _round_up(x, m):
    return ((x + m - 1) // m) * m


def _num_tensorcores():
    """Best-effort detection of TensorCores per chip (v7x has 2)."""
    try:
        kind = jax.devices()[0].device_kind.lower()
        return 2 if ("v7" in kind or "7x" in kind) else 1
    except Exception:
        return 1


def _select_tile(B, num_tc):
    """Batch tile (multiple of 16 sublanes: bf16 packs 16 rows per vreg)."""
    if B <= 16:
        return _round_up(max(B, 1), 16)
    if num_tc >= 2 and B >= 256:
        # Ensure >=2 grid steps so the "parallel" axis shards across both TCs.
        return min(256, _round_up(pl.cdiv(B, 2), 16))
    # Single-TC chips (v5e/v6e): bigger tile amortizes per-step overhead.
    return min(512, _round_up(B, 16))


def _vmem_limit_bytes(tm, out_itemsize):
    w = 2 * 2 * (D_IN * D_H + D_H * D_H + D_H * D_OUT_PAD)   # bf16 weights, 2 bufs
    b = 2 * 4 * (D_H + D_H + D_OUT_PAD)                       # f32 biases, 2 bufs
    x = 2 * 2 * tm * D_IN                                     # bf16 x tile, 2 bufs
    o = 2 * out_itemsize * tm * D_OUT_PAD                      # out tile, 2 bufs
    act = 2 * 4 * tm * D_H                                     # h1/h2 scratch (rough)
    total = int(1.25 * (w + b + x + o + act)) + (4 << 20)
    return min(_round_up(total, 1 << 20), 64 << 20)


def generator_kernel(x_ref, w1_ref, b1_ref, w2_ref, b2_ref, w3_ref, b3_ref, o_ref):
    x = x_ref[...]                                                     # (tm, 128) bf16
    h1 = jnp.dot(x, w1_ref[...], preferred_element_type=jnp.float32)  # (tm, 1024) f32
    h1 = jnp.maximum(h1 + b1_ref[...], 0.0)                           # ReLU
    h2 = jnp.dot(h1.astype(jnp.bfloat16), w2_ref[...],
                 preferred_element_type=jnp.float32)                  # (tm, 1024) f32
    h2 = jnp.maximum(h2 + b2_ref[...], 0.0)                           # ReLU
    y = jnp.dot(h2.astype(jnp.bfloat16), w3_ref[...],
                preferred_element_type=jnp.float32)                   # (tm, 896) f32
    o_ref[...] = jnp.tanh(y + b3_ref[...]).astype(o_ref.dtype)        # Tanh


@functools.lru_cache(maxsize=32)
def _build_generator_call(b_pad, tm, out_dtype_name):
    out_dtype = jnp.dtype(out_dtype_name)
    const = lambda i: (0, 0)  # whole-array block, same index every grid step

    flops = 2 * b_pad * (D_IN * D_H + D_H * D_H + D_H * D_OUT_PAD)
    weight_bytes = 2 * (D_IN * D_H + D_H * D_H + D_H * D_OUT_PAD)      # bf16 weights
    bias_bytes = 4 * (D_H + D_H + D_OUT_PAD)                           # f32 biases
    io_bytes = 2 * b_pad * D_IN + out_dtype.itemsize * b_pad * D_OUT_PAD

    return pl.pallas_call(
        generator_kernel,
        out_shape=jax.ShapeDtypeStruct((b_pad, D_OUT_PAD), out_dtype),
        grid_spec=pltpu.PrefetchScalarGridSpec(
            num_scalar_prefetch=0,
            grid=(b_pad // tm,),
            in_specs=[
                pl.BlockSpec((tm, D_IN), lambda i: (i, 0)),   # x tile (bf16)
                pl.BlockSpec((D_IN, D_H), const),             # W1 (bf16)
                pl.BlockSpec((1, D_H), const),                # b1 (f32)
                pl.BlockSpec((D_H, D_H), const),              # W2 (bf16)
                pl.BlockSpec((1, D_H), const),                # b2 (f32)
                pl.BlockSpec((D_H, D_OUT_PAD), const),        # W3 padded (bf16)
                pl.BlockSpec((1, D_OUT_PAD), const),          # b3 padded (f32)
            ],
            out_specs=pl.BlockSpec((tm, D_OUT_PAD), lambda i: (i, 0)),
        ),
        compiler_params=pltpu.CompilerParams(
            dimension_semantics=("parallel",),
            vmem_limit_bytes=_vmem_limit_bytes(tm, out_dtype.itemsize),
        ),
        cost_estimate=pl.CostEstimate(
            flops=flops,
            transcendentals=b_pad * D_OUT_PAD,
            bytes_accessed=weight_bytes + bias_bytes + io_bytes,
        ),
    )


def prepare_params(params):
    """One-time param prep: bf16 weights, f32 biases, W3/b3 pre-padded to 896."""
    w1, b1, w2, b2, w3, b3 = params
    pad_n = D_OUT_PAD - D_OUT
    return (
        w1.astype(jnp.bfloat16),
        b1.reshape(1, D_H).astype(jnp.float32),
        w2.astype(jnp.bfloat16),
        b2.reshape(1, D_H).astype(jnp.float32),
        jnp.pad(w3, ((0, 0), (0, pad_n))).astype(jnp.bfloat16),
        jnp.pad(b3.reshape(1, D_OUT).astype(jnp.float32), ((0, 0), (0, pad_n))),
    )


def generator_forward(x, prepared_params, *, tm=None, out_dtype=jnp.float32,
                      keep_padded=False):
    """x: (B, 128) float32 -> (B, 784) `out_dtype` (or (B_pad, 896) if keep_padded)."""
    B = x.shape[0]
    if tm is None:
        tm = _select_tile(B, _num_tensorcores())
    tm = max(16, _round_up(tm, 16))
    b_pad = _round_up(max(B, 1), tm)

    x_p = x.astype(jnp.bfloat16)
    if b_pad != B:
        x_p = jnp.pad(x_p, ((0, b_pad - B), (0, 0)))

    call = _build_generator_call(b_pad, tm, jnp.dtype(out_dtype).name)
    out = call(x_p, *prepared_params)
    if keep_padded:
        return out
    return out[:B, :D_OUT]


def init_params(key):
    """PyTorch nn.Linear-style init; weights stored pre-transposed as (in, out)."""
    ks = jax.random.split(key, 6)

    def linear(kw, kb, fan_in, fan_out):
        bound = 1.0 / (fan_in ** 0.5)
        w = jax.random.uniform(kw, (fan_in, fan_out), jnp.float32, -bound, bound)
        b = jax.random.uniform(kb, (1, fan_out), jnp.float32, -bound, bound)
        return w, b

    w1, b1 = linear(ks[0], ks[1], D_IN, D_H)
    w2, b2 = linear(ks[2], ks[3], D_H, D_H)
    w3, b3 = linear(ks[4], ks[5], D_H, D_OUT)
    return (w1, b1, w2, b2, w3, b3)


def reference_forward_f32(x, params):
    w1, b1, w2, b2, w3, b3 = params
    h1 = jnp.maximum(x @ w1 + b1, 0.0)
    h2 = jnp.maximum(h1 @ w2 + b2, 0.0)
    return jnp.tanh(h2 @ w3 + b3)


def reference_forward_bf16(x, params):
    """Mirror of the kernel's numerics: bf16 matmul inputs, f32 accumulation."""
    w1, b1, w2, b2, w3, b3 = params
    bf = jnp.bfloat16
    dot = lambda a, b: jnp.dot(a.astype(bf), b.astype(bf),
                               preferred_element_type=jnp.float32)
    h1 = jnp.maximum(dot(x, w1) + b1, 0.0)
    h2 = jnp.maximum(dot(h1, w2) + b2, 0.0)
    return jnp.tanh(dot(h2, w3) + b3)


if __name__ == "__main__":
    key = jax.random.PRNGKey(0)
    k_x, k_p = jax.random.split(key)
    params = init_params(k_p)
    prepared = prepare_params(params)  # one-time bf16 cast + 896-pad, hoisted

    # B=4 exercises the small-batch (16-row tile) path; B=256 exercises the
    # normal tile path (2 "parallel" grid steps on v7x, single step elsewhere).
    for B in (4, 256):
        x = jax.random.normal(jax.random.fold_in(k_x, B), (B, D_IN), jnp.float32)
        out = jax.block_until_ready(generator_forward(x, prepared))
        assert out.shape == (B, D_OUT)
        assert out.dtype == jnp.float32
        assert bool(jnp.all(jnp.isfinite(out)))
        ref_bf = reference_forward_bf16(x, params)
        ref_f32 = reference_forward_f32(x, params)
        assert jnp.allclose(out, ref_bf, atol=2e-2), "mismatch vs bf16-emulated reference"
        assert jnp.allclose(out, ref_f32, atol=8e-2), "mismatch vs f32 reference"

    # bf16-output path (halves output HBM stream); looser tolerance vs f32 ref.
    x = jax.random.normal(jax.random.fold_in(k_x, 64), (64, D_IN), jnp.float32)
    out_bf = jax.block_until_ready(
        generator_forward(x, prepared, out_dtype=jnp.bfloat16))
    assert out_bf.shape == (64, D_OUT) and out_bf.dtype == jnp.bfloat16
    assert jnp.allclose(out_bf.astype(jnp.float32),
                        reference_forward_f32(x, params), atol=1e-1)

    print("KERNEL_OK")
</pallas_src>

<mosaic_0001>
module attributes {stable_mosaic.version = 11 : i64} {
  func.func @generator_kernel(%arg0: i32, %arg1: memref<16x128xbf16, #tpu.memory_space<vmem>>, %arg2: memref<128x1024xbf16, #tpu.memory_space<vmem>>, %arg3: memref<1x1024xf32, #tpu.memory_space<vmem>>, %arg4: memref<1024x1024xbf16, #tpu.memory_space<vmem>>, %arg5: memref<1x1024xf32, #tpu.memory_space<vmem>>, %arg6: memref<1024x896xbf16, #tpu.memory_space<vmem>>, %arg7: memref<1x896xf32, #tpu.memory_space<vmem>>, %arg8: memref<16x896xf32, #tpu.memory_space<vmem>>) attributes {dimension_semantics = [#tpu.dimension_semantics<parallel>], iteration_bounds = array<i64: 1>, scalar_prefetch = 0 : i64, scratch_operands = 0 : i64, tpu.core_type = #tpu.core_type<tc>, window_params = [{transform_indices = @transform_0, window_bounds = array<i64: 16, 128>}, {pipeline_mode = #tpu.pipeline_mode<synchronous>, transform_indices = @transform_1, window_bounds = array<i64: 128, 1024>}, {pipeline_mode = #tpu.pipeline_mode<synchronous>, transform_indices = @transform_2, window_bounds = array<i64: 1, 1024>}, {pipeline_mode = #tpu.pipeline_mode<synchronous>, transform_indices = @transform_3, window_bounds = array<i64: 1024, 1024>}, {pipeline_mode = #tpu.pipeline_mode<synchronous>, transform_indices = @transform_4, window_bounds = array<i64: 1, 1024>}, {pipeline_mode = #tpu.pipeline_mode<synchronous>, transform_indices = @transform_5, window_bounds = array<i64: 1024, 896>}, {pipeline_mode = #tpu.pipeline_mode<synchronous>, transform_indices = @transform_6, window_bounds = array<i64: 1, 896>}, {transform_indices = @transform_7, window_bounds = array<i64: 16, 896>}]} {
    %c0 = arith.constant 0 : index
    %c0_0 = arith.constant 0 : index
    %0 = vector.load %arg1[%c0, %c0_0] : memref<16x128xbf16, #tpu.memory_space<vmem>>, vector<16x128xbf16>
    %c0_1 = arith.constant 0 : index
    %c0_2 = arith.constant 0 : index
    %1 = vector.load %arg2[%c0_1, %c0_2] : memref<128x1024xbf16, #tpu.memory_space<vmem>>, vector<128x1024xbf16>
    %cst = arith.constant dense<0.000000e+00> : vector<16x1024xf32>
    %2 = tpu.matmul %0, %1, %cst {dimension_numbers = #tpu.dot_dimension_numbers<[1], [0], [0], [1], [0, 0, 1, 1], [], []>} : vector<16x128xbf16>, vector<128x1024xbf16>, vector<16x1024xf32> -> vector<16x1024xf32>
    %c0_3 = arith.constant 0 : index
    %c0_4 = arith.constant 0 : index
    %3 = vector.load %arg3[%c0_3, %c0_4] : memref<1x1024xf32, #tpu.memory_space<vmem>>, vector<1x1024xf32>
    %4 = vector.broadcast %3 : vector<1x1024xf32> to vector<16x1024xf32>
    %5 = arith.addf %2, %4 : vector<16x1024xf32>
    %cst_5 = arith.constant 0.000000e+00 : f32
    %6 = vector.broadcast %cst_5 : f32 to vector<16x1024xf32>
    %7 = arith.maximumf %5, %6 : vector<16x1024xf32>
    %8 = arith.truncf %7 : vector<16x1024xf32> to vector<16x1024xbf16>
    %c0_6 = arith.constant 0 : index
    %c0_7 = arith.constant 0 : index
    %9 = vector.load %arg4[%c0_6, %c0_7] : memref<1024x1024xbf16, #tpu.memory_space<vmem>>, vector<1024x1024xbf16>
    %cst_8 = arith.constant dense<0.000000e+00> : vector<16x1024xf32>
    %10 = tpu.matmul %8, %9, %cst_8 {dimension_numbers = #tpu.dot_dimension_numbers<[1], [0], [0], [1], [0, 0, 1, 1], [], []>} : vector<16x1024xbf16>, vector<1024x1024xbf16>, vector<16x1024xf32> -> vector<16x1024xf32>
    %c0_9 = arith.constant 0 : index
    %c0_10 = arith.constant 0 : index
    %11 = vector.load %arg5[%c0_9, %c0_10] : memref<1x1024xf32, #tpu.memory_space<vmem>>, vector<1x1024xf32>
    %12 = vector.broadcast %11 : vector<1x1024xf32> to vector<16x1024xf32>
    %13 = arith.addf %10, %12 : vector<16x1024xf32>
    %cst_11 = arith.constant 0.000000e+00 : f32
    %14 = vector.broadcast %cst_11 : f32 to vector<16x1024xf32>
    %15 = arith.maximumf %13, %14 : vector<16x1024xf32>
    %16 = arith.truncf %15 : vector<16x1024xf32> to vector<16x1024xbf16>
    %c0_12 = arith.constant 0 : index
    %c0_13 = arith.constant 0 : index
    %17 = vector.load %arg6[%c0_12, %c0_13] : memref<1024x896xbf16, #tpu.memory_space<vmem>>, vector<1024x896xbf16>
    %cst_14 = arith.constant dense<0.000000e+00> : vector<16x896xf32>
    %18 = tpu.matmul %16, %17, %cst_14 {dimension_numbers = #tpu.dot_dimension_numbers<[1], [0], [0], [1], [0, 0, 1, 1], [], []>} : vector<16x1024xbf16>, vector<1024x896xbf16>, vector<16x896xf32> -> vector<16x896xf32>
    %c0_15 = arith.constant 0 : index
    %c0_16 = arith.constant 0 : index
    %19 = vector.load %arg7[%c0_15, %c0_16] : memref<1x896xf32, #tpu.memory_space<vmem>>, vector<1x896xf32>
    %20 = vector.broadcast %19 : vector<1x896xf32> to vector<16x896xf32>
    %21 = arith.addf %18, %20 : vector<16x896xf32>
    %22 = math.tanh %21 : vector<16x896xf32>
    %c0_17 = arith.constant 0 : index
    %c0_18 = arith.constant 0 : index
    %23 = vector.load %arg8[%c0_17, %c0_18] : memref<16x896xf32, #tpu.memory_space<vmem>>, vector<16x896xf32>
    tpu.vector_store %arg8[%c0_17, %c0_18], %22 {strides = array<i32>} : memref<16x896xf32, #tpu.memory_space<vmem>>, vector<16x896xf32>,
    return
  }
  func.func @transform_0(%arg0: i32) -> (i32, i32) {
    %c0_i32 = arith.constant 0 : i32
    %c0_i32_0 = arith.constant 0 : i32
    return %arg0, %c0_i32 : i32, i32
  }
  func.func @transform_1(%arg0: i32) -> (i32, i32) {
    %c0_i32 = arith.constant 0 : i32
    %c0_i32_0 = arith.constant 0 : i32
    %c0_i32_1 = arith.constant 0 : i32
    return %c0_i32, %c0_i32_0 : i32, i32
  }
  func.func @transform_2(%arg0: i32) -> (i32, i32) {
    %c0_i32 = arith.constant 0 : i32
    %c0_i32_0 = arith.constant 0 : i32
    %c0_i32_1 = arith.constant 0 : i32
    return %c0_i32, %c0_i32_0 : i32, i32
  }
  func.func @transform_3(%arg0: i32) -> (i32, i32) {
    %c0_i32 = arith.constant 0 : i32
    %c0_i32_0 = arith.constant 0 : i32
    %c0_i32_1 = arith.constant 0 : i32
    return %c0_i32, %c0_i32_0 : i32, i32
  }
  func.func @transform_4(%arg0: i32) -> (i32, i32) {
    %c0_i32 = arith.constant 0 : i32
    %c0_i32_0 = arith.constant 0 : i32
    %c0_i32_1 = arith.constant 0 : i32
    return %c0_i32, %c0_i32_0 : i32, i32
  }
  func.func @transform_5(%arg0: i32) -> (i32, i32) {
    %c0_i32 = arith.constant 0 : i32
    %c0_i32_0 = arith.constant 0 : i32
    %c0_i32_1 = arith.constant 0 : i32
    return %c0_i32, %c0_i32_0 : i32, i32
  }
  func.func @transform_6(%arg0: i32) -> (i32, i32) {
    %c0_i32 = arith.constant 0 : i32
    %c0_i32_0 = arith.constant 0 : i32
    %c0_i32_1 = arith.constant 0 : i32
    return %c0_i32, %c0_i32_0 : i32, i32
  }
  func.func @transform_7(%arg0: i32) -> (i32, i32) {
    %c0_i32 = arith.constant 0 : i32
    %c0_i32_0 = arith.constant 0 : i32
    return %arg0, %c0_i32 : i32, i32
  }
}

</mosaic_0001>

<bundles_post_ra>
// kernel: tpu_custom_call.1
= control target key start
LH: loop header
LB: loop body
LE: loop exit
PB: predicated region body
PF: predicated region fallthrough
CT: control target
= control target key end

     0   :  { %12 = vsyncpa [#allocation3], 0  ;;  %s14275_s0 = inlined_call_operand.hbm [shape: bf16[16,128], index: 0, kind: input, shape index: {}]   ;;  %s14276_s1 = inlined_call_operand.hbm [shape: bf16[128,1024], index: 1, kind: input, shape index: {}]   ;;  %s14277_s2 = inlined_call_operand.hbm [shape: f32[1,1024], index: 2, kind: input, shape index: {}]   ;;  %s14278_s3 = inlined_call_operand.hbm [shape: bf16[1024,1024], index: 3, kind: input, shape index: {}]   ;;  %s14279_s4 = inlined_call_operand.hbm [shape: f32[1,1024], index: 4, kind: input, shape index: {}]   ;;  %s14280_s5 = inlined_call_operand.hbm [shape: bf16[1024,896], index: 5, kind: input, shape index: {}]   ;;  %s14281_s6 = inlined_call_operand.hbm [shape: f32[1,896], index: 6, kind: input, shape index: {}]   ;;  %s14282_s7 = inlined_call_operand.hbm [shape: f32[16,896], index: 7, kind: output, shape index: {}]  }
   0x1   :  { %13 = vsyncpa [#allocation6], 0 }
   0x2   :  { %14 = vsyncpa [#allocation9], 0 }
   0x3   :  { %15 = vsyncpa [#allocation12], 0  ;;  %s34_s26 = sshll.u32 %s14276_s1, 4  ;;  %s35_s26 = int_to_ptr.hbm [resolvable:$true] %s34_s26 }
   0x4   :  { %16 = vsyncpa [#allocation4], 0  ;;  %s13726_s27 = smov [#allocation5]   ;;  %s58_s8 = sshll.u32 %s14278_s3, 4  ;;  %s59_s8 = int_to_ptr.hbm [resolvable:$true] %s58_s8 }
   0x5   :  { %s36_s28 = sshll.u32 %s13726_s27, 4  ;;  %s13727_s9 = smov 512   ;;  %s37_s28 = int_to_ptr.vmem [resolvable:$true] %s36_s28 }
   0x6   :  { %s13728_s10 = smov 32   ;;  %s13729_s11 = smov [#allocation8]  }
   0x7   :  { %42 = dma.hbm_to_vmem [thread:$0]  %s35_s26, 8192, %s37_s28, [#allocation6], %s13727_s9, %s13727_s9, %s13728_s10  }
   0x8   :  { %s60_s12 = sshll.u32 %s13729_s11, 4  ;;  %s82_s15 = sshll.u32 %s14280_s5, 4  ;;  %s61_s12 = int_to_ptr.vmem [resolvable:$true] %s60_s12  ;;  %s83_s15 = int_to_ptr.hbm [resolvable:$true] %s82_s15 }
   0x9   :  { %66 = dma.hbm_to_vmem [thread:$0]  %s59_s8, 65536, %s61_s12, [#allocation9], %s13727_s9, %s13727_s9, %s13728_s10  }
   0xa   :  { %s13730_s1 = smov [#allocation11]   ;;  %s21_s3 = sshll.u32 %s14275_s0, 4  ;;  %s22_s3 = int_to_ptr.hbm [resolvable:$true] %s21_s3 }
   0xb   :  { %s84_s16 = sshll.u32 %s13730_s1, 4  ;;  %s13731_s19 = smov 448   ;;  %s85_s16 = int_to_ptr.vmem [resolvable:$true] %s84_s16 }
   0xc   :  { %s13732_s20 = smov 28   ;;  %s13733_s21 = smov [#allocation2]  }
   0xd   :  { %90 = dma.hbm_to_vmem [thread:$0]  %s83_s15, 57344, %s85_s16, [#allocation12], %s13731_s19, %s13731_s19, %s13732_s20  }
   0xe   :  { %s23_s22 = sshll.u32 %s13733_s21, 4  ;;  %s13734_s23 = smov 64   ;;  %s24_s22 = int_to_ptr.vmem [resolvable:$true] %s23_s22 }
   0xf   :  { %s13735_s24 = smov 4   ;;  %s48_s26 = sshll.u32 %s14277_s2, 4  ;;  %s49_s26 = int_to_ptr.hbm [resolvable:$true] %s48_s26 }
  0x10   :  { %29 = dma.hbm_to_vmem [thread:$0]  %s22_s3, 128, %s24_s22, [#allocation3], %s13734_s23, %s13734_s23, %s13735_s24  }
  0x11   :  { %s13736_s27 = smov [#allocation7]   ;;  %s72_s30 = sshll.u32 %s14279_s4, 4  ;;  %s73_s30 = int_to_ptr.hbm [resolvable:$true] %s72_s30 }
  0x12   :  { %s50_s28 = sshll.u32 %s13736_s27, 4  ;;  %s13737_s8 = smov [#allocation10]   ;;  %s51_s28 = int_to_ptr.vmem [resolvable:$true] %s50_s28 }
  0x13   :  { %53 = dma.hbm_to_vmem [thread:$0]  %s49_s26, 128, %s51_s28, [#allocation6]  }
  0x14   :  { %s74_s9 = sshll.u32 %s13737_s8, 4  ;;  %s96_s12 = sshll.u32 %s14281_s6, 4  ;;  %s75_s9 = int_to_ptr.vmem [resolvable:$true] %s74_s9  ;;  %s97_s12 = int_to_ptr.hbm [resolvable:$true] %s96_s12 }
  0x15   :  { %77 = dma.hbm_to_vmem [thread:$0]  %s73_s30, 128, %s75_s9, [#allocation9]  }
  0x16   :  { %s13738_s2 = smov [#allocation13]  }
  0x17   :  { %s98_s13 = sshll.u32 %s13738_s2, 4  ;;  %s99_s13 = int_to_ptr.vmem [resolvable:$true] %s98_s13 }
  0x18   :  { %101 = dma.hbm_to_vmem [thread:$0]  %s97_s12, 112, %s99_s13, [#allocation12]  }
  0x19   :  { %13716 = dma.done.wait [#allocation3], 128  }
  0x1a   :  { %13717 = vsyncadd [#allocation3], 4294967168 }
  0x1b   :  { %13718 = dma.done.wait [#allocation6], 8320  }
  0x1c   :  { %13719 = vsyncadd [#allocation6], 4294958976 }
  0x1d   :  { %13720 = dma.done.wait [#allocation9], 65664  }
  0x1e   :  { %13721 = vsyncadd [#allocation9], 4294901632 }
  0x1f   :  { %13722 = dma.done.wait [#allocation12], 57456  }
  0x20   :  { %13723 = vsyncadd [#allocation12], 4294909840  ;;  %v8582_v0 = vld [vmem:[#allocation5 + $0x1c0] sm:$0xf]  ;;  %v12509_v2 = vld [vmem:[#allocation5 + $0x1c4] sm:$0xf] }
  0x21   :  { %v12513_v1 = vld [vmem:[#allocation5 + $0x1dc] sm:$0xf0]  ;;  %v8584_v4 = vld [vmem:[#allocation5 + $0x1e0] sm:$0xf0]  ;;  %v8590_v5 = vld [vmem:[#allocation5 + $0x1c8] sm:$0xf] }
  0x22   :  { %v8583_v3 = vor.u32 %v12513_v1, %v8582_v0  ;;  %v12514_v6 = vld [vmem:[#allocation5 + $0x1e4] sm:$0xf0]  ;;  %v8587_v7 = vor.u32 %v12509_v2, %v8584_v4  ;;  %v12510_v9 = vld [vmem:[#allocation5 + $0x1cc] sm:$0xf]  ;;  %v8550_v11 = vld [vmem:[#allocation5 + $0x180] sm:$0xf] }
  0x23   :  { %v8591_v8 = vor.u32 %v12514_v6, %v8590_v5  ;;  %v8592_v10 = vld [vmem:[#allocation5 + $0x1e8] sm:$0xf0]  ;;  %v12505_v13 = vld [vmem:[#allocation5 + $0x19c] sm:$0xf0]  ;;  %v12501_v14 = vld [vmem:[#allocation5 + $0x184] sm:$0xf] }
  0x24   :  { %540 = vmatpush.bf16.msra.mxu0 %v8583_v3  ;;  %v8595_v12 = vor.u32 %v12510_v9, %v8592_v10  ;;  %v8552_v15 = vld [vmem:[#allocation5 + $0x1a0] sm:$0xf0]  ;;  %554 = vmatpush.bf16.msra.mxu1 %v8587_v7  ;;  %v8551_v16 = vor.u32 %v12505_v13, %v8550_v11  ;;  %v8558_v18 = vld [vmem:[#allocation5 + $0x188] sm:$0xf]  ;;  %v12502_v20 = vld [vmem:[#allocation5 + $0x18c] sm:$0xf] }
  0x25   :  { %568 = vmatpush.bf16.msra.mxu2 %v8591_v8  ;;  %v8555_v17 = vor.u32 %v12501_v14, %v8552_v15  ;;  %v12506_v19 = vld [vmem:[#allocation5 + $0x1a4] sm:$0xf0]  ;;  %v8560_v22 = vld [vmem:[#allocation5 + $0x1a8] sm:$0xf0]  ;;  %v8518_v23 = vld [vmem:[#allocation5 + $0x140] sm:$0xf] }
  0x26   :  { %582 = vmatpush.bf16.msra.mxu3 %v8595_v12  ;;  %v8559_v21 = vor.u32 %v12506_v19, %v8558_v18  ;;  %v12497_v24 = vld [vmem:[#allocation5 + $0x15c] sm:$0xf0]  ;;  %v8563_v25 = vor.u32 %v12502_v20, %v8560_v22  ;;  %v12493_v26 = vld [vmem:[#allocation5 + $0x144] sm:$0xf]  ;;  %v8526_v28 = vld [vmem:[#allocation5 + $0x148] sm:$0xf] }
  0x27   :  { %v8520_v27 = vld [vmem:[#allocation5 + $0x160] sm:$0xf0]  ;;  %v8519_v29 = vor.u32 %v12497_v24, %v8518_v23  ;;  %v12498_v30 = vld [vmem:[#allocation5 + $0x164] sm:$0xf0]  ;;  %v12494_v31 = vld [vmem:[#allocation5 + $0x14c] sm:$0xf] }
  0x28   :  { %541 = vmatpush.bf16.msra.mxu0 %v8551_v16  ;;  %v8528_v32 = vld [vmem:[#allocation5 + $0x168] sm:$0xf0]  ;;  %555 = vmatpush.bf16.msra.mxu1 %v8555_v17  ;;  %v8523_v33 = vor.u32 %v12493_v26, %v8520_v27  ;;  %v8527_v34 = vor.u32 %v12498_v30, %v8526_v28  ;;  %v8486_v35 = vld [vmem:[#allocation5 + $0x100] sm:$0xf]  ;;  %v12485_v37 = vld [vmem:[#allocation5 + $0x104] sm:$0xf] }
  0x29   :  { %569 = vmatpush.bf16.msra.mxu2 %v8559_v21  ;;  %v12489_v36 = vld [vmem:[#allocation5 + $0x11c] sm:$0xf0]  ;;  %v8531_v38 = vor.u32 %v12494_v31, %v8528_v32  ;;  %v8488_v39 = vld [vmem:[#allocation5 + $0x120] sm:$0xf0]  ;;  %v8494_v40 = vld [vmem:[#allocation5 + $0x108] sm:$0xf] }
  0x2a   :  { %583 = vmatpush.bf16.msra.mxu3 %v8563_v25  ;;  %v12490_v41 = vld [vmem:[#allocation5 + $0x124] sm:$0xf0]  ;;  %v12486_v42 = vld [vmem:[#allocation5 + $0x10c] sm:$0xf]  ;;  %v8487_v44 = vor.u32 %v12489_v36, %v8486_v35  ;;  %v8491_v45 = vor.u32 %v12485_v37, %v8488_v39  ;;  %v8454_v47 = vld [vmem:[#allocation5 + $0xc0] sm:$0xf] }
  0x2b   :  { %v8496_v43 = vld [vmem:[#allocation5 + $0x128] sm:$0xf0]  ;;  %v8495_v46 = vor.u32 %v12490_v41, %v8494_v40  ;;  %v12481_v48 = vld [vmem:[#allocation5 + $0xdc] sm:$0xf0]  ;;  %v12477_v49 = vld [vmem:[#allocation5 + $0xc4] sm:$0xf] }
  0x2c   :  { %542 = vmatpush.bf16.msra.mxu0 %v8519_v29  ;;  %556 = vmatpush.bf16.msra.mxu1 %v8523_v33  ;;  %v8499_v50 = vor.u32 %v12486_v42, %v8496_v43  ;;  %v8456_v51 = vld [vmem:[#allocation5 + $0xe0] sm:$0xf0]  ;;  %v8462_v52 = vld [vmem:[#allocation5 + $0xc8] sm:$0xf]  ;;  %v12478_v54 = vld [vmem:[#allocation5 + $0xcc] sm:$0xf]  ;;  %v8455_v56 = vor.u32 %v12481_v48, %v8454_v47 }
  0x2d   :  { %570 = vmatpush.bf16.msra.mxu2 %v8527_v34  ;;  %v12482_v53 = vld [vmem:[#allocation5 + $0xe4] sm:$0xf0]  ;;  %v8464_v55 = vld [vmem:[#allocation5 + $0xe8] sm:$0xf0]  ;;  %v8459_v57 = vor.u32 %v12477_v49, %v8456_v51  ;;  %v8422_v59 = vld [vmem:[#allocation5 + $0x80] sm:$0xf] }
  0x2e   :  { %584 = vmatpush.bf16.msra.mxu3 %v8531_v38  ;;  %v8463_v58 = vor.u32 %v12482_v53, %v8462_v52  ;;  %v12473_v60 = vld [vmem:[#allocation5 + $0x9c] sm:$0xf0]  ;;  %v12469_v61 = vld [vmem:[#allocation5 + $0x84] sm:$0xf]  ;;  %v8467_v62 = vor.u32 %v12478_v54, %v8464_v55  ;;  %v8430_v0 = vld [vmem:[#allocation5 + $0x88] sm:$0xf] }
  0x2f   :  { %v8424_v63 = vld [vmem:[#allocation5 + $0xa0] sm:$0xf0]  ;;  %v12474_v1 = vld [vmem:[#allocation5 + $0xa4] sm:$0xf0]  ;;  %v12470_v2 = vld [vmem:[#allocation5 + $0x8c] sm:$0xf]  ;;  %v8423_v4 = vor.u32 %v12473_v60, %v8422_v59 }
  0x30   :  { %543 = vmatpush.bf16.msra.mxu0 %v8487_v44  ;;  %557 = vmatpush.bf16.msra.mxu1 %v8491_v45  ;;  %v8432_v3 = vld [vmem:[#allocation5 + $0xa8] sm:$0xf0]  ;;  %v8427_v5 = vor.u32 %v12469_v61, %v8424_v63  ;;  %v8431_v6 = vor.u32 %v12474_v1, %v8430_v0  ;;  %v8390_v7 = vld [vmem:[#allocation5 + $0x40] sm:$0xf]  ;;  %v12461_v9 = vld [vmem:[#allocation5 + $0x44] sm:$0xf] }
  0x31   :  { %571 = vmatpush.bf16.msra.mxu2 %v8495_v46  ;;  %v12465_v8 = vld [vmem:[#allocation5 + $0x5c] sm:$0xf0]  ;;  %v8435_v10 = vor.u32 %v12470_v2, %v8432_v3  ;;  %v8392_v11 = vld [vmem:[#allocation5 + $0x60] sm:$0xf0]  ;;  %v8398_v12 = vld [vmem:[#allocation5 + $0x48] sm:$0xf] }
  0x32   :  { %585 = vmatpush.bf16.msra.mxu3 %v8499_v50  ;;  %v12466_v13 = vld [vmem:[#allocation5 + $0x64] sm:$0xf0]  ;;  %v12462_v14 = vld [vmem:[#allocation5 + $0x4c] sm:$0xf]  ;;  %v8391_v16 = vor.u32 %v12465_v8, %v8390_v7  ;;  %v8358_v17 = vld [vmem:[#allocation5] sm:$0xf]  ;;  %v8395_v19 = vor.u32 %v12461_v9, %v8392_v11 }
  0x33   :  { %v8400_v15 = vld [vmem:[#allocation5 + $0x68] sm:$0xf0]  ;;  %v12457_v18 = vld [vmem:[#allocation5 + $0x1c] sm:$0xf0]  ;;  %v8399_v20 = vor.u32 %v12466_v13, %v8398_v12  ;;  %v12453_v21 = vld [vmem:[#allocation5 + $0x4] sm:$0xf] }
  0x34   :  { %544 = vmatpush.bf16.msra.mxu0 %v8455_v56  ;;  %558 = vmatpush.bf16.msra.mxu1 %v8459_v57  ;;  %v8360_v22 = vld [vmem:[#allocation5 + $0x20] sm:$0xf0]  ;;  %v8366_v23 = vld [vmem:[#allocation5 + $0x8] sm:$0xf]  ;;  %v8403_v24 = vor.u32 %v12462_v14, %v8400_v15  ;;  %v12454_v26 = vld [vmem:[#allocation5 + $0xc] sm:$0xf]  ;;  %v8359_v31 = vor.u32 %v12457_v18, %v8358_v17 }
  0x35   :  { %572 = vmatpush.bf16.msra.mxu2 %v8463_v58  ;;  %v12458_v25 = vld [vmem:[#allocation5 + $0x24] sm:$0xf0]  ;;  %v8368_v27 = vld [vmem:[#allocation5 + $0x28] sm:$0xf0]  ;;  %v8598_v28 = vld [vmem:[#allocation5 + $0x1d0] sm:$0xf]  ;;  %v8363_v35 = vor.u32 %v12453_v21, %v8360_v22 }
  0x36   :  { %586 = vmatpush.bf16.msra.mxu3 %v8467_v62  ;;  %v12515_v29 = vld [vmem:[#allocation5 + $0x1ec] sm:$0xf0]  ;;  %v12511_v30 = vld [vmem:[#allocation5 + $0x1d4] sm:$0xf]  ;;  %v8606_v33 = vld [vmem:[#allocation5 + $0x1d8] sm:$0xf]  ;;  %v8367_v36 = vor.u32 %v12458_v25, %v8366_v23  ;;  %v8371_v39 = vor.u32 %v12454_v26, %v8368_v27 }
  0x37   :  { %v8600_v32 = vld [vmem:[#allocation5 + $0x1f0] sm:$0xf0]  ;;  %v12516_v34 = vld [vmem:[#allocation5 + $0x1f4] sm:$0xf0]  ;;  %v12512_v37 = vld [vmem:[#allocation5 + $0x1dc] sm:$0xf]  ;;  %v8599_v40 = vor.u32 %v12515_v29, %v8598_v28 }
  0x38   :  { %545 = vmatpush.bf16.msra.mxu0 %v8423_v4  ;;  %559 = vmatpush.bf16.msra.mxu1 %v8427_v5  ;;  %v8608_v38 = vld [vmem:[#allocation5 + $0x1f8] sm:$0xf0]  ;;  %v8603_v42 = vor.u32 %v12511_v30, %v8600_v32  ;;  %v8607_v43 = vor.u32 %v12516_v34, %v8606_v33  ;;  %v8566_v44 = vld [vmem:[#allocation5 + $0x190] sm:$0xf]  ;;  %v12503_v46 = vld [vmem:[#allocation5 + $0x194] sm:$0xf] }
  0x39   :  { %573 = vmatpush.bf16.msra.mxu2 %v8431_v6  ;;  %v13803_v41 = vld [vmem:[#allocation2] sm:$0xff]  ;;  %v12507_v45 = vld [vmem:[#allocation5 + $0x1ac] sm:$0xf0]  ;;  %v8611_v47 = vor.u32 %v12512_v37, %v8608_v38  ;;  %v8568_v48 = vld [vmem:[#allocation5 + $0x1b0] sm:$0xf0]  ;;  %s13739_s4 = smov [#allocation14]  }
  0x3a   :  { %587 = vmatpush.bf16.msra.mxu3 %v8435_v10  ;;  %v8574_v49 = vld [vmem:[#allocation5 + $0x198] sm:$0xf]  ;;  %v12504_v51 = vld [vmem:[#allocation5 + $0x19c] sm:$0xf]  ;;  %v8567_v53 = vor.u32 %v12507_v45, %v8566_v44  ;;  %v8571_v54 = vor.u32 %v12503_v46, %v8568_v48  ;;  %v8534_v56 = vld [vmem:[#allocation5 + $0x150] sm:$0xf] }
  0x3b   :  { %v12508_v50 = vld [vmem:[#allocation5 + $0x1b4] sm:$0xf0]  ;;  %v8576_v52 = vld [vmem:[#allocation5 + $0x1b8] sm:$0xf0]  ;;  %v12499_v57 = vld [vmem:[#allocation5 + $0x16c] sm:$0xf0] }
  0x3c   :  { %546 = vmatpush.bf16.msra.mxu0 %v8391_v16  ;;  %560 = vmatpush.bf16.msra.mxu1 %v8395_v19  ;;  %v8575_v55 = vor.u32 %v12508_v50, %v8574_v49  ;;  %v12495_v58 = vld [vmem:[#allocation5 + $0x154] sm:$0xf]  ;;  %v8579_v59 = vor.u32 %v12504_v51, %v8576_v52  ;;  %v8542_v61 = vld [vmem:[#allocation5 + $0x158] sm:$0xf]  ;;  %v12496_v63 = vld [vmem:[#allocation5 + $0x15c] sm:$0xf]  ;;  %v8535_v1 = vor.u32 %v12499_v57, %v8534_v56 }
  0x3d   :  { %574 = vmatpush.bf16.msra.mxu2 %v8399_v20  ;;  %v8536_v60 = vld [vmem:[#allocation5 + $0x170] sm:$0xf0]  ;;  %v12500_v62 = vld [vmem:[#allocation5 + $0x174] sm:$0xf0]  ;;  %v8544_v0 = vld [vmem:[#allocation5 + $0x178] sm:$0xf0] }
  0x3e   :  { %588 = vmatpush.bf16.msra.mxu3 %v8403_v24  ;;  %v8539_v2 = vor.u32 %v12495_v58, %v8536_v60  ;;  %v8543_v3 = vor.u32 %v12500_v62, %v8542_v61  ;;  %v8502_v4 = vld [vmem:[#allocation5 + $0x110] sm:$0xf]  ;;  %v12487_v6 = vld [vmem:[#allocation5 + $0x114] sm:$0xf]  ;;  %v8547_v7 = vor.u32 %v12496_v63, %v8544_v0  ;;  %v8510_v9 = vld [vmem:[#allocation5 + $0x118] sm:$0xf] }
  0x3f   :  { %v12491_v5 = vld [vmem:[#allocation5 + $0x12c] sm:$0xf0]  ;;  %v8504_v8 = vld [vmem:[#allocation5 + $0x130] sm:$0xf0]  ;;  %v12492_v10 = vld [vmem:[#allocation5 + $0x134] sm:$0xf0] }
  0x40   :  { %547 = vmatpush.bf16.msra.mxu0 %v8359_v31  ;;  %561 = vmatpush.bf16.msra.mxu1 %v8363_v35  ;;  %v12488_v11 = vld [vmem:[#allocation5 + $0x11c] sm:$0xf]  ;;  %v8503_v13 = vor.u32 %v12491_v5, %v8502_v4  ;;  %v8507_v14 = vor.u32 %v12487_v6, %v8504_v8  ;;  %v8511_v15 = vor.u32 %v12492_v10, %v8510_v9  ;;  %v8470_v16 = vld [vmem:[#allocation5 + $0xd0] sm:$0xf]  ;;  %v12479_v18 = vld [vmem:[#allocation5 + $0xd4] sm:$0xf] }
  0x41   :  { %575 = vmatpush.bf16.msra.mxu2 %v8367_v36  ;;  %v8512_v12 = vld [vmem:[#allocation5 + $0x138] sm:$0xf0]  ;;  %v12483_v17 = vld [vmem:[#allocation5 + $0xec] sm:$0xf0]  ;;  %v8472_v20 = vld [vmem:[#allocation5 + $0xf0] sm:$0xf0] }
  0x42   :  { %589 = vmatpush.bf16.msra.mxu3 %v8371_v39  ;;  %v8515_v19 = vor.u32 %v12488_v11, %v8512_v12  ;;  %v8478_v21 = vld [vmem:[#allocation5 + $0xd8] sm:$0xf]  ;;  %v12480_v23 = vld [vmem:[#allocation5 + $0xdc] sm:$0xf]  ;;  %v8471_v25 = vor.u32 %v12483_v17, %v8470_v16  ;;  %v8475_v26 = vor.u32 %v12479_v18, %v8472_v20  ;;  %v8438_v28 = vld [vmem:[#allocation5 + $0x90] sm:$0xf] }
  0x43   :  { %548 = vmatmul.bf16.vlgmr.msra.gmra.mxu0 %v13803_v41  ;;  %562 = vmatmul.bf16.vlgmr.msra.gmra.mxu1 %v13803_v41  ;;  %v12484_v22 = vld [vmem:[#allocation5 + $0xf4] sm:$0xf0]  ;;  %v8480_v24 = vld [vmem:[#allocation5 + $0xf8] sm:$0xf0]  ;;  %v12475_v29 = vld [vmem:[#allocation5 + $0xac] sm:$0xf0] }
  0x44   :  { %596 = vmatpush.bf16.msrb.mxu0 %v8599_v40  ;;  %610 = vmatpush.bf16.msrb.mxu1 %v8603_v42  ;;  %v8479_v27 = vor.u32 %v12484_v22, %v8478_v21  ;;  %v12471_v30 = vld [vmem:[#allocation5 + $0x94] sm:$0xf]  ;;  %v8483_v31 = vor.u32 %v12480_v23, %v8480_v24  ;;  %v8446_v33 = vld [vmem:[#allocation5 + $0x98] sm:$0xf]  ;;  %v12472_v35 = vld [vmem:[#allocation5 + $0x9c] sm:$0xf]  ;;  %v8439_v37 = vor.u32 %v12475_v29, %v8438_v28 }
  0x45   :  { %624 = vmatpush.bf16.msrb.mxu2 %v8607_v43  ;;  %590 = vmatmul.bf16.vlgmr.msra.gmra.mxu3 %v13803_v41  ;;  %v8440_v32 = vld [vmem:[#allocation5 + $0xb0] sm:$0xf0]  ;;  %v12476_v34 = vld [vmem:[#allocation5 + $0xb4] sm:$0xf0]  ;;  %v8448_v36 = vld [vmem:[#allocation5 + $0xb8] sm:$0xf0] }
  0x46   :  { %638 = vmatpush.bf16.msrb.mxu3 %v8611_v47  ;;  %576 = vmatmul.bf16.vlgmr.msra.gmra.mxu2 %v13803_v41  ;;  %v8443_v38 = vor.u32 %v12471_v30, %v8440_v32  ;;  %v8447_v39 = vor.u32 %v12476_v34, %v8446_v33  ;;  %v8406_v40 = vld [vmem:[#allocation5 + $0x50] sm:$0xf]  ;;  %v12463_v43 = vld [vmem:[#allocation5 + $0x54] sm:$0xf]  ;;  %v8451_v44 = vor.u32 %v12472_v35, %v8448_v36  ;;  %v8414_v46 = vld [vmem:[#allocation5 + $0x58] sm:$0xf] }
  0x47   :  { %v12467_v42 = vld [vmem:[#allocation5 + $0x6c] sm:$0xf0]  ;;  %v8408_v45 = vld [vmem:[#allocation5 + $0x70] sm:$0xf0]  ;;  %v12468_v47 = vld [vmem:[#allocation5 + $0x74] sm:$0xf0] }
  0x48   :  { %597 = vmatpush.bf16.msrb.mxu0 %v8567_v53  ;;  %611 = vmatpush.bf16.msrb.mxu1 %v8571_v54  ;;  %v12464_v48 = vld [vmem:[#allocation5 + $0x5c] sm:$0xf]  ;;  %v8407_v50 = vor.u32 %v12467_v42, %v8406_v40  ;;  %v8374_v51 = vld [vmem:[#allocation5 + $0x10] sm:$0xf]  ;;  %v8411_v52 = vor.u32 %v12463_v43, %v8408_v45  ;;  %v8415_v53 = vor.u32 %v12468_v47, %v8414_v46  ;;  %v8376_v56 = vld [vmem:[#allocation5 + $0x30] sm:$0xf0] }
  0x49   :  { %625 = vmatpush.bf16.msrb.mxu2 %v8575_v55  ;;  %v8416_v49 = vld [vmem:[#allocation5 + $0x78] sm:$0xf0]  ;;  %v12459_v54 = vld [vmem:[#allocation5 + $0x2c] sm:$0xf0]  ;;  %v12455_v55 = vld [vmem:[#allocation5 + $0x14] sm:$0xf] }
  0x4a   :  { %639 = vmatpush.bf16.msrb.mxu3 %v8579_v59  ;;  %v8419_v57 = vor.u32 %v12464_v48, %v8416_v49  ;;  %v8382_v58 = vld [vmem:[#allocation5 + $0x18] sm:$0xf]  ;;  %v12456_v60 = vld [vmem:[#allocation5 + $0x1c] sm:$0xf]  ;;  %v8838_v62 = vld [vmem:[#allocation8 + $0x1c0] sm:$0xf]  ;;  %v8375_v0 = vor.u32 %v12459_v54, %v8374_v51 }
  0x4b   :  { %v12460_v59 = vld [vmem:[#allocation5 + $0x34] sm:$0xf0]  ;;  %v8384_v61 = vld [vmem:[#allocation5 + $0x38] sm:$0xf0]  ;;  %v12577_v63 = vld [vmem:[#allocation8 + $0x1dc] sm:$0xf0] }
  0x4c   :  { %598 = vmatpush.bf16.msrb.mxu0 %v8535_v1  ;;  %612 = vmatpush.bf16.msrb.mxu1 %v8539_v2  ;;  %v9094_v1 = vld [vmem:[#allocation8 + $0x3c0] sm:$0xf]  ;;  %v8383_v4 = vor.u32 %v12460_v59, %v8382_v58  ;;  %v8387_v5 = vor.u32 %v12456_v60, %v8384_v61  ;;  %v8839_v6 = vor.u32 %v12577_v63, %v8838_v62  ;;  %s8334_s6 = sshll.u32 %s13739_s4, 4  ;;  %s8336_s1 = sshll.u32 %s14282_s7, 4  ;;  %s8335_s6 = int_to_ptr.vmem [resolvable:$true] %s8334_s6  ;;  %s8337_s1 = int_to_ptr.hbm [resolvable:$true] %s8336_s1 }
  0x4d   :  { %626 = vmatpush.bf16.msrb.mxu2 %v8543_v3  ;;  %v12641_v2 = vld [vmem:[#allocation8 + $0x3dc] sm:$0xf0]  ;;  %v8379_v3 = vor.u32 %v12455_v55, %v8376_v56  ;;  %s13740_s16 = smov 896   ;;  %s13741_s17 = smov 56  }
  0x4e   :  { %640 = vmatpush.bf16.msrb.mxu3 %v8547_v7  ;;  %v8806_v7 = vld [vmem:[#allocation8 + $0x180] sm:$0xf]  ;;  %v9095_v10 = vor.u32 %v12641_v2, %v9094_v1 }
  0x4f   :  { %v9350_v8 = vld [vmem:[#allocation8 + $0x5c0] sm:$0xf] }
  0x50   :  { %599 = vmatpush.bf16.msrb.mxu0 %v8503_v13  ;;  %613 = vmatpush.bf16.msrb.mxu1 %v8507_v14  ;;  %v12705_v9 = vld [vmem:[#allocation8 + $0x5dc] sm:$0xf0] }
  0x51   :  { %627 = vmatpush.bf16.msrb.mxu2 %v8511_v15  ;;  %v12569_v11 = vld [vmem:[#allocation8 + $0x19c] sm:$0xf0]  ;;  %v9351_v16 = vor.u32 %v12705_v9, %v9350_v8 }
  0x52   :  { %641 = vmatpush.bf16.msrb.mxu3 %v8515_v19  ;;  %v9606_v12 = vld [vmem:[#allocation8 + $0x7c0] sm:$0xf]  ;;  %v8807_v17 = vor.u32 %v12569_v11, %v8806_v7 }
  0x53   :  { %v12769_v13 = vld [vmem:[#allocation8 + $0x7dc] sm:$0xf0] }
  0x54   :  { %600 = vmatpush.bf16.msrb.mxu0 %v8471_v25  ;;  %614 = vmatpush.bf16.msrb.mxu1 %v8475_v26  ;;  %v9062_v14 = vld [vmem:[#allocation8 + $0x380] sm:$0xf]  ;;  %v9607_v18 = vor.u32 %v12769_v13, %v9606_v12 }
  0x55   :  { %628 = vmatpush.bf16.msrb.mxu2 %v8479_v27  ;;  %v12633_v15 = vld [vmem:[#allocation8 + $0x39c] sm:$0xf0] }
  0x56   :  { %642 = vmatpush.bf16.msrb.mxu3 %v8483_v31  ;;  %v8774_v19 = vld [vmem:[#allocation8 + $0x140] sm:$0xf]  ;;  %v9063_v22 = vor.u32 %v12633_v15, %v9062_v14 }
  0x57   :  { %v9318_v20 = vld [vmem:[#allocation8 + $0x580] sm:$0xf] }
  0x58   :  { %601 = vmatpush.bf16.msrb.mxu0 %v8439_v37  ;;  %615 = vmatpush.bf16.msrb.mxu1 %v8443_v38  ;;  %v12697_v21 = vld [vmem:[#allocation8 + $0x59c] sm:$0xf0] }
  0x59   :  { %629 = vmatpush.bf16.msrb.mxu2 %v8447_v39  ;;  %v12561_v23 = vld [vmem:[#allocation8 + $0x15c] sm:$0xf0]  ;;  %v9319_v28 = vor.u32 %v12697_v21, %v9318_v20 }
  0x5a   :  { %643 = vmatpush.bf16.msrb.mxu3 %v8451_v44  ;;  %v9574_v24 = vld [vmem:[#allocation8 + $0x780] sm:$0xf]  ;;  %v8775_v29 = vor.u32 %v12561_v23, %v8774_v19 }
  0x5b   :  { %v12761_v25 = vld [vmem:[#allocation8 + $0x79c] sm:$0xf0] }
  0x5c   :  { %602 = vmatpush.bf16.msrb.mxu0 %v8407_v50  ;;  %616 = vmatpush.bf16.msrb.mxu1 %v8411_v52  ;;  %v9030_v26 = vld [vmem:[#allocation8 + $0x340] sm:$0xf]  ;;  %v9575_v30 = vor.u32 %v12761_v25, %v9574_v24 }
  0x5d   :  { %630 = vmatpush.bf16.msrb.mxu2 %v8415_v53  ;;  %v12625_v27 = vld [vmem:[#allocation8 + $0x35c] sm:$0xf0] }
  0x5e   :  { %644 = vmatpush.bf16.msrb.mxu3 %v8419_v57  ;;  %v8742_v31 = vld [vmem:[#allocation8 + $0x100] sm:$0xf]  ;;  %v9031_v34 = vor.u32 %v12625_v27, %v9030_v26 }
  0x5f   :  { %v9286_v32 = vld [vmem:[#allocation8 + $0x540] sm:$0xf] }
  0x60   :  { %603 = vmatpush.bf16.msrb.mxu0 %v8375_v0  ;;  %617 = vmatpush.bf16.msrb.mxu1 %v8379_v3  ;;  %v12689_v33 = vld [vmem:[#allocation8 + $0x55c] sm:$0xf0] }
  0x61   :  { %631 = vmatpush.bf16.msrb.mxu2 %v8383_v4  ;;  %v12553_v35 = vld [vmem:[#allocation8 + $0x11c] sm:$0xf0]  ;;  %v9287_v40 = vor.u32 %v12689_v33, %v9286_v32 }
  0x62   :  { %645 = vmatpush.bf16.msrb.mxu3 %v8387_v5  ;;  %v9542_v36 = vld [vmem:[#allocation8 + $0x740] sm:$0xf] }
  0x63   :  { %604 = vmatmul.bf16.vlgmr.msrb.gmra.mxu0 %v13803_v41  ;;  %618 = vmatmul.bf16.vlgmr.msrb.gmra.mxu1 %v13803_v41  ;;  %v12753_v37 = vld [vmem:[#allocation8 + $0x75c] sm:$0xf0] }
  0x64   :  { %3766 = vmatpush.bf16.msra.mxu0 %v8839_v6  ;;  %3780 = vmatpush.bf16.msra.mxu1 %v9095_v10  ;;  %v8998_v38 = vld [vmem:[#allocation8 + $0x300] sm:$0xf]  ;;  %v9543_v42 = vor.u32 %v12753_v37, %v9542_v36 }
  0x65   :  { %632 = vmatmul.bf16.vlgmr.msrb.gmra.mxu2 %v13803_v41  ;;  %646 = vmatmul.bf16.vlgmr.msrb.gmra.mxu3 %v13803_v41  ;;  %v12617_v39 = vld [vmem:[#allocation8 + $0x31c] sm:$0xf0]  ;;  %v8743_v41 = vor.u32 %v12553_v35, %v8742_v31 }
  0x66   :  { %3794 = vmatpush.bf16.msra.mxu2 %v9351_v16  ;;  %3808 = vmatpush.bf16.msra.mxu3 %v9607_v18  ;;  %v8710_v43 = vld [vmem:[#allocation8 + $0xc0] sm:$0xf]  ;;  %v8999_v46 = vor.u32 %v12617_v39, %v8998_v38 }
  0x67   :  { %v9254_v44 = vld [vmem:[#allocation8 + $0x500] sm:$0xf] }
  0x68   :  { %3767 = vmatpush.bf16.msra.mxu0 %v8807_v17  ;;  %3781 = vmatpush.bf16.msra.mxu1 %v9063_v22  ;;  %v12681_v45 = vld [vmem:[#allocation8 + $0x51c] sm:$0xf0] }
  0x69   :  { %v12545_v47 = vld [vmem:[#allocation8 + $0xdc] sm:$0xf0]  ;;  %v9255_v52 = vor.u32 %v12681_v45, %v9254_v44 }
  0x6a   :  { %3795 = vmatpush.bf16.msra.mxu2 %v9319_v28  ;;  %3809 = vmatpush.bf16.msra.mxu3 %v9575_v30  ;;  %v9510_v48 = vld [vmem:[#allocation8 + $0x700] sm:$0xf]  ;;  %v8711_v53 = vor.u32 %v12545_v47, %v8710_v43 }
  0x6b   :  { %v12745_v49 = vld [vmem:[#allocation8 + $0x71c] sm:$0xf0] }
  0x6c   :  { %3768 = vmatpush.bf16.msra.mxu0 %v8775_v29  ;;  %3782 = vmatpush.bf16.msra.mxu1 %v9031_v34  ;;  %v8966_v50 = vld [vmem:[#allocation8 + $0x2c0] sm:$0xf]  ;;  %v9511_v54 = vor.u32 %v12745_v49, %v9510_v48 }
  0x6d   :  { %v12609_v51 = vld [vmem:[#allocation8 + $0x2dc] sm:$0xf0] }
  0x6e   :  { %3796 = vmatpush.bf16.msra.mxu2 %v9287_v40  ;;  %3810 = vmatpush.bf16.msra.mxu3 %v9543_v42  ;;  %v8678_v55 = vld [vmem:[#allocation8 + $0x80] sm:$0xf]  ;;  %v8967_v58 = vor.u32 %v12609_v51, %v8966_v50 }
  0x6f   :  { %v9222_v56 = vld [vmem:[#allocation8 + $0x4c0] sm:$0xf] }
  0x70   :  { %3769 = vmatpush.bf16.msra.mxu0 %v8743_v41  ;;  %v12673_v57 = vld [vmem:[#allocation8 + $0x4dc] sm:$0xf0]  ;;  %3783 = vmatpush.bf16.msra.mxu1 %v8999_v46 }
  0x71   :  { %v12537_v59 = vld [vmem:[#allocation8 + $0x9c] sm:$0xf0]  ;;  %v9223_v0 = vor.u32 %v12673_v57, %v9222_v56 }
  0x72   :  { %v9478_v60 = vld [vmem:[#allocation8 + $0x6c0] sm:$0xf]  ;;  %3797 = vmatpush.bf16.msra.mxu2 %v9255_v52  ;;  %3811 = vmatpush.bf16.msra.mxu3 %v9511_v54  ;;  %v8679_v1 = vor.u32 %v12537_v59, %v8678_v55 }
  0x73   :  { %v12737_v61 = vld [vmem:[#allocation8 + $0x6dc] sm:$0xf0] }
  0x74   :  { %v8934_v62 = vld [vmem:[#allocation8 + $0x280] sm:$0xf]  ;;  %3770 = vmatpush.bf16.msra.mxu0 %v8711_v53  ;;  %v9479_v2 = vor.u32 %v12737_v61, %v9478_v60  ;;  %3784 = vmatpush.bf16.msra.mxu1 %v8967_v58 }
  0x75   :  { %v12601_v63 = vld [vmem:[#allocation8 + $0x29c] sm:$0xf0] }
  0x76   :  { %v8646_v3 = vld [vmem:[#allocation8 + $0x40] sm:$0xf]  ;;  %v8935_v6 = vor.u32 %v12601_v63, %v8934_v62  ;;  %3798 = vmatpush.bf16.msra.mxu2 %v9223_v0  ;;  %3812 = vmatpush.bf16.msra.mxu3 %v9479_v2 }
  0x77   :  { %v9190_v4 = vld [vmem:[#allocation8 + $0x480] sm:$0xf] }
  0x78   :  { %v12665_v5 = vld [vmem:[#allocation8 + $0x49c] sm:$0xf0]  ;;  %3771 = vmatpush.bf16.msra.mxu0 %v8679_v1  ;;  %3785 = vmatpush.bf16.msra.mxu1 %v8935_v6 }
  0x79   :  { %v12529_v7 = vld [vmem:[#allocation8 + $0x5c] sm:$0xf0]  ;;  %v9191_v12 = vor.u32 %v12665_v5, %v9190_v4 }
  0x7a   :  { %v9446_v8 = vld [vmem:[#allocation8 + $0x680] sm:$0xf]  ;;  %v8647_v14 = vor.u32 %v12529_v7, %v8646_v3 }
  0x7b   :  { %v12729_v9 = vld [vmem:[#allocation8 + $0x69c] sm:$0xf0]  ;;  %3799 = vmatpush.bf16.msra.mxu2 %v9191_v12 }
  0x7c   :  { %v8902_v10 = vld [vmem:[#allocation8 + $0x240] sm:$0xf]  ;;  %v9447_v15 = vor.u32 %v12729_v9, %v9446_v8  ;;  %3772 = vmatpush.bf16.msra.mxu0 %v8647_v14 }
  0x7d   :  { %v12593_v11 = vld [vmem:[#allocation8 + $0x25c] sm:$0xf0] }
  0x7e   :  { %v8614_v13 = vld [vmem:[#allocation8] sm:$0xf]  ;;  %v8903_v19 = vor.u32 %v12593_v11, %v8902_v10  ;;  %3813 = vmatpush.bf16.msra.mxu3 %v9447_v15 }
  0x7f   :  { %v12521_v16 = vld [vmem:[#allocation8 + $0x1c] sm:$0xf0] }
  0x80   :  { %v9158_v17 = vld [vmem:[#allocation8 + $0x440] sm:$0xf]  ;;  %v8615_v29 = vor.u32 %v12521_v16, %v8614_v13  ;;  %3786 = vmatpush.bf16.msra.mxu1 %v8903_v19 }
  0x81   :  { %v12657_v18 = vld [vmem:[#allocation8 + $0x45c] sm:$0xf0] }
  0x82   :  { %v8870_v20 = vld [vmem:[#allocation8 + $0x200] sm:$0xf]  ;;  %v9159_v28 = vor.u32 %v12657_v18, %v9158_v17  ;;  %3773 = vmatpush.bf16.msra.mxu0 %v8615_v29 }
  0x83   :  { %v9414_v21 = vld [vmem:[#allocation8 + $0x640] sm:$0xf] }
  0x84   :  { %v12721_v22 = vld [vmem:[#allocation8 + $0x65c] sm:$0xf0]  ;;  %3800 = vmatpush.bf16.msra.mxu2 %v9159_v28 }
  0x85   :  { %v12585_v23 = vld [vmem:[#allocation8 + $0x21c] sm:$0xf0]  ;;  %v9415_v30 = vor.u32 %v12721_v22, %v9414_v21 }
  0x86   :  { %v9862_v24 = vld [vmem:[#allocation8 + $0x9c0] sm:$0xf]  ;;  %v8871_v35 = vor.u32 %v12585_v23, %v8870_v20 }
  0x87   :  { %v12833_v25 = vld [vmem:[#allocation8 + $0x9dc] sm:$0xf0]  ;;  %3814 = vmatpush.bf16.msra.mxu3 %v9415_v30 }
  0x88   :  { %v10118_v26 = vld [vmem:[#allocation8 + $0xbc0] sm:$0xf]  ;;  %v9863_v36 = vor.u32 %v12833_v25, %v9862_v24  ;;  %3787 = vmatpush.bf16.msra.mxu1 %v8871_v35 }
  0x89   :  { %v12897_v27 = vld [vmem:[#allocation8 + $0xbdc] sm:$0xf0] }
  0x8a   :  { %v9830_v31 = vld [vmem:[#allocation8 + $0x980] sm:$0xf]  ;;  %v10119_v40 = vor.u32 %v12897_v27, %v10118_v26  ;;  %3822 = vmatpush.bf16.msrb.mxu0 %v9863_v36 }
  0x8b   :  { %v9126_v32 = vld [vmem:[#allocation8 + $0x400] sm:$0xf] }
  0x8c   :  { %v12649_v33 = vld [vmem:[#allocation8 + $0x41c] sm:$0xf0]  ;;  %3836 = vmatpush.bf16.msrb.mxu1 %v10119_v40 }
  0x8d   :  { %v9382_v34 = vld [vmem:[#allocation8 + $0x600] sm:$0xf]  ;;  %v9127_v46 = vor.u32 %v12649_v33, %v9126_v32 }
  0x8e   :  { %v12713_v37 = vld [vmem:[#allocation8 + $0x61c] sm:$0xf0] }
  0x8f   :  { %v10374_v38 = vld [vmem:[#allocation8 + $0xdc0] sm:$0xf]  ;;  %v9383_v47 = vor.u32 %v12713_v37, %v9382_v34  ;;  %3801 = vmatpush.bf16.msra.mxu2 %v9127_v46 }
  0x90   :  { %v12961_v39 = vld [vmem:[#allocation8 + $0xddc] sm:$0xf0] }
  0x91   :  { %v12825_v41 = vld [vmem:[#allocation8 + $0x99c] sm:$0xf0]  ;;  %v10375_v48 = vor.u32 %v12961_v39, %v10374_v38  ;;  %3815 = vmatpush.bf16.msra.mxu3 %v9383_v47 }
  0x92   :  { %v10630_v42 = vld [vmem:[#allocation8 + $0xfc0] sm:$0xf]  ;;  %v9831_v49 = vor.u32 %v12825_v41, %v9830_v31 }
  0x93   :  { %v13025_v43 = vld [vmem:[#allocation8 + $0xfdc] sm:$0xf0]  ;;  %3850 = vmatpush.bf16.msrb.mxu2 %v10375_v48 }
  0x94   :  { %v10086_v44 = vld [vmem:[#allocation8 + $0xb80] sm:$0xf]  ;;  %v10631_v50 = vor.u32 %v13025_v43, %v10630_v42  ;;  %3823 = vmatpush.bf16.msrb.mxu0 %v9831_v49 }
  0x95   :  { %v12889_v45 = vld [vmem:[#allocation8 + $0xb9c] sm:$0xf0] }
  0x96   :  { %v9798_v51 = vld [vmem:[#allocation8 + $0x940] sm:$0xf]  ;;  %v10087_v54 = vor.u32 %v12889_v45, %v10086_v44  ;;  %3864 = vmatpush.bf16.msrb.mxu3 %v10631_v50 }
  0x97   :  { %v10342_v52 = vld [vmem:[#allocation8 + $0xd80] sm:$0xf] }
  0x98   :  { %v12953_v53 = vld [vmem:[#allocation8 + $0xd9c] sm:$0xf0]  ;;  %3837 = vmatpush.bf16.msrb.mxu1 %v10087_v54 }
  0x99   :  { %v12817_v55 = vld [vmem:[#allocation8 + $0x95c] sm:$0xf0]  ;;  %v10343_v60 = vor.u32 %v12953_v53, %v10342_v52 }
  0x9a   :  { %v10598_v56 = vld [vmem:[#allocation8 + $0xf80] sm:$0xf]  ;;  %v9799_v61 = vor.u32 %v12817_v55, %v9798_v51 }
  0x9b   :  { %v13017_v57 = vld [vmem:[#allocation8 + $0xf9c] sm:$0xf0]  ;;  %3851 = vmatpush.bf16.msrb.mxu2 %v10343_v60 }
  0x9c   :  { %v10054_v58 = vld [vmem:[#allocation8 + $0xb40] sm:$0xf]  ;;  %v10599_v62 = vor.u32 %v13017_v57, %v10598_v56  ;;  %3824 = vmatpush.bf16.msrb.mxu0 %v9799_v61 }
  0x9d   :  { %v12881_v59 = vld [vmem:[#allocation8 + $0xb5c] sm:$0xf0] }
  0x9e   :  { %v10055_v63 = vor.u32 %v12881_v59, %v10054_v58  ;;  %v9766_v0 = vld [vmem:[#allocation8 + $0x900] sm:$0xf]  ;;  %3865 = vmatpush.bf16.msrb.mxu3 %v10599_v62 }
  0x9f   :  { %v12809_v1 = vld [vmem:[#allocation8 + $0x91c] sm:$0xf0] }
  0xa0   :  { %v10022_v2 = vld [vmem:[#allocation8 + $0xb00] sm:$0xf]  ;;  %v9767_v4 = vor.u32 %v12809_v1, %v9766_v0  ;;  %3838 = vmatpush.bf16.msrb.mxu1 %v10055_v63 }
  0xa1   :  { %v12873_v3 = vld [vmem:[#allocation8 + $0xb1c] sm:$0xf0] }
  0xa2   :  { %v10023_v5 = vor.u32 %v12873_v3, %v10022_v2  ;;  %3825 = vmatpush.bf16.msrb.mxu0 %v9767_v4  ;;  %v10310_v6 = vld [vmem:[#allocation8 + $0xd40] sm:$0xf]  ;;  %v13813_v2 = vld [vmem:[#allocation7] sm:$0xff] }
  0xa3   :  { %v12945_v7 = vld [vmem:[#allocation8 + $0xd5c] sm:$0xf0]  ;;  %v198_v4 = vperm.slane %v13813_v2, 0 }
  0xa4   :  { %3839 = vmatpush.bf16.msrb.mxu1 %v10023_v5  ;;  %v10566_v8 = vld [vmem:[#allocation8 + $0xf40] sm:$0xf]  ;;  %v10311_v9 = vor.u32 %v12945_v7, %v10310_v6  ;;  %v199_v6 = vperm.slane %v13813_v2, 1 }
  0xa5   :  { %v13009_v10 = vld [vmem:[#allocation8 + $0xf5c] sm:$0xf0] }
  0xa6   :  { %v10567_v11 = vor.u32 %v13009_v10, %v10566_v8  ;;  %v9734_v12 = vld [vmem:[#allocation8 + $0x8c0] sm:$0xf]  ;;  %3852 = vmatpush.bf16.msrb.mxu2 %v10311_v9 }
  0xa7   :  { %v12801_v13 = vld [vmem:[#allocation8 + $0x8dc] sm:$0xf0] }
  0xa8   :  { %v9990_v14 = vld [vmem:[#allocation8 + $0xac0] sm:$0xf]  ;;  %v9735_v15 = vor.u32 %v12801_v13, %v9734_v12  ;;  %3866 = vmatpush.bf16.msrb.mxu3 %v10567_v11 }
  0xa9   :  { %v12865_v16 = vld [vmem:[#allocation8 + $0xadc] sm:$0xf0] }
  0xaa   :  { %v9991_v17 = vor.u32 %v12865_v16, %v9990_v14  ;;  %v10278_v18 = vld [vmem:[#allocation8 + $0xd00] sm:$0xf]  ;;  %3826 = vmatpush.bf16.msrb.mxu0 %v9735_v15  ;;  %v12573_v15 = vld [vmem:[#allocation8 + $0x1c4] sm:$0xf] }
  0xab   :  { %v12937_v19 = vld [vmem:[#allocation8 + $0xd1c] sm:$0xf0]  ;;  %v8840_v16 = vld [vmem:[#allocation8 + $0x1e0] sm:$0xf0] }
  0xac   :  { %v10279_v20 = vor.u32 %v12937_v19, %v10278_v18  ;;  %v10534_v21 = vld [vmem:[#allocation8 + $0xf00] sm:$0xf]  ;;  %3840 = vmatpush.bf16.msrb.mxu1 %v9991_v17  ;;  %v200_v18 = vperm.slane %v13813_v2, 2 }
  0xad   :  { %v13001_v22 = vld [vmem:[#allocation8 + $0xf1c] sm:$0xf0] }
  0xae   :  { %v10535_v23 = vor.u32 %v13001_v22, %v10534_v21  ;;  %v9702_v24 = vld [vmem:[#allocation8 + $0x880] sm:$0xf]  ;;  %3853 = vmatpush.bf16.msrb.mxu2 %v10279_v20  ;;  %v12637_v20 = vld [vmem:[#allocation8 + $0x3c4] sm:$0xf]  ;;  %v201_v22 = vperm.slane %v13813_v2, 3 }
  0xaf   :  { %v12793_v25 = vld [vmem:[#allocation8 + $0x89c] sm:$0xf0]  ;;  %v9096_v21 = vld [vmem:[#allocation8 + $0x3e0] sm:$0xf0] }
  0xb0   :  { %v9958_v26 = vld [vmem:[#allocation8 + $0xa80] sm:$0xf]  ;;  %v9703_v27 = vor.u32 %v12793_v25, %v9702_v24  ;;  %3867 = vmatpush.bf16.msrb.mxu3 %v10535_v23  ;;  %v8843_v25 = vor.u32 %v12573_v15, %v8840_v16  ;;  %v8968_v15 = vld [vmem:[#allocation8 + $0x2e0] sm:$0xf0] }
  0xb1   :  { %v12857_v28 = vld [vmem:[#allocation8 + $0xa9c] sm:$0xf0] }
  0xb2   :  { %v9959_v29 = vor.u32 %v12857_v28, %v9958_v26  ;;  %v10246_v30 = vld [vmem:[#allocation8 + $0xcc0] sm:$0xf]  ;;  %3827 = vmatpush.bf16.msrb.mxu0 %v9703_v27  ;;  %v9099_v27 = vor.u32 %v12637_v20, %v9096_v21  ;;  %v12565_v28 = vld [vmem:[#allocation8 + $0x184] sm:$0xf] }
  0xb3   :  { %v12929_v31 = vld [vmem:[#allocation8 + $0xcdc] sm:$0xf0]  ;;  %v9256_v20 = vld [vmem:[#allocation8 + $0x520] sm:$0xf0] }
  0xb4   :  { %v10502_v32 = vld [vmem:[#allocation8 + $0xec0] sm:$0xf]  ;;  %v10247_v33 = vor.u32 %v12929_v31, %v10246_v30  ;;  %3841 = vmatpush.bf16.msrb.mxu1 %v9959_v29  ;;  %v8808_v29 = vld [vmem:[#allocation8 + $0x1a0] sm:$0xf0] }
  0xb5   :  { %v12993_v34 = vld [vmem:[#allocation8 + $0xedc] sm:$0xf0]  ;;  %v12741_v21 = vld [vmem:[#allocation8 + $0x704] sm:$0xf] }
  0xb6   :  { %v10503_v35 = vor.u32 %v12993_v34, %v10502_v32  ;;  %v9670_v36 = vld [vmem:[#allocation8 + $0x840] sm:$0xf]  ;;  %3854 = vmatpush.bf16.msrb.mxu2 %v10247_v33  ;;  %v12629_v32 = vld [vmem:[#allocation8 + $0x384] sm:$0xf] }
  0xb7   :  { %v12785_v37 = vld [vmem:[#allocation8 + $0x85c] sm:$0xf0]  ;;  %v9064_v33 = vld [vmem:[#allocation8 + $0x3a0] sm:$0xf0] }
  0xb8   :  { %v9671_v38 = vor.u32 %v12785_v37, %v9670_v36  ;;  %v9926_v39 = vld [vmem:[#allocation8 + $0xa40] sm:$0xf]  ;;  %3868 = vmatpush.bf16.msrb.mxu3 %v10503_v35 }
  0xb9   :  { %v12849_v40 = vld [vmem:[#allocation8 + $0xa5c] sm:$0xf0] }
  0xba   :  { %v9927_v41 = vor.u32 %v12849_v40, %v9926_v39  ;;  %v10214_v42 = vld [vmem:[#allocation8 + $0xc80] sm:$0xf]  ;;  %3828 = vmatpush.bf16.msrb.mxu0 %v9671_v38  ;;  %v8811_v38 = vor.u32 %v12565_v28, %v8808_v29  ;;  %v12701_v39 = vld [vmem:[#allocation8 + $0x5c4] sm:$0xf]  ;;  %v202_v28 = vperm.slane %v13813_v2, 4 }
  0xbb   :  { %v12921_v43 = vld [vmem:[#allocation8 + $0xc9c] sm:$0xf0]  ;;  %v9352_v40 = vld [vmem:[#allocation8 + $0x5e0] sm:$0xf0] }
  0xbc   :  { %v10470_v44 = vld [vmem:[#allocation8 + $0xe80] sm:$0xf]  ;;  %v10215_v45 = vor.u32 %v12921_v43, %v10214_v42  ;;  %3842 = vmatpush.bf16.msrb.mxu1 %v9927_v41  ;;  %v12765_v41 = vld [vmem:[#allocation8 + $0x7c4] sm:$0xf]  ;;  %v9067_v43 = vor.u32 %v12629_v32, %v9064_v33  ;;  %v203_v33 = vperm.slane %v13813_v2, 5 }
  0xbd   :  { %v12985_v46 = vld [vmem:[#allocation8 + $0xe9c] sm:$0xf0]  ;;  %v8936_v32 = vld [vmem:[#allocation8 + $0x2a0] sm:$0xf0] }
  0xbe   :  { %v10471_v47 = vor.u32 %v12985_v46, %v10470_v44  ;;  %v9638_v48 = vld [vmem:[#allocation8 + $0x800] sm:$0xf]  ;;  %3855 = vmatpush.bf16.msrb.mxu2 %v10215_v45  ;;  %v9608_v44 = vld [vmem:[#allocation8 + $0x7e0] sm:$0xf0] }
  0xbf   :  { %v12777_v49 = vld [vmem:[#allocation8 + $0x81c] sm:$0xf0]  ;;  %v12557_v45 = vld [vmem:[#allocation8 + $0x144] sm:$0xf] }
  0xc0   :  { %v9894_v50 = vld [vmem:[#allocation8 + $0xa00] sm:$0xf]  ;;  %v9639_v51 = vor.u32 %v12777_v49, %v9638_v48  ;;  %3869 = vmatpush.bf16.msrb.mxu3 %v10471_v47  ;;  %v549_v3 = vpop.f32.mrf.mxu0  ;;  %v563_v5 = vpop.f32.mrf.mxu1  ;;  %v8776_v46 = vld [vmem:[#allocation8 + $0x160] sm:$0xf0] }
  0xc1   :  { %v12841_v52 = vld [vmem:[#allocation8 + $0xa1c] sm:$0xf0]  ;;  %v550_v7 = vadd.f32 %v549_v3, %v198_v4  ;;  %v564_v8 = vadd.f32 %v563_v5, %v199_v6  ;;  %v12621_v49 = vld [vmem:[#allocation8 + $0x344] sm:$0xf] }
  0xc2   :  { %v9895_v53 = vor.u32 %v12841_v52, %v9894_v50  ;;  %v10182_v54 = vld [vmem:[#allocation8 + $0xc40] sm:$0xf]  ;;  %3829 = vmatpush.bf16.msrb.mxu0 %v9639_v51  ;;  %v9032_v50 = vld [vmem:[#allocation8 + $0x360] sm:$0xf0] }
  0xc3   :  { %v12913_v55 = vld [vmem:[#allocation8 + $0xc5c] sm:$0xf0]  ;;  %v652_v12 = vmax.f32 %v550_v7, 0.0  ;;  %v653_v17 = vmax.f32 %v564_v8, 0.0  ;;  %v9000_v3 = vld [vmem:[#allocation8 + $0x320] sm:$0xf0] }
  0xc4   :  { %v10438_v56 = vld [vmem:[#allocation8 + $0xe40] sm:$0xf]  ;;  %3843 = vmatpush.bf16.msrb.mxu1 %v9895_v53  ;;  %v10183_v58 = vor.u32 %v12913_v55, %v10182_v54  ;;  %v9355_v53 = vor.u32 %v12701_v39, %v9352_v40  ;;  %v9611_v55 = vor.u32 %v12765_v41, %v9608_v44  ;;  %v12685_v7 = vld [vmem:[#allocation8 + $0x544] sm:$0xf] }
  0xc5   :  { %v12977_v57 = vld [vmem:[#allocation8 + $0xe5c] sm:$0xf0]  ;;  %v9288_v8 = vld [vmem:[#allocation8 + $0x560] sm:$0xf0] }
  0xc6   :  { %v10439_v59 = vor.u32 %v12977_v57, %v10438_v56  ;;  %3856 = vmatpush.bf16.msrb.mxu2 %v10183_v58  ;;  %v10150_v60 = vld [vmem:[#allocation8 + $0xc00] sm:$0xf]  ;;  %v8779_v56 = vor.u32 %v12557_v45, %v8776_v46  ;;  %v12693_v57 = vld [vmem:[#allocation8 + $0x584] sm:$0xf]  ;;  %v9291_v16 = vor.u32 %v12685_v7, %v9288_v8  ;;  %v204_v8 = vperm.slane %v13813_v2, 6 }
  0xc7   :  { %v12905_v61 = vld [vmem:[#allocation8 + $0xc1c] sm:$0xf0]  ;;  %v9320_v58 = vld [vmem:[#allocation8 + $0x5a0] sm:$0xf0] }
  0xc8   :  { %3870 = vmatpush.bf16.msrb.mxu3 %v10439_v59  ;;  %v10151_v62 = vor.u32 %v12905_v61, %v10150_v60  ;;  %v10406_v63 = vld [vmem:[#allocation8 + $0xe00] sm:$0xf]  ;;  %v591_v10 = vpop.f32.mrf.mxu3  ;;  %v551_v11 = vpop.f32.mrf.mxu0  ;;  %v12757_v59 = vld [vmem:[#allocation8 + $0x784] sm:$0xf]  ;;  %v9035_v61 = vor.u32 %v12621_v49, %v9032_v50 }
  0xc9   :  { %v12969_v0 = vld [vmem:[#allocation8 + $0xe1c] sm:$0xf0]  ;;  %v577_v9 = vpop.f32.mrf.mxu2  ;;  %v552_v13 = vadd.f32 %v551_v11, %v198_v4  ;;  %v565_v14 = vpop.f32.mrf.mxu1  ;;  %v592_v34 = vadd.f32 %v591_v10, %v201_v22  ;;  %v9323_v4 = vor.u32 %v12693_v57, %v9320_v58  ;;  %v9544_v11 = vld [vmem:[#allocation8 + $0x760] sm:$0xf0] }
  0xca   :  { %v10407_v1 = vor.u32 %v12969_v0, %v10406_v63  ;;  %3857 = vmatpush.bf16.msrb.mxu2 %v10151_v62  ;;  %v566_v19 = vadd.f32 %v565_v14, %v199_v6  ;;  %v578_v30 = vadd.f32 %v577_v9, %v200_v18  ;;  %v9576_v62 = vld [vmem:[#allocation8 + $0x7a0] sm:$0xf0] }
  0xcb   :  { %v660_v23 = vmax.f32 %v552_v13, 0.0  ;;  %v655_v51 = vmax.f32 %v592_v34, 0.0  ;;  %v12549_v63 = vld [vmem:[#allocation8 + $0x104] sm:$0xf]  ;;  %v9579_v5 = vor.u32 %v12757_v59, %v9576_v62 }
  0xcc   :  { %3871 = vmatpush.bf16.msrb.mxu3 %v10407_v1  ;;  %v661_v24 = vmax.f32 %v566_v19, 0.0  ;;  %v654_v47 = vmax.f32 %v578_v30, 0.0  ;;  %v8744_v0 = vld [vmem:[#allocation8 + $0x120] sm:$0xf0] }
  0xcd   :  { %v13819_v26 = vpack.c.bf16 %v660_v23, %v652_v12  ;;  %v12613_v1 = vld [vmem:[#allocation8 + $0x304] sm:$0xf]  ;;  %v8747_v6 = vor.u32 %v12549_v63, %v8744_v0 }
  0xce   :  { %v13821_v31 = vpack.c.bf16 %v661_v24, %v653_v17  ;;  %v12749_v9 = vld [vmem:[#allocation8 + $0x744] sm:$0xf]  ;;  %v9003_v10 = vor.u32 %v12613_v1, %v9000_v3 }
  0xcf   :  { %3774 = vmatmul.bf16.vlgmr.msra.gmra.mxu0 %v13819_v26  ;;  %v12541_v12 = vld [vmem:[#allocation8 + $0xc4] sm:$0xf]  ;;  %v9547_v17 = vor.u32 %v12749_v9, %v9544_v11 }
  0xd0   :  { %v593_v37 = vpop.f32.mrf.mxu3  ;;  %3788 = vmatmul.bf16.vlgmr.msra.gmra.mxu1 %v13821_v31  ;;  %3878 = vmatpush.bf16.msra.mxu0 %v8843_v25  ;;  %v8712_v13 = vld [vmem:[#allocation8 + $0xe0] sm:$0xf0] }
  0xd1   :  { %v579_v35 = vpop.f32.mrf.mxu2  ;;  %v594_v42 = vadd.f32 %v593_v37, %v201_v22  ;;  %3892 = vmatpush.bf16.msra.mxu1 %v9099_v27  ;;  %v12605_v14 = vld [vmem:[#allocation8 + $0x2c4] sm:$0xf] }
  0xd2   :  { %v580_v36 = vadd.f32 %v579_v35, %v200_v18  ;;  %v8715_v18 = vor.u32 %v12541_v12, %v8712_v13  ;;  %v12677_v19 = vld [vmem:[#allocation8 + $0x504] sm:$0xf]  ;;  %v8971_v23 = vor.u32 %v12605_v14, %v8968_v15  ;;  %v205_v13 = vperm.slane %v13813_v2, 7 }
  0xd3   :  { %v663_v52 = vmax.f32 %v594_v42, 0.0  ;;  %v9512_v24 = vld [vmem:[#allocation8 + $0x720] sm:$0xf0]  ;;  %v9259_v34 = vor.u32 %v12677_v19, %v9256_v20 }
  0xd4   :  { %v662_v48 = vmax.f32 %v580_v36, 0.0  ;;  %3879 = vmatpush.bf16.msra.mxu0 %v8811_v38  ;;  %v12533_v25 = vld [vmem:[#allocation8 + $0x84] sm:$0xf]  ;;  %v9515_v35 = vor.u32 %v12741_v21, %v9512_v24 }
  0xd5   :  { %v13827_v60 = vpack.c.bf16 %v663_v52, %v655_v51  ;;  %3893 = vmatpush.bf16.msra.mxu1 %v9067_v43  ;;  %v8680_v27 = vld [vmem:[#allocation8 + $0xa0] sm:$0xf0] }
  0xd6   :  { %v13825_v54 = vpack.c.bf16 %v662_v48, %v654_v47  ;;  %v12597_v30 = vld [vmem:[#allocation8 + $0x284] sm:$0xf]  ;;  %v8683_v36 = vor.u32 %v12533_v25, %v8680_v27 }
  0xd7   :  { %3816 = vmatmul.bf16.vlgmr.msra.gmra.mxu3 %v13827_v60  ;;  %v12669_v37 = vld [vmem:[#allocation8 + $0x4c4] sm:$0xf]  ;;  %v8939_v40 = vor.u32 %v12597_v30, %v8936_v32 }
  0xd8   :  { %3802 = vmatmul.bf16.vlgmr.msra.gmra.mxu2 %v13825_v54  ;;  %3920 = vmatpush.bf16.msra.mxu3 %v9611_v55  ;;  %v9224_v38 = vld [vmem:[#allocation8 + $0x4e0] sm:$0xf0] }
  0xd9   :  { %3906 = vmatpush.bf16.msra.mxu2 %v9355_v53  ;;  %3880 = vmatpush.bf16.msra.mxu0 %v8779_v56  ;;  %v12733_v39 = vld [vmem:[#allocation8 + $0x6c4] sm:$0xf]  ;;  %v9227_v48 = vor.u32 %v12669_v37, %v9224_v38 }
  0xda   :  { %3894 = vmatpush.bf16.msra.mxu1 %v9035_v61  ;;  %v9480_v41 = vld [vmem:[#allocation8 + $0x6e0] sm:$0xf0] }
  0xdb   :  { %v12525_v42 = vld [vmem:[#allocation8 + $0x44] sm:$0xf]  ;;  %v9483_v52 = vor.u32 %v12733_v39, %v9480_v41 }
  0xdc   :  { %3921 = vmatpush.bf16.msra.mxu3 %v9579_v5  ;;  %v8648_v43 = vld [vmem:[#allocation8 + $0x60] sm:$0xf0] }
  0xdd   :  { %3907 = vmatpush.bf16.msra.mxu2 %v9323_v4  ;;  %3881 = vmatpush.bf16.msra.mxu0 %v8747_v6  ;;  %v12589_v45 = vld [vmem:[#allocation8 + $0x244] sm:$0xf]  ;;  %v8651_v53 = vor.u32 %v12525_v42, %v8648_v43 }
  0xde   :  { %3895 = vmatpush.bf16.msra.mxu1 %v9003_v10  ;;  %v8904_v46 = vld [vmem:[#allocation8 + $0x260] sm:$0xf0] }
  0xdf   :  { %v12661_v49 = vld [vmem:[#allocation8 + $0x484] sm:$0xf]  ;;  %v8907_v61 = vor.u32 %v12589_v45, %v8904_v46 }
  0xe0   :  { %v605_v22 = vpop.f32.mrf.mxu0  ;;  %v619_v29 = vpop.f32.mrf.mxu1  ;;  %3922 = vmatpush.bf16.msra.mxu3 %v9547_v17  ;;  %v9192_v50 = vld [vmem:[#allocation8 + $0x4a0] sm:$0xf0] }
  0xe1   :  { %3908 = vmatpush.bf16.msra.mxu2 %v9291_v16  ;;  %3882 = vmatpush.bf16.msra.mxu0 %v8715_v18  ;;  %v606_v44 = vadd.f32 %v605_v22, %v202_v28  ;;  %v620_v47 = vadd.f32 %v619_v29, %v203_v33  ;;  %v12725_v55 = vld [vmem:[#allocation8 + $0x684] sm:$0xf]  ;;  %v9195_v10 = vor.u32 %v12661_v49, %v9192_v50 }
  0xe2   :  { %3896 = vmatpush.bf16.msra.mxu1 %v8971_v23  ;;  %v9448_v56 = vld [vmem:[#allocation8 + $0x6a0] sm:$0xf0] }
  0xe3   :  { %v12517_v57 = vld [vmem:[#allocation8 + $0x4] sm:$0xf]  ;;  %v656_v1 = vmax.f32 %v606_v44, 0.0  ;;  %v657_v7 = vmax.f32 %v620_v47, 0.0  ;;  %v9451_v15 = vor.u32 %v12725_v55, %v9448_v56 }
  0xe4   :  { %3923 = vmatpush.bf16.msra.mxu3 %v9515_v35  ;;  %v8616_v62 = vld [vmem:[#allocation8 + $0x20] sm:$0xf0] }
  0xe5   :  { %3909 = vmatpush.bf16.msra.mxu2 %v9259_v34  ;;  %3883 = vmatpush.bf16.msra.mxu0 %v8683_v36  ;;  %v12581_v63 = vld [vmem:[#allocation8 + $0x204] sm:$0xf]  ;;  %v8619_v16 = vor.u32 %v12517_v57, %v8616_v62 }
  0xe6   :  { %3897 = vmatpush.bf16.msra.mxu1 %v8939_v40  ;;  %v8872_v0 = vld [vmem:[#allocation8 + $0x220] sm:$0xf0] }
  0xe7   :  { %v12829_v5 = vld [vmem:[#allocation8 + $0x9c4] sm:$0xf]  ;;  %v8875_v20 = vor.u32 %v12581_v63, %v8872_v0 }
  0xe8   :  { %v633_v51 = vpop.f32.mrf.mxu2  ;;  %v647_v58 = vpop.f32.mrf.mxu3  ;;  %v9864_v6 = vld [vmem:[#allocation8 + $0x9e0] sm:$0xf0]  ;;  %3924 = vmatpush.bf16.msra.mxu3 %v9483_v52 }
  0xe9   :  { %v607_v59 = vpop.f32.mrf.mxu0  ;;  %v621_v4 = vpop.f32.mrf.mxu1  ;;  %3910 = vmatpush.bf16.msra.mxu2 %v9227_v48  ;;  %v12893_v11 = vld [vmem:[#allocation8 + $0xbc4] sm:$0xf]  ;;  %3884 = vmatpush.bf16.msra.mxu0 %v8651_v53  ;;  %v9867_v24 = vor.u32 %v12829_v5, %v9864_v6  ;;  %v634_v25 = vadd.f32 %v633_v51, %v204_v8 }
  0xea   :  { %v608_v3 = vadd.f32 %v607_v59, %v202_v28  ;;  %v622_v9 = vadd.f32 %v621_v4, %v203_v33  ;;  %v10120_v12 = vld [vmem:[#allocation8 + $0xbe0] sm:$0xf0]  ;;  %3898 = vmatpush.bf16.msra.mxu1 %v8907_v61  ;;  %v648_v33 = vadd.f32 %v647_v58, %v205_v13 }
  0xeb   :  { %v12653_v17 = vld [vmem:[#allocation8 + $0x444] sm:$0xf]  ;;  %v10123_v2 = vor.u32 %v12893_v11, %v10120_v12  ;;  %v658_v49 = vmax.f32 %v634_v25, 0.0 }
  0xec   :  { %v664_v14 = vmax.f32 %v608_v3, 0.0  ;;  %v9160_v18 = vld [vmem:[#allocation8 + $0x460] sm:$0xf0]  ;;  %v665_v19 = vmax.f32 %v622_v9, 0.0  ;;  %3925 = vmatpush.bf16.msra.mxu3 %v9451_v15  ;;  %v659_v56 = vmax.f32 %v648_v33, 0.0 }
  0xed   :  { %v12717_v21 = vld [vmem:[#allocation8 + $0x644] sm:$0xf]  ;;  %3911 = vmatpush.bf16.msra.mxu2 %v9195_v10  ;;  %v9163_v28 = vor.u32 %v12653_v17, %v9160_v18  ;;  %3885 = vmatpush.bf16.msra.mxu0 %v8619_v16 }
  0xee   :  { %v9416_v22 = vld [vmem:[#allocation8 + $0x660] sm:$0xf0]  ;;  %v13835_v23 = vpack.c.bf16 %v664_v14, %v656_v1  ;;  %v13837_v27 = vpack.c.bf16 %v665_v19, %v657_v7  ;;  %3899 = vmatpush.bf16.msra.mxu1 %v8875_v20 }
  0xef   :  { %v12821_v29 = vld [vmem:[#allocation8 + $0x984] sm:$0xf]  ;;  %v9419_v35 = vor.u32 %v12717_v21, %v9416_v22 }
  0xf0   :  { %v9832_v30 = vld [vmem:[#allocation8 + $0x9a0] sm:$0xf0]  ;;  %v635_v34 = vpop.f32.mrf.mxu2  ;;  %v649_v40 = vpop.f32.mrf.mxu3  ;;  %3830 = vmatmul.bf16.vlgmr.msrb.gmra.mxu0 %v13835_v23  ;;  %3844 = vmatmul.bf16.vlgmr.msrb.gmra.mxu1 %v13837_v27 }
  0xf1   :  { %v12885_v32 = vld [vmem:[#allocation8 + $0xb84] sm:$0xf]  ;;  %v636_v39 = vadd.f32 %v635_v34, %v204_v8  ;;  %v650_v44 = vadd.f32 %v649_v40, %v205_v13  ;;  %3934 = vmatpush.bf16.msrb.mxu0 %v9867_v24  ;;  %v9835_v45 = vor.u32 %v12821_v29, %v9832_v30  ;;  %3912 = vmatpush.bf16.msra.mxu2 %v9163_v28 }
  0xf2   :  { %v10088_v36 = vld [vmem:[#allocation8 + $0xba0] sm:$0xf0]  ;;  %3948 = vmatpush.bf16.msrb.mxu1 %v10123_v2  ;;  %3926 = vmatpush.bf16.msra.mxu3 %v9419_v35 }
  0xf3   :  { %v12645_v37 = vld [vmem:[#allocation8 + $0x404] sm:$0xf]  ;;  %v666_v50 = vmax.f32 %v636_v39, 0.0  ;;  %v10091_v51 = vor.u32 %v12885_v32, %v10088_v36  ;;  %v667_v57 = vmax.f32 %v650_v44, 0.0 }
  0xf4   :  { %v9128_v38 = vld [vmem:[#allocation8 + $0x420] sm:$0xf0] }
  0xf5   :  { %v12709_v41 = vld [vmem:[#allocation8 + $0x604] sm:$0xf]  ;;  %v9131_v52 = vor.u32 %v12645_v37, %v9128_v38  ;;  %v13841_v62 = vpack.c.bf16 %v666_v50, %v658_v49  ;;  %v13843_v0 = vpack.c.bf16 %v667_v57, %v659_v56  ;;  %3935 = vmatpush.bf16.msrb.mxu0 %v9835_v45 }
  0xf6   :  { %v9384_v42 = vld [vmem:[#allocation8 + $0x620] sm:$0xf0]  ;;  %3949 = vmatpush.bf16.msrb.mxu1 %v10091_v51 }
  0xf7   :  { %v12957_v43 = vld [vmem:[#allocation8 + $0xdc4] sm:$0xf]  ;;  %v9387_v58 = vor.u32 %v12709_v41, %v9384_v42  ;;  %3913 = vmatpush.bf16.msra.mxu2 %v9131_v52  ;;  %3872 = vmatmul.bf16.vlgmr.msrb.gmra.mxu3 %v13843_v0 }
  0xf8   :  { %v10376_v46 = vld [vmem:[#allocation8 + $0xde0] sm:$0xf0]  ;;  %3858 = vmatmul.bf16.vlgmr.msrb.gmra.mxu2 %v13841_v62 }
  0xf9   :  { %v13021_v47 = vld [vmem:[#allocation8 + $0xfc4] sm:$0xf]  ;;  %v10379_v63 = vor.u32 %v12957_v43, %v10376_v46  ;;  %3927 = vmatpush.bf16.msra.mxu3 %v9387_v58 }
  0xfa   :  { %v10632_v48 = vld [vmem:[#allocation8 + $0xfe0] sm:$0xf0] }
  0xfb   :  { %v12813_v53 = vld [vmem:[#allocation8 + $0x944] sm:$0xf]  ;;  %v10635_v1 = vor.u32 %v13021_v47, %v10632_v48  ;;  %3962 = vmatpush.bf16.msrb.mxu2 %v10379_v63 }
  0xfc   :  { %v9800_v55 = vld [vmem:[#allocation8 + $0x960] sm:$0xf0] }
  0xfd   :  { %v12877_v59 = vld [vmem:[#allocation8 + $0xb44] sm:$0xf]  ;;  %v9803_v3 = vor.u32 %v12813_v53, %v9800_v55  ;;  %3976 = vmatpush.bf16.msrb.mxu3 %v10635_v1 }
  0xfe   :  { %v10056_v61 = vld [vmem:[#allocation8 + $0xb60] sm:$0xf0] }
  0xff   :  { %v12949_v4 = vld [vmem:[#allocation8 + $0xd84] sm:$0xf]  ;;  %v10059_v7 = vor.u32 %v12877_v59, %v10056_v61  ;;  %3936 = vmatpush.bf16.msrb.mxu0 %v9803_v3 }
 0x100   :  { %v10344_v5 = vld [vmem:[#allocation8 + $0xda0] sm:$0xf0]  ;;  %3886 = vmatmul.bf16.vlgmr.msra.gmra.mxu0 %v13819_v26  ;;  %3900 = vmatmul.bf16.vlgmr.msra.gmra.mxu1 %v13821_v31 }
 0x101   :  { %v13013_v6 = vld [vmem:[#allocation8 + $0xf84] sm:$0xf]  ;;  %v10347_v13 = vor.u32 %v12949_v4, %v10344_v5  ;;  %3950 = vmatpush.bf16.msrb.mxu1 %v10059_v7  ;;  %v8846_v5 = vld [vmem:[#allocation8 + $0x1c8] sm:$0xf] }
 0x102   :  { %v10600_v8 = vld [vmem:[#allocation8 + $0xfa0] sm:$0xf0]  ;;  %v12578_v7 = vld [vmem:[#allocation8 + $0x1e4] sm:$0xf0] }
 0x103   :  { %v12805_v9 = vld [vmem:[#allocation8 + $0x904] sm:$0xf]  ;;  %v10603_v14 = vor.u32 %v13013_v6, %v10600_v8  ;;  %3963 = vmatpush.bf16.msrb.mxu2 %v10347_v13  ;;  %v9102_v8 = vld [vmem:[#allocation8 + $0x3c8] sm:$0xf] }
 0x104   :  { %v9768_v10 = vld [vmem:[#allocation8 + $0x920] sm:$0xf0] }
 0x105   :  { %v12869_v11 = vld [vmem:[#allocation8 + $0xb04] sm:$0xf]  ;;  %v9771_v15 = vor.u32 %v12805_v9, %v9768_v10  ;;  %3977 = vmatpush.bf16.msrb.mxu3 %v10603_v14  ;;  %v12642_v9 = vld [vmem:[#allocation8 + $0x3e4] sm:$0xf0] }
 0x106   :  { %v10024_v12 = vld [vmem:[#allocation8 + $0xb20] sm:$0xf0] }
 0x107   :  { %v12941_v16 = vld [vmem:[#allocation8 + $0xd44] sm:$0xf]  ;;  %v10027_v18 = vor.u32 %v12869_v11, %v10024_v12  ;;  %3937 = vmatpush.bf16.msrb.mxu0 %v9771_v15  ;;  %3928 = vmatmul.bf16.vlgmr.msra.gmra.mxu3 %v13827_v60 }
 0x108   :  { %v10312_v17 = vld [vmem:[#allocation8 + $0xd60] sm:$0xf0]  ;;  %3914 = vmatmul.bf16.vlgmr.msra.gmra.mxu2 %v13825_v54 }
 0x109   :  { %v13005_v19 = vld [vmem:[#allocation8 + $0xf44] sm:$0xf]  ;;  %v10315_v2 = vor.u32 %v12941_v16, %v10312_v17  ;;  %3951 = vmatpush.bf16.msrb.mxu1 %v10027_v18  ;;  %v8847_v17 = vor.u32 %v12578_v7, %v8846_v5  ;;  %v9103_v18 = vor.u32 %v12642_v9, %v9102_v8  ;;  %v8718_v5 = vld [vmem:[#allocation8 + $0xc8] sm:$0xf] }
 0x10a   :  { %v10568_v20 = vld [vmem:[#allocation8 + $0xf60] sm:$0xf0]  ;;  %v8974_v7 = vld [vmem:[#allocation8 + $0x2c8] sm:$0xf] }
 0x10b   :  { %v12797_v21 = vld [vmem:[#allocation8 + $0x8c4] sm:$0xf]  ;;  %v10571_v28 = vor.u32 %v13005_v19, %v10568_v20  ;;  %3964 = vmatpush.bf16.msrb.mxu2 %v10315_v2  ;;  %v8814_v19 = vld [vmem:[#allocation8 + $0x188] sm:$0xf] }
 0x10c   :  { %v9736_v22 = vld [vmem:[#allocation8 + $0x8e0] sm:$0xf0]  ;;  %v12610_v8 = vld [vmem:[#allocation8 + $0x2e4] sm:$0xf0] }
 0x10d   :  { %v12861_v24 = vld [vmem:[#allocation8 + $0xac4] sm:$0xf]  ;;  %v9739_v32 = vor.u32 %v12797_v21, %v9736_v22  ;;  %3978 = vmatpush.bf16.msrb.mxu3 %v10571_v28  ;;  %v12570_v21 = vld [vmem:[#allocation8 + $0x1a4] sm:$0xf0] }
 0x10e   :  { %v9992_v25 = vld [vmem:[#allocation8 + $0xae0] sm:$0xf0]  ;;  %v9070_v22 = vld [vmem:[#allocation8 + $0x388] sm:$0xf] }
 0x10f   :  { %v12933_v29 = vld [vmem:[#allocation8 + $0xd04] sm:$0xf]  ;;  %v9995_v33 = vor.u32 %v12861_v24, %v9992_v25  ;;  %3938 = vmatpush.bf16.msrb.mxu0 %v9739_v32  ;;  %v12634_v24 = vld [vmem:[#allocation8 + $0x3a4] sm:$0xf0] }
 0x110   :  { %v10280_v30 = vld [vmem:[#allocation8 + $0xd20] sm:$0xf0]  ;;  %v9358_v32 = vld [vmem:[#allocation8 + $0x5c8] sm:$0xf] }
 0x111   :  { %v12997_v34 = vld [vmem:[#allocation8 + $0xf04] sm:$0xf]  ;;  %v10283_v40 = vor.u32 %v12933_v29, %v10280_v30  ;;  %3952 = vmatpush.bf16.msrb.mxu1 %v9995_v33  ;;  %v12706_v33 = vld [vmem:[#allocation8 + $0x5e4] sm:$0xf0] }
 0x112   :  { %v10536_v35 = vld [vmem:[#allocation8 + $0xf20] sm:$0xf0] }
 0x113   :  { %v12789_v36 = vld [vmem:[#allocation8 + $0x884] sm:$0xf]  ;;  %v10539_v41 = vor.u32 %v12997_v34, %v10536_v35  ;;  %3965 = vmatpush.bf16.msrb.mxu2 %v10283_v40  ;;  %v8815_v34 = vor.u32 %v12570_v21, %v8814_v19  ;;  %v9071_v35 = vor.u32 %v12634_v24, %v9070_v22  ;;  %v12562_v40 = vld [vmem:[#allocation8 + $0x164] sm:$0xf0] }
 0x114   :  { %v9704_v37 = vld [vmem:[#allocation8 + $0x8a0] sm:$0xf0]  ;;  %v8942_v19 = vld [vmem:[#allocation8 + $0x288] sm:$0xf] }
 0x115   :  { %v12853_v38 = vld [vmem:[#allocation8 + $0xa84] sm:$0xf]  ;;  %v9707_v44 = vor.u32 %v12789_v36, %v9704_v37  ;;  %3979 = vmatpush.bf16.msrb.mxu3 %v10539_v41  ;;  %v9614_v36 = vld [vmem:[#allocation8 + $0x7c8] sm:$0xf] }
 0x116   :  { %v9960_v39 = vld [vmem:[#allocation8 + $0xaa0] sm:$0xf0]  ;;  %v12770_v37 = vld [vmem:[#allocation8 + $0x7e4] sm:$0xf0] }
 0x117   :  { %v12925_v42 = vld [vmem:[#allocation8 + $0xcc4] sm:$0xf]  ;;  %v9963_v45 = vor.u32 %v12853_v38, %v9960_v39  ;;  %3939 = vmatpush.bf16.msrb.mxu0 %v9707_v44  ;;  %v8782_v38 = vld [vmem:[#allocation8 + $0x148] sm:$0xf]  ;;  %v9359_v44 = vor.u32 %v12706_v33, %v9358_v32 }
 0x118   :  { %v10248_v43 = vld [vmem:[#allocation8 + $0xce0] sm:$0xf0]  ;;  %v9038_v41 = vld [vmem:[#allocation8 + $0x348] sm:$0xf] }
 0x119   :  { %v12989_v46 = vld [vmem:[#allocation8 + $0xec4] sm:$0xf]  ;;  %v10251_v52 = vor.u32 %v12925_v42, %v10248_v43  ;;  %3953 = vmatpush.bf16.msrb.mxu1 %v9963_v45  ;;  %v12626_v42 = vld [vmem:[#allocation8 + $0x364] sm:$0xf0]  ;;  %v9615_v45 = vor.u32 %v12770_v37, %v9614_v36 }
 0x11a   :  { %v10504_v47 = vld [vmem:[#allocation8 + $0xee0] sm:$0xf0]  ;;  %v9230_v24 = vld [vmem:[#allocation8 + $0x4c8] sm:$0xf] }
 0x11b   :  { %v12781_v48 = vld [vmem:[#allocation8 + $0x844] sm:$0xf]  ;;  %v10507_v53 = vor.u32 %v12989_v46, %v10504_v47  ;;  %3966 = vmatpush.bf16.msrb.mxu2 %v10251_v52  ;;  %v9326_v46 = vld [vmem:[#allocation8 + $0x588] sm:$0xf] }
 0x11c   :  { %v9672_v49 = vld [vmem:[#allocation8 + $0x860] sm:$0xf0]  ;;  %v12698_v47 = vld [vmem:[#allocation8 + $0x5a4] sm:$0xf0] }
 0x11d   :  { %v12845_v50 = vld [vmem:[#allocation8 + $0xa44] sm:$0xf]  ;;  %v9675_v58 = vor.u32 %v12781_v48, %v9672_v49  ;;  %3980 = vmatpush.bf16.msrb.mxu3 %v10507_v53  ;;  %v8783_v48 = vor.u32 %v12562_v40, %v8782_v38  ;;  %v9039_v49 = vor.u32 %v12626_v42, %v9038_v41  ;;  %v8750_v52 = vld [vmem:[#allocation8 + $0x108] sm:$0xf] }
 0x11e   :  { %v9928_v51 = vld [vmem:[#allocation8 + $0xa60] sm:$0xf0]  ;;  %v12554_v53 = vld [vmem:[#allocation8 + $0x124] sm:$0xf0] }
 0x11f   :  { %v12917_v55 = vld [vmem:[#allocation8 + $0xc84] sm:$0xf]  ;;  %v9931_v59 = vor.u32 %v12845_v50, %v9928_v51  ;;  %3940 = vmatpush.bf16.msrb.mxu0 %v9675_v58  ;;  %v9582_v50 = vld [vmem:[#allocation8 + $0x788] sm:$0xf] }
 0x120   :  { %v10216_v56 = vld [vmem:[#allocation8 + $0xca0] sm:$0xf0]  ;;  %v12762_v51 = vld [vmem:[#allocation8 + $0x7a4] sm:$0xf0] }
 0x121   :  { %v12981_v57 = vld [vmem:[#allocation8 + $0xe84] sm:$0xf]  ;;  %v10219_v6 = vor.u32 %v12917_v55, %v10216_v56  ;;  %3954 = vmatpush.bf16.msrb.mxu1 %v9931_v59  ;;  %v9006_v55 = vld [vmem:[#allocation8 + $0x308] sm:$0xf]  ;;  %v9583_v58 = vor.u32 %v12762_v51, %v9582_v50 }
 0x122   :  { %v10472_v61 = vld [vmem:[#allocation8 + $0xea0] sm:$0xf0]  ;;  %v12618_v56 = vld [vmem:[#allocation8 + $0x324] sm:$0xf0] }
 0x123   :  { %v12773_v63 = vld [vmem:[#allocation8 + $0x804] sm:$0xf]  ;;  %v10475_v10 = vor.u32 %v12981_v57, %v10472_v61  ;;  %3967 = vmatpush.bf16.msrb.mxu2 %v10219_v6  ;;  %v9327_v57 = vor.u32 %v12698_v47, %v9326_v46  ;;  %v9294_v59 = vld [vmem:[#allocation8 + $0x548] sm:$0xf] }
 0x124   :  { %v9640_v1 = vld [vmem:[#allocation8 + $0x820] sm:$0xf0]  ;;  %v12690_v61 = vld [vmem:[#allocation8 + $0x564] sm:$0xf0] }
 0x125   :  { %v12837_v3 = vld [vmem:[#allocation8 + $0xa04] sm:$0xf]  ;;  %v9643_v13 = vor.u32 %v12773_v63, %v9640_v1  ;;  %3981 = vmatpush.bf16.msrb.mxu3 %v10475_v10  ;;  %v8751_v63 = vor.u32 %v12554_v53, %v8750_v52  ;;  %v9007_v1 = vor.u32 %v12618_v56, %v9006_v55  ;;  %v12546_v6 = vld [vmem:[#allocation8 + $0xe4] sm:$0xf0]  ;;  %v9295_v9 = vor.u32 %v12690_v61, %v9294_v59 }
 0x126   :  { %v9896_v4 = vld [vmem:[#allocation8 + $0xa20] sm:$0xf0]  ;;  %v8654_v32 = vld [vmem:[#allocation8 + $0x48] sm:$0xf] }
 0x127   :  { %v12909_v11 = vld [vmem:[#allocation8 + $0xc44] sm:$0xf]  ;;  %v9899_v14 = vor.u32 %v12837_v3, %v9896_v4  ;;  %3941 = vmatpush.bf16.msrb.mxu0 %v9643_v13  ;;  %v9550_v3 = vld [vmem:[#allocation8 + $0x748] sm:$0xf]  ;;  %v8719_v13 = vor.u32 %v12546_v6, %v8718_v5 }
 0x128   :  { %v10184_v12 = vld [vmem:[#allocation8 + $0xc60] sm:$0xf0]  ;;  %v12754_v4 = vld [vmem:[#allocation8 + $0x764] sm:$0xf0] }
 0x129   :  { %v12973_v15 = vld [vmem:[#allocation8 + $0xe44] sm:$0xf]  ;;  %v10187_v20 = vor.u32 %v12909_v11, %v10184_v12  ;;  %3955 = vmatpush.bf16.msrb.mxu1 %v9899_v14  ;;  %v9551_v10 = vor.u32 %v12754_v4, %v9550_v3  ;;  %v9262_v11 = vld [vmem:[#allocation8 + $0x508] sm:$0xf]  ;;  %v8975_v14 = vor.u32 %v12610_v8, %v8974_v7 }
 0x12a   :  { %v10440_v16 = vld [vmem:[#allocation8 + $0xe60] sm:$0xf0]  ;;  %3942 = vmatmul.bf16.vlgmr.msrb.gmra.mxu0 %v13835_v23  ;;  %v12682_v12 = vld [vmem:[#allocation8 + $0x524] sm:$0xf0] }
 0x12b   :  { %v10443_v25 = vor.u32 %v12973_v15, %v10440_v16  ;;  %v12901_v2 = vld [vmem:[#allocation8 + $0xc04] sm:$0xf]  ;;  %3990 = vmatpush.bf16.msra.mxu0 %v8847_v17  ;;  %3968 = vmatpush.bf16.msrb.mxu2 %v10187_v20  ;;  %v9518_v15 = vld [vmem:[#allocation8 + $0x708] sm:$0xf]  ;;  %v9263_v21 = vor.u32 %v12682_v12, %v9262_v11 }
 0x12c   :  { %v10152_v28 = vld [vmem:[#allocation8 + $0xc20] sm:$0xf0]  ;;  %3956 = vmatmul.bf16.vlgmr.msrb.gmra.mxu1 %v13837_v27  ;;  %v12746_v16 = vld [vmem:[#allocation8 + $0x724] sm:$0xf0] }
 0x12d   :  { %v12965_v29 = vld [vmem:[#allocation8 + $0xe04] sm:$0xf]  ;;  %4004 = vmatpush.bf16.msra.mxu1 %v9103_v18  ;;  %v10155_v39 = vor.u32 %v12901_v2, %v10152_v28  ;;  %3982 = vmatpush.bf16.msrb.mxu3 %v10443_v25  ;;  %v8686_v17 = vld [vmem:[#allocation8 + $0x88] sm:$0xf]  ;;  %v9519_v22 = vor.u32 %v12746_v16, %v9518_v15 }
 0x12e   :  { %v10408_v30 = vld [vmem:[#allocation8 + $0xe20] sm:$0xf0]  ;;  %v12538_v18 = vld [vmem:[#allocation8 + $0xa4] sm:$0xf0] }
 0x12f   :  { %v10411_v43 = vor.u32 %v12965_v29, %v10408_v30  ;;  %3991 = vmatpush.bf16.msra.mxu0 %v8815_v34  ;;  %3969 = vmatpush.bf16.msrb.mxu2 %v10155_v39  ;;  %v12602_v20 = vld [vmem:[#allocation8 + $0x2a4] sm:$0xf0]  ;;  %v8687_v2 = vor.u32 %v12538_v18, %v8686_v17 }
 0x130   :  { %v12674_v25 = vld [vmem:[#allocation8 + $0x4e4] sm:$0xf0]  ;;  %v8943_v28 = vor.u32 %v12602_v20, %v8942_v19 }
 0x131   :  { %4005 = vmatpush.bf16.msra.mxu1 %v9071_v35  ;;  %3983 = vmatpush.bf16.msrb.mxu3 %v10411_v43  ;;  %v9486_v29 = vld [vmem:[#allocation8 + $0x6c8] sm:$0xf]  ;;  %v9231_v36 = vor.u32 %v12674_v25, %v9230_v24 }
 0x132   :  { %3970 = vmatmul.bf16.vlgmr.msrb.gmra.mxu2 %v13841_v62  ;;  %v12738_v30 = vld [vmem:[#allocation8 + $0x6e4] sm:$0xf0] }
 0x133   :  { %4018 = vmatpush.bf16.msra.mxu2 %v9359_v44  ;;  %3992 = vmatpush.bf16.msra.mxu0 %v8783_v48  ;;  %v12530_v33 = vld [vmem:[#allocation8 + $0x64] sm:$0xf0]  ;;  %v9487_v37 = vor.u32 %v12738_v30, %v9486_v29 }
 0x134   :  { %3984 = vmatmul.bf16.vlgmr.msrb.gmra.mxu3 %v13843_v0  ;;  %v8910_v34 = vld [vmem:[#allocation8 + $0x248] sm:$0xf]  ;;  %v8655_v41 = vor.u32 %v12530_v33, %v8654_v32 }
 0x135   :  { %4032 = vmatpush.bf16.msra.mxu3 %v9615_v45  ;;  %4006 = vmatpush.bf16.msra.mxu1 %v9039_v49  ;;  %v12594_v35 = vld [vmem:[#allocation8 + $0x264] sm:$0xf0] }
 0x136   :  { %v9198_v38 = vld [vmem:[#allocation8 + $0x488] sm:$0xf]  ;;  %v8911_v42 = vor.u32 %v12594_v35, %v8910_v34 }
 0x137   :  { %4019 = vmatpush.bf16.msra.mxu2 %v9327_v57  ;;  %3993 = vmatpush.bf16.msra.mxu0 %v8751_v63  ;;  %v12666_v39 = vld [vmem:[#allocation8 + $0x4a4] sm:$0xf0] }
 0x138   :  { %v9454_v40 = vld [vmem:[#allocation8 + $0x688] sm:$0xf]  ;;  %v9199_v49 = vor.u32 %v12666_v39, %v9198_v38 }
 0x139   :  { %4033 = vmatpush.bf16.msra.mxu3 %v9583_v58  ;;  %4007 = vmatpush.bf16.msra.mxu1 %v9007_v1  ;;  %v12730_v43 = vld [vmem:[#allocation8 + $0x6a4] sm:$0xf0] }
 0x13a   :  { %v8622_v44 = vld [vmem:[#allocation8 + $0x8] sm:$0xf]  ;;  %v9455_v53 = vor.u32 %v12730_v43, %v9454_v40 }
 0x13b   :  { %4020 = vmatpush.bf16.msra.mxu2 %v9295_v9  ;;  %3994 = vmatpush.bf16.msra.mxu0 %v8719_v13  ;;  %v12522_v45 = vld [vmem:[#allocation8 + $0x24] sm:$0xf0] }
 0x13c   :  { %v8878_v46 = vld [vmem:[#allocation8 + $0x208] sm:$0xf]  ;;  %v8623_v57 = vor.u32 %v12522_v45, %v8622_v44 }
 0x13d   :  { %4034 = vmatpush.bf16.msra.mxu3 %v9551_v10  ;;  %4008 = vmatpush.bf16.msra.mxu1 %v8975_v14  ;;  %v12586_v47 = vld [vmem:[#allocation8 + $0x224] sm:$0xf0] }
 0x13e   :  { %v9870_v48 = vld [vmem:[#allocation8 + $0x9c8] sm:$0xf]  ;;  %v8879_v58 = vor.u32 %v12586_v47, %v8878_v46 }
 0x13f   :  { %4021 = vmatpush.bf16.msra.mxu2 %v9263_v21  ;;  %3995 = vmatpush.bf16.msra.mxu0 %v8687_v2  ;;  %v12834_v50 = vld [vmem:[#allocation8 + $0x9e4] sm:$0xf0] }
 0x140   :  { %v10126_v51 = vld [vmem:[#allocation8 + $0xbc8] sm:$0xf]  ;;  %v9871_v63 = vor.u32 %v12834_v50, %v9870_v48 }
 0x141   :  { %4035 = vmatpush.bf16.msra.mxu3 %v9519_v22  ;;  %4009 = vmatpush.bf16.msra.mxu1 %v8943_v28  ;;  %v12898_v52 = vld [vmem:[#allocation8 + $0xbe4] sm:$0xf0] }
 0x142   :  { %v9166_v55 = vld [vmem:[#allocation8 + $0x448] sm:$0xf]  ;;  %v10127_v1 = vor.u32 %v12898_v52, %v10126_v51 }
 0x143   :  { %4022 = vmatpush.bf16.msra.mxu2 %v9231_v36  ;;  %v12658_v56 = vld [vmem:[#allocation8 + $0x464] sm:$0xf0]  ;;  %3996 = vmatpush.bf16.msra.mxu0 %v8655_v41 }
 0x144   :  { %v9422_v59 = vld [vmem:[#allocation8 + $0x648] sm:$0xf]  ;;  %v9167_v4 = vor.u32 %v12658_v56, %v9166_v55 }
 0x145   :  { %4036 = vmatpush.bf16.msra.mxu3 %v9487_v37  ;;  %4010 = vmatpush.bf16.msra.mxu1 %v8911_v42  ;;  %v12722_v61 = vld [vmem:[#allocation8 + $0x664] sm:$0xf0] }
 0x146   :  { %v9838_v3 = vld [vmem:[#allocation8 + $0x988] sm:$0xf]  ;;  %v9423_v8 = vor.u32 %v12722_v61, %v9422_v59 }
 0x147   :  { %4023 = vmatpush.bf16.msra.mxu2 %v9199_v49  ;;  %v12826_v5 = vld [vmem:[#allocation8 + $0x9a4] sm:$0xf0]  ;;  %3997 = vmatpush.bf16.msra.mxu0 %v8623_v57 }
 0x148   :  { %v10094_v6 = vld [vmem:[#allocation8 + $0xb88] sm:$0xf]  ;;  %v9839_v15 = vor.u32 %v12826_v5, %v9838_v3 }
 0x149   :  { %v12890_v7 = vld [vmem:[#allocation8 + $0xba4] sm:$0xf0]  ;;  %4037 = vmatpush.bf16.msra.mxu3 %v9455_v53  ;;  %4011 = vmatpush.bf16.msra.mxu1 %v8879_v58 }
 0x14a   :  { %v9134_v9 = vld [vmem:[#allocation8 + $0x408] sm:$0xf]  ;;  %v10095_v16 = vor.u32 %v12890_v7, %v10094_v6  ;;  %3998 = vmatmul.bf16.vlgmr.msra.gmra.mxu0 %v13819_v26 }
 0x14b   :  { %v12650_v10 = vld [vmem:[#allocation8 + $0x424] sm:$0xf0]  ;;  %4046 = vmatpush.bf16.msrb.mxu0 %v9871_v63  ;;  %4024 = vmatpush.bf16.msra.mxu2 %v9167_v4 }
 0x14c   :  { %v9390_v11 = vld [vmem:[#allocation8 + $0x608] sm:$0xf]  ;;  %v9135_v19 = vor.u32 %v12650_v10, %v9134_v9  ;;  %4012 = vmatmul.bf16.vlgmr.msra.gmra.mxu1 %v13821_v31 }
 0x14d   :  { %v12714_v12 = vld [vmem:[#allocation8 + $0x624] sm:$0xf0]  ;;  %4060 = vmatpush.bf16.msrb.mxu1 %v10127_v1  ;;  %4038 = vmatpush.bf16.msra.mxu3 %v9423_v8 }
 0x14e   :  { %v10382_v13 = vld [vmem:[#allocation8 + $0xdc8] sm:$0xf]  ;;  %v9391_v22 = vor.u32 %v12714_v12, %v9390_v11 }
 0x14f   :  { %v12962_v14 = vld [vmem:[#allocation8 + $0xde4] sm:$0xf0]  ;;  %4047 = vmatpush.bf16.msrb.mxu0 %v9839_v15  ;;  %4025 = vmatpush.bf16.msra.mxu2 %v9135_v19 }
 0x150   :  { %v10638_v17 = vld [vmem:[#allocation8 + $0xfc8] sm:$0xf]  ;;  %v10383_v24 = vor.u32 %v12962_v14, %v10382_v13 }
 0x151   :  { %v13026_v18 = vld [vmem:[#allocation8 + $0xfe4] sm:$0xf0]  ;;  %4061 = vmatpush.bf16.msrb.mxu1 %v10095_v16  ;;  %4039 = vmatpush.bf16.msra.mxu3 %v9391_v22 }
 0x152   :  { %v9806_v20 = vld [vmem:[#allocation8 + $0x948] sm:$0xf]  ;;  %v10639_v28 = vor.u32 %v13026_v18, %v10638_v17  ;;  %4026 = vmatmul.bf16.vlgmr.msra.gmra.mxu2 %v13825_v54 }
 0x153   :  { %v12818_v21 = vld [vmem:[#allocation8 + $0x964] sm:$0xf0]  ;;  %4074 = vmatpush.bf16.msrb.mxu2 %v10383_v24 }
 0x154   :  { %v10062_v25 = vld [vmem:[#allocation8 + $0xb48] sm:$0xf]  ;;  %v9807_v32 = vor.u32 %v12818_v21, %v9806_v20  ;;  %4040 = vmatmul.bf16.vlgmr.msra.gmra.mxu3 %v13827_v60 }
 0x155   :  { %v12882_v2 = vld [vmem:[#allocation8 + $0xb64] sm:$0xf0]  ;;  %4088 = vmatpush.bf16.msrb.mxu3 %v10639_v28 }
 0x156   :  { %v10350_v29 = vld [vmem:[#allocation8 + $0xd88] sm:$0xf]  ;;  %v10063_v35 = vor.u32 %v12882_v2, %v10062_v25  ;;  %4048 = vmatpush.bf16.msrb.mxu0 %v9807_v32 }
 0x157   :  { %v12954_v30 = vld [vmem:[#allocation8 + $0xda4] sm:$0xf0] }
 0x158   :  { %v10606_v33 = vld [vmem:[#allocation8 + $0xf88] sm:$0xf]  ;;  %v10351_v38 = vor.u32 %v12954_v30, %v10350_v29  ;;  %4062 = vmatpush.bf16.msrb.mxu1 %v10063_v35  ;;  %v12638_v35 = vld [vmem:[#allocation8 + $0x3cc] sm:$0xf] }
 0x159   :  { %v13018_v34 = vld [vmem:[#allocation8 + $0xfa4] sm:$0xf0] }
 0x15a   :  { %v9774_v36 = vld [vmem:[#allocation8 + $0x908] sm:$0xf]  ;;  %v10607_v41 = vor.u32 %v13018_v34, %v10606_v33  ;;  %4075 = vmatpush.bf16.msrb.mxu2 %v10351_v38  ;;  %v12574_v33 = vld [vmem:[#allocation8 + $0x1cc] sm:$0xf] }
 0x15b   :  { %v12810_v37 = vld [vmem:[#allocation8 + $0x924] sm:$0xf0]  ;;  %v8848_v34 = vld [vmem:[#allocation8 + $0x1e8] sm:$0xf0] }
 0x15c   :  { %v10030_v39 = vld [vmem:[#allocation8 + $0xb08] sm:$0xf]  ;;  %v9775_v44 = vor.u32 %v12810_v37, %v9774_v36  ;;  %4089 = vmatpush.bf16.msrb.mxu3 %v10607_v41  ;;  %v9104_v37 = vld [vmem:[#allocation8 + $0x3e8] sm:$0xf0] }
 0x15d   :  { %v12874_v40 = vld [vmem:[#allocation8 + $0xb24] sm:$0xf0] }
 0x15e   :  { %v10318_v42 = vld [vmem:[#allocation8 + $0xd48] sm:$0xf]  ;;  %v10031_v47 = vor.u32 %v12874_v40, %v10030_v39  ;;  %4049 = vmatpush.bf16.msrb.mxu0 %v9775_v44  ;;  %v8851_v44 = vor.u32 %v12574_v33, %v8848_v34  ;;  %v12750_v34 = vld [vmem:[#allocation8 + $0x74c] sm:$0xf] }
 0x15f   :  { %v12946_v43 = vld [vmem:[#allocation8 + $0xd64] sm:$0xf0] }
 0x160   :  { %v10574_v45 = vld [vmem:[#allocation8 + $0xf48] sm:$0xf]  ;;  %v10319_v50 = vor.u32 %v12946_v43, %v10318_v42  ;;  %4063 = vmatpush.bf16.msrb.mxu1 %v10031_v47 }
 0x161   :  { %v13010_v46 = vld [vmem:[#allocation8 + $0xf64] sm:$0xf0] }
 0x162   :  { %v9742_v48 = vld [vmem:[#allocation8 + $0x8c8] sm:$0xf]  ;;  %v10575_v53 = vor.u32 %v13010_v46, %v10574_v45  ;;  %4076 = vmatpush.bf16.msrb.mxu2 %v10319_v50  ;;  %v12566_v45 = vld [vmem:[#allocation8 + $0x18c] sm:$0xf]  ;;  %v9107_v46 = vor.u32 %v12638_v35, %v9104_v37 }
 0x163   :  { %v12802_v49 = vld [vmem:[#allocation8 + $0x8e4] sm:$0xf0]  ;;  %v9072_v50 = vld [vmem:[#allocation8 + $0x3a8] sm:$0xf0] }
 0x164   :  { %v9998_v51 = vld [vmem:[#allocation8 + $0xac8] sm:$0xf]  ;;  %v9743_v57 = vor.u32 %v12802_v49, %v9742_v48  ;;  %4090 = vmatpush.bf16.msrb.mxu3 %v10575_v53  ;;  %v8816_v48 = vld [vmem:[#allocation8 + $0x1a8] sm:$0xf0] }
 0x165   :  { %v12866_v52 = vld [vmem:[#allocation8 + $0xae4] sm:$0xf0]  ;;  %v12630_v49 = vld [vmem:[#allocation8 + $0x38c] sm:$0xf] }
 0x166   :  { %v10286_v55 = vld [vmem:[#allocation8 + $0xd08] sm:$0xf]  ;;  %v9999_v61 = vor.u32 %v12866_v52, %v9998_v51  ;;  %4050 = vmatpush.bf16.msrb.mxu0 %v9743_v57  ;;  %v12702_v57 = vld [vmem:[#allocation8 + $0x5cc] sm:$0xf] }
 0x167   :  { %v12938_v56 = vld [vmem:[#allocation8 + $0xd24] sm:$0xf0]  ;;  %v9552_v35 = vld [vmem:[#allocation8 + $0x768] sm:$0xf0] }
 0x168   :  { %v10542_v58 = vld [vmem:[#allocation8 + $0xf08] sm:$0xf]  ;;  %v10287_v3 = vor.u32 %v12938_v56, %v10286_v55  ;;  %4064 = vmatpush.bf16.msrb.mxu1 %v9999_v61  ;;  %v12766_v61 = vld [vmem:[#allocation8 + $0x7cc] sm:$0xf] }
 0x169   :  { %v13002_v59 = vld [vmem:[#allocation8 + $0xf24] sm:$0xf0] }
 0x16a   :  { %v9710_v63 = vld [vmem:[#allocation8 + $0x888] sm:$0xf]  ;;  %v10543_v6 = vor.u32 %v13002_v59, %v10542_v58  ;;  %4077 = vmatpush.bf16.msrb.mxu2 %v10287_v3  ;;  %v9360_v58 = vld [vmem:[#allocation8 + $0x5e8] sm:$0xf0]  ;;  %v8819_v59 = vor.u32 %v12566_v45, %v8816_v48  ;;  %v9075_v3 = vor.u32 %v12630_v49, %v9072_v50 }
 0x16b   :  { %v12794_v1 = vld [vmem:[#allocation8 + $0x8a4] sm:$0xf0]  ;;  %v9264_v45 = vld [vmem:[#allocation8 + $0x528] sm:$0xf0] }
 0x16c   :  { %v9966_v4 = vld [vmem:[#allocation8 + $0xa88] sm:$0xf]  ;;  %v9711_v9 = vor.u32 %v12794_v1, %v9710_v63  ;;  %4091 = vmatpush.bf16.msrb.mxu3 %v10543_v6  ;;  %v9616_v63 = vld [vmem:[#allocation8 + $0x7e8] sm:$0xf0]  ;;  %v13859_v1 = vld [vmem:[#allocation10] sm:$0xff] }
 0x16d   :  { %v12858_v5 = vld [vmem:[#allocation8 + $0xaa4] sm:$0xf0]  ;;  %v8784_v6 = vld [vmem:[#allocation8 + $0x168] sm:$0xf0] }
 0x16e   :  { %v10254_v7 = vld [vmem:[#allocation8 + $0xcc8] sm:$0xf]  ;;  %v9967_v12 = vor.u32 %v12858_v5, %v9966_v4  ;;  %4051 = vmatpush.bf16.msrb.mxu0 %v9711_v9  ;;  %v12558_v5 = vld [vmem:[#allocation8 + $0x14c] sm:$0xf] }
 0x16f   :  { %v12930_v8 = vld [vmem:[#allocation8 + $0xce4] sm:$0xf0]  ;;  %v12622_v9 = vld [vmem:[#allocation8 + $0x34c] sm:$0xf] }
 0x170   :  { %v10510_v10 = vld [vmem:[#allocation8 + $0xec8] sm:$0xf]  ;;  %v10255_v15 = vor.u32 %v12930_v8, %v10254_v7  ;;  %4065 = vmatpush.bf16.msrb.mxu1 %v9967_v12  ;;  %v9363_v8 = vor.u32 %v12702_v57, %v9360_v58  ;;  %v14284_v12 = vperm.slane %v13859_v1, 0  ;;  %v9520_v48 = vld [vmem:[#allocation8 + $0x728] sm:$0xf0] }
 0x171   :  { %v12994_v11 = vld [vmem:[#allocation8 + $0xee4] sm:$0xf0]  ;;  %v12534_v50 = vld [vmem:[#allocation8 + $0x8c] sm:$0xf] }
 0x172   :  { %v9678_v13 = vld [vmem:[#allocation8 + $0x848] sm:$0xf]  ;;  %v10511_v18 = vor.u32 %v12994_v11, %v10510_v10  ;;  %4078 = vmatpush.bf16.msrb.mxu2 %v10255_v15  ;;  %v9040_v10 = vld [vmem:[#allocation8 + $0x368] sm:$0xf0]  ;;  %v9619_v11 = vor.u32 %v12766_v61, %v9616_v63  ;;  %v8787_v15 = vor.u32 %v12558_v5, %v8784_v6 }
 0x173   :  { %v12786_v14 = vld [vmem:[#allocation8 + $0x864] sm:$0xf0]  ;;  %v12670_v57 = vld [vmem:[#allocation8 + $0x4cc] sm:$0xf] }
 0x174   :  { %v9934_v16 = vld [vmem:[#allocation8 + $0xa48] sm:$0xf]  ;;  %v9679_v21 = vor.u32 %v12786_v14, %v9678_v13  ;;  %4092 = vmatpush.bf16.msrb.mxu3 %v10511_v18  ;;  %v12694_v13 = vld [vmem:[#allocation8 + $0x58c] sm:$0xf]  ;;  %v9043_v18 = vor.u32 %v12622_v9, %v9040_v10  ;;  %v3803_v9 = vpop.f32.mrf.mxu2 }
 0x175   :  { %v12850_v17 = vld [vmem:[#allocation8 + $0xa64] sm:$0xf0]  ;;  %v9328_v14 = vld [vmem:[#allocation8 + $0x5a8] sm:$0xf0] }
 0x176   :  { %v10222_v19 = vld [vmem:[#allocation8 + $0xc88] sm:$0xf]  ;;  %v9935_v2 = vor.u32 %v12850_v17, %v9934_v16  ;;  %4052 = vmatpush.bf16.msrb.mxu0 %v9679_v21  ;;  %v12758_v16 = vld [vmem:[#allocation8 + $0x78c] sm:$0xf]  ;;  %v3775_v21 = vpop.f32.mrf.mxu0 }
 0x177   :  { %v12922_v20 = vld [vmem:[#allocation8 + $0xca4] sm:$0xf0]  ;;  %v9584_v17 = vld [vmem:[#allocation8 + $0x7a8] sm:$0xf0] }
 0x178   :  { %v10478_v22 = vld [vmem:[#allocation8 + $0xe88] sm:$0xf]  ;;  %v10223_v32 = vor.u32 %v12922_v20, %v10222_v19  ;;  %4066 = vmatpush.bf16.msrb.mxu1 %v9935_v2  ;;  %v12550_v19 = vld [vmem:[#allocation8 + $0x10c] sm:$0xf]  ;;  %v3776_v2 = vadd.f32 %v3775_v21, %v14284_v12  ;;  %v12632_v12 = vld [vmem:[#allocation8 + $0x39c] sm:$0xf] }
 0x179   :  { %v12986_v24 = vld [vmem:[#allocation8 + $0xea4] sm:$0xf0]  ;;  %v8752_v20 = vld [vmem:[#allocation8 + $0x128] sm:$0xf0] }
 0x17a   :  { %v9646_v25 = vld [vmem:[#allocation8 + $0x808] sm:$0xf]  ;;  %v10479_v36 = vor.u32 %v12986_v24, %v10478_v22  ;;  %4079 = vmatpush.bf16.msrb.mxu2 %v10223_v32  ;;  %v9331_v22 = vor.u32 %v12694_v13, %v9328_v14  ;;  %v12614_v24 = vld [vmem:[#allocation8 + $0x30c] sm:$0xf]  ;;  %v3789_v32 = vpop.f32.mrf.mxu1  ;;  %v8755_v33 = vor.u32 %v12550_v19, %v8752_v20  ;;  %v3817_v19 = vpop.f32.mrf.mxu3 }
 0x17b   :  { %v12778_v28 = vld [vmem:[#allocation8 + $0x824] sm:$0xf0]  ;;  %v9232_v58 = vld [vmem:[#allocation8 + $0x4e8] sm:$0xf0] }
 0x17c   :  { %v9902_v29 = vld [vmem:[#allocation8 + $0xa08] sm:$0xf]  ;;  %v9647_v40 = vor.u32 %v12778_v28, %v9646_v25  ;;  %4093 = vmatpush.bf16.msrb.mxu3 %v10479_v36  ;;  %v9008_v25 = vld [vmem:[#allocation8 + $0x328] sm:$0xf0]  ;;  %v9587_v28 = vor.u32 %v12758_v16, %v9584_v17  ;;  %v3790_v36 = vadd.f32 %v3789_v32, %v3776_v2  ;;  %v9235_v6 = vor.u32 %v12670_v57, %v9232_v58 }
 0x17d   :  { %v12842_v30 = vld [vmem:[#allocation8 + $0xa24] sm:$0xf0]  ;;  %v9011_v37 = vor.u32 %v12614_v24, %v9008_v25  ;;  %v12734_v61 = vld [vmem:[#allocation8 + $0x6cc] sm:$0xf] }
 0x17e   :  { %v10190_v38 = vld [vmem:[#allocation8 + $0xc48] sm:$0xf]  ;;  %v9903_v43 = vor.u32 %v12842_v30, %v9902_v29  ;;  %4053 = vmatpush.bf16.msrb.mxu0 %v9647_v40  ;;  %v12686_v29 = vld [vmem:[#allocation8 + $0x54c] sm:$0xf]  ;;  %v3804_v14 = vadd.f32 %v3803_v9, %v3790_v36 }
 0x17f   :  { %v12914_v39 = vld [vmem:[#allocation8 + $0xc64] sm:$0xf0]  ;;  %v9296_v30 = vld [vmem:[#allocation8 + $0x568] sm:$0xf0] }
 0x180   :  { %v10446_v41 = vld [vmem:[#allocation8 + $0xe48] sm:$0xf]  ;;  %v10191_v47 = vor.u32 %v12914_v39, %v10190_v38  ;;  %4067 = vmatpush.bf16.msrb.mxu1 %v9903_v43  ;;  %v12542_v38 = vld [vmem:[#allocation8 + $0xcc] sm:$0xf]  ;;  %v9299_v40 = vor.u32 %v12686_v29, %v9296_v30  ;;  %v9555_v43 = vor.u32 %v12750_v34, %v9552_v35  ;;  %v13868_v25 = vadd.f32 %v3817_v19, %v3804_v14 }
 0x181   :  { %v12978_v42 = vld [vmem:[#allocation8 + $0xe64] sm:$0xf0]  ;;  %4054 = vmatmul.bf16.vlgmr.msrb.gmra.mxu0 %v13835_v23  ;;  %v8720_v39 = vld [vmem:[#allocation8 + $0xe8] sm:$0xf0] }
 0x182   :  { %v10447_v51 = vor.u32 %v12978_v42, %v10446_v41  ;;  %v10158_v52 = vld [vmem:[#allocation8 + $0xc08] sm:$0xf]  ;;  %4102 = vmatpush.bf16.msra.mxu0 %v8851_v44  ;;  %4080 = vmatpush.bf16.msrb.mxu2 %v10191_v47  ;;  %v12606_v41 = vld [vmem:[#allocation8 + $0x2cc] sm:$0xf] }
 0x183   :  { %v12906_v53 = vld [vmem:[#allocation8 + $0xc24] sm:$0xf0]  ;;  %4068 = vmatmul.bf16.vlgmr.msrb.gmra.mxu1 %v13837_v27  ;;  %v8976_v42 = vld [vmem:[#allocation8 + $0x2e8] sm:$0xf0] }
 0x184   :  { %v10414_v55 = vld [vmem:[#allocation8 + $0xe08] sm:$0xf]  ;;  %4116 = vmatpush.bf16.msra.mxu1 %v9107_v46  ;;  %v10159_v4 = vor.u32 %v12906_v53, %v10158_v52  ;;  %4094 = vmatpush.bf16.msrb.mxu3 %v10447_v51  ;;  %v12678_v44 = vld [vmem:[#allocation8 + $0x50c] sm:$0xf]  ;;  %v8723_v46 = vor.u32 %v12542_v38, %v8720_v39  ;;  %v8979_v49 = vor.u32 %v12606_v41, %v8976_v42 }
 0x185   :  { %v12970_v56 = vld [vmem:[#allocation8 + $0xe24] sm:$0xf0]  ;;  %v12742_v47 = vld [vmem:[#allocation8 + $0x70c] sm:$0xf]  ;;  %v9267_v52 = vor.u32 %v12678_v44, %v9264_v45 }
 0x186   :  { %v10415_v7 = vor.u32 %v12970_v56, %v10414_v55  ;;  %4103 = vmatpush.bf16.msra.mxu0 %v8819_v59  ;;  %4081 = vmatpush.bf16.msrb.mxu2 %v10159_v4  ;;  %v8688_v51 = vld [vmem:[#allocation8 + $0xa8] sm:$0xf0]  ;;  %v9523_v56 = vor.u32 %v12742_v47, %v9520_v48 }
 0x187   :  { %v12598_v53 = vld [vmem:[#allocation8 + $0x28c] sm:$0xf]  ;;  %v8691_v59 = vor.u32 %v12534_v50, %v8688_v51  ;;  %v13870_v51 = vpop.f32.mrf.mxu0 }
 0x188   :  { %4117 = vmatpush.bf16.msra.mxu1 %v9075_v3  ;;  %4095 = vmatpush.bf16.msrb.mxu3 %v10415_v7  ;;  %v8944_v55 = vld [vmem:[#allocation8 + $0x2a8] sm:$0xf0] }
 0x189   :  { %4082 = vmatmul.bf16.vlgmr.msrb.gmra.mxu2 %v13841_v62  ;;  %v9488_v63 = vld [vmem:[#allocation8 + $0x6e8] sm:$0xf0]  ;;  %v8947_v3 = vor.u32 %v12598_v53, %v8944_v55 }
 0x18a   :  { %4130 = vmatpush.bf16.msra.mxu2 %v9363_v8  ;;  %4104 = vmatpush.bf16.msra.mxu0 %v8787_v15  ;;  %v12526_v4 = vld [vmem:[#allocation8 + $0x4c] sm:$0xf]  ;;  %v9491_v10 = vor.u32 %v12734_v61, %v9488_v63 }
 0x18b   :  { %4096 = vmatmul.bf16.vlgmr.msrb.gmra.mxu3 %v13843_v0  ;;  %v8656_v5 = vld [vmem:[#allocation8 + $0x68] sm:$0xf0] }
 0x18c   :  { %4144 = vmatpush.bf16.msra.mxu3 %v9619_v11  ;;  %4118 = vmatpush.bf16.msra.mxu1 %v9043_v18  ;;  %v12590_v7 = vld [vmem:[#allocation8 + $0x24c] sm:$0xf]  ;;  %v8659_v15 = vor.u32 %v12526_v4, %v8656_v5 }
 0x18d   :  { %v8912_v8 = vld [vmem:[#allocation8 + $0x268] sm:$0xf0] }
 0x18e   :  { %4131 = vmatpush.bf16.msra.mxu2 %v9331_v22  ;;  %4105 = vmatpush.bf16.msra.mxu0 %v8755_v33  ;;  %v12662_v11 = vld [vmem:[#allocation8 + $0x48c] sm:$0xf]  ;;  %v8915_v20 = vor.u32 %v12590_v7, %v8912_v8 }
 0x18f   :  { %v9200_v13 = vld [vmem:[#allocation8 + $0x4a8] sm:$0xf0] }
 0x190   :  { %4145 = vmatpush.bf16.msra.mxu3 %v9587_v28  ;;  %4119 = vmatpush.bf16.msra.mxu1 %v9011_v37  ;;  %v12726_v16 = vld [vmem:[#allocation8 + $0x68c] sm:$0xf]  ;;  %v9203_v2 = vor.u32 %v12662_v11, %v9200_v13 }
 0x191   :  { %v9456_v17 = vld [vmem:[#allocation8 + $0x6a8] sm:$0xf0] }
 0x192   :  { %4132 = vmatpush.bf16.msra.mxu2 %v9299_v40  ;;  %4106 = vmatpush.bf16.msra.mxu0 %v8723_v46  ;;  %v12518_v18 = vld [vmem:[#allocation8 + $0xc] sm:$0xf]  ;;  %v9459_v32 = vor.u32 %v12726_v16, %v9456_v17 }
 0x193   :  { %v8624_v21 = vld [vmem:[#allocation8 + $0x28] sm:$0xf0] }
 0x194   :  { %4146 = vmatpush.bf16.msra.mxu3 %v9555_v43  ;;  %4120 = vmatpush.bf16.msra.mxu1 %v8979_v49  ;;  %v12582_v22 = vld [vmem:[#allocation8 + $0x20c] sm:$0xf]  ;;  %v8627_v36 = vor.u32 %v12518_v18, %v8624_v21 }
 0x195   :  { %v8880_v24 = vld [vmem:[#allocation8 + $0x228] sm:$0xf0] }
 0x196   :  { %4133 = vmatpush.bf16.msra.mxu2 %v9267_v52  ;;  %4107 = vmatpush.bf16.msra.mxu0 %v8691_v59  ;;  %v12830_v28 = vld [vmem:[#allocation8 + $0x9cc] sm:$0xf]  ;;  %v8883_v39 = vor.u32 %v12582_v22, %v8880_v24  ;;  %v3831_v22 = vpop.f32.mrf.mxu0 }
 0x197   :  { %v9872_v29 = vld [vmem:[#allocation8 + $0x9e8] sm:$0xf0] }
 0x198   :  { %4147 = vmatpush.bf16.msra.mxu3 %v9523_v56  ;;  %4121 = vmatpush.bf16.msra.mxu1 %v8947_v3  ;;  %v12894_v30 = vld [vmem:[#allocation8 + $0xbcc] sm:$0xf]  ;;  %v9875_v40 = vor.u32 %v12830_v28, %v9872_v29  ;;  %v13872_v56 = vpop.f32.mrf.mxu1  ;;  %v3832_v29 = vadd.f32 %v3831_v22, %v13868_v25  ;;  %v13879_v25 = vpop.f32.mrf.mxu2 }
 0x199   :  { %v10128_v33 = vld [vmem:[#allocation8 + $0xbe8] sm:$0xf0] }
 0x19a   :  { %4134 = vmatpush.bf16.msra.mxu2 %v9235_v6  ;;  %v12654_v34 = vld [vmem:[#allocation8 + $0x44c] sm:$0xf]  ;;  %4108 = vmatpush.bf16.msra.mxu0 %v8659_v15  ;;  %v10131_v42 = vor.u32 %v12894_v30, %v10128_v33 }
 0x19b   :  { %v9168_v35 = vld [vmem:[#allocation8 + $0x468] sm:$0xf0] }
 0x19c   :  { %4148 = vmatpush.bf16.msra.mxu3 %v9491_v10  ;;  %v12718_v37 = vld [vmem:[#allocation8 + $0x64c] sm:$0xf]  ;;  %4122 = vmatpush.bf16.msra.mxu1 %v8915_v20  ;;  %v9171_v43 = vor.u32 %v12654_v34, %v9168_v35 }
 0x19d   :  { %v9424_v38 = vld [vmem:[#allocation8 + $0x668] sm:$0xf0] }
 0x19e   :  { %v12822_v41 = vld [vmem:[#allocation8 + $0x98c] sm:$0xf]  ;;  %4135 = vmatpush.bf16.msra.mxu2 %v9203_v2  ;;  %v9427_v47 = vor.u32 %v12718_v37, %v9424_v38  ;;  %4109 = vmatpush.bf16.msra.mxu0 %v8627_v36 }
 0x19f   :  { %v9840_v44 = vld [vmem:[#allocation8 + $0x9a8] sm:$0xf0] }
 0x1a0   :  { %v12886_v45 = vld [vmem:[#allocation8 + $0xb8c] sm:$0xf]  ;;  %4149 = vmatpush.bf16.msra.mxu3 %v9459_v32  ;;  %4123 = vmatpush.bf16.msra.mxu1 %v8883_v39  ;;  %v9843_v57 = vor.u32 %v12822_v41, %v9840_v44  ;;  %v3845_v30 = vpop.f32.mrf.mxu1 }
 0x1a1   :  { %v10096_v46 = vld [vmem:[#allocation8 + $0xba8] sm:$0xf0]  ;;  %4110 = vmatmul.bf16.vlgmr.msra.gmra.mxu0 %v13819_v26  ;;  %v3846_v38 = vadd.f32 %v3845_v30, %v3832_v29 }
 0x1a2   :  { %v12646_v48 = vld [vmem:[#allocation8 + $0x40c] sm:$0xf]  ;;  %4158 = vmatpush.bf16.msrb.mxu0 %v9875_v40  ;;  %4136 = vmatpush.bf16.msra.mxu2 %v9171_v43  ;;  %v10099_v61 = vor.u32 %v12886_v45, %v10096_v46 }
 0x1a3   :  { %v9136_v49 = vld [vmem:[#allocation8 + $0x428] sm:$0xf0]  ;;  %4124 = vmatmul.bf16.vlgmr.msra.gmra.mxu1 %v13821_v31 }
 0x1a4   :  { %v12710_v50 = vld [vmem:[#allocation8 + $0x60c] sm:$0xf]  ;;  %4172 = vmatpush.bf16.msrb.mxu1 %v10131_v42  ;;  %v9139_v63 = vor.u32 %v12646_v48, %v9136_v49  ;;  %4150 = vmatpush.bf16.msra.mxu3 %v9427_v47  ;;  %v13881_v48 = vpop.f32.mrf.mxu3 }
 0x1a5   :  { %v9392_v52 = vld [vmem:[#allocation8 + $0x628] sm:$0xf0] }
 0x1a6   :  { %v12958_v53 = vld [vmem:[#allocation8 + $0xdcc] sm:$0xf]  ;;  %v9395_v5 = vor.u32 %v12710_v50, %v9392_v52  ;;  %4159 = vmatpush.bf16.msrb.mxu0 %v9843_v57  ;;  %4137 = vmatpush.bf16.msra.mxu2 %v9139_v63 }
 0x1a7   :  { %v10384_v55 = vld [vmem:[#allocation8 + $0xde8] sm:$0xf0] }
 0x1a8   :  { %v13022_v58 = vld [vmem:[#allocation8 + $0xfcc] sm:$0xf]  ;;  %v10387_v6 = vor.u32 %v12958_v53, %v10384_v55  ;;  %4173 = vmatpush.bf16.msrb.mxu1 %v10099_v61  ;;  %4151 = vmatpush.bf16.msra.mxu3 %v9395_v5 }
 0x1a9   :  { %v10640_v59 = vld [vmem:[#allocation8 + $0xfe8] sm:$0xf0]  ;;  %4138 = vmatmul.bf16.vlgmr.msra.gmra.mxu2 %v13825_v54 }
 0x1aa   :  { %v12814_v3 = vld [vmem:[#allocation8 + $0x94c] sm:$0xf]  ;;  %v10643_v9 = vor.u32 %v13022_v58, %v10640_v59  ;;  %4186 = vmatpush.bf16.msrb.mxu2 %v10387_v6  ;;  %v13883_v58 = vpop.f32.mrf.mxu0 }
 0x1ab   :  { %v9808_v4 = vld [vmem:[#allocation8 + $0x968] sm:$0xf0]  ;;  %4152 = vmatmul.bf16.vlgmr.msra.gmra.mxu3 %v13827_v60 }
 0x1ac   :  { %v12878_v7 = vld [vmem:[#allocation8 + $0xb4c] sm:$0xf]  ;;  %v9811_v13 = vor.u32 %v12814_v3, %v9808_v4  ;;  %4200 = vmatpush.bf16.msrb.mxu3 %v10643_v9  ;;  %v13885_v3 = vpop.f32.mrf.mxu1 }
 0x1ad   :  { %v10064_v8 = vld [vmem:[#allocation8 + $0xb68] sm:$0xf0] }
 0x1ae   :  { %v12950_v10 = vld [vmem:[#allocation8 + $0xd8c] sm:$0xf]  ;;  %v10067_v16 = vor.u32 %v12878_v7, %v10064_v8  ;;  %4160 = vmatpush.bf16.msrb.mxu0 %v9811_v13 }
 0x1af   :  { %v10352_v11 = vld [vmem:[#allocation8 + $0xda8] sm:$0xf0] }
 0x1b0   :  { %v13014_v14 = vld [vmem:[#allocation8 + $0xf8c] sm:$0xf]  ;;  %v10355_v19 = vor.u32 %v12950_v10, %v10352_v11  ;;  %4174 = vmatpush.bf16.msrb.mxu1 %v10067_v16 }
 0x1b1   :  { %v10608_v15 = vld [vmem:[#allocation8 + $0xfa8] sm:$0xf0] }
 0x1b2   :  { %v12806_v17 = vld [vmem:[#allocation8 + $0x90c] sm:$0xf]  ;;  %v10611_v24 = vor.u32 %v13014_v14, %v10608_v15  ;;  %4187 = vmatpush.bf16.msrb.mxu2 %v10355_v19 }
 0x1b3   :  { %v9776_v18 = vld [vmem:[#allocation8 + $0x928] sm:$0xf0] }
 0x1b4   :  { %v12870_v20 = vld [vmem:[#allocation8 + $0xb0c] sm:$0xf]  ;;  %v9779_v32 = vor.u32 %v12806_v17, %v9776_v18  ;;  %4201 = vmatpush.bf16.msrb.mxu3 %v10611_v24  ;;  %v3859_v18 = vpop.f32.mrf.mxu2 }
 0x1b5   :  { %v10032_v21 = vld [vmem:[#allocation8 + $0xb28] sm:$0xf0]  ;;  %v3860_v24 = vadd.f32 %v3859_v18, %v3846_v38 }
 0x1b6   :  { %v12942_v2 = vld [vmem:[#allocation8 + $0xd4c] sm:$0xf]  ;;  %v10035_v35 = vor.u32 %v12870_v20, %v10032_v21  ;;  %4161 = vmatpush.bf16.msrb.mxu0 %v9779_v32  ;;  %v14285_v20 = vperm.slane %v13859_v1, 1 }
 0x1b7   :  { %v10320_v28 = vld [vmem:[#allocation8 + $0xd68] sm:$0xf0] }
 0x1b8   :  { %v13006_v33 = vld [vmem:[#allocation8 + $0xf4c] sm:$0xf]  ;;  %v10323_v39 = vor.u32 %v12942_v2, %v10320_v28  ;;  %4175 = vmatpush.bf16.msrb.mxu1 %v10035_v35  ;;  %v3873_v2 = vpop.f32.mrf.mxu3  ;;  %v12579_v35 = vld [vmem:[#allocation8 + $0x1ec] sm:$0xf0] }
 0x1b9   :  { %v10576_v34 = vld [vmem:[#allocation8 + $0xf68] sm:$0xf0] }
 0x1ba   :  { %v12798_v36 = vld [vmem:[#allocation8 + $0x8cc] sm:$0xf]  ;;  %v10579_v42 = vor.u32 %v13006_v33, %v10576_v34  ;;  %4188 = vmatpush.bf16.msrb.mxu2 %v10323_v39  ;;  %v8854_v34 = vld [vmem:[#allocation8 + $0x1d0] sm:$0xf]  ;;  %v3887_v39 = vpop.f32.mrf.mxu0 }
 0x1bb   :  { %v9744_v37 = vld [vmem:[#allocation8 + $0x8e8] sm:$0xf0]  ;;  %v3888_v38 = vadd.f32 %v3887_v39, %v14285_v20  ;;  %v12763_v39 = vld [vmem:[#allocation8 + $0x7ac] sm:$0xf0]  ;;  %v12908_v20 = vld [vmem:[#allocation8 + $0xc34] sm:$0xf0] }
 0x1bc   :  { %v12862_v40 = vld [vmem:[#allocation8 + $0xacc] sm:$0xf]  ;;  %v9747_v45 = vor.u32 %v12798_v36, %v9744_v37  ;;  %4202 = vmatpush.bf16.msrb.mxu3 %v10579_v42  ;;  %v9110_v36 = vld [vmem:[#allocation8 + $0x3d0] sm:$0xf]  ;;  %v13888_v37 = vadd.f32 %v3873_v2, %v3860_v24 }
 0x1bd   :  { %v10000_v41 = vld [vmem:[#allocation8 + $0xae8] sm:$0xf0] }
 0x1be   :  { %v12934_v43 = vld [vmem:[#allocation8 + $0xd0c] sm:$0xf]  ;;  %v10003_v49 = vor.u32 %v12862_v40, %v10000_v41  ;;  %4162 = vmatpush.bf16.msrb.mxu0 %v9747_v45  ;;  %14288 = vst [vmem:[#allocation20_spill] sm:$0xff] %v13888_v37  ;;  %v12643_v41 = vld [vmem:[#allocation8 + $0x3ec] sm:$0xf0] }
 0x1bf   :  { %v10288_v44 = vld [vmem:[#allocation8 + $0xd28] sm:$0xf0]  ;;  %v12824_v37 = vld [vmem:[#allocation8 + $0x99c] sm:$0xf] }
 0x1c0   :  { %v12998_v46 = vld [vmem:[#allocation8 + $0xf0c] sm:$0xf]  ;;  %v10291_v53 = vor.u32 %v12934_v43, %v10288_v44  ;;  %4176 = vmatpush.bf16.msrb.mxu1 %v10003_v49  ;;  %v3901_v44 = vpop.f32.mrf.mxu1 }
 0x1c1   :  { %v10544_v47 = vld [vmem:[#allocation8 + $0xf28] sm:$0xf0] }
 0x1c2   :  { %v12790_v50 = vld [vmem:[#allocation8 + $0x88c] sm:$0xf]  ;;  %v10547_v59 = vor.u32 %v12998_v46, %v10544_v47  ;;  %4189 = vmatpush.bf16.msrb.mxu2 %v10291_v53  ;;  %v3902_v53 = vadd.f32 %v3901_v44, %v3888_v38  ;;  %v9014_v38 = vld [vmem:[#allocation8 + $0x310] sm:$0xf] }
 0x1c3   :  { %v9712_v52 = vld [vmem:[#allocation8 + $0x8a8] sm:$0xf0]  ;;  %v12619_v44 = vld [vmem:[#allocation8 + $0x32c] sm:$0xf0] }
 0x1c4   :  { %v12854_v55 = vld [vmem:[#allocation8 + $0xa8c] sm:$0xf]  ;;  %v9715_v4 = vor.u32 %v12790_v50, %v9712_v52  ;;  %4203 = vmatpush.bf16.msrb.mxu3 %v10547_v59  ;;  %v8855_v50 = vor.u32 %v12579_v35, %v8854_v34  ;;  %v8822_v52 = vld [vmem:[#allocation8 + $0x190] sm:$0xf] }
 0x1c5   :  { %v9968_v57 = vld [vmem:[#allocation8 + $0xaa8] sm:$0xf0]  ;;  %v12571_v59 = vld [vmem:[#allocation8 + $0x1ac] sm:$0xf0] }
 0x1c6   :  { %v12926_v61 = vld [vmem:[#allocation8 + $0xccc] sm:$0xf]  ;;  %v9971_v7 = vor.u32 %v12854_v55, %v9968_v57  ;;  %4163 = vmatpush.bf16.msrb.mxu0 %v9715_v4  ;;  %v9111_v55 = vor.u32 %v12643_v41, %v9110_v36  ;;  %v12699_v34 = vld [vmem:[#allocation8 + $0x5ac] sm:$0xf0] }
 0x1c7   :  { %v10256_v63 = vld [vmem:[#allocation8 + $0xce8] sm:$0xf0]  ;;  %v9590_v36 = vld [vmem:[#allocation8 + $0x790] sm:$0xf] }
 0x1c8   :  { %v12990_v5 = vld [vmem:[#allocation8 + $0xecc] sm:$0xf]  ;;  %v10259_v10 = vor.u32 %v12926_v61, %v10256_v63  ;;  %4177 = vmatpush.bf16.msrb.mxu1 %v9971_v7  ;;  %v9078_v61 = vld [vmem:[#allocation8 + $0x390] sm:$0xf] }
 0x1c9   :  { %v10512_v6 = vld [vmem:[#allocation8 + $0xee8] sm:$0xf0]  ;;  %v12635_v63 = vld [vmem:[#allocation8 + $0x3ac] sm:$0xf0] }
 0x1ca   :  { %v12782_v8 = vld [vmem:[#allocation8 + $0x84c] sm:$0xf]  ;;  %v10515_v14 = vor.u32 %v12990_v5, %v10512_v6  ;;  %4190 = vmatpush.bf16.msrb.mxu2 %v10259_v10  ;;  %v9366_v10 = vld [vmem:[#allocation8 + $0x5d0] sm:$0xf] }
 0x1cb   :  { %v9680_v9 = vld [vmem:[#allocation8 + $0x868] sm:$0xf0]  ;;  %v8758_v41 = vld [vmem:[#allocation8 + $0x110] sm:$0xf] }
 0x1cc   :  { %v12846_v11 = vld [vmem:[#allocation8 + $0xa4c] sm:$0xf]  ;;  %v9683_v19 = vor.u32 %v12782_v8, %v9680_v9  ;;  %4204 = vmatpush.bf16.msrb.mxu3 %v10515_v14  ;;  %v13892_v8 = vpop.f32.mrf.mxu2  ;;  %v8823_v14 = vor.u32 %v12571_v59, %v8822_v52  ;;  %v12755_v59 = vld [vmem:[#allocation8 + $0x76c] sm:$0xf0] }
 0x1cd   :  { %v9936_v13 = vld [vmem:[#allocation8 + $0xa68] sm:$0xf0] }
 0x1ce   :  { %v12918_v15 = vld [vmem:[#allocation8 + $0xc8c] sm:$0xf]  ;;  %v9939_v28 = vor.u32 %v12846_v11, %v9936_v13  ;;  %4164 = vmatpush.bf16.msrb.mxu0 %v9683_v19  ;;  %v12707_v11 = vld [vmem:[#allocation8 + $0x5ec] sm:$0xf0]  ;;  %v13894_v13 = vpop.f32.mrf.mxu3 }
 0x1cf   :  { %v10224_v16 = vld [vmem:[#allocation8 + $0xca8] sm:$0xf0]  ;;  %v8790_v19 = vld [vmem:[#allocation8 + $0x150] sm:$0xf]  ;;  %v9367_v2 = vor.u32 %v12707_v11, %v9366_v10 }
 0x1d0   :  { %v12982_v17 = vld [vmem:[#allocation8 + $0xe8c] sm:$0xf]  ;;  %v10227_v33 = vor.u32 %v12918_v15, %v10224_v16  ;;  %4178 = vmatpush.bf16.msrb.mxu1 %v9939_v28  ;;  %v9622_v15 = vld [vmem:[#allocation8 + $0x7d0] sm:$0xf] }
 0x1d1   :  { %v10480_v21 = vld [vmem:[#allocation8 + $0xea8] sm:$0xf0]  ;;  %v12771_v16 = vld [vmem:[#allocation8 + $0x7ec] sm:$0xf0] }
 0x1d2   :  { %v12774_v22 = vld [vmem:[#allocation8 + $0x80c] sm:$0xf]  ;;  %v10483_v40 = vor.u32 %v12982_v17, %v10480_v21  ;;  %4191 = vmatpush.bf16.msrb.mxu2 %v10227_v33  ;;  %v9079_v17 = vor.u32 %v12635_v63, %v9078_v61  ;;  %v12563_v21 = vld [vmem:[#allocation8 + $0x16c] sm:$0xf0]  ;;  %v9015_v61 = vor.u32 %v12619_v44, %v9014_v38 }
 0x1d3   :  { %v9648_v29 = vld [vmem:[#allocation8 + $0x828] sm:$0xf0]  ;;  %v9046_v28 = vld [vmem:[#allocation8 + $0x350] sm:$0xf]  ;;  %v8791_v35 = vor.u32 %v12563_v21, %v8790_v19 }
 0x1d4   :  { %v12838_v30 = vld [vmem:[#allocation8 + $0xa0c] sm:$0xf]  ;;  %v9651_v45 = vor.u32 %v12774_v22, %v9648_v29  ;;  %4205 = vmatpush.bf16.msrb.mxu3 %v10483_v40  ;;  %v13897_v22 = vpop.f32.mrf.mxu0  ;;  %v12627_v29 = vld [vmem:[#allocation8 + $0x36c] sm:$0xf0] }
 0x1d5   :  { %v9904_v32 = vld [vmem:[#allocation8 + $0xa28] sm:$0xf0]  ;;  %v9334_v33 = vld [vmem:[#allocation8 + $0x590] sm:$0xf]  ;;  %v9047_v40 = vor.u32 %v12627_v29, %v9046_v28 }
 0x1d6   :  { %v12910_v42 = vld [vmem:[#allocation8 + $0xc4c] sm:$0xf]  ;;  %v9907_v49 = vor.u32 %v12838_v30, %v9904_v32  ;;  %4165 = vmatpush.bf16.msrb.mxu0 %v9651_v45  ;;  %v13900_v30 = vpop.f32.mrf.mxu1  ;;  %v9623_v32 = vor.u32 %v12771_v16, %v9622_v15  ;;  %v3915_v45 = vpop.f32.mrf.mxu2  ;;  %v8726_v63 = vld [vmem:[#allocation8 + $0xd0] sm:$0xf] }
 0x1d7   :  { %v10192_v43 = vld [vmem:[#allocation8 + $0xc68] sm:$0xf0]  ;;  %v3929_v52 = vpop.f32.mrf.mxu3  ;;  %v9270_v11 = vld [vmem:[#allocation8 + $0x510] sm:$0xf] }
 0x1d8   :  { %v12974_v46 = vld [vmem:[#allocation8 + $0xe4c] sm:$0xf]  ;;  %v10195_v57 = vor.u32 %v12910_v42, %v10192_v43  ;;  %4179 = vmatpush.bf16.msrb.mxu1 %v9907_v49  ;;  %v12555_v42 = vld [vmem:[#allocation8 + $0x12c] sm:$0xf0]  ;;  %v9335_v43 = vor.u32 %v12699_v34, %v9334_v33 }
 0x1d9   :  { %v10448_v47 = vld [vmem:[#allocation8 + $0xe68] sm:$0xf0]  ;;  %4166 = vmatmul.bf16.vlgmr.msrb.gmra.mxu0 %v13835_v23  ;;  %v12691_v49 = vld [vmem:[#allocation8 + $0x56c] sm:$0xf0] }
 0x1da   :  { %v10451_v4 = vor.u32 %v12974_v46, %v10448_v47  ;;  %v12902_v5 = vld [vmem:[#allocation8 + $0xc0c] sm:$0xf]  ;;  %4214 = vmatpush.bf16.msra.mxu0 %v8855_v50  ;;  %4192 = vmatpush.bf16.msrb.mxu2 %v10195_v57  ;;  %v9591_v46 = vor.u32 %v12763_v39, %v9590_v36  ;;  %v9302_v47 = vld [vmem:[#allocation8 + $0x550] sm:$0xf]  ;;  %v3916_v50 = vadd.f32 %v3915_v45, %v3902_v53 }
 0x1db   :  { %v10160_v6 = vld [vmem:[#allocation8 + $0xc28] sm:$0xf0]  ;;  %4180 = vmatmul.bf16.vlgmr.msrb.gmra.mxu1 %v13837_v27  ;;  %v9558_v57 = vld [vmem:[#allocation8 + $0x750] sm:$0xf] }
 0x1dc   :  { %v12966_v7 = vld [vmem:[#allocation8 + $0xe0c] sm:$0xf]  ;;  %4228 = vmatpush.bf16.msra.mxu1 %v9111_v55  ;;  %v10163_v18 = vor.u32 %v12902_v5, %v10160_v6  ;;  %4206 = vmatpush.bf16.msrb.mxu3 %v10451_v4  ;;  %v8759_v55 = vor.u32 %v12555_v42, %v8758_v41  ;;  %v12547_v4 = vld [vmem:[#allocation8 + $0xec] sm:$0xf0]  ;;  %v3930_v5 = vadd.f32 %v3929_v52, %v3916_v50  ;;  %v3943_v53 = vpop.f32.mrf.mxu0 }
 0x1dd   :  { %v10416_v9 = vld [vmem:[#allocation8 + $0xe28] sm:$0xf0]  ;;  %v9303_v6 = vor.u32 %v12691_v49, %v9302_v47  ;;  %v9559_v10 = vor.u32 %v12755_v59, %v9558_v57  ;;  %v8727_v16 = vor.u32 %v12547_v4, %v8726_v63  ;;  %v12603_v33 = vld [vmem:[#allocation8 + $0x2ac] sm:$0xf0] }
 0x1de   :  { %v10419_v24 = vor.u32 %v12966_v7, %v10416_v9  ;;  %4215 = vmatpush.bf16.msra.mxu0 %v8823_v14  ;;  %4193 = vmatpush.bf16.msrb.mxu2 %v10163_v18  ;;  %v8982_v7 = vld [vmem:[#allocation8 + $0x2d0] sm:$0xf]  ;;  %v3944_v15 = vadd.f32 %v3943_v53, %v3930_v5  ;;  %v3957_v19 = vpop.f32.mrf.mxu1  ;;  %v13904_v34 = vpop.f32.mrf.mxu2 }
 0x1df   :  { %v12611_v9 = vld [vmem:[#allocation8 + $0x2ec] sm:$0xf0] }
 0x1e0   :  { %4229 = vmatpush.bf16.msra.mxu1 %v9079_v17  ;;  %4207 = vmatpush.bf16.msrb.mxu3 %v10419_v24  ;;  %v12683_v14 = vld [vmem:[#allocation8 + $0x52c] sm:$0xf0]  ;;  %v8983_v21 = vor.u32 %v12611_v9, %v8982_v7  ;;  %v3958_v28 = vadd.f32 %v3957_v19, %v3944_v15 }
 0x1e1   :  { %4194 = vmatmul.bf16.vlgmr.msrb.gmra.mxu2 %v13841_v62  ;;  %v9526_v17 = vld [vmem:[#allocation8 + $0x710] sm:$0xf]  ;;  %v9271_v29 = vor.u32 %v12683_v14, %v9270_v11 }
 0x1e2   :  { %4242 = vmatpush.bf16.msra.mxu2 %v9367_v2  ;;  %4216 = vmatpush.bf16.msra.mxu0 %v8791_v35  ;;  %v12747_v18 = vld [vmem:[#allocation8 + $0x72c] sm:$0xf0] }
 0x1e3   :  { %4208 = vmatmul.bf16.vlgmr.msrb.gmra.mxu3 %v13843_v0  ;;  %v8694_v24 = vld [vmem:[#allocation8 + $0x90] sm:$0xf]  ;;  %v9527_v35 = vor.u32 %v12747_v18, %v9526_v17 }
 0x1e4   :  { %4256 = vmatpush.bf16.msra.mxu3 %v9623_v32  ;;  %4230 = vmatpush.bf16.msra.mxu1 %v9047_v40  ;;  %v12539_v2 = vld [vmem:[#allocation8 + $0xac] sm:$0xf0]  ;;  %v13906_v40 = vpop.f32.mrf.mxu3 }
 0x1e5   :  { %v8950_v32 = vld [vmem:[#allocation8 + $0x290] sm:$0xf]  ;;  %v8695_v41 = vor.u32 %v12539_v2, %v8694_v24 }
 0x1e6   :  { %4243 = vmatpush.bf16.msra.mxu2 %v9335_v43  ;;  %4217 = vmatpush.bf16.msra.mxu0 %v8759_v55  ;;  %v9238_v36 = vld [vmem:[#allocation8 + $0x4d0] sm:$0xf]  ;;  %v8951_v38 = vor.u32 %v12603_v33, %v8950_v32  ;;  %v3971_v18 = vpop.f32.mrf.mxu2 }
 0x1e7   :  { %v12675_v39 = vld [vmem:[#allocation8 + $0x4ec] sm:$0xf0]  ;;  %v3972_v2 = vadd.f32 %v3971_v18, %v3958_v28  ;;  %v13914_v18 = vpop.f32.mrf.mxu1 }
 0x1e8   :  { %4257 = vmatpush.bf16.msra.mxu3 %v9591_v46  ;;  %4231 = vmatpush.bf16.msra.mxu1 %v9015_v61  ;;  %v9494_v42 = vld [vmem:[#allocation8 + $0x6d0] sm:$0xf]  ;;  %v9239_v46 = vor.u32 %v12675_v39, %v9238_v36 }
 0x1e9   :  { %v12739_v43 = vld [vmem:[#allocation8 + $0x6ec] sm:$0xf0] }
 0x1ea   :  { %4244 = vmatpush.bf16.msra.mxu2 %v9303_v6  ;;  %4218 = vmatpush.bf16.msra.mxu0 %v8727_v16  ;;  %v8662_v44 = vld [vmem:[#allocation8 + $0x50] sm:$0xf]  ;;  %v9495_v50 = vor.u32 %v12739_v43, %v9494_v42 }
 0x1eb   :  { %v12531_v45 = vld [vmem:[#allocation8 + $0x6c] sm:$0xf0] }
 0x1ec   :  { %4258 = vmatpush.bf16.msra.mxu3 %v9559_v10  ;;  %4232 = vmatpush.bf16.msra.mxu1 %v8983_v21  ;;  %v8918_v47 = vld [vmem:[#allocation8 + $0x250] sm:$0xf]  ;;  %v8663_v57 = vor.u32 %v12531_v45, %v8662_v44 }
 0x1ed   :  { %v12595_v49 = vld [vmem:[#allocation8 + $0x26c] sm:$0xf0] }
 0x1ee   :  { %4245 = vmatpush.bf16.msra.mxu2 %v9271_v29  ;;  %v9206_v52 = vld [vmem:[#allocation8 + $0x490] sm:$0xf]  ;;  %4219 = vmatpush.bf16.msra.mxu0 %v8695_v41  ;;  %v8919_v4 = vor.u32 %v12595_v49, %v8918_v47 }
 0x1ef   :  { %v12667_v55 = vld [vmem:[#allocation8 + $0x4ac] sm:$0xf0] }
 0x1f0   :  { %4259 = vmatpush.bf16.msra.mxu3 %v9527_v35  ;;  %v9462_v59 = vld [vmem:[#allocation8 + $0x690] sm:$0xf]  ;;  %4233 = vmatpush.bf16.msra.mxu1 %v8951_v38  ;;  %v9207_v9 = vor.u32 %v12667_v55, %v9206_v52  ;;  %v3985_v35 = vpop.f32.mrf.mxu3 }
 0x1f1   :  { %v12731_v61 = vld [vmem:[#allocation8 + $0x6ac] sm:$0xf0]  ;;  %v13908_v38 = vadd.f32 %v3985_v35, %v3972_v2 }
 0x1f2   :  { %v8630_v63 = vld [vmem:[#allocation8 + $0x10] sm:$0xf]  ;;  %4246 = vmatpush.bf16.msra.mxu2 %v9239_v46  ;;  %v9463_v14 = vor.u32 %v12731_v61, %v9462_v59  ;;  %4220 = vmatpush.bf16.msra.mxu0 %v8663_v57 }
 0x1f3   :  { %v12523_v5 = vld [vmem:[#allocation8 + $0x2c] sm:$0xf0]  ;;  %14289 = vst [vmem:[#allocation21_spill] sm:$0xff] %v13908_v38 }
 0x1f4   :  { %v8886_v6 = vld [vmem:[#allocation8 + $0x210] sm:$0xf]  ;;  %4260 = vmatpush.bf16.msra.mxu3 %v9495_v50  ;;  %v8631_v19 = vor.u32 %v12523_v5, %v8630_v63  ;;  %4234 = vmatpush.bf16.msra.mxu1 %v8919_v4 }
 0x1f5   :  { %v12587_v7 = vld [vmem:[#allocation8 + $0x22c] sm:$0xf0] }
 0x1f6   :  { %v9878_v53 = vld [vmem:[#allocation8 + $0x9d0] sm:$0xf]  ;;  %v8887_v29 = vor.u32 %v12587_v7, %v8886_v6  ;;  %4247 = vmatpush.bf16.msra.mxu2 %v9207_v9  ;;  %4221 = vmatpush.bf16.msra.mxu0 %v8631_v19 }
 0x1f7   :  { %v12835_v10 = vld [vmem:[#allocation8 + $0x9ec] sm:$0xf0] }
 0x1f8   :  { %v10134_v11 = vld [vmem:[#allocation8 + $0xbd0] sm:$0xf]  ;;  %v9879_v32 = vor.u32 %v12835_v10, %v9878_v53  ;;  %4261 = vmatpush.bf16.msra.mxu3 %v9463_v14  ;;  %4235 = vmatpush.bf16.msra.mxu1 %v8887_v29  ;;  %v13911_v53 = vpop.f32.mrf.mxu0 }
 0x1f9   :  { %v12899_v15 = vld [vmem:[#allocation8 + $0xbec] sm:$0xf0]  ;;  %4222 = vmatmul.bf16.vlgmr.msra.gmra.mxu0 %v13819_v26 }
 0x1fa   :  { %v9174_v16 = vld [vmem:[#allocation8 + $0x450] sm:$0xf]  ;;  %v10135_v36 = vor.u32 %v12899_v15, %v10134_v11  ;;  %4270 = vmatpush.bf16.msrb.mxu0 %v9879_v32 }
 0x1fb   :  { %v12659_v17 = vld [vmem:[#allocation8 + $0x46c] sm:$0xf0]  ;;  %4236 = vmatmul.bf16.vlgmr.msra.gmra.mxu1 %v13821_v31 }
 0x1fc   :  { %v9430_v21 = vld [vmem:[#allocation8 + $0x650] sm:$0xf]  ;;  %v9175_v39 = vor.u32 %v12659_v17, %v9174_v16  ;;  %4284 = vmatpush.bf16.msrb.mxu1 %v10135_v36 }
 0x1fd   :  { %v12723_v24 = vld [vmem:[#allocation8 + $0x66c] sm:$0xf0] }
 0x1fe   :  { %v9846_v33 = vld [vmem:[#allocation8 + $0x990] sm:$0xf]  ;;  %v9431_v44 = vor.u32 %v12723_v24, %v9430_v21  ;;  %4248 = vmatpush.bf16.msra.mxu2 %v9175_v39  ;;  %v14283_v39 = vperm.slane %v13859_v1, 2 }
 0x1ff   :  { %v12827_v41 = vld [vmem:[#allocation8 + $0x9ac] sm:$0xf0] }
 0x200   :  { %v10102_v42 = vld [vmem:[#allocation8 + $0xb90] sm:$0xf]  ;;  %v9847_v52 = vor.u32 %v12827_v41, %v9846_v33  ;;  %4262 = vmatpush.bf16.msra.mxu3 %v9431_v44 }
 0x201   :  { %v12891_v43 = vld [vmem:[#allocation8 + $0xbac] sm:$0xf0] }
 0x202   :  { %v9142_v45 = vld [vmem:[#allocation8 + $0x410] sm:$0xf]  ;;  %v10103_v59 = vor.u32 %v12891_v43, %v10102_v42  ;;  %4271 = vmatpush.bf16.msrb.mxu0 %v9847_v52 }
 0x203   :  { %v12651_v46 = vld [vmem:[#allocation8 + $0x42c] sm:$0xf0] }
 0x204   :  { %v9398_v47 = vld [vmem:[#allocation8 + $0x610] sm:$0xf]  ;;  %v9143_v61 = vor.u32 %v12651_v46, %v9142_v45  ;;  %4285 = vmatpush.bf16.msrb.mxu1 %v10103_v59 }
 0x205   :  { %v12715_v28 = vld [vmem:[#allocation8 + $0x62c] sm:$0xf0] }
 0x206   :  { %v10390_v49 = vld [vmem:[#allocation8 + $0xdd0] sm:$0xf]  ;;  %v9399_v5 = vor.u32 %v12715_v28, %v9398_v47  ;;  %4249 = vmatpush.bf16.msra.mxu2 %v9143_v61 }
 0x207   :  { %v12963_v50 = vld [vmem:[#allocation8 + $0xdec] sm:$0xf0] }
 0x208   :  { %v10646_v55 = vld [vmem:[#allocation8 + $0xfd0] sm:$0xf]  ;;  %v10391_v6 = vor.u32 %v12963_v50, %v10390_v49  ;;  %4263 = vmatpush.bf16.msra.mxu3 %v9399_v5  ;;  %v3999_v50 = vpop.f32.mrf.mxu0  ;;  %v4013_v5 = vpop.f32.mrf.mxu1 }
 0x209   :  { %v13027_v57 = vld [vmem:[#allocation8 + $0xfec] sm:$0xf0]  ;;  %4250 = vmatmul.bf16.vlgmr.msra.gmra.mxu2 %v13825_v54  ;;  %v4000_v59 = vadd.f32 %v3999_v50, %v14283_v39 }
 0x20a   :  { %v9814_v63 = vld [vmem:[#allocation8 + $0x950] sm:$0xf]  ;;  %v10647_v10 = vor.u32 %v13027_v57, %v10646_v55  ;;  %4298 = vmatpush.bf16.msrb.mxu2 %v10391_v6 }
 0x20b   :  { %v12819_v4 = vld [vmem:[#allocation8 + $0x96c] sm:$0xf0]  ;;  %4264 = vmatmul.bf16.vlgmr.msra.gmra.mxu3 %v13827_v60 }
 0x20c   :  { %v10070_v7 = vld [vmem:[#allocation8 + $0xb50] sm:$0xf]  ;;  %v9815_v15 = vor.u32 %v12819_v4, %v9814_v63  ;;  %4312 = vmatpush.bf16.msrb.mxu3 %v10647_v10  ;;  %v4014_v10 = vadd.f32 %v4013_v5, %v4000_v59  ;;  %v12639_v5 = vld [vmem:[#allocation8 + $0x3d4] sm:$0xf] }
 0x20d   :  { %v12883_v9 = vld [vmem:[#allocation8 + $0xb6c] sm:$0xf0] }
 0x20e   :  { %v10358_v11 = vld [vmem:[#allocation8 + $0xd90] sm:$0xf]  ;;  %v10071_v19 = vor.u32 %v12883_v9, %v10070_v7  ;;  %4272 = vmatpush.bf16.msrb.mxu0 %v9815_v15 }
 0x20f   :  { %v12955_v14 = vld [vmem:[#allocation8 + $0xdac] sm:$0xf0] }
 0x210   :  { %v10614_v16 = vld [vmem:[#allocation8 + $0xf90] sm:$0xf]  ;;  %v10359_v2 = vor.u32 %v12955_v14, %v10358_v11  ;;  %4286 = vmatpush.bf16.msrb.mxu1 %v10071_v19 }
 0x211   :  { %v13019_v17 = vld [vmem:[#allocation8 + $0xfac] sm:$0xf0] }
 0x212   :  { %v9782_v21 = vld [vmem:[#allocation8 + $0x910] sm:$0xf]  ;;  %v10615_v33 = vor.u32 %v13019_v17, %v10614_v16  ;;  %4299 = vmatpush.bf16.msrb.mxu2 %v10359_v2  ;;  %v13921_v16 = vpop.f32.mrf.mxu2 }
 0x213   :  { %v12811_v24 = vld [vmem:[#allocation8 + $0x92c] sm:$0xf0] }
 0x214   :  { %v10038_v29 = vld [vmem:[#allocation8 + $0xb10] sm:$0xf]  ;;  %v9783_v41 = vor.u32 %v12811_v24, %v9782_v21  ;;  %4313 = vmatpush.bf16.msrb.mxu3 %v10615_v33 }
 0x215   :  { %v12875_v32 = vld [vmem:[#allocation8 + $0xb2c] sm:$0xf0] }
 0x216   :  { %v10326_v35 = vld [vmem:[#allocation8 + $0xd50] sm:$0xf]  ;;  %v10039_v44 = vor.u32 %v12875_v32, %v10038_v29  ;;  %4273 = vmatpush.bf16.msrb.mxu0 %v9783_v41  ;;  %v13923_v32 = vpop.f32.mrf.mxu3 }
 0x217   :  { %v12947_v36 = vld [vmem:[#allocation8 + $0xd6c] sm:$0xf0] }
 0x218   :  { %v10582_v42 = vld [vmem:[#allocation8 + $0xf50] sm:$0xf]  ;;  %v10327_v47 = vor.u32 %v12947_v36, %v10326_v35  ;;  %4287 = vmatpush.bf16.msrb.mxu1 %v10039_v44 }
 0x219   :  { %v13011_v43 = vld [vmem:[#allocation8 + $0xf6c] sm:$0xf0] }
 0x21a   :  { %v9750_v45 = vld [vmem:[#allocation8 + $0x8d0] sm:$0xf]  ;;  %v10583_v52 = vor.u32 %v13011_v43, %v10582_v42  ;;  %4300 = vmatpush.bf16.msrb.mxu2 %v10327_v47 }
 0x21b   :  { %v12803_v46 = vld [vmem:[#allocation8 + $0x8ec] sm:$0xf0] }
 0x21c   :  { %v10006_v28 = vld [vmem:[#allocation8 + $0xad0] sm:$0xf]  ;;  %v9751_v61 = vor.u32 %v12803_v46, %v9750_v45  ;;  %4314 = vmatpush.bf16.msrb.mxu3 %v10583_v52 }
 0x21d   :  { %v12867_v49 = vld [vmem:[#allocation8 + $0xaec] sm:$0xf0] }
 0x21e   :  { %v10294_v55 = vld [vmem:[#allocation8 + $0xd10] sm:$0xf]  ;;  %v10007_v6 = vor.u32 %v12867_v49, %v10006_v28  ;;  %4274 = vmatpush.bf16.msrb.mxu0 %v9751_v61 }
 0x21f   :  { %v12939_v57 = vld [vmem:[#allocation8 + $0xd2c] sm:$0xf0] }
 0x220   :  { %v10550_v63 = vld [vmem:[#allocation8 + $0xf10] sm:$0xf]  ;;  %v10295_v11 = vor.u32 %v12939_v57, %v10294_v55  ;;  %4288 = vmatpush.bf16.msrb.mxu1 %v10007_v6  ;;  %v4027_v6 = vpop.f32.mrf.mxu2 }
 0x221   :  { %v13003_v4 = vld [vmem:[#allocation8 + $0xf2c] sm:$0xf0] }
 0x222   :  { %v9718_v7 = vld [vmem:[#allocation8 + $0x890] sm:$0xf]  ;;  %v10551_v17 = vor.u32 %v13003_v4, %v10550_v63  ;;  %4301 = vmatpush.bf16.msrb.mxu2 %v10295_v11  ;;  %v12575_v63 = vld [vmem:[#allocation8 + $0x1d4] sm:$0xf] }
 0x223   :  { %v12795_v9 = vld [vmem:[#allocation8 + $0x8ac] sm:$0xf0]  ;;  %v8856_v4 = vld [vmem:[#allocation8 + $0x1f0] sm:$0xf0] }
 0x224   :  { %v9974_v14 = vld [vmem:[#allocation8 + $0xa90] sm:$0xf]  ;;  %v9719_v24 = vor.u32 %v12795_v9, %v9718_v7  ;;  %4315 = vmatpush.bf16.msrb.mxu3 %v10551_v17  ;;  %v9112_v9 = vld [vmem:[#allocation8 + $0x3f0] sm:$0xf0] }
 0x225   :  { %v12859_v15 = vld [vmem:[#allocation8 + $0xaac] sm:$0xf0] }
 0x226   :  { %v10262_v19 = vld [vmem:[#allocation8 + $0xcd0] sm:$0xf]  ;;  %v9975_v33 = vor.u32 %v12859_v15, %v9974_v14  ;;  %4275 = vmatpush.bf16.msrb.mxu0 %v9719_v24  ;;  %v4028_v15 = vadd.f32 %v4027_v6, %v4014_v10  ;;  %v4041_v24 = vpop.f32.mrf.mxu3 }
 0x227   :  { %v12931_v21 = vld [vmem:[#allocation8 + $0xcec] sm:$0xf0] }
 0x228   :  { %v10518_v2 = vld [vmem:[#allocation8 + $0xed0] sm:$0xf]  ;;  %v10263_v41 = vor.u32 %v12931_v21, %v10262_v19  ;;  %4289 = vmatpush.bf16.msrb.mxu1 %v9975_v33  ;;  %v12567_v33 = vld [vmem:[#allocation8 + $0x194] sm:$0xf] }
 0x229   :  { %v12995_v29 = vld [vmem:[#allocation8 + $0xeec] sm:$0xf0] }
 0x22a   :  { %v9686_v35 = vld [vmem:[#allocation8 + $0x850] sm:$0xf]  ;;  %v10519_v44 = vor.u32 %v12995_v29, %v10518_v2  ;;  %4302 = vmatpush.bf16.msrb.mxu2 %v10263_v41  ;;  %v8859_v29 = vor.u32 %v12575_v63, %v8856_v4  ;;  %v12559_v63 = vld [vmem:[#allocation8 + $0x154] sm:$0xf] }
 0x22b   :  { %v12787_v36 = vld [vmem:[#allocation8 + $0x86c] sm:$0xf0]  ;;  %v8792_v4 = vld [vmem:[#allocation8 + $0x170] sm:$0xf0] }
 0x22c   :  { %v9942_v42 = vld [vmem:[#allocation8 + $0xa50] sm:$0xf]  ;;  %v9687_v47 = vor.u32 %v12787_v36, %v9686_v35  ;;  %4316 = vmatpush.bf16.msrb.mxu3 %v10519_v44  ;;  %v13925_v35 = vadd.f32 %v4041_v24, %v4028_v15  ;;  %v9115_v36 = vor.u32 %v12639_v5, %v9112_v9  ;;  %v9080_v44 = vld [vmem:[#allocation8 + $0x3b0] sm:$0xf0] }
 0x22d   :  { %v12851_v43 = vld [vmem:[#allocation8 + $0xa6c] sm:$0xf0]  ;;  %v9048_v9 = vld [vmem:[#allocation8 + $0x370] sm:$0xf0] }
 0x22e   :  { %v10230_v45 = vld [vmem:[#allocation8 + $0xc90] sm:$0xf]  ;;  %v9943_v52 = vor.u32 %v12851_v43, %v9942_v42  ;;  %4276 = vmatpush.bf16.msrb.mxu0 %v9687_v47  ;;  %v8824_v42 = vld [vmem:[#allocation8 + $0x1b0] sm:$0xf0] }
 0x22f   :  { %v12923_v46 = vld [vmem:[#allocation8 + $0xcac] sm:$0xf0]  ;;  %v12631_v43 = vld [vmem:[#allocation8 + $0x394] sm:$0xf] }
 0x230   :  { %v10486_v28 = vld [vmem:[#allocation8 + $0xe90] sm:$0xf]  ;;  %v10231_v61 = vor.u32 %v12923_v46, %v10230_v45  ;;  %4290 = vmatpush.bf16.msrb.mxu1 %v9943_v52  ;;  %v8827_v52 = vor.u32 %v12567_v33, %v8824_v42  ;;  %v12695_v15 = vld [vmem:[#allocation8 + $0x594] sm:$0xf] }
 0x231   :  { %v12987_v49 = vld [vmem:[#allocation8 + $0xeac] sm:$0xf0]  ;;  %v9592_v24 = vld [vmem:[#allocation8 + $0x7b0] sm:$0xf0] }
 0x232   :  { %v9654_v50 = vld [vmem:[#allocation8 + $0x810] sm:$0xf]  ;;  %v10487_v7 = vor.u32 %v12987_v49, %v10486_v28  ;;  %4303 = vmatpush.bf16.msrb.mxu2 %v10231_v61  ;;  %v12703_v49 = vld [vmem:[#allocation8 + $0x5d4] sm:$0xf] }
 0x233   :  { %v12779_v55 = vld [vmem:[#allocation8 + $0x82c] sm:$0xf0]  ;;  %v12551_v33 = vld [vmem:[#allocation8 + $0x114] sm:$0xf] }
 0x234   :  { %v9910_v57 = vld [vmem:[#allocation8 + $0xa10] sm:$0xf]  ;;  %v9655_v17 = vor.u32 %v12779_v55, %v9654_v50  ;;  %4317 = vmatpush.bf16.msrb.mxu3 %v10487_v7  ;;  %v9368_v50 = vld [vmem:[#allocation8 + $0x5f0] sm:$0xf0] }
 0x235   :  { %v12843_v59 = vld [vmem:[#allocation8 + $0xa2c] sm:$0xf0]  ;;  %v12767_v55 = vld [vmem:[#allocation8 + $0x7d4] sm:$0xf]  ;;  %v9371_v6 = vor.u32 %v12703_v49, %v9368_v50 }
 0x236   :  { %v10198_v11 = vld [vmem:[#allocation8 + $0xc50] sm:$0xf]  ;;  %v9911_v2 = vor.u32 %v12843_v59, %v9910_v57  ;;  %4277 = vmatpush.bf16.msrb.mxu0 %v9655_v17  ;;  %v9624_v57 = vld [vmem:[#allocation8 + $0x7f0] sm:$0xf0]  ;;  %v9083_v59 = vor.u32 %v12631_v43, %v9080_v44 }
 0x237   :  { %v12915_v14 = vld [vmem:[#allocation8 + $0xc6c] sm:$0xf0]  ;;  %v12623_v7 = vld [vmem:[#allocation8 + $0x354] sm:$0xf] }
 0x238   :  { %v10454_v19 = vld [vmem:[#allocation8 + $0xe50] sm:$0xf]  ;;  %v10199_v41 = vor.u32 %v12915_v14, %v10198_v11  ;;  %4291 = vmatpush.bf16.msrb.mxu1 %v9911_v2  ;;  %v13928_v11 = vpop.f32.mrf.mxu0  ;;  %v9627_v14 = vor.u32 %v12767_v55, %v9624_v57  ;;  %v9336_v17 = vld [vmem:[#allocation8 + $0x5b0] sm:$0xf0]  ;;  %v13931_v2 = vpop.f32.mrf.mxu1 }
 0x239   :  { %v12979_v21 = vld [vmem:[#allocation8 + $0xe6c] sm:$0xf0]  ;;  %4278 = vmatmul.bf16.vlgmr.msrb.gmra.mxu0 %v13835_v23  ;;  %v12615_v42 = vld [vmem:[#allocation8 + $0x314] sm:$0xf] }
 0x23a   :  { %v10455_v45 = vor.u32 %v12979_v21, %v10454_v19  ;;  %v10166_v10 = vld [vmem:[#allocation8 + $0xc10] sm:$0xf]  ;;  %4326 = vmatpush.bf16.msra.mxu0 %v8859_v29  ;;  %4304 = vmatpush.bf16.msrb.mxu2 %v10199_v41  ;;  %v8795_v19 = vor.u32 %v12559_v63, %v8792_v4  ;;  %v12759_v21 = vld [vmem:[#allocation8 + $0x794] sm:$0xf]  ;;  %v9051_v29 = vor.u32 %v12623_v7, %v9048_v9 }
 0x23b   :  { %v12907_v46 = vld [vmem:[#allocation8 + $0xc2c] sm:$0xf0]  ;;  %4292 = vmatmul.bf16.vlgmr.msrb.gmra.mxu1 %v13837_v27  ;;  %v9339_v41 = vor.u32 %v12695_v15, %v9336_v17  ;;  %v9016_v43 = vld [vmem:[#allocation8 + $0x330] sm:$0xf0]  ;;  %v9595_v44 = vor.u32 %v12759_v21, %v9592_v24 }
 0x23c   :  { %v10422_v47 = vld [vmem:[#allocation8 + $0xe10] sm:$0xf]  ;;  %4340 = vmatpush.bf16.msra.mxu1 %v9115_v36  ;;  %v10167_v61 = vor.u32 %v12907_v46, %v10166_v10  ;;  %4318 = vmatpush.bf16.msrb.mxu3 %v10455_v45  ;;  %v8760_v36 = vld [vmem:[#allocation8 + $0x130] sm:$0xf0]  ;;  %v9019_v49 = vor.u32 %v12615_v42, %v9016_v43 }
 0x23d   :  { %v12971_v28 = vld [vmem:[#allocation8 + $0xe2c] sm:$0xf0]  ;;  %v12687_v45 = vld [vmem:[#allocation8 + $0x554] sm:$0xf]  ;;  %v8763_v46 = vor.u32 %v12551_v33, %v8760_v36 }
 0x23e   :  { %v10423_v5 = vor.u32 %v12971_v28, %v10422_v47  ;;  %4327 = vmatpush.bf16.msra.mxu0 %v8827_v52  ;;  %4305 = vmatpush.bf16.msrb.mxu2 %v10167_v61  ;;  %v9304_v10 = vld [vmem:[#allocation8 + $0x570] sm:$0xf0] }
 0x23f   :  { %v12751_v47 = vld [vmem:[#allocation8 + $0x754] sm:$0xf]  ;;  %v9307_v55 = vor.u32 %v12687_v45, %v9304_v10 }
 0x240   :  { %4341 = vmatpush.bf16.msra.mxu1 %v9083_v59  ;;  %4319 = vmatpush.bf16.msrb.mxu3 %v10423_v5  ;;  %v9560_v28 = vld [vmem:[#allocation8 + $0x770] sm:$0xf0]  ;;  %v4055_v61 = vpop.f32.mrf.mxu0  ;;  %v4069_v15 = vpop.f32.mrf.mxu1 }
 0x241   :  { %4306 = vmatmul.bf16.vlgmr.msrb.gmra.mxu2 %v13841_v62  ;;  %v12543_v50 = vld [vmem:[#allocation8 + $0xd4] sm:$0xf]  ;;  %v9563_v63 = vor.u32 %v12751_v47, %v9560_v28 }
 0x242   :  { %4354 = vmatpush.bf16.msra.mxu2 %v9371_v6  ;;  %4328 = vmatpush.bf16.msra.mxu0 %v8795_v19  ;;  %v8728_v52 = vld [vmem:[#allocation8 + $0xf0] sm:$0xf0]  ;;  %v4056_v6 = vadd.f32 %v4055_v61, %v13925_v35 }
 0x243   :  { %4320 = vmatmul.bf16.vlgmr.msrb.gmra.mxu3 %v13843_v0  ;;  %v12607_v57 = vld [vmem:[#allocation8 + $0x2d4] sm:$0xf]  ;;  %v8731_v7 = vor.u32 %v12543_v50, %v8728_v52 }
 0x244   :  { %4368 = vmatpush.bf16.msra.mxu3 %v9627_v14  ;;  %4342 = vmatpush.bf16.msra.mxu1 %v9051_v29  ;;  %v8984_v59 = vld [vmem:[#allocation8 + $0x2f0] sm:$0xf0]  ;;  %v4070_v24 = vadd.f32 %v4069_v15, %v4056_v6 }
 0x245   :  { %v12679_v4 = vld [vmem:[#allocation8 + $0x514] sm:$0xf]  ;;  %v8987_v17 = vor.u32 %v12607_v57, %v8984_v59 }
 0x246   :  { %4355 = vmatpush.bf16.msra.mxu2 %v9339_v41  ;;  %v9272_v5 = vld [vmem:[#allocation8 + $0x530] sm:$0xf0]  ;;  %4329 = vmatpush.bf16.msra.mxu0 %v8763_v46  ;;  %v13936_v41 = vpop.f32.mrf.mxu2  ;;  %v13938_v46 = vpop.f32.mrf.mxu3 }
 0x247   :  { %v12743_v9 = vld [vmem:[#allocation8 + $0x714] sm:$0xf]  ;;  %v9275_v29 = vor.u32 %v12679_v4, %v9272_v5 }
 0x248   :  { %4369 = vmatpush.bf16.msra.mxu3 %v9595_v44  ;;  %v9528_v14 = vld [vmem:[#allocation8 + $0x730] sm:$0xf0]  ;;  %4343 = vmatpush.bf16.msra.mxu1 %v9019_v49 }
 0x249   :  { %v12535_v19 = vld [vmem:[#allocation8 + $0x94] sm:$0xf]  ;;  %v9531_v42 = vor.u32 %v12743_v9, %v9528_v14 }
 0x24a   :  { %v8696_v21 = vld [vmem:[#allocation8 + $0xb0] sm:$0xf0]  ;;  %4356 = vmatpush.bf16.msra.mxu2 %v9307_v55  ;;  %4330 = vmatpush.bf16.msra.mxu0 %v8731_v7 }
 0x24b   :  { %v12599_v33 = vld [vmem:[#allocation8 + $0x294] sm:$0xf]  ;;  %v8699_v44 = vor.u32 %v12535_v19, %v8696_v21 }
 0x24c   :  { %v8952_v36 = vld [vmem:[#allocation8 + $0x2b0] sm:$0xf0]  ;;  %4370 = vmatpush.bf16.msra.mxu3 %v9563_v63  ;;  %4344 = vmatpush.bf16.msra.mxu1 %v8987_v17 }
 0x24d   :  { %v12671_v43 = vld [vmem:[#allocation8 + $0x4d4] sm:$0xf]  ;;  %v8955_v47 = vor.u32 %v12599_v33, %v8952_v36 }
 0x24e   :  { %v9240_v35 = vld [vmem:[#allocation8 + $0x4f0] sm:$0xf0]  ;;  %4357 = vmatpush.bf16.msra.mxu2 %v9275_v29  ;;  %4331 = vmatpush.bf16.msra.mxu0 %v8699_v44  ;;  %v4083_v33 = vpop.f32.mrf.mxu2 }
 0x24f   :  { %v12735_v45 = vld [vmem:[#allocation8 + $0x6d4] sm:$0xf]  ;;  %v9243_v50 = vor.u32 %v12671_v43, %v9240_v35  ;;  %v4084_v44 = vadd.f32 %v4083_v33, %v4070_v24 }
 0x250   :  { %v9496_v10 = vld [vmem:[#allocation8 + $0x6f0] sm:$0xf0]  ;;  %4371 = vmatpush.bf16.msra.mxu3 %v9531_v42  ;;  %4345 = vmatpush.bf16.msra.mxu1 %v8955_v47 }
 0x251   :  { %v12527_v28 = vld [vmem:[#allocation8 + $0x54] sm:$0xf]  ;;  %v9499_v57 = vor.u32 %v12735_v45, %v9496_v10 }
 0x252   :  { %v8664_v49 = vld [vmem:[#allocation8 + $0x70] sm:$0xf0]  ;;  %4358 = vmatpush.bf16.msra.mxu2 %v9243_v50 }
 0x253   :  { %v12591_v52 = vld [vmem:[#allocation8 + $0x254] sm:$0xf]  ;;  %v8667_v63 = vor.u32 %v12527_v28, %v8664_v49  ;;  %v4097_v28 = vpop.f32.mrf.mxu3 }
 0x254   :  { %v8920_v55 = vld [vmem:[#allocation8 + $0x270] sm:$0xf0]  ;;  %4372 = vmatpush.bf16.msra.mxu3 %v9499_v57 }
 0x255   :  { %v12663_v59 = vld [vmem:[#allocation8 + $0x494] sm:$0xf]  ;;  %v8923_v7 = vor.u32 %v12591_v52, %v8920_v55  ;;  %4332 = vmatpush.bf16.msra.mxu0 %v8667_v63  ;;  %v13940_v55 = vadd.f32 %v4097_v28, %v4084_v44 }
 0x256   :  { %v9208_v61 = vld [vmem:[#allocation8 + $0x4b0] sm:$0xf0] }
 0x257   :  { %v12727_v4 = vld [vmem:[#allocation8 + $0x694] sm:$0xf]  ;;  %v9211_v17 = vor.u32 %v12663_v59, %v9208_v61  ;;  %4346 = vmatpush.bf16.msra.mxu1 %v8923_v7  ;;  %14290 = vst [vmem:[#allocation22_spill] sm:$0xff] %v13940_v55  ;;  %v9376_v55 = vld [vmem:[#allocation8 + $0x5f8] sm:$0xf0] }
 0x258   :  { %v9464_v5 = vld [vmem:[#allocation8 + $0x6b0] sm:$0xf0] }
 0x259   :  { %v12519_v6 = vld [vmem:[#allocation8 + $0x14] sm:$0xf]  ;;  %v9467_v36 = vor.u32 %v12727_v4, %v9464_v5  ;;  %4359 = vmatpush.bf16.msra.mxu2 %v9211_v17 }
 0x25a   :  { %v8632_v9 = vld [vmem:[#allocation8 + $0x30] sm:$0xf0] }
 0x25b   :  { %v12583_v14 = vld [vmem:[#allocation8 + $0x214] sm:$0xf]  ;;  %v8635_v45 = vor.u32 %v12519_v6, %v8632_v9  ;;  %4373 = vmatpush.bf16.msra.mxu3 %v9467_v36 }
 0x25c   :  { %v8888_v15 = vld [vmem:[#allocation8 + $0x230] sm:$0xf0] }
 0x25d   :  { %v12831_v19 = vld [vmem:[#allocation8 + $0x9d4] sm:$0xf]  ;;  %v8891_v49 = vor.u32 %v12583_v14, %v8888_v15  ;;  %4333 = vmatpush.bf16.msra.mxu0 %v8635_v45 }
 0x25e   :  { %v9880_v21 = vld [vmem:[#allocation8 + $0x9f0] sm:$0xf0] }
 0x25f   :  { %v12895_v29 = vld [vmem:[#allocation8 + $0xbd4] sm:$0xf]  ;;  %v9883_v52 = vor.u32 %v12831_v19, %v9880_v21  ;;  %4347 = vmatpush.bf16.msra.mxu1 %v8891_v49 }
 0x260   :  { %v10136_v42 = vld [vmem:[#allocation8 + $0xbf0] sm:$0xf0]  ;;  %4334 = vmatmul.bf16.vlgmr.msra.gmra.mxu0 %v13819_v26 }
 0x261   :  { %v12655_v43 = vld [vmem:[#allocation8 + $0x454] sm:$0xf]  ;;  %v10139_v59 = vor.u32 %v12895_v29, %v10136_v42  ;;  %4382 = vmatpush.bf16.msrb.mxu0 %v9883_v52 }
 0x262   :  { %v9176_v35 = vld [vmem:[#allocation8 + $0x470] sm:$0xf0]  ;;  %4348 = vmatmul.bf16.vlgmr.msra.gmra.mxu1 %v13821_v31 }
 0x263   :  { %v12719_v10 = vld [vmem:[#allocation8 + $0x654] sm:$0xf]  ;;  %v9179_v57 = vor.u32 %v12655_v43, %v9176_v35  ;;  %4396 = vmatpush.bf16.msrb.mxu1 %v10139_v59 }
 0x264   :  { %v9432_v47 = vld [vmem:[#allocation8 + $0x670] sm:$0xf0] }
 0x265   :  { %v12823_v50 = vld [vmem:[#allocation8 + $0x994] sm:$0xf]  ;;  %v9435_v39 = vor.u32 %v12719_v10, %v9432_v47  ;;  %4360 = vmatpush.bf16.msra.mxu2 %v9179_v57 }
 0x266   :  { %v9848_v61 = vld [vmem:[#allocation8 + $0x9b0] sm:$0xf0] }
 0x267   :  { %v12887_v4 = vld [vmem:[#allocation8 + $0xb94] sm:$0xf]  ;;  %v9851_v14 = vor.u32 %v12823_v50, %v9848_v61  ;;  %4374 = vmatpush.bf16.msra.mxu3 %v9435_v39 }
 0x268   :  { %v10104_v5 = vld [vmem:[#allocation8 + $0xbb0] sm:$0xf0] }
 0x269   :  { %v12647_v24 = vld [vmem:[#allocation8 + $0x414] sm:$0xf]  ;;  %v10107_v17 = vor.u32 %v12887_v4, %v10104_v5  ;;  %4383 = vmatpush.bf16.msrb.mxu0 %v9851_v14 }
 0x26a   :  { %v9144_v63 = vld [vmem:[#allocation8 + $0x430] sm:$0xf0] }
 0x26b   :  { %v12711_v6 = vld [vmem:[#allocation8 + $0x614] sm:$0xf]  ;;  %v9147_v21 = vor.u32 %v12647_v24, %v9144_v63  ;;  %4397 = vmatpush.bf16.msrb.mxu1 %v10107_v17 }
 0x26c   :  { %v9400_v9 = vld [vmem:[#allocation8 + $0x630] sm:$0xf0] }
 0x26d   :  { %v12959_v33 = vld [vmem:[#allocation8 + $0xdd4] sm:$0xf]  ;;  %v9403_v36 = vor.u32 %v12711_v6, %v9400_v9  ;;  %4361 = vmatpush.bf16.msra.mxu2 %v9147_v21 }
 0x26e   :  { %v10392_v7 = vld [vmem:[#allocation8 + $0xdf0] sm:$0xf0] }
 0x26f   :  { %v13023_v15 = vld [vmem:[#allocation8 + $0xfd4] sm:$0xf]  ;;  %v10395_v43 = vor.u32 %v12959_v33, %v10392_v7  ;;  %4375 = vmatpush.bf16.msra.mxu3 %v9403_v36 }
 0x270   :  { %v10648_v19 = vld [vmem:[#allocation8 + $0xff0] sm:$0xf0]  ;;  %4362 = vmatmul.bf16.vlgmr.msra.gmra.mxu2 %v13825_v54 }
 0x271   :  { %v12815_v29 = vld [vmem:[#allocation8 + $0x954] sm:$0xf]  ;;  %v10651_v45 = vor.u32 %v13023_v15, %v10648_v19  ;;  %4410 = vmatpush.bf16.msrb.mxu2 %v10395_v43 }
 0x272   :  { %v9816_v42 = vld [vmem:[#allocation8 + $0x970] sm:$0xf0]  ;;  %4376 = vmatmul.bf16.vlgmr.msra.gmra.mxu3 %v13827_v60 }
 0x273   :  { %v12879_v35 = vld [vmem:[#allocation8 + $0xb54] sm:$0xf]  ;;  %v9819_v28 = vor.u32 %v12815_v29, %v9816_v42  ;;  %4424 = vmatpush.bf16.msrb.mxu3 %v10651_v45 }
 0x274   :  { %v10072_v44 = vld [vmem:[#allocation8 + $0xb70] sm:$0xf0] }
 0x275   :  { %v12951_v10 = vld [vmem:[#allocation8 + $0xd94] sm:$0xf]  ;;  %v10075_v50 = vor.u32 %v12879_v35, %v10072_v44  ;;  %4384 = vmatpush.bf16.msrb.mxu0 %v9819_v28 }
 0x276   :  { %v10360_v47 = vld [vmem:[#allocation8 + $0xdb0] sm:$0xf0] }
 0x277   :  { %v13015_v49 = vld [vmem:[#allocation8 + $0xf94] sm:$0xf]  ;;  %v10363_v57 = vor.u32 %v12951_v10, %v10360_v47  ;;  %4398 = vmatpush.bf16.msrb.mxu1 %v10075_v50 }
 0x278   :  { %v10616_v52 = vld [vmem:[#allocation8 + $0xfb0] sm:$0xf0] }
 0x279   :  { %v12807_v59 = vld [vmem:[#allocation8 + $0x914] sm:$0xf]  ;;  %v10619_v5 = vor.u32 %v13015_v49, %v10616_v52  ;;  %4411 = vmatpush.bf16.msrb.mxu2 %v10363_v57 }
 0x27a   :  { %v9784_v39 = vld [vmem:[#allocation8 + $0x930] sm:$0xf0] }
 0x27b   :  { %v12871_v61 = vld [vmem:[#allocation8 + $0xb14] sm:$0xf]  ;;  %v9787_v6 = vor.u32 %v12807_v59, %v9784_v39  ;;  %4425 = vmatpush.bf16.msrb.mxu3 %v10619_v5 }
 0x27c   :  { %v10040_v4 = vld [vmem:[#allocation8 + $0xb30] sm:$0xf0] }
 0x27d   :  { %v12943_v24 = vld [vmem:[#allocation8 + $0xd54] sm:$0xf]  ;;  %v10043_v7 = vor.u32 %v12871_v61, %v10040_v4  ;;  %4385 = vmatpush.bf16.msrb.mxu0 %v9787_v6 }
 0x27e   :  { %v10328_v63 = vld [vmem:[#allocation8 + $0xd70] sm:$0xf0] }
 0x27f   :  { %v13007_v9 = vld [vmem:[#allocation8 + $0xf54] sm:$0xf]  ;;  %v10331_v19 = vor.u32 %v12943_v24, %v10328_v63  ;;  %4399 = vmatpush.bf16.msrb.mxu1 %v10043_v7 }
 0x280   :  { %v10584_v33 = vld [vmem:[#allocation8 + $0xf70] sm:$0xf0] }
 0x281   :  { %v12799_v14 = vld [vmem:[#allocation8 + $0x8d4] sm:$0xf]  ;;  %v10587_v29 = vor.u32 %v13007_v9, %v10584_v33  ;;  %4412 = vmatpush.bf16.msrb.mxu2 %v10331_v19 }
 0x282   :  { %v9752_v15 = vld [vmem:[#allocation8 + $0x8f0] sm:$0xf0] }
 0x283   :  { %v12863_v17 = vld [vmem:[#allocation8 + $0xad4] sm:$0xf]  ;;  %v9755_v43 = vor.u32 %v12799_v14, %v9752_v15  ;;  %4426 = vmatpush.bf16.msrb.mxu3 %v10587_v29 }
 0x284   :  { %v10008_v21 = vld [vmem:[#allocation8 + $0xaf0] sm:$0xf0] }
 0x285   :  { %v12935_v42 = vld [vmem:[#allocation8 + $0xd14] sm:$0xf]  ;;  %v10011_v45 = vor.u32 %v12863_v17, %v10008_v21  ;;  %4386 = vmatpush.bf16.msrb.mxu0 %v9755_v43 }
 0x286   :  { %v10296_v36 = vld [vmem:[#allocation8 + $0xd30] sm:$0xf0] }
 0x287   :  { %v12999_v35 = vld [vmem:[#allocation8 + $0xf14] sm:$0xf]  ;;  %v10299_v28 = vor.u32 %v12935_v42, %v10296_v36  ;;  %4400 = vmatpush.bf16.msrb.mxu1 %v10011_v45  ;;  %v8862_v45 = vld [vmem:[#allocation8 + $0x1d8] sm:$0xf] }
 0x288   :  { %v10552_v44 = vld [vmem:[#allocation8 + $0xf30] sm:$0xf0] }
 0x289   :  { %v12791_v10 = vld [vmem:[#allocation8 + $0x894] sm:$0xf]  ;;  %v10555_v50 = vor.u32 %v12999_v35, %v10552_v44  ;;  %4413 = vmatpush.bf16.msrb.mxu2 %v10299_v28 }
 0x28a   :  { %v9720_v47 = vld [vmem:[#allocation8 + $0x8b0] sm:$0xf0] }
 0x28b   :  { %v12855_v49 = vld [vmem:[#allocation8 + $0xa94] sm:$0xf]  ;;  %v9723_v57 = vor.u32 %v12791_v10, %v9720_v47  ;;  %4427 = vmatpush.bf16.msrb.mxu3 %v10555_v50  ;;  %v12580_v10 = vld [vmem:[#allocation8 + $0x1f4] sm:$0xf0] }
 0x28c   :  { %v9976_v52 = vld [vmem:[#allocation8 + $0xab0] sm:$0xf0]  ;;  %v9118_v47 = vld [vmem:[#allocation8 + $0x3d8] sm:$0xf] }
 0x28d   :  { %v12927_v59 = vld [vmem:[#allocation8 + $0xcd4] sm:$0xf]  ;;  %v9979_v5 = vor.u32 %v12855_v49, %v9976_v52  ;;  %4387 = vmatpush.bf16.msrb.mxu0 %v9723_v57  ;;  %v12644_v49 = vld [vmem:[#allocation8 + $0x3f4] sm:$0xf0] }
 0x28e   :  { %v10264_v39 = vld [vmem:[#allocation8 + $0xcf0] sm:$0xf0] }
 0x28f   :  { %v12991_v61 = vld [vmem:[#allocation8 + $0xed4] sm:$0xf]  ;;  %v10267_v6 = vor.u32 %v12927_v59, %v10264_v39  ;;  %4401 = vmatpush.bf16.msrb.mxu1 %v9979_v5  ;;  %v8830_v5 = vld [vmem:[#allocation8 + $0x198] sm:$0xf] }
 0x290   :  { %v10520_v4 = vld [vmem:[#allocation8 + $0xef0] sm:$0xf0] }
 0x291   :  { %v12783_v24 = vld [vmem:[#allocation8 + $0x854] sm:$0xf]  ;;  %v10523_v7 = vor.u32 %v12991_v61, %v10520_v4  ;;  %4414 = vmatpush.bf16.msrb.mxu2 %v10267_v6  ;;  %v8863_v4 = vor.u32 %v12580_v10, %v8862_v45  ;;  %v12572_v6 = vld [vmem:[#allocation8 + $0x1b4] sm:$0xf0] }
 0x292   :  { %v9688_v63 = vld [vmem:[#allocation8 + $0x870] sm:$0xf0]  ;;  %v8798_v45 = vld [vmem:[#allocation8 + $0x158] sm:$0xf] }
 0x293   :  { %v12847_v9 = vld [vmem:[#allocation8 + $0xa54] sm:$0xf]  ;;  %v9691_v19 = vor.u32 %v12783_v24, %v9688_v63  ;;  %4428 = vmatpush.bf16.msrb.mxu3 %v10523_v7  ;;  %v9119_v24 = vor.u32 %v12644_v49, %v9118_v47  ;;  %v12564_v10 = vld [vmem:[#allocation8 + $0x174] sm:$0xf0] }
 0x294   :  { %v9944_v33 = vld [vmem:[#allocation8 + $0xa70] sm:$0xf0]  ;;  %v9054_v49 = vld [vmem:[#allocation8 + $0x358] sm:$0xf] }
 0x295   :  { %v12919_v14 = vld [vmem:[#allocation8 + $0xc94] sm:$0xf]  ;;  %v9947_v42 = vor.u32 %v12847_v9, %v9944_v33  ;;  %4388 = vmatpush.bf16.msrb.mxu0 %v9691_v19  ;;  %v9086_v9 = vld [vmem:[#allocation8 + $0x398] sm:$0xf] }
 0x296   :  { %v10232_v15 = vld [vmem:[#allocation8 + $0xcb0] sm:$0xf0]  ;;  %v12636_v33 = vld [vmem:[#allocation8 + $0x3b4] sm:$0xf0] }
 0x297   :  { %v12983_v17 = vld [vmem:[#allocation8 + $0xe94] sm:$0xf]  ;;  %v10235_v44 = vor.u32 %v12919_v14, %v10232_v15  ;;  %4402 = vmatpush.bf16.msrb.mxu1 %v9947_v42  ;;  %v8831_v42 = vor.u32 %v12572_v6, %v8830_v5 }
 0x298   :  { %v10488_v21 = vld [vmem:[#allocation8 + $0xeb0] sm:$0xf0] }
 0x299   :  { %v12775_v29 = vld [vmem:[#allocation8 + $0x814] sm:$0xf]  ;;  %v10491_v28 = vor.u32 %v12983_v17, %v10488_v21  ;;  %4415 = vmatpush.bf16.msrb.mxu2 %v10235_v44  ;;  %v9374_v21 = vld [vmem:[#allocation8 + $0x5d8] sm:$0xf] }
 0x29a   :  { %v9656_v36 = vld [vmem:[#allocation8 + $0x830] sm:$0xf0] }
 0x29b   :  { %v12839_v43 = vld [vmem:[#allocation8 + $0xa14] sm:$0xf]  ;;  %v9659_v59 = vor.u32 %v12775_v29, %v9656_v36  ;;  %4429 = vmatpush.bf16.msrb.mxu3 %v10491_v28  ;;  %v12708_v29 = vld [vmem:[#allocation8 + $0x5f4] sm:$0xf0] }
 0x29c   :  { %v9912_v35 = vld [vmem:[#allocation8 + $0xa30] sm:$0xf0]  ;;  %v9630_v36 = vld [vmem:[#allocation8 + $0x7d8] sm:$0xf]  ;;  %v9375_v28 = vor.u32 %v12708_v29, %v9374_v21 }
 0x29d   :  { %v12911_v52 = vld [vmem:[#allocation8 + $0xc54] sm:$0xf]  ;;  %v9915_v61 = vor.u32 %v12839_v43, %v9912_v35  ;;  %4389 = vmatpush.bf16.msrb.mxu0 %v9659_v59  ;;  %v12772_v43 = vld [vmem:[#allocation8 + $0x7f4] sm:$0xf0]  ;;  %v9087_v35 = vor.u32 %v12636_v33, %v9086_v9 }
 0x29e   :  { %v10200_v50 = vld [vmem:[#allocation8 + $0xc70] sm:$0xf0]  ;;  %v9342_v59 = vld [vmem:[#allocation8 + $0x598] sm:$0xf] }
 0x29f   :  { %v12975_v39 = vld [vmem:[#allocation8 + $0xe54] sm:$0xf]  ;;  %v10203_v63 = vor.u32 %v12911_v52, %v10200_v50  ;;  %4403 = vmatpush.bf16.msrb.mxu1 %v9915_v61  ;;  %v12628_v52 = vld [vmem:[#allocation8 + $0x374] sm:$0xf0]  ;;  %v9631_v50 = vor.u32 %v12772_v43, %v9630_v36 }
 0x2a0   :  { %v10456_v57 = vld [vmem:[#allocation8 + $0xe70] sm:$0xf0]  ;;  %4390 = vmatmul.bf16.vlgmr.msrb.gmra.mxu0 %v13835_v23  ;;  %v9598_v61 = vld [vmem:[#allocation8 + $0x798] sm:$0xf]  ;;  %v9055_v5 = vor.u32 %v12628_v52, %v9054_v49 }
 0x2a1   :  { %v10459_v7 = vor.u32 %v12975_v39, %v10456_v57  ;;  %v12903_v14 = vld [vmem:[#allocation8 + $0xc14] sm:$0xf]  ;;  %4438 = vmatpush.bf16.msra.mxu0 %v8863_v4  ;;  %4416 = vmatpush.bf16.msrb.mxu2 %v10203_v63  ;;  %v12700_v39 = vld [vmem:[#allocation8 + $0x5b4] sm:$0xf0]  ;;  %v8799_v57 = vor.u32 %v12564_v10, %v8798_v45 }
 0x2a2   :  { %v10168_v15 = vld [vmem:[#allocation8 + $0xc30] sm:$0xf0]  ;;  %4404 = vmatmul.bf16.vlgmr.msrb.gmra.mxu1 %v13837_v27  ;;  %v12764_v4 = vld [vmem:[#allocation8 + $0x7b4] sm:$0xf0]  ;;  %v9343_v6 = vor.u32 %v12700_v39, %v9342_v59 }
 0x2a3   :  { %v12967_v17 = vld [vmem:[#allocation8 + $0xe14] sm:$0xf]  ;;  %4452 = vmatpush.bf16.msra.mxu1 %v9119_v24  ;;  %v10171_v44 = vor.u32 %v12903_v14, %v10168_v15  ;;  %4430 = vmatpush.bf16.msrb.mxu3 %v10459_v7  ;;  %v8766_v24 = vld [vmem:[#allocation8 + $0x118] sm:$0xf]  ;;  %v9599_v7 = vor.u32 %v12764_v4, %v9598_v61 }
 0x2a4   :  { %v10424_v19 = vld [vmem:[#allocation8 + $0xe30] sm:$0xf0]  ;;  %v12556_v63 = vld [vmem:[#allocation8 + $0x134] sm:$0xf0] }
 0x2a5   :  { %v10427_v47 = vor.u32 %v12967_v17, %v10424_v19  ;;  %4439 = vmatpush.bf16.msra.mxu0 %v8831_v42  ;;  %4417 = vmatpush.bf16.msrb.mxu2 %v10171_v44  ;;  %v9022_v9 = vld [vmem:[#allocation8 + $0x318] sm:$0xf]  ;;  %v8767_v17 = vor.u32 %v12556_v63, %v8766_v24 }
 0x2a6   :  { %v12620_v33 = vld [vmem:[#allocation8 + $0x334] sm:$0xf0] }
 0x2a7   :  { %4453 = vmatpush.bf16.msra.mxu1 %v9087_v35  ;;  %4431 = vmatpush.bf16.msrb.mxu3 %v10427_v47  ;;  %v9310_v14 = vld [vmem:[#allocation8 + $0x558] sm:$0xf]  ;;  %v9023_v29 = vor.u32 %v12620_v33, %v9022_v9 }
 0x2a8   :  { %v12692_v15 = vld [vmem:[#allocation8 + $0x574] sm:$0xf0]  ;;  %4418 = vmatmul.bf16.vlgmr.msrb.gmra.mxu2 %v13841_v62 }
 0x2a9   :  { %4466 = vmatpush.bf16.msra.mxu2 %v9375_v28  ;;  %4440 = vmatpush.bf16.msra.mxu0 %v8799_v57  ;;  %v9566_v19 = vld [vmem:[#allocation8 + $0x758] sm:$0xf]  ;;  %v9311_v43 = vor.u32 %v12692_v15, %v9310_v14 }
 0x2aa   :  { %v12756_v21 = vld [vmem:[#allocation8 + $0x774] sm:$0xf0]  ;;  %4432 = vmatmul.bf16.vlgmr.msrb.gmra.mxu3 %v13843_v0 }
 0x2ab   :  { %4480 = vmatpush.bf16.msra.mxu3 %v9631_v50  ;;  %4454 = vmatpush.bf16.msra.mxu1 %v9055_v5  ;;  %v8734_v42 = vld [vmem:[#allocation8 + $0xd8] sm:$0xf]  ;;  %v9567_v45 = vor.u32 %v12756_v21, %v9566_v19 }
 0x2ac   :  { %v12548_v36 = vld [vmem:[#allocation8 + $0xf4] sm:$0xf0] }
 0x2ad   :  { %4467 = vmatpush.bf16.msra.mxu2 %v9343_v6  ;;  %v8990_v35 = vld [vmem:[#allocation8 + $0x2d8] sm:$0xf]  ;;  %4441 = vmatpush.bf16.msra.mxu0 %v8767_v17  ;;  %v8735_v28 = vor.u32 %v12548_v36, %v8734_v42 }
 0x2ae   :  { %v12612_v44 = vld [vmem:[#allocation8 + $0x2f4] sm:$0xf0] }
 0x2af   :  { %4481 = vmatpush.bf16.msra.mxu3 %v9599_v7  ;;  %v9278_v10 = vld [vmem:[#allocation8 + $0x518] sm:$0xf]  ;;  %4455 = vmatpush.bf16.msra.mxu1 %v9023_v29  ;;  %v8991_v50 = vor.u32 %v12612_v44, %v8990_v35 }
 0x2b0   :  { %v12684_v47 = vld [vmem:[#allocation8 + $0x534] sm:$0xf0] }
 0x2b1   :  { %v9534_v49 = vld [vmem:[#allocation8 + $0x718] sm:$0xf]  ;;  %4468 = vmatpush.bf16.msra.mxu2 %v9311_v43  ;;  %v9279_v57 = vor.u32 %v12684_v47, %v9278_v10  ;;  %4442 = vmatpush.bf16.msra.mxu0 %v8735_v28 }
 0x2b2   :  { %v12748_v52 = vld [vmem:[#allocation8 + $0x734] sm:$0xf0] }
 0x2b3   :  { %v8702_v59 = vld [vmem:[#allocation8 + $0x98] sm:$0xf]  ;;  %4482 = vmatpush.bf16.msra.mxu3 %v9567_v45  ;;  %v9535_v5 = vor.u32 %v12748_v52, %v9534_v49  ;;  %4456 = vmatpush.bf16.msra.mxu1 %v8991_v50 }
 0x2b4   :  { %v12540_v39 = vld [vmem:[#allocation8 + $0xb4] sm:$0xf0] }
 0x2b5   :  { %v8958_v61 = vld [vmem:[#allocation8 + $0x298] sm:$0xf]  ;;  %v8703_v6 = vor.u32 %v12540_v39, %v8702_v59  ;;  %4469 = vmatpush.bf16.msra.mxu2 %v9279_v57 }
 0x2b6   :  { %v12604_v4 = vld [vmem:[#allocation8 + $0x2b4] sm:$0xf0] }
 0x2b7   :  { %v9246_v24 = vld [vmem:[#allocation8 + $0x4d8] sm:$0xf]  ;;  %v8959_v7 = vor.u32 %v12604_v4, %v8958_v61  ;;  %4483 = vmatpush.bf16.msra.mxu3 %v9535_v5  ;;  %4443 = vmatpush.bf16.msra.mxu0 %v8703_v6 }
 0x2b8   :  { %v12676_v63 = vld [vmem:[#allocation8 + $0x4f4] sm:$0xf0] }
 0x2b9   :  { %v9502_v9 = vld [vmem:[#allocation8 + $0x6d8] sm:$0xf]  ;;  %v9247_v17 = vor.u32 %v12676_v63, %v9246_v24  ;;  %4457 = vmatpush.bf16.msra.mxu1 %v8959_v7 }
 0x2ba   :  { %v12740_v33 = vld [vmem:[#allocation8 + $0x6f4] sm:$0xf0] }
 0x2bb   :  { %v8670_v14 = vld [vmem:[#allocation8 + $0x58] sm:$0xf]  ;;  %v9503_v29 = vor.u32 %v12740_v33, %v9502_v9  ;;  %4470 = vmatpush.bf16.msra.mxu2 %v9247_v17 }
 0x2bc   :  { %v12532_v15 = vld [vmem:[#allocation8 + $0x74] sm:$0xf0] }
 0x2bd   :  { %v8926_v19 = vld [vmem:[#allocation8 + $0x258] sm:$0xf]  ;;  %v8671_v43 = vor.u32 %v12532_v15, %v8670_v14  ;;  %4484 = vmatpush.bf16.msra.mxu3 %v9503_v29 }
 0x2be   :  { %v12596_v21 = vld [vmem:[#allocation8 + $0x274] sm:$0xf0] }
 0x2bf   :  { %v9214_v42 = vld [vmem:[#allocation8 + $0x498] sm:$0xf]  ;;  %v8927_v10 = vor.u32 %v12596_v21, %v8926_v19  ;;  %4444 = vmatpush.bf16.msra.mxu0 %v8671_v43 }
 0x2c0   :  { %v12668_v36 = vld [vmem:[#allocation8 + $0x4b4] sm:$0xf0] }
 0x2c1   :  { %v9470_v35 = vld [vmem:[#allocation8 + $0x698] sm:$0xf]  ;;  %v9215_v52 = vor.u32 %v12668_v36, %v9214_v42  ;;  %4458 = vmatpush.bf16.msra.mxu1 %v8927_v10 }
 0x2c2   :  { %v12732_v44 = vld [vmem:[#allocation8 + $0x6b4] sm:$0xf0] }
 0x2c3   :  { %v8638_v45 = vld [vmem:[#allocation8 + $0x18] sm:$0xf]  ;;  %v9471_v57 = vor.u32 %v12732_v44, %v9470_v35  ;;  %4471 = vmatpush.bf16.msra.mxu2 %v9215_v52 }
 0x2c4   :  { %v12524_v47 = vld [vmem:[#allocation8 + $0x34] sm:$0xf0] }
 0x2c5   :  { %v8894_v28 = vld [vmem:[#allocation8 + $0x218] sm:$0xf]  ;;  %v8639_v24 = vor.u32 %v12524_v47, %v8638_v45  ;;  %4485 = vmatpush.bf16.msra.mxu3 %v9471_v57 }
 0x2c6   :  { %v12588_v49 = vld [vmem:[#allocation8 + $0x234] sm:$0xf0] }
 0x2c7   :  { %v9886_v50 = vld [vmem:[#allocation8 + $0x9d8] sm:$0xf]  ;;  %v8895_v9 = vor.u32 %v12588_v49, %v8894_v28  ;;  %4445 = vmatpush.bf16.msra.mxu0 %v8639_v24 }
 0x2c8   :  { %v12836_v59 = vld [vmem:[#allocation8 + $0x9f4] sm:$0xf0] }
 0x2c9   :  { %v10142_v39 = vld [vmem:[#allocation8 + $0xbd8] sm:$0xf]  ;;  %v9887_v33 = vor.u32 %v12836_v59, %v9886_v50  ;;  %4459 = vmatpush.bf16.msra.mxu1 %v8895_v9 }
 0x2ca   :  { %v12900_v61 = vld [vmem:[#allocation8 + $0xbf4] sm:$0xf0]  ;;  %4446 = vmatmul.bf16.vlgmr.msra.gmra.mxu0 %v13819_v26 }
 0x2cb   :  { %v9182_v4 = vld [vmem:[#allocation8 + $0x458] sm:$0xf]  ;;  %v10143_v14 = vor.u32 %v12900_v61, %v10142_v39  ;;  %4494 = vmatpush.bf16.msrb.mxu0 %v9887_v33 }
 0x2cc   :  { %v12660_v5 = vld [vmem:[#allocation8 + $0x474] sm:$0xf0]  ;;  %4460 = vmatmul.bf16.vlgmr.msra.gmra.mxu1 %v13821_v31 }
 0x2cd   :  { %v9438_v63 = vld [vmem:[#allocation8 + $0x658] sm:$0xf]  ;;  %v9183_v15 = vor.u32 %v12660_v5, %v9182_v4  ;;  %4508 = vmatpush.bf16.msrb.mxu1 %v10143_v14 }
 0x2ce   :  { %v12724_v6 = vld [vmem:[#allocation8 + $0x674] sm:$0xf0] }
 0x2cf   :  { %v9854_v7 = vld [vmem:[#allocation8 + $0x998] sm:$0xf]  ;;  %v9439_v29 = vor.u32 %v12724_v6, %v9438_v63  ;;  %4472 = vmatpush.bf16.msra.mxu2 %v9183_v15 }
 0x2d0   :  { %v12828_v17 = vld [vmem:[#allocation8 + $0x9b4] sm:$0xf0] }
 0x2d1   :  { %v10110_v19 = vld [vmem:[#allocation8 + $0xb98] sm:$0xf]  ;;  %v9855_v10 = vor.u32 %v12828_v17, %v9854_v7  ;;  %4486 = vmatpush.bf16.msra.mxu3 %v9439_v29 }
 0x2d2   :  { %v12892_v21 = vld [vmem:[#allocation8 + $0xbb4] sm:$0xf0] }
 0x2d3   :  { %v9150_v42 = vld [vmem:[#allocation8 + $0x418] sm:$0xf]  ;;  %v10111_v49 = vor.u32 %v12892_v21, %v10110_v19  ;;  %4495 = vmatpush.bf16.msrb.mxu0 %v9855_v10 }
 0x2d4   :  { %v12652_v36 = vld [vmem:[#allocation8 + $0x434] sm:$0xf0] }
 0x2d5   :  { %v9406_v35 = vld [vmem:[#allocation8 + $0x618] sm:$0xf]  ;;  %v9151_v52 = vor.u32 %v12652_v36, %v9150_v42  ;;  %4509 = vmatpush.bf16.msrb.mxu1 %v10111_v49 }
 0x2d6   :  { %v12716_v43 = vld [vmem:[#allocation8 + $0x634] sm:$0xf0] }
 0x2d7   :  { %v10398_v44 = vld [vmem:[#allocation8 + $0xdd8] sm:$0xf]  ;;  %v9407_v39 = vor.u32 %v12716_v43, %v9406_v35  ;;  %4473 = vmatpush.bf16.msra.mxu2 %v9151_v52 }
 0x2d8   :  { %v12964_v45 = vld [vmem:[#allocation8 + $0xdf4] sm:$0xf0] }
 0x2d9   :  { %v10654_v47 = vld [vmem:[#allocation8 + $0xfd8] sm:$0xf]  ;;  %v10399_v57 = vor.u32 %v12964_v45, %v10398_v44  ;;  %4487 = vmatpush.bf16.msra.mxu3 %v9407_v39 }
 0x2da   :  { %v13028_v28 = vld [vmem:[#allocation8 + $0xff4] sm:$0xf0]  ;;  %4474 = vmatmul.bf16.vlgmr.msra.gmra.mxu2 %v13825_v54 }
 0x2db   :  { %v9822_v50 = vld [vmem:[#allocation8 + $0x958] sm:$0xf]  ;;  %v10655_v5 = vor.u32 %v13028_v28, %v10654_v47  ;;  %4522 = vmatpush.bf16.msrb.mxu2 %v10399_v57 }
 0x2dc   :  { %v12820_v59 = vld [vmem:[#allocation8 + $0x974] sm:$0xf0]  ;;  %4488 = vmatmul.bf16.vlgmr.msra.gmra.mxu3 %v13827_v60 }
 0x2dd   :  { %v10078_v61 = vld [vmem:[#allocation8 + $0xb58] sm:$0xf]  ;;  %v9823_v6 = vor.u32 %v12820_v59, %v9822_v50  ;;  %4536 = vmatpush.bf16.msrb.mxu3 %v10655_v5 }
 0x2de   :  { %v12884_v4 = vld [vmem:[#allocation8 + $0xb74] sm:$0xf0] }
 0x2df   :  { %v10366_v24 = vld [vmem:[#allocation8 + $0xd98] sm:$0xf]  ;;  %v10079_v7 = vor.u32 %v12884_v4, %v10078_v61  ;;  %4496 = vmatpush.bf16.msrb.mxu0 %v9823_v6 }
 0x2e0   :  { %v12956_v63 = vld [vmem:[#allocation8 + $0xdb4] sm:$0xf0] }
 0x2e1   :  { %v10622_v9 = vld [vmem:[#allocation8 + $0xf98] sm:$0xf]  ;;  %v10367_v17 = vor.u32 %v12956_v63, %v10366_v24  ;;  %4510 = vmatpush.bf16.msrb.mxu1 %v10079_v7 }
 0x2e2   :  { %v13020_v33 = vld [vmem:[#allocation8 + $0xfb4] sm:$0xf0] }
 0x2e3   :  { %v9790_v14 = vld [vmem:[#allocation8 + $0x918] sm:$0xf]  ;;  %v10623_v29 = vor.u32 %v13020_v33, %v10622_v9  ;;  %4523 = vmatpush.bf16.msrb.mxu2 %v10367_v17 }
 0x2e4   :  { %v12812_v15 = vld [vmem:[#allocation8 + $0x934] sm:$0xf0] }
 0x2e5   :  { %v10046_v19 = vld [vmem:[#allocation8 + $0xb18] sm:$0xf]  ;;  %v9791_v35 = vor.u32 %v12812_v15, %v9790_v14  ;;  %4537 = vmatpush.bf16.msrb.mxu3 %v10623_v29  ;;  %v13954_v29 = vpop.f32.mrf.mxu0 }
 0x2e6   :  { %v12876_v21 = vld [vmem:[#allocation8 + $0xb34] sm:$0xf0]  ;;  %14291 = vst [vmem:[#allocation23_spill] sm:$0xff] %v13954_v29  ;;  %v12648_v29 = vld [vmem:[#allocation8 + $0x41c] sm:$0xf] }
 0x2e7   :  { %v10334_v42 = vld [vmem:[#allocation8 + $0xd58] sm:$0xf]  ;;  %v10047_v45 = vor.u32 %v12876_v21, %v10046_v19  ;;  %4497 = vmatpush.bf16.msrb.mxu0 %v9791_v35 }
 0x2e8   :  { %v12948_v36 = vld [vmem:[#allocation8 + $0xd74] sm:$0xf0] }
 0x2e9   :  { %v10590_v43 = vld [vmem:[#allocation8 + $0xf58] sm:$0xf]  ;;  %v10335_v28 = vor.u32 %v12948_v36, %v10334_v42  ;;  %4511 = vmatpush.bf16.msrb.mxu1 %v10047_v45 }
 0x2ea   :  { %v13012_v44 = vld [vmem:[#allocation8 + $0xf74] sm:$0xf0] }
 0x2eb   :  { %v9758_v10 = vld [vmem:[#allocation8 + $0x8d8] sm:$0xf]  ;;  %v10591_v50 = vor.u32 %v13012_v44, %v10590_v43  ;;  %4524 = vmatpush.bf16.msrb.mxu2 %v10335_v28 }
 0x2ec   :  { %v12804_v47 = vld [vmem:[#allocation8 + $0x8f4] sm:$0xf0] }
 0x2ed   :  { %v10014_v49 = vld [vmem:[#allocation8 + $0xad8] sm:$0xf]  ;;  %v9759_v57 = vor.u32 %v12804_v47, %v9758_v10  ;;  %4538 = vmatpush.bf16.msrb.mxu3 %v10591_v50 }
 0x2ee   :  { %v12868_v52 = vld [vmem:[#allocation8 + $0xaf4] sm:$0xf0] }
 0x2ef   :  { %v10302_v59 = vld [vmem:[#allocation8 + $0xd18] sm:$0xf]  ;;  %v10015_v5 = vor.u32 %v12868_v52, %v10014_v49  ;;  %4498 = vmatpush.bf16.msrb.mxu0 %v9759_v57 }
 0x2f0   :  { %v12940_v39 = vld [vmem:[#allocation8 + $0xd34] sm:$0xf0] }
 0x2f1   :  { %v10558_v61 = vld [vmem:[#allocation8 + $0xf18] sm:$0xf]  ;;  %v10303_v6 = vor.u32 %v12940_v39, %v10302_v59  ;;  %4512 = vmatpush.bf16.msrb.mxu1 %v10015_v5 }
 0x2f2   :  { %v13004_v4 = vld [vmem:[#allocation8 + $0xf34] sm:$0xf0] }
 0x2f3   :  { %v9726_v24 = vld [vmem:[#allocation8 + $0x898] sm:$0xf]  ;;  %v10559_v7 = vor.u32 %v13004_v4, %v10558_v61  ;;  %4525 = vmatpush.bf16.msrb.mxu2 %v10303_v6  ;;  %v12640_v6 = vld [vmem:[#allocation8 + $0x3dc] sm:$0xf] }
 0x2f4   :  { %v12796_v63 = vld [vmem:[#allocation8 + $0x8b4] sm:$0xf0] }
 0x2f5   :  { %v9982_v9 = vld [vmem:[#allocation8 + $0xa98] sm:$0xf]  ;;  %v9727_v17 = vor.u32 %v12796_v63, %v9726_v24  ;;  %4539 = vmatpush.bf16.msrb.mxu3 %v10559_v7  ;;  %v12576_v24 = vld [vmem:[#allocation8 + $0x1dc] sm:$0xf] }
 0x2f6   :  { %v12860_v33 = vld [vmem:[#allocation8 + $0xab4] sm:$0xf0]  ;;  %v8864_v63 = vld [vmem:[#allocation8 + $0x1f8] sm:$0xf0] }
 0x2f7   :  { %v10270_v14 = vld [vmem:[#allocation8 + $0xcd8] sm:$0xf]  ;;  %v9983_v42 = vor.u32 %v12860_v33, %v9982_v9  ;;  %4499 = vmatpush.bf16.msrb.mxu0 %v9727_v17  ;;  %v13956_v9 = vpop.f32.mrf.mxu1  ;;  %v13958_v33 = vpop.f32.mrf.mxu2 }
 0x2f8   :  { %v12932_v15 = vld [vmem:[#allocation8 + $0xcf4] sm:$0xf0]  ;;  %14292 = vst [vmem:[#allocation24_spill] sm:$0xff] %v13956_v9  ;;  %v8640_v9 = vld [vmem:[#allocation8 + $0x38] sm:$0xf0] }
 0x2f9   :  { %v10526_v19 = vld [vmem:[#allocation8 + $0xed8] sm:$0xf]  ;;  %v10271_v43 = vor.u32 %v12932_v15, %v10270_v14  ;;  %4513 = vmatpush.bf16.msrb.mxu1 %v9983_v42  ;;  %14293 = vst [vmem:[#allocation25_spill] sm:$0xff] %v13958_v33  ;;  %v9120_v14 = vld [vmem:[#allocation8 + $0x3f8] sm:$0xf0]  ;;  %v13962_v33 = vpop.f32.mrf.mxu3 }
 0x2fa   :  { %v12996_v21 = vld [vmem:[#allocation8 + $0xef4] sm:$0xf0]  ;;  %14294 = vst [vmem:[#allocation26_spill] sm:$0xff] %v13962_v33 }
 0x2fb   :  { %v9694_v36 = vld [vmem:[#allocation8 + $0x858] sm:$0xf]  ;;  %v10527_v10 = vor.u32 %v12996_v21, %v10526_v19  ;;  %4526 = vmatpush.bf16.msrb.mxu2 %v10271_v43  ;;  %v8867_v43 = vor.u32 %v12576_v24, %v8864_v63  ;;  %v12560_v63 = vld [vmem:[#allocation8 + $0x15c] sm:$0xf] }
 0x2fc   :  { %v12788_v35 = vld [vmem:[#allocation8 + $0x874] sm:$0xf0] }
 0x2fd   :  { %v9950_v44 = vld [vmem:[#allocation8 + $0xa58] sm:$0xf]  ;;  %v9695_v49 = vor.u32 %v12788_v35, %v9694_v36  ;;  %4540 = vmatpush.bf16.msrb.mxu3 %v10527_v10  ;;  %v13960_v36 = vpop.f32.mrf.mxu0  ;;  %v9088_v10 = vld [vmem:[#allocation8 + $0x3b8] sm:$0xf0] }
 0x2fe   :  { %v12852_v45 = vld [vmem:[#allocation8 + $0xa74] sm:$0xf0] }
 0x2ff   :  { %v10238_v47 = vld [vmem:[#allocation8 + $0xc98] sm:$0xf]  ;;  %v9951_v39 = vor.u32 %v12852_v45, %v9950_v44  ;;  %4500 = vmatpush.bf16.msrb.mxu0 %v9695_v49  ;;  %v12568_v44 = vld [vmem:[#allocation8 + $0x19c] sm:$0xf]  ;;  %v9123_v45 = vor.u32 %v12640_v6, %v9120_v14  ;;  %v13966_v14 = vpop.f32.mrf.mxu2 }
 0x300   :  { %v12924_v28 = vld [vmem:[#allocation8 + $0xcb4] sm:$0xf0]  ;;  %v8800_v6 = vld [vmem:[#allocation8 + $0x178] sm:$0xf0] }
 0x301   :  { %v10494_v52 = vld [vmem:[#allocation8 + $0xe98] sm:$0xf]  ;;  %v10239_v5 = vor.u32 %v12924_v28, %v10238_v47  ;;  %4514 = vmatpush.bf16.msrb.mxu1 %v9951_v39  ;;  %v8832_v28 = vld [vmem:[#allocation8 + $0x1b8] sm:$0xf0] }
 0x302   :  { %v12988_v50 = vld [vmem:[#allocation8 + $0xeb4] sm:$0xf0]  ;;  %v8835_v39 = vor.u32 %v12568_v44, %v8832_v28  ;;  %v9600_v44 = vld [vmem:[#allocation8 + $0x7b8] sm:$0xf0] }
 0x303   :  { %v9662_v59 = vld [vmem:[#allocation8 + $0x818] sm:$0xf]  ;;  %v10495_v7 = vor.u32 %v12988_v50, %v10494_v52  ;;  %4527 = vmatpush.bf16.msrb.mxu2 %v10239_v5  ;;  %v9091_v5 = vor.u32 %v12632_v12, %v9088_v10  ;;  %v8803_v12 = vor.u32 %v12560_v63, %v8800_v6  ;;  %v8768_v28 = vld [vmem:[#allocation8 + $0x138] sm:$0xf0] }
 0x304   :  { %v12780_v57 = vld [vmem:[#allocation8 + $0x834] sm:$0xf0]  ;;  %v12544_v63 = vld [vmem:[#allocation8 + $0xdc] sm:$0xf] }
 0x305   :  { %v9918_v61 = vld [vmem:[#allocation8 + $0xa18] sm:$0xf]  ;;  %v9663_v19 = vor.u32 %v12780_v57, %v9662_v59  ;;  %4541 = vmatpush.bf16.msrb.mxu3 %v10495_v7  ;;  %v12704_v57 = vld [vmem:[#allocation8 + $0x5dc] sm:$0xf]  ;;  %v13964_v7 = vpop.f32.mrf.mxu1  ;;  %v13970_v10 = vpop.f32.mrf.mxu0 }
 0x306   :  { %v12844_v4 = vld [vmem:[#allocation8 + $0xa34] sm:$0xf0]  ;;  %v8736_v6 = vld [vmem:[#allocation8 + $0xf8] sm:$0xf0] }
 0x307   :  { %v10206_v15 = vld [vmem:[#allocation8 + $0xc58] sm:$0xf]  ;;  %v9919_v35 = vor.u32 %v12844_v4, %v9918_v61  ;;  %4501 = vmatpush.bf16.msrb.mxu0 %v9663_v19  ;;  %v12768_v61 = vld [vmem:[#allocation8 + $0x7dc] sm:$0xf] }
 0x308   :  { %v12916_v17 = vld [vmem:[#allocation8 + $0xc74] sm:$0xf0]  ;;  %v9632_v4 = vld [vmem:[#allocation8 + $0x7f8] sm:$0xf0] }
 0x309   :  { %v10462_v21 = vld [vmem:[#allocation8 + $0xe58] sm:$0xf]  ;;  %v10207_v47 = vor.u32 %v12916_v17, %v10206_v15  ;;  %4515 = vmatpush.bf16.msrb.mxu1 %v9919_v35  ;;  %v9379_v17 = vor.u32 %v12704_v57, %v9376_v55  ;;  %v12624_v19 = vld [vmem:[#allocation8 + $0x35c] sm:$0xf] }
 0x30a   :  { %v12980_v42 = vld [vmem:[#allocation8 + $0xe74] sm:$0xf0]  ;;  %4502 = vmatmul.bf16.vlgmr.msrb.gmra.mxu0 %v13835_v23  ;;  %v12696_v35 = vld [vmem:[#allocation8 + $0x59c] sm:$0xf] }
 0x30b   :  { %v10463_v52 = vor.u32 %v12980_v42, %v10462_v21  ;;  %v10174_v50 = vld [vmem:[#allocation8 + $0xc18] sm:$0xf]  ;;  %4550 = vmatpush.bf16.msra.mxu0 %v8867_v43  ;;  %4528 = vmatpush.bf16.msrb.mxu2 %v10207_v47  ;;  %v9056_v21 = vld [vmem:[#allocation8 + $0x378] sm:$0xf0]  ;;  %v9635_v42 = vor.u32 %v12768_v61, %v9632_v4 }
 0x30c   :  { %v10430_v49 = vld [vmem:[#allocation8 + $0xe18] sm:$0xf]  ;;  %v10175_v24 = vor.u32 %v12908_v20, %v10174_v50  ;;  %4516 = vmatmul.bf16.vlgmr.msrb.gmra.mxu1 %v13837_v27  ;;  %v9344_v43 = vld [vmem:[#allocation8 + $0x5b8] sm:$0xf0] }
 0x30d   :  { %v12972_v59 = vld [vmem:[#allocation8 + $0xe34] sm:$0xf0]  ;;  %4564 = vmatpush.bf16.msra.mxu1 %v9123_v45  ;;  %4542 = vmatpush.bf16.msrb.mxu3 %v10463_v52  ;;  %v12760_v20 = vld [vmem:[#allocation8 + $0x79c] sm:$0xf]  ;;  %v9059_v45 = vor.u32 %v12624_v19, %v9056_v21  ;;  %v9347_v55 = vor.u32 %v12696_v35, %v9344_v43  ;;  %v13976_v43 = vpop.f32.mrf.mxu1 }
 0x30e   :  { %v10431_v15 = vor.u32 %v12972_v59, %v10430_v49  ;;  %v12552_v47 = vld [vmem:[#allocation8 + $0x11c] sm:$0xf]  ;;  %v9603_v49 = vor.u32 %v12760_v20, %v9600_v44  ;;  %v8739_v20 = vor.u32 %v12544_v63, %v8736_v6 }
 0x30f   :  { %4551 = vmatpush.bf16.msra.mxu0 %v8835_v39  ;;  %4529 = vmatpush.bf16.msrb.mxu2 %v10175_v24  ;;  %v12616_v52 = vld [vmem:[#allocation8 + $0x31c] sm:$0xf]  ;;  %v13972_v39 = vpop.f32.mrf.mxu3  ;;  %v8771_v61 = vor.u32 %v12552_v47, %v8768_v28 }
 0x310   :  { %v9024_v50 = vld [vmem:[#allocation8 + $0x338] sm:$0xf0]  ;;  %14295 = vst [vmem:[#allocation27_spill] sm:$0xff] %v13972_v39 }
 0x311   :  { %4565 = vmatpush.bf16.msra.mxu1 %v9091_v5  ;;  %4543 = vmatpush.bf16.msrb.mxu3 %v10431_v15  ;;  %v12688_v59 = vld [vmem:[#allocation8 + $0x55c] sm:$0xf]  ;;  %v9027_v24 = vor.u32 %v12616_v52, %v9024_v50 }
 0x312   :  { %v9312_v57 = vld [vmem:[#allocation8 + $0x578] sm:$0xf0]  ;;  %4530 = vmatmul.bf16.vlgmr.msrb.gmra.mxu2 %v13841_v62 }
 0x313   :  { %4578 = vmatpush.bf16.msra.mxu2 %v9379_v17  ;;  %4552 = vmatpush.bf16.msra.mxu0 %v8803_v12  ;;  %v12752_v4 = vld [vmem:[#allocation8 + $0x75c] sm:$0xf]  ;;  %v9315_v15 = vor.u32 %v12688_v59, %v9312_v57  ;;  %v13978_v12 = vpop.f32.mrf.mxu2 }
 0x314   :  { %v9568_v5 = vld [vmem:[#allocation8 + $0x778] sm:$0xf0]  ;;  %4544 = vmatmul.bf16.vlgmr.msrb.gmra.mxu3 %v13843_v0 }
 0x315   :  { %4592 = vmatpush.bf16.msra.mxu3 %v9635_v42  ;;  %4566 = vmatpush.bf16.msra.mxu1 %v9059_v45  ;;  %v12608_v17 = vld [vmem:[#allocation8 + $0x2dc] sm:$0xf]  ;;  %v9571_v21 = vor.u32 %v12752_v4, %v9568_v5 }
 0x316   :  { %v8992_v19 = vld [vmem:[#allocation8 + $0x2f8] sm:$0xf0] }
 0x317   :  { %4579 = vmatpush.bf16.msra.mxu2 %v9347_v55  ;;  %v12680_v42 = vld [vmem:[#allocation8 + $0x51c] sm:$0xf]  ;;  %4553 = vmatpush.bf16.msra.mxu0 %v8771_v61  ;;  %v8995_v45 = vor.u32 %v12608_v17, %v8992_v19  ;;  %v13980_v55 = vpop.f32.mrf.mxu0  ;;  %v13982_v19 = vpop.f32.mrf.mxu3 }
 0x318   :  { %v9280_v35 = vld [vmem:[#allocation8 + $0x538] sm:$0xf0]  ;;  %14296 = vst [vmem:[#allocation28_spill] sm:$0xff] %v13980_v55 }
 0x319   :  { %4593 = vmatpush.bf16.msra.mxu3 %v9603_v49  ;;  %v12744_v44 = vld [vmem:[#allocation8 + $0x71c] sm:$0xf]  ;;  %4567 = vmatpush.bf16.msra.mxu1 %v9027_v24  ;;  %v9283_v50 = vor.u32 %v12680_v42, %v9280_v35  ;;  %14297 = vst [vmem:[#allocation29_spill] sm:$0xff] %v13982_v19 }
 0x31a   :  { %v9536_v47 = vld [vmem:[#allocation8 + $0x738] sm:$0xf0] }
 0x31b   :  { %v12536_v28 = vld [vmem:[#allocation8 + $0x9c] sm:$0xf]  ;;  %4580 = vmatpush.bf16.msra.mxu2 %v9315_v15  ;;  %v9539_v57 = vor.u32 %v12744_v44, %v9536_v47  ;;  %4554 = vmatpush.bf16.msra.mxu0 %v8739_v20  ;;  %v13984_v47 = vpop.f32.mrf.mxu1  ;;  %v13986_v20 = vpop.f32.mrf.mxu2 }
 0x31c   :  { %v8704_v52 = vld [vmem:[#allocation8 + $0xb8] sm:$0xf0]  ;;  %14298 = vst [vmem:[#allocation30_spill] sm:$0xff] %v13984_v47 }
 0x31d   :  { %v12600_v49 = vld [vmem:[#allocation8 + $0x29c] sm:$0xf]  ;;  %4594 = vmatpush.bf16.msra.mxu3 %v9571_v21  ;;  %v8707_v33 = vor.u32 %v12536_v28, %v8704_v52  ;;  %4568 = vmatpush.bf16.msra.mxu1 %v8995_v45  ;;  %14299 = vst [vmem:[#allocation31_spill] sm:$0xff] %v13986_v20 }
 0x31e   :  { %v8960_v59 = vld [vmem:[#allocation8 + $0x2b8] sm:$0xf0] }
 0x31f   :  { %v12672_v4 = vld [vmem:[#allocation8 + $0x4dc] sm:$0xf]  ;;  %v8963_v6 = vor.u32 %v12600_v49, %v8960_v59  ;;  %4581 = vmatpush.bf16.msra.mxu2 %v9283_v50  ;;  %4555 = vmatpush.bf16.msra.mxu0 %v8707_v33  ;;  %v13988_v33 = vpop.f32.mrf.mxu0 }
 0x320   :  { %v9248_v5 = vld [vmem:[#allocation8 + $0x4f8] sm:$0xf0]  ;;  %14300 = vst [vmem:[#allocation32_spill] sm:$0xff] %v13988_v33 }
 0x321   :  { %v12736_v61 = vld [vmem:[#allocation8 + $0x6dc] sm:$0xf]  ;;  %v9251_v55 = vor.u32 %v12672_v4, %v9248_v5  ;;  %4595 = vmatpush.bf16.msra.mxu3 %v9539_v57  ;;  %4569 = vmatpush.bf16.msra.mxu1 %v8963_v6 }
 0x322   :  { %v9504_v63 = vld [vmem:[#allocation8 + $0x6f8] sm:$0xf0] }
 0x323   :  { %v12528_v24 = vld [vmem:[#allocation8 + $0x5c] sm:$0xf]  ;;  %v9507_v35 = vor.u32 %v12736_v61, %v9504_v63  ;;  %4582 = vmatpush.bf16.msra.mxu2 %v9251_v55  ;;  %v13990_v55 = vpop.f32.mrf.mxu3 }
 0x324   :  { %v8672_v17 = vld [vmem:[#allocation8 + $0x78] sm:$0xf0]  ;;  %14301 = vst [vmem:[#allocation33_spill] sm:$0xff] %v13990_v55  ;;  %v11054_v55 = vld [vmem:[#allocation11 + $0x310] sm:$0xf] }
 0x325   :  { %v12592_v15 = vld [vmem:[#allocation8 + $0x25c] sm:$0xf]  ;;  %v8675_v28 = vor.u32 %v12528_v24, %v8672_v17  ;;  %4596 = vmatpush.bf16.msra.mxu3 %v9507_v35 }
 0x326   :  { %v8928_v42 = vld [vmem:[#allocation8 + $0x278] sm:$0xf0] }
 0x327   :  { %v12664_v21 = vld [vmem:[#allocation8 + $0x49c] sm:$0xf]  ;;  %v8931_v59 = vor.u32 %v12592_v15, %v8928_v42  ;;  %4556 = vmatpush.bf16.msra.mxu0 %v8675_v28 }
 0x328   :  { %v9216_v44 = vld [vmem:[#allocation8 + $0x4b8] sm:$0xf0] }
 0x329   :  { %v12728_v45 = vld [vmem:[#allocation8 + $0x69c] sm:$0xf]  ;;  %v9219_v5 = vor.u32 %v12664_v21, %v9216_v44  ;;  %4570 = vmatpush.bf16.msra.mxu1 %v8931_v59 }
 0x32a   :  { %v9472_v52 = vld [vmem:[#allocation8 + $0x6b8] sm:$0xf0] }
 0x32b   :  { %v12520_v49 = vld [vmem:[#allocation8 + $0x1c] sm:$0xf]  ;;  %v9475_v38 = vor.u32 %v12728_v45, %v9472_v52  ;;  %4583 = vmatpush.bf16.msra.mxu2 %v9219_v5  ;;  %v13992_v5 = vpop.f32.mrf.mxu1 }
 0x32c   :  { %v12584_v50 = vld [vmem:[#allocation8 + $0x21c] sm:$0xf]  ;;  %v8643_v24 = vor.u32 %v12520_v49, %v8640_v9 }
 0x32d   :  { %v8896_v4 = vld [vmem:[#allocation8 + $0x238] sm:$0xf0]  ;;  %4597 = vmatpush.bf16.msra.mxu3 %v9475_v38 }
 0x32e   :  { %v12832_v57 = vld [vmem:[#allocation8 + $0x9dc] sm:$0xf]  ;;  %v8899_v15 = vor.u32 %v12584_v50, %v8896_v4  ;;  %4557 = vmatpush.bf16.msra.mxu0 %v8643_v24 }
 0x32f   :  { %v9888_v61 = vld [vmem:[#allocation8 + $0x9f8] sm:$0xf0] }
 0x330   :  { %v12896_v63 = vld [vmem:[#allocation8 + $0xbdc] sm:$0xf]  ;;  %v9891_v42 = vor.u32 %v12832_v57, %v9888_v61  ;;  %4571 = vmatpush.bf16.msra.mxu1 %v8899_v15 }
 0x331   :  { %v10144_v47 = vld [vmem:[#allocation8 + $0xbf8] sm:$0xf0]  ;;  %4558 = vmatmul.bf16.vlgmr.msra.gmra.mxu0 %v13819_v26 }
 0x332   :  { %v12656_v39 = vld [vmem:[#allocation8 + $0x45c] sm:$0xf]  ;;  %v10147_v21 = vor.u32 %v12896_v63, %v10144_v47  ;;  %4606 = vmatpush.bf16.msrb.mxu0 %v9891_v42 }
 0x333   :  { %v9184_v20 = vld [vmem:[#allocation8 + $0x478] sm:$0xf0]  ;;  %4572 = vmatmul.bf16.vlgmr.msra.gmra.mxu1 %v13821_v31 }
 0x334   :  { %v12720_v17 = vld [vmem:[#allocation8 + $0x65c] sm:$0xf]  ;;  %v9187_v44 = vor.u32 %v12656_v39, %v9184_v20  ;;  %v13994_v39 = vpop.f32.mrf.mxu2  ;;  %4620 = vmatpush.bf16.msrb.mxu1 %v10147_v21 }
 0x335   :  { %v9440_v6 = vld [vmem:[#allocation8 + $0x678] sm:$0xf0] }
 0x336   :  { %v9856_v35 = vld [vmem:[#allocation8 + $0x9b8] sm:$0xf0]  ;;  %v9443_v19 = vor.u32 %v12720_v17, %v9440_v6  ;;  %4584 = vmatpush.bf16.msra.mxu2 %v9187_v44 }
 0x337   :  { %v12888_v45 = vld [vmem:[#allocation8 + $0xb9c] sm:$0xf]  ;;  %v9859_v50 = vor.u32 %v12824_v37, %v9856_v35  ;;  %v13997_v37 = vpop.f32.mrf.mxu0 }
 0x338   :  { %v10112_v52 = vld [vmem:[#allocation8 + $0xbb8] sm:$0xf0]  ;;  %4598 = vmatpush.bf16.msra.mxu3 %v9443_v19 }
 0x339   :  { %v9152_v33 = vld [vmem:[#allocation8 + $0x438] sm:$0xf0]  ;;  %v10115_v38 = vor.u32 %v12888_v45, %v10112_v52  ;;  %4607 = vmatpush.bf16.msrb.mxu0 %v9859_v50 }
 0x33a   :  { %v12712_v28 = vld [vmem:[#allocation8 + $0x61c] sm:$0xf]  ;;  %v9155_v47 = vor.u32 %v12648_v29, %v9152_v33 }
 0x33b   :  { %v9408_v9 = vld [vmem:[#allocation8 + $0x638] sm:$0xf0]  ;;  %4621 = vmatpush.bf16.msrb.mxu1 %v10115_v38  ;;  %v14003_v38 = vpop.f32.mrf.mxu1 }
 0x33c   :  { %v12960_v49 = vld [vmem:[#allocation8 + $0xddc] sm:$0xf]  ;;  %v9411_v63 = vor.u32 %v12712_v28, %v9408_v9  ;;  %4585 = vmatpush.bf16.msra.mxu2 %v9155_v47  ;;  %v14000_v9 = vpop.f32.mrf.mxu3  ;;  %14302 = vst [vmem:[#allocation34_spill] sm:$0xff] %v14003_v38  ;;  %v14005_v47 = vpop.f32.mrf.mxu2 }
 0x33d   :  { %v10400_v59 = vld [vmem:[#allocation8 + $0xdf8] sm:$0xf0]  ;;  %14303 = vst [vmem:[#allocation35_spill] sm:$0xff] %v14005_v47  ;;  %v10858_v47 = vld [vmem:[#allocation11 + $0x188] sm:$0xf] }
 0x33e   :  { %v13024_v4 = vld [vmem:[#allocation8 + $0xfdc] sm:$0xf]  ;;  %v10403_v24 = vor.u32 %v12960_v49, %v10400_v59  ;;  %4599 = vmatpush.bf16.msra.mxu3 %v9411_v63 }
 0x33f   :  { %v10656_v57 = vld [vmem:[#allocation8 + $0xff8] sm:$0xf0]  ;;  %4586 = vmatmul.bf16.vlgmr.msra.gmra.mxu2 %v13825_v54 }
 0x340   :  { %v12816_v20 = vld [vmem:[#allocation8 + $0x95c] sm:$0xf]  ;;  %v10659_v15 = vor.u32 %v13024_v4, %v10656_v57  ;;  %4634 = vmatpush.bf16.msrb.mxu2 %v10403_v24 }
 0x341   :  { %v9824_v61 = vld [vmem:[#allocation8 + $0x978] sm:$0xf0]  ;;  %4600 = vmatmul.bf16.vlgmr.msra.gmra.mxu3 %v13827_v60 }
 0x342   :  { %v12880_v17 = vld [vmem:[#allocation8 + $0xb5c] sm:$0xf]  ;;  %v9827_v21 = vor.u32 %v12816_v20, %v9824_v61  ;;  %4648 = vmatpush.bf16.msrb.mxu3 %v10659_v15 }
 0x343   :  { %v10080_v6 = vld [vmem:[#allocation8 + $0xb78] sm:$0xf0] }
 0x344   :  { %v12952_v42 = vld [vmem:[#allocation8 + $0xd9c] sm:$0xf]  ;;  %v10083_v19 = vor.u32 %v12880_v17, %v10080_v6  ;;  %4608 = vmatpush.bf16.msrb.mxu0 %v9827_v21 }
 0x345   :  { %v10368_v35 = vld [vmem:[#allocation8 + $0xdb8] sm:$0xf0] }
 0x346   :  { %v13016_v44 = vld [vmem:[#allocation8 + $0xf9c] sm:$0xf]  ;;  %v10371_v45 = vor.u32 %v12952_v42, %v10368_v35  ;;  %4622 = vmatpush.bf16.msrb.mxu1 %v10083_v19 }
 0x347   :  { %v10624_v29 = vld [vmem:[#allocation8 + $0xfb8] sm:$0xf0] }
 0x348   :  { %v12808_v33 = vld [vmem:[#allocation8 + $0x91c] sm:$0xf]  ;;  %v10627_v31 = vor.u32 %v13016_v44, %v10624_v29  ;;  %4635 = vmatpush.bf16.msrb.mxu2 %v10371_v45  ;;  %v14008_v29 = vpop.f32.mrf.mxu0 }
 0x349   :  { %v9792_v26 = vld [vmem:[#allocation8 + $0x938] sm:$0xf0] }
 0x34a   :  { %v12872_v52 = vld [vmem:[#allocation8 + $0xb1c] sm:$0xf]  ;;  %v9795_v50 = vor.u32 %v12808_v33, %v9792_v26  ;;  %4649 = vmatpush.bf16.msrb.mxu3 %v10627_v31 }
 0x34b   :  { %v10048_v28 = vld [vmem:[#allocation8 + $0xb38] sm:$0xf0] }
 0x34c   :  { %v12944_v49 = vld [vmem:[#allocation8 + $0xd5c] sm:$0xf]  ;;  %v10051_v20 = vor.u32 %v12872_v52, %v10048_v28  ;;  %4609 = vmatpush.bf16.msrb.mxu0 %v9795_v50  ;;  %v14010_v28 = vpop.f32.mrf.mxu3 }
 0x34d   :  { %v10336_v59 = vld [vmem:[#allocation8 + $0xd78] sm:$0xf0]  ;;  %14304 = vst [vmem:[#allocation36_spill] sm:$0xff] %v14010_v28 }
 0x34e   :  { %v13008_v4 = vld [vmem:[#allocation8 + $0xf5c] sm:$0xf]  ;;  %v10339_v24 = vor.u32 %v12944_v49, %v10336_v59  ;;  %4623 = vmatpush.bf16.msrb.mxu1 %v10051_v20 }
 0x34f   :  { %v10592_v57 = vld [vmem:[#allocation8 + $0xf78] sm:$0xf0] }
 0x350   :  { %v12800_v61 = vld [vmem:[#allocation8 + $0x8dc] sm:$0xf]  ;;  %v10595_v54 = vor.u32 %v13008_v4, %v10592_v57  ;;  %4636 = vmatpush.bf16.msrb.mxu2 %v10339_v24 }
 0x351   :  { %v9760_v63 = vld [vmem:[#allocation8 + $0x8f8] sm:$0xf0] }
 0x352   :  { %v12864_v17 = vld [vmem:[#allocation8 + $0xadc] sm:$0xf]  ;;  %v9763_v35 = vor.u32 %v12800_v61, %v9760_v63  ;;  %4650 = vmatpush.bf16.msrb.mxu3 %v10595_v54 }
 0x353   :  { %v10016_v6 = vld [vmem:[#allocation8 + $0xaf8] sm:$0xf0] }
 0x354   :  { %v12936_v15 = vld [vmem:[#allocation8 + $0xd1c] sm:$0xf]  ;;  %v10019_v60 = vor.u32 %v12864_v17, %v10016_v6  ;;  %4610 = vmatpush.bf16.msrb.mxu0 %v9763_v35  ;;  %v14307_v35 = vperm.slane %v13859_v1, 1 }
 0x355   :  { %v10304_v42 = vld [vmem:[#allocation8 + $0xd38] sm:$0xf0] }
 0x356   :  { %v13000_v21 = vld [vmem:[#allocation8 + $0xf1c] sm:$0xf]  ;;  %v10307_v26 = vor.u32 %v12936_v15, %v10304_v42  ;;  %4624 = vmatpush.bf16.msrb.mxu1 %v10019_v60  ;;  %v14012_v15 = vpop.f32.mrf.mxu1  ;;  %v14014_v42 = vpop.f32.mrf.mxu2 }
 0x357   :  { %v10560_v44 = vld [vmem:[#allocation8 + $0xf38] sm:$0xf0]  ;;  %14305 = vst [vmem:[#allocation37_spill] sm:$0xff] %v14012_v15 }
 0x358   :  { %v12792_v19 = vld [vmem:[#allocation8 + $0x89c] sm:$0xf]  ;;  %v10563_v31 = vor.u32 %v13000_v21, %v10560_v44  ;;  %4637 = vmatpush.bf16.msrb.mxu2 %v10307_v26  ;;  %14306 = vst [vmem:[#allocation38_spill] sm:$0xff] %v14014_v42 }
 0x359   :  { %v9728_v33 = vld [vmem:[#allocation8 + $0x8b8] sm:$0xf0] }
 0x35a   :  { %v12856_v45 = vld [vmem:[#allocation8 + $0xa9c] sm:$0xf]  ;;  %v9731_v50 = vor.u32 %v12792_v19, %v9728_v33  ;;  %4651 = vmatpush.bf16.msrb.mxu3 %v10563_v31  ;;  %v3890_v19 = vadd.f32 %v13897_v22, %v14307_v35  ;;  %v13081_v22 = vld [vmem:[#allocation11 + $0x1a0] sm:$0xf0] }
 0x35b   :  { %v9984_v52 = vld [vmem:[#allocation8 + $0xab8] sm:$0xf0] }
 0x35c   :  { %v12928_v49 = vld [vmem:[#allocation8 + $0xcdc] sm:$0xf]  ;;  %v9987_v61 = vor.u32 %v12856_v45, %v9984_v52  ;;  %4611 = vmatpush.bf16.msrb.mxu0 %v9731_v50  ;;  %v14308_v52 = vperm.slane %v13859_v1, 0  ;;  %v11082_v50 = vld [vmem:[#allocation11 + $0x348] sm:$0xf]  ;;  %v3904_v38 = vadd.f32 %v13900_v30, %v3890_v19 }
 0x35d   :  { %v10272_v59 = vld [vmem:[#allocation8 + $0xcf8] sm:$0xf0]  ;;  %v13130_v30 = vld [vmem:[#allocation11 + $0x328] sm:$0xf0] }
 0x35e   :  { %v12992_v4 = vld [vmem:[#allocation8 + $0xedc] sm:$0xf]  ;;  %v10275_v17 = vor.u32 %v12928_v49, %v10272_v59  ;;  %v3778_v49 = vadd.f32 %v13870_v51, %v14308_v52  ;;  %v14022_v59 = vpop.f32.mrf.mxu0  ;;  %4625 = vmatpush.bf16.msrb.mxu1 %v9987_v61 }
 0x35f   :  { %v10528_v57 = vld [vmem:[#allocation8 + $0xef8] sm:$0xf0]  ;;  %14309 = vst [vmem:[#allocation39_spill] sm:$0xff] %v14022_v59  ;;  %v13074_v59 = vld [vmem:[#allocation11 + $0x168] sm:$0xf0] }
 0x360   :  { %v12784_v20 = vld [vmem:[#allocation8 + $0x85c] sm:$0xf]  ;;  %v10531_v54 = vor.u32 %v12992_v4, %v10528_v57  ;;  %4638 = vmatpush.bf16.msrb.mxu2 %v10275_v17 }
 0x361   :  { %v9696_v63 = vld [vmem:[#allocation8 + $0x878] sm:$0xf0] }
 0x362   :  { %v12848_v24 = vld [vmem:[#allocation8 + $0xa5c] sm:$0xf]  ;;  %v9699_v60 = vor.u32 %v12784_v20, %v9696_v63  ;;  %4652 = vmatpush.bf16.msrb.mxu3 %v10531_v54  ;;  %v13137_v63 = vld [vmem:[#allocation11 + $0x360] sm:$0xf0]  ;;  %v3918_v54 = vadd.f32 %v13904_v34, %v3904_v38  ;;  %v11306_v34 = vld [vmem:[#allocation11 + $0x508] sm:$0xf] }
 0x363   :  { %v9952_v6 = vld [vmem:[#allocation8 + $0xa78] sm:$0xf0]  ;;  %v13193_v38 = vld [vmem:[#allocation11 + $0x520] sm:$0xf0] }
 0x364   :  { %v12920_v21 = vld [vmem:[#allocation8 + $0xc9c] sm:$0xf]  ;;  %v9955_v31 = vor.u32 %v12848_v24, %v9952_v6  ;;  %4612 = vmatpush.bf16.msrb.mxu0 %v9699_v60  ;;  %v3792_v24 = vadd.f32 %v13872_v56, %v3778_v49  ;;  %v14026_v6 = vpop.f32.mrf.mxu3  ;;  %v14030_v60 = vpop.f32.mrf.mxu1 }
 0x365   :  { %v10240_v44 = vld [vmem:[#allocation8 + $0xcb8] sm:$0xf0] }
 0x366   :  { %v12984_v33 = vld [vmem:[#allocation8 + $0xe9c] sm:$0xf]  ;;  %v10243_v42 = vor.u32 %v12920_v21, %v10240_v44  ;;  %4626 = vmatpush.bf16.msrb.mxu1 %v9955_v31  ;;  %v10859_v21 = vor.u32 %v13081_v22, %v10858_v47  ;;  %v10830_v44 = vld [vmem:[#allocation11 + $0x150] sm:$0xf]  ;;  %v3806_v19 = vadd.f32 %v13879_v25, %v3792_v24  ;;  %v3932_v25 = vadd.f32 %v13906_v40, %v3918_v54 }
 0x367   :  { %v10496_v45 = vld [vmem:[#allocation8 + $0xeb8] sm:$0xf0]  ;;  %v14310_v24 = vperm.slane %v13859_v1, 2 }
 0x368   :  { %v12776_v26 = vld [vmem:[#allocation8 + $0x81c] sm:$0xf]  ;;  %v10499_v20 = vor.u32 %v12984_v33, %v10496_v45  ;;  %4639 = vmatpush.bf16.msrb.mxu2 %v10243_v42  ;;  %v11083_v33 = vor.u32 %v13137_v63, %v11082_v50  ;;  %v11530_v42 = vld [vmem:[#allocation11 + $0x6c8] sm:$0xf]  ;;  %v10802_v50 = vld [vmem:[#allocation11 + $0x118] sm:$0xf]  ;;  %v3820_v63 = vadd.f32 %v13881_v48, %v3806_v19  ;;  %v3946_v1 = vadd.f32 %v13911_v53, %v3932_v25 }
 0x369   :  { %v9664_v4 = vld [vmem:[#allocation8 + $0x838] sm:$0xf0]  ;;  %v4002_v40 = vadd.f32 %v13928_v11, %v14310_v24  ;;  %v10774_v11 = vld [vmem:[#allocation11 + $0xe0] sm:$0xf]  ;;  %v13060_v19 = vld [vmem:[#allocation11 + $0xf8] sm:$0xf0] }
 0x36a   :  { %v12840_v57 = vld [vmem:[#allocation8 + $0xa1c] sm:$0xf]  ;;  %v9667_v51 = vor.u32 %v12776_v26, %v9664_v4  ;;  %v14032_v26 = vpop.f32.mrf.mxu2  ;;  %4653 = vmatpush.bf16.msrb.mxu3 %v10499_v20  ;;  %v13249_v4 = vld [vmem:[#allocation11 + $0x6e0] sm:$0xf0]  ;;  %v3834_v48 = vadd.f32 %v13883_v58, %v3820_v63  ;;  %v11474_v25 = vld [vmem:[#allocation11 + $0x658] sm:$0xf] }
 0x36b   :  { %v9920_v28 = vld [vmem:[#allocation8 + $0xa38] sm:$0xf0] }
 0x36c   :  { %v12912_v35 = vld [vmem:[#allocation8 + $0xc5c] sm:$0xf]  ;;  %v9923_v17 = vor.u32 %v12840_v57, %v9920_v28  ;;  %4613 = vmatpush.bf16.msrb.mxu0 %v9667_v51  ;;  %v11055_v57 = vor.u32 %v13130_v30, %v11054_v55  ;;  %v11531_v55 = vor.u32 %v13249_v4, %v11530_v42  ;;  %v13242_v30 = vld [vmem:[#allocation11 + $0x6a8] sm:$0xf0]  ;;  %v3848_v53 = vadd.f32 %v13885_v3, %v3834_v48  ;;  %v14054_v42 = vpop.f32.mrf.mxu1  ;;  %v10718_v48 = vld [vmem:[#allocation11 + $0x70] sm:$0xf] }
 0x36d   :  { %v10208_v15 = vld [vmem:[#allocation8 + $0xc78] sm:$0xf0] }
 0x36e   :  { %v12976_v52 = vld [vmem:[#allocation8 + $0xe5c] sm:$0xf]  ;;  %v10211_v45 = vor.u32 %v12912_v35, %v10208_v15  ;;  %4627 = vmatpush.bf16.msrb.mxu1 %v9923_v17  ;;  %v10831_v15 = vor.u32 %v13074_v59, %v10830_v44  ;;  %v14036_v35 = vpop.f32.mrf.mxu0  ;;  %v11026_v59 = vld [vmem:[#allocation11 + $0x2d8] sm:$0xf]  ;;  %v11278_v17 = vld [vmem:[#allocation11 + $0x4d0] sm:$0xf] }
 0x36f   :  { %v10464_v61 = vld [vmem:[#allocation8 + $0xe78] sm:$0xf0]  ;;  %4614 = vmatmul.bf16.vlgmr.msrb.gmra.mxu0 %v13835_v23  ;;  %v14044_v44 = vld [vmem:[#allocation10] sm:$0xff]  ;;  %v14047_v23 = vpop.f32.mrf.mxu3 }
 0x370   :  { %v10467_v56 = vor.u32 %v12976_v52, %v10464_v61  ;;  %v12904_v49 = vld [vmem:[#allocation8 + $0xc1c] sm:$0xf]  ;;  %7518 = vmatpush.bf16.msra.mxu0 %v10859_v21  ;;  %4640 = vmatpush.bf16.msrb.mxu2 %v10211_v45  ;;  %v11307_v52 = vor.u32 %v13193_v38, %v11306_v34  ;;  %v13186_v21 = vld [vmem:[#allocation11 + $0x4e8] sm:$0xf0]  ;;  %v1193_v54 = vperm.slane %v14044_v44, 3 }
 0x371   :  { %v10176_v28 = vld [vmem:[#allocation8 + $0xc38] sm:$0xf0]  ;;  %4628 = vmatmul.bf16.vlgmr.msrb.gmra.mxu1 %v13837_v27  ;;  %v11502_v45 = vld [vmem:[#allocation11 + $0x690] sm:$0xf]  ;;  %v11279_v58 = vor.u32 %v13186_v21, %v11278_v17  ;;  %v11250_v34 = vld [vmem:[#allocation11 + $0x498] sm:$0xf] }
 0x372   :  { %v12968_v47 = vld [vmem:[#allocation8 + $0xe1c] sm:$0xf]  ;;  %7532 = vmatpush.bf16.msra.mxu1 %v11083_v33  ;;  %v10179_v22 = vor.u32 %v12904_v49, %v10176_v28  ;;  %4654 = vmatpush.bf16.msrb.mxu3 %v10467_v56  ;;  %v4114_v56 = vadd.f32 %v13970_v10, %v1193_v54  ;;  %v10998_v49 = vld [vmem:[#allocation11 + $0x2a0] sm:$0xf]  ;;  %v13116_v28 = vld [vmem:[#allocation11 + $0x2b8] sm:$0xf0]  ;;  %v14056_v4 = vpop.f32.mrf.mxu2  ;;  %v10775_v10 = vor.u32 %v13060_v19, %v10774_v11 }
 0x373   :  { %v10432_v31 = vld [vmem:[#allocation8 + $0xe38] sm:$0xf0]  ;;  %v10999_v3 = vor.u32 %v13116_v28, %v10998_v49  ;;  %v11194_v19 = vld [vmem:[#allocation11 + $0x428] sm:$0xf] }
 0x374   :  { %v13067_v20 = vld [vmem:[#allocation11 + $0x130] sm:$0xf0]  ;;  %v10435_v51 = vor.u32 %v12968_v47, %v10432_v31  ;;  %7519 = vmatpush.bf16.msra.mxu0 %v10831_v15  ;;  %4641 = vmatpush.bf16.msrb.mxu2 %v10179_v22  ;;  %v4016_v47 = vadd.f32 %v13931_v2, %v4002_v40  ;;  %v11503_v31 = vor.u32 %v13242_v30, %v11502_v45  ;;  %v13102_v30 = vld [vmem:[#allocation11 + $0x248] sm:$0xf0]  ;;  %v14081_v49 = vpop.f32.mrf.mxu1 }
 0x375   :  { %v13123_v61 = vld [vmem:[#allocation11 + $0x2f0] sm:$0xf0]  ;;  %v10803_v33 = vor.u32 %v13067_v20, %v10802_v50  ;;  %v4112_v15 = vadd.f32 %v13960_v36, %v1193_v54  ;;  %v3960_v2 = vadd.f32 %v13914_v18, %v3946_v1  ;;  %v10746_v50 = vld [vmem:[#allocation11 + $0xa8] sm:$0xf]  ;;  %v13053_v36 = vld [vmem:[#allocation11 + $0xc0] sm:$0xf0]  ;;  %v3862_v20 = vadd.f32 %v13892_v8, %v3848_v53 }
 0x376   :  { %7533 = vmatpush.bf16.msra.mxu1 %v11055_v57  ;;  %v11027_v27 = vor.u32 %v13123_v61, %v11026_v59  ;;  %4655 = vmatpush.bf16.msrb.mxu3 %v10435_v51  ;;  %v13179_v38 = vld [vmem:[#allocation11 + $0x4b0] sm:$0xf0]  ;;  %v4030_v22 = vadd.f32 %v13936_v41, %v4016_v47  ;;  %v4128_v63 = vadd.f32 %v13976_v43, %v4114_v56  ;;  %v14064_v51 = vpop.f32.mrf.mxu0  ;;  %v13109_v59 = vld [vmem:[#allocation11 + $0x280] sm:$0xf0]  ;;  %v11222_v61 = vld [vmem:[#allocation11 + $0x460] sm:$0xf] }
 0x377   :  { %4642 = vmatmul.bf16.vlgmr.msrb.gmra.mxu2 %v13841_v62  ;;  %v13235_v57 = vld [vmem:[#allocation11 + $0x670] sm:$0xf0]  ;;  %v11251_v62 = vor.u32 %v13179_v38, %v11250_v34  ;;  %v3974_v18 = vadd.f32 %v13921_v16, %v3960_v2  ;;  %v4126_v24 = vadd.f32 %v13964_v7, %v4112_v15  ;;  %v10747_v8 = vor.u32 %v13053_v36, %v10746_v50  ;;  %v13228_v43 = vld [vmem:[#allocation11 + $0x638] sm:$0xf0]  ;;  %v13046_v54 = vld [vmem:[#allocation11 + $0x88] sm:$0xf0]  ;;  %v14074_v45 = vpop.f32.mrf.mxu3 }
 0x378   :  { %7546 = vmatpush.bf16.msra.mxu2 %v11307_v52  ;;  %7520 = vmatpush.bf16.msra.mxu0 %v10803_v33  ;;  %v10970_v52 = vld [vmem:[#allocation11 + $0x268] sm:$0xf]  ;;  %v11475_v41 = vor.u32 %v13235_v57, %v11474_v25  ;;  %v4142_v40 = vadd.f32 %v13978_v12, %v4128_v63  ;;  %v4044_v17 = vadd.f32 %v13938_v46, %v4030_v22  ;;  %v10942_v12 = vld [vmem:[#allocation11 + $0x230] sm:$0xf]  ;;  %v13165_v56 = vld [vmem:[#allocation11 + $0x440] sm:$0xf0] }
 0x379   :  { %4656 = vmatmul.bf16.vlgmr.msrb.gmra.mxu3 %v13843_v0  ;;  %v13172_v0 = vld [vmem:[#allocation11 + $0x478] sm:$0xf0]  ;;  %v10971_v21 = vor.u32 %v13109_v59, %v10970_v52  ;;  %v14071_v16 = vadd.f32 %v13894_v13, %v3862_v20  ;;  %v4140_v33 = vadd.f32 %v13966_v14, %v4126_v24  ;;  %v14077_v1 = vadd.f32 %v13923_v32, %v3974_v18  ;;  %v11418_v47 = vld [vmem:[#allocation11 + $0x5e8] sm:$0xf]  ;;  %v10690_v53 = vld [vmem:[#allocation11 + $0x38] sm:$0xf] }
 0x37a   :  { %7560 = vmatpush.bf16.msra.mxu3 %v11531_v55  ;;  %7534 = vmatpush.bf16.msra.mxu1 %v11027_v27  ;;  %v11446_v55 = vld [vmem:[#allocation11 + $0x620] sm:$0xf]  ;;  %v11223_v7 = vor.u32 %v13172_v0, %v11222_v61  ;;  %v14311_v27 = vld [vmem:[#allocation23_spill] sm:$0xff]  ;;  %v14083_v14 = vpop.f32.mrf.mxu2  ;;  %v10719_v28 = vor.u32 %v13046_v54, %v10718_v48  ;;  %v14313_v34 = vld [vmem:[#allocation20_spill] sm:$0xff]  ;;  %v10943_v32 = vor.u32 %v13102_v30, %v10942_v12 }
 0x37b   :  { %v4058_v46 = vadd.f32 %v14311_v27, %v4044_v17  ;;  %v11447_v11 = vor.u32 %v13228_v43, %v11446_v55  ;;  %v4662_v38 = vmax.f32 %v14313_v34, 0.0  ;;  %v13039_v15 = vld [vmem:[#allocation11 + $0x50] sm:$0xf0]  ;;  %v14315_v2 = vld [vmem:[#allocation32_spill] sm:$0xff]  ;;  %v14316_v20 = vld [vmem:[#allocation21_spill] sm:$0xff] }
 0x37c   :  { %7547 = vmatpush.bf16.msra.mxu2 %v11279_v58  ;;  %7521 = vmatpush.bf16.msra.mxu0 %v10775_v10  ;;  %v14312_v58 = vld [vmem:[#allocation29_spill] sm:$0xff]  ;;  %v4670_v10 = vmax.f32 %v14071_v16, 0.0  ;;  %v14314_v25 = vld [vmem:[#allocation27_spill] sm:$0xff]  ;;  %v10914_v50 = vld [vmem:[#allocation11 + $0x1f8] sm:$0xf]  ;;  %v4663_v63 = vmax.f32 %v14316_v20, 0.0 }
 0x37d   :  { %v4156_v13 = vadd.f32 %v14312_v58, %v4142_v40  ;;  %v4154_v57 = vadd.f32 %v14314_v25, %v4140_v33  ;;  %v13095_v36 = vld [vmem:[#allocation11 + $0x210] sm:$0xf0]  ;;  %v14317_v52 = vld [vmem:[#allocation24_spill] sm:$0xff]  ;;  %v13158_v61 = vld [vmem:[#allocation11 + $0x408] sm:$0xf0] }
 0x37e   :  { %7561 = vmatpush.bf16.msra.mxu3 %v11503_v31  ;;  %7535 = vmatpush.bf16.msra.mxu1 %v10999_v3  ;;  %v13221_v31 = vld [vmem:[#allocation11 + $0x600] sm:$0xf0]  ;;  %v11195_v3 = vor.u32 %v13165_v56, %v11194_v19  ;;  %v4072_v59 = vadd.f32 %v14317_v52, %v4058_v46  ;;  %v14318_v0 = vld [vmem:[#allocation28_spill] sm:$0xff]  ;;  %v4337_v40 = vpop.f32.mrf.mxu0  ;;  %v11390_v55 = vld [vmem:[#allocation11 + $0x5b0] sm:$0xf]  ;;  %v10915_v54 = vor.u32 %v13095_v36, %v10914_v50 }
 0x37f   :  { %v4170_v22 = vadd.f32 %v14315_v2, %v4156_v13  ;;  %v11419_v18 = vor.u32 %v13221_v31, %v11418_v47  ;;  %v4168_v24 = vadd.f32 %v14318_v0, %v4154_v57  ;;  %v13214_v43 = vld [vmem:[#allocation11 + $0x5c8] sm:$0xf0]  ;;  %v10662_v17 = vld [vmem:[#allocation11] sm:$0xf]  ;;  %v13032_v33 = vld [vmem:[#allocation11 + $0x18] sm:$0xf0]  ;;  %v14095_v27 = vpop.f32.mrf.mxu3 }
 0x380   :  { %7548 = vmatpush.bf16.msra.mxu2 %v11251_v62  ;;  %7522 = vmatpush.bf16.msra.mxu0 %v10747_v8  ;;  %v4671_v62 = vmax.f32 %v14077_v1, 0.0  ;;  %v10691_v8 = vor.u32 %v13039_v15, %v10690_v53  ;;  %v13088_v12 = vld [vmem:[#allocation11 + $0x1d8] sm:$0xf0]  ;;  %v13305_v19 = vld [vmem:[#allocation11 + $0x8a0] sm:$0xf0]  ;;  %v11391_v58 = vor.u32 %v13214_v43, %v11390_v55  ;;  %v14320_v31 = vld [vmem:[#allocation30_spill] sm:$0xff] }
 0x381   :  { %v4184_v30 = vadd.f32 %v13992_v5, %v4170_v22  ;;  %v11978_v56 = vld [vmem:[#allocation11 + $0xa48] sm:$0xf]  ;;  %v13361_v13 = vld [vmem:[#allocation11 + $0xa60] sm:$0xf0]  ;;  %v13151_v47 = vld [vmem:[#allocation11 + $0x3d0] sm:$0xf0]  ;;  %v10663_v5 = vor.u32 %v13032_v33, %v10662_v17 }
 0x382   :  { %7562 = vmatpush.bf16.msra.mxu3 %v11475_v41  ;;  %7536 = vmatpush.bf16.msra.mxu1 %v10971_v21  ;;  %v11166_v41 = vld [vmem:[#allocation11 + $0x3f0] sm:$0xf]  ;;  %v14319_v21 = vld [vmem:[#allocation25_spill] sm:$0xff]  ;;  %v1194_v15 = vperm.slane %v14044_v44, 4  ;;  %v11362_v25 = vld [vmem:[#allocation11 + $0x578] sm:$0xf]  ;;  %v14120_v34 = vpack.c.bf16 %v4671_v62, %v4663_v63 }
 0x383   :  { %v4086_v48 = vadd.f32 %v14319_v21, %v4072_v59  ;;  %v11167_v46 = vor.u32 %v13158_v61, %v11166_v41  ;;  %v4198_v53 = vadd.f32 %v13994_v39, %v4184_v30  ;;  %v13207_v57 = vld [vmem:[#allocation11 + $0x590] sm:$0xf0]  ;;  %v14321_v2 = vld [vmem:[#allocation26_spill] sm:$0xff]  ;;  %v11726_v52 = vld [vmem:[#allocation11 + $0x850] sm:$0xf]  ;;  %v4351_v41 = vpop.f32.mrf.mxu1  ;;  %v14103_v61 = vpop.f32.mrf.mxu2  ;;  %v11979_v39 = vor.u32 %v13361_v13, %v11978_v56 }
 0x384   :  { %7549 = vmatpush.bf16.msra.mxu2 %v11223_v7  ;;  %7523 = vmatpush.bf16.msra.mxu0 %v10719_v28  ;;  %v10886_v7 = vld [vmem:[#allocation11 + $0x1c0] sm:$0xf]  ;;  %v11138_v28 = vld [vmem:[#allocation11 + $0x3b8] sm:$0xf]  ;;  %v14322_v59 = vld [vmem:[#allocation31_spill] sm:$0xff]  ;;  %v11363_v43 = vor.u32 %v13207_v57, %v11362_v25 }
 0x385   :  { %v4100_v22 = vadd.f32 %v14321_v2, %v4086_v48  ;;  %v10887_v50 = vor.u32 %v13088_v12, %v10886_v7  ;;  %v11139_v0 = vor.u32 %v13151_v47, %v11138_v28  ;;  %v13354_v55 = vld [vmem:[#allocation11 + $0xa28] sm:$0xf0]  ;;  %v11110_v17 = vld [vmem:[#allocation11 + $0x380] sm:$0xf]  ;;  %v13144_v21 = vld [vmem:[#allocation11 + $0x398] sm:$0xf0]  ;;  %v4212_v33 = vadd.f32 %v14000_v9, %v4198_v53 }
 0x386   :  { %7563 = vmatpush.bf16.msra.mxu3 %v11447_v11  ;;  %7537 = vmatpush.bf16.msra.mxu1 %v10943_v32  ;;  %v11754_v11 = vld [vmem:[#allocation11 + $0x888] sm:$0xf]  ;;  %v4182_v32 = vadd.f32 %v14320_v31, %v4168_v24  ;;  %v13298_v24 = vld [vmem:[#allocation11 + $0x868] sm:$0xf0]  ;;  %v11334_v48 = vld [vmem:[#allocation11 + $0x540] sm:$0xf]  ;;  %v4224_v7 = vadd.f32 %v13997_v37, %v1194_v15  ;;  %v4226_v12 = vadd.f32 %v14008_v29, %v1194_v15  ;;  %v14114_v30 = vpop.f32.mrf.mxu0 }
 0x387   :  { %v11755_v36 = vor.u32 %v13305_v19, %v11754_v11  ;;  %v12202_v11 = vld [vmem:[#allocation11 + $0xc08] sm:$0xf]  ;;  %v13417_v19 = vld [vmem:[#allocation11 + $0xc20] sm:$0xf0]  ;;  %v4672_v16 = vmax.f32 %v4100_v22, 0.0  ;;  %v11727_v9 = vor.u32 %v13298_v24, %v11726_v52  ;;  %v11111_v56 = vor.u32 %v13144_v21, %v11110_v17  ;;  %v4379_v25 = vpop.f32.mrf.mxu3 }
 0x388   :  { %7550 = vmatpush.bf16.msra.mxu2 %v11195_v3  ;;  %7524 = vmatpush.bf16.msra.mxu0 %v10691_v8  ;;  %v1195_v3 = vperm.slane %v14044_v44, 5  ;;  %v11950_v8 = vld [vmem:[#allocation11 + $0xa10] sm:$0xf]  ;;  %v14323_v37 = vld [vmem:[#allocation33_spill] sm:$0xff]  ;;  %v13291_v13 = vld [vmem:[#allocation11 + $0x830] sm:$0xf0] }
 0x389   :  { %v11951_v29 = vor.u32 %v13354_v55, %v11950_v8  ;;  %v14324_v28 = vld [vmem:[#allocation22_spill] sm:$0xff]  ;;  %v11922_v63 = vld [vmem:[#allocation11 + $0x9d8] sm:$0xf]  ;;  %v13347_v62 = vld [vmem:[#allocation11 + $0x9f0] sm:$0xf0]  ;;  %v4673_v31 = vmax.f32 %v4212_v33, 0.0 }
 0x38a   :  { %7564 = vmatpush.bf16.msra.mxu3 %v11419_v18  ;;  %7538 = vmatpush.bf16.msra.mxu1 %v10915_v54  ;;  %v4196_v18 = vadd.f32 %v14322_v59, %v4182_v32  ;;  %v14109_v54 = vpack.c.bf16 %v4670_v10, %v4662_v38  ;;  %v4338_v38 = vadd.f32 %v4337_v40, %v1195_v3  ;;  %v4664_v47 = vmax.f32 %v14324_v28, 0.0  ;;  %v14325_v32 = vld [vmem:[#allocation34_spill] sm:$0xff]  ;;  %v14326_v15 = vld [vmem:[#allocation37_spill] sm:$0xff]  ;;  %v12174_v57 = vld [vmem:[#allocation11 + $0xbd0] sm:$0xf] }
 0x38b   :  { %v4336_v20 = vadd.f32 %v14064_v51, %v1195_v3  ;;  %v12203_v40 = vor.u32 %v13417_v19, %v12202_v11  ;;  %v4238_v53 = vadd.f32 %v14325_v32, %v4224_v7  ;;  %v13410_v2 = vld [vmem:[#allocation11 + $0xbe8] sm:$0xf0]  ;;  %v11923_v24 = vor.u32 %v13347_v62, %v11922_v63  ;;  %v11670_v8 = vld [vmem:[#allocation11 + $0x7e0] sm:$0xf]  ;;  %v13284_v55 = vld [vmem:[#allocation11 + $0x7f8] sm:$0xf0] }
 0x38c   :  { %7551 = vmatpush.bf16.msra.mxu2 %v11167_v46  ;;  %7525 = vmatpush.bf16.msra.mxu0 %v10663_v5  ;;  %v13200_v46 = vld [vmem:[#allocation11 + $0x558] sm:$0xf0]  ;;  %v4210_v10 = vadd.f32 %v14323_v37, %v4196_v18  ;;  %v4240_v5 = vadd.f32 %v14326_v15, %v4226_v12  ;;  %v14129_v22 = vpack.c.bf16 %v4672_v16, %v4664_v47  ;;  %v14328_v59 = vld [vmem:[#allocation38_spill] sm:$0xff]  ;;  %v11894_v17 = vld [vmem:[#allocation11 + $0x9a0] sm:$0xf] }
 0x38d   :  { %v11335_v1 = vor.u32 %v13200_v46, %v11334_v48  ;;  %v4352_v51 = vadd.f32 %v4351_v41, %v4338_v38  ;;  %v13340_v21 = vld [vmem:[#allocation11 + $0x9b8] sm:$0xf0]  ;;  %v12175_v48 = vor.u32 %v13410_v2, %v12174_v57  ;;  %v12146_v7 = vld [vmem:[#allocation11 + $0xb98] sm:$0xf]  ;;  %v13403_v12 = vld [vmem:[#allocation11 + $0xbb0] sm:$0xf0]  ;;  %v11671_v11 = vor.u32 %v13284_v55, %v11670_v8 }
 0x38e   :  { %7565 = vmatpush.bf16.msra.mxu3 %v11391_v58  ;;  %7539 = vmatpush.bf16.msra.mxu1 %v10887_v50  ;;  %v11698_v58 = vld [vmem:[#allocation11 + $0x818] sm:$0xf]  ;;  %v4665_v50 = vmax.f32 %v4210_v10, 0.0  ;;  %v4254_v18 = vadd.f32 %v14328_v59, %v4240_v5  ;;  %v11642_v16 = vld [vmem:[#allocation11 + $0x7a8] sm:$0xf] }
 0x38f   :  { %7526 = vmatmul.bf16.vlgmr.msra.gmra.mxu0 %v14109_v54  ;;  %v11699_v3 = vor.u32 %v13291_v13, %v11698_v58  ;;  %v4366_v41 = vadd.f32 %v14103_v61, %v4352_v51  ;;  %v11895_v61 = vor.u32 %v13340_v21, %v11894_v17  ;;  %v13277_v38 = vld [vmem:[#allocation11 + $0x7c0] sm:$0xf0]  ;;  %v4433_v13 = vpop.f32.mrf.mxu3  ;;  %v12118_v28 = vld [vmem:[#allocation11 + $0xb60] sm:$0xf]  ;;  %v13396_v47 = vld [vmem:[#allocation11 + $0xb78] sm:$0xf0] }
 0x390   :  { %7574 = vmatpush.bf16.msrb.mxu0 %v11755_v36  ;;  %7552 = vmatpush.bf16.msra.mxu2 %v11139_v0  ;;  %v14327_v36 = vld [vmem:[#allocation35_spill] sm:$0xff]  ;;  %v14135_v0 = vpop.f32.mrf.mxu2  ;;  %v14139_v33 = vpack.c.bf16 %v4673_v31, %v4665_v50  ;;  %v4268_v19 = vadd.f32 %v14026_v6, %v4254_v18  ;;  %v11643_v62 = vor.u32 %v13277_v38, %v11642_v16  ;;  %v13270_v32 = vld [vmem:[#allocation11 + $0x788] sm:$0xf0]  ;;  %v12090_v51 = vld [vmem:[#allocation11 + $0xb28] sm:$0xf] }
 0x391   :  { %7540 = vmatmul.bf16.vlgmr.msra.gmra.mxu1 %v14120_v34  ;;  %v4252_v52 = vadd.f32 %v14327_v36, %v4238_v53  ;;  %v4380_v10 = vadd.f32 %v4379_v25, %v4366_v41  ;;  %v14330_v6 = vld [vmem:[#allocation39_spill] sm:$0xff]  ;;  %v13326_v5 = vld [vmem:[#allocation11 + $0x948] sm:$0xf0]  ;;  %v11810_v55 = vld [vmem:[#allocation11 + $0x8f8] sm:$0xf] }
 0x392   :  { %7588 = vmatpush.bf16.msrb.mxu1 %v11979_v39  ;;  %7566 = vmatpush.bf16.msra.mxu3 %v11363_v43  ;;  %v14133_v39 = vpop.f32.mrf.mxu1  ;;  %v4350_v43 = vadd.f32 %v14081_v49, %v4336_v20  ;;  %v4393_v49 = vpop.f32.mrf.mxu0  ;;  %v4282_v58 = vadd.f32 %v14036_v35, %v4268_v19  ;;  %v11614_v31 = vld [vmem:[#allocation11 + $0x770] sm:$0xf]  ;;  %v12119_v35 = vor.u32 %v13396_v47, %v12118_v28  ;;  %v13263_v18 = vld [vmem:[#allocation11 + $0x750] sm:$0xf0]  ;;  %v10860_v16 = vld [vmem:[#allocation11 + $0x1a4] sm:$0xf0] }
 0x393   :  { %v4394_v63 = vadd.f32 %v4393_v49, %v4380_v10  ;;  %v11838_v15 = vld [vmem:[#allocation11 + $0x930] sm:$0xf]  ;;  %v11615_v36 = vor.u32 %v13270_v32, %v11614_v31  ;;  %v13134_v38 = vld [vmem:[#allocation11 + $0x34c] sm:$0xf]  ;;  %v13375_v10 = vld [vmem:[#allocation11 + $0xad0] sm:$0xf0] }
 0x394   :  { %7575 = vmatpush.bf16.msrb.mxu0 %v11727_v9  ;;  %7553 = vmatpush.bf16.msra.mxu2 %v11111_v56  ;;  %v4364_v46 = vadd.f32 %v14083_v14, %v4350_v43  ;;  %v14329_v9 = vld [vmem:[#allocation36_spill] sm:$0xff]  ;;  %v13333_v56 = vld [vmem:[#allocation11 + $0x980] sm:$0xf0]  ;;  %v12147_v14 = vor.u32 %v13403_v12, %v12146_v7  ;;  %v4296_v25 = vadd.f32 %v14054_v42, %v4282_v58  ;;  %v13319_v43 = vld [vmem:[#allocation11 + $0x910] sm:$0xf0] }
 0x395   :  { %v4266_v37 = vadd.f32 %v14329_v9, %v4252_v52  ;;  %v11839_v59 = vor.u32 %v13326_v5, %v11838_v15  ;;  %v12062_v17 = vld [vmem:[#allocation11 + $0xaf0] sm:$0xf]  ;;  %v13071_v47 = vld [vmem:[#allocation11 + $0x154] sm:$0xf]  ;;  %v12006_v31 = vld [vmem:[#allocation11 + $0xa80] sm:$0xf] }
 0x396   :  { %7589 = vmatpush.bf16.msrb.mxu1 %v11951_v29  ;;  %7567 = vmatpush.bf16.msra.mxu3 %v11335_v1  ;;  %v11866_v29 = vld [vmem:[#allocation11 + $0x968] sm:$0xf]  ;;  %v4378_v1 = vadd.f32 %v14095_v27, %v4364_v46  ;;  %v4310_v52 = vadd.f32 %v14056_v4, %v4296_v25  ;;  %v11558_v4 = vld [vmem:[#allocation11 + $0x700] sm:$0xf]  ;;  %v11811_v46 = vor.u32 %v13319_v43, %v11810_v55  ;;  %v13368_v32 = vld [vmem:[#allocation11 + $0xa98] sm:$0xf0] }
 0x397   :  { %7554 = vmatmul.bf16.vlgmr.msra.gmra.mxu2 %v14129_v22  ;;  %v4280_v20 = vadd.f32 %v14330_v6, %v4266_v37  ;;  %v4435_v12 = vpop.f32.mrf.mxu3  ;;  %v12034_v37 = vld [vmem:[#allocation11 + $0xab8] sm:$0xf]  ;;  %v11308_v15 = vld [vmem:[#allocation11 + $0x524] sm:$0xf0]  ;;  %v13057_v43 = vld [vmem:[#allocation11 + $0xe4] sm:$0xf] }
 0x398   :  { %7602 = vmatpush.bf16.msrb.mxu2 %v12203_v40  ;;  %7576 = vmatpush.bf16.msrb.mxu0 %v11699_v3  ;;  %v11867_v40 = vor.u32 %v13333_v56, %v11866_v29  ;;  %v4392_v53 = vadd.f32 %v14114_v30, %v4378_v1  ;;  %v4421_v2 = vpop.f32.mrf.mxu2  ;;  %v13389_v3 = vld [vmem:[#allocation11 + $0xb40] sm:$0xf0]  ;;  %v11586_v30 = vld [vmem:[#allocation11 + $0x738] sm:$0xf]  ;;  %v4324_v7 = vadd.f32 %v14074_v45, %v4310_v52  ;;  %v10832_v1 = vld [vmem:[#allocation11 + $0x16c] sm:$0xf0] }
 0x399   :  { %7568 = vmatmul.bf16.vlgmr.msra.gmra.mxu3 %v14139_v33  ;;  %v4294_v27 = vadd.f32 %v14030_v60, %v4280_v20  ;;  %v12091_v41 = vor.u32 %v13389_v3, %v12090_v51  ;;  %v13382_v60 = vld [vmem:[#allocation11 + $0xb08] sm:$0xf0]  ;;  %v13064_v51 = vld [vmem:[#allocation11 + $0x11c] sm:$0xf]  ;;  %v10804_v3 = vld [vmem:[#allocation11 + $0x134] sm:$0xf0] }
 0x39a   :  { %7590 = vmatpush.bf16.msrb.mxu1 %v11923_v24  ;;  %v4407_v57 = vpop.f32.mrf.mxu1  ;;  %v4406_v8 = vadd.f32 %v14133_v39, %v4392_v53  ;;  %v13312_v39 = vld [vmem:[#allocation11 + $0x8d8] sm:$0xf0]  ;;  %v12063_v9 = vor.u32 %v13382_v60, %v12062_v17  ;;  %v14158_v56 = vpop.f32.mrf.mxu0  ;;  %v13190_v53 = vld [vmem:[#allocation11 + $0x50c] sm:$0xf]  ;;  %v13113_v17 = vld [vmem:[#allocation11 + $0x2a4] sm:$0xf] }
 0x39b   :  { %v4408_v50 = vadd.f32 %v4407_v57, %v4394_v63  ;;  %v4308_v24 = vadd.f32 %v14032_v26, %v4294_v27  ;;  %v13256_v26 = vld [vmem:[#allocation11 + $0x718] sm:$0xf0]  ;;  %v13127_v63 = vld [vmem:[#allocation11 + $0x314] sm:$0xf]  ;;  %v12007_v27 = vor.u32 %v13368_v32, %v12006_v31  ;;  %v11311_v52 = vor.u32 %v13190_v53, %v11308_v15  ;;  %v13162_v32 = vld [vmem:[#allocation11 + $0x42c] sm:$0xf] }
 0x39c   :  { %7603 = vmatpush.bf16.msrb.mxu2 %v12175_v48  ;;  %7577 = vmatpush.bf16.msrb.mxu0 %v11671_v11  ;;  %v4420_v21 = vadd.f32 %v14135_v0, %v4406_v8  ;;  %v11587_v48 = vor.u32 %v13263_v18, %v11586_v30  ;;  %v11782_v11 = vld [vmem:[#allocation11 + $0x8c0] sm:$0xf]  ;;  %v11084_v0 = vld [vmem:[#allocation11 + $0x364] sm:$0xf0]  ;;  %v11559_v45 = vor.u32 %v13256_v26, %v11558_v4  ;;  %v11280_v30 = vld [vmem:[#allocation11 + $0x4ec] sm:$0xf0] }
 0x39d   :  { %v4422_v42 = vadd.f32 %v4421_v2, %v4408_v50  ;;  %v4322_v19 = vadd.f32 %v14047_v23, %v4308_v24  ;;  %v11783_v58 = vor.u32 %v13312_v39, %v11782_v11  ;;  %v11087_v20 = vor.u32 %v13134_v38, %v11084_v0  ;;  %v13120_v50 = vld [vmem:[#allocation11 + $0x2dc] sm:$0xf]  ;;  %v12426_v4 = vld [vmem:[#allocation11 + $0xdc8] sm:$0xf]  ;;  %v13050_v39 = vld [vmem:[#allocation11 + $0xac] sm:$0xf] }
 0x39e   :  { %7591 = vmatpush.bf16.msrb.mxu1 %v11895_v61  ;;  %v13078_v61 = vld [vmem:[#allocation11 + $0x18c] sm:$0xf]  ;;  %v4434_v29 = vadd.f32 %v4433_v13, %v4420_v21  ;;  %v1196_v18 = vperm.slane %v14044_v44, 6  ;;  %v10807_v24 = vor.u32 %v13064_v51, %v10804_v3  ;;  %v11000_v21 = vld [vmem:[#allocation11 + $0x2bc] sm:$0xf0] }
 0x39f   :  { %v4436_v49 = vadd.f32 %v4435_v12, %v4422_v42  ;;  %v10863_v28 = vor.u32 %v13078_v61, %v10860_v16  ;;  %v4666_v23 = vmax.f32 %v4322_v19, 0.0  ;;  %v14167_v60 = vpop.f32.mrf.mxu3  ;;  %v13176_v12 = vld [vmem:[#allocation11 + $0x49c] sm:$0xf]  ;;  %v11003_v11 = vor.u32 %v13113_v17, %v11000_v21  ;;  %v10748_v19 = vld [vmem:[#allocation11 + $0xc4] sm:$0xf0] }
 0x3a0   :  { %7604 = vmatpush.bf16.msrb.mxu2 %v12147_v14  ;;  %7578 = vmatpush.bf16.msrb.mxu0 %v11643_v62  ;;  %v4674_v14 = vmax.f32 %v4324_v7, 0.0  ;;  %v12035_v62 = vor.u32 %v13375_v10, %v12034_v37  ;;  %v4667_v13 = vmax.f32 %v4434_v29, 0.0  ;;  %v4475_v42 = vpop.f32.mrf.mxu2  ;;  %v13473_v7 = vld [vmem:[#allocation11 + $0xde0] sm:$0xf0]  ;;  %v4448_v61 = vadd.f32 %v14158_v56, %v1196_v18  ;;  %v10972_v16 = vld [vmem:[#allocation11 + $0x284] sm:$0xf0] }
 0x3a1   :  { %v4675_v6 = vmax.f32 %v4436_v49, 0.0  ;;  %v12427_v44 = vor.u32 %v13473_v7, %v12426_v4  ;;  %v13106_v49 = vld [vmem:[#allocation11 + $0x26c] sm:$0xf]  ;;  %v13169_v10 = vld [vmem:[#allocation11 + $0x464] sm:$0xf] }
 0x3a2   :  { %7592 = vmatpush.bf16.msrb.mxu1 %v11867_v40  ;;  %v11056_v40 = vld [vmem:[#allocation11 + $0x32c] sm:$0xf0]  ;;  %v14160_v5 = vpack.c.bf16 %v4674_v14, %v4666_v23  ;;  %v4461_v57 = vpop.f32.mrf.mxu1  ;;  %v4449_v8 = vpop.f32.mrf.mxu0  ;;  %v13466_v0 = vld [vmem:[#allocation11 + $0xda8] sm:$0xf0]  ;;  %v11224_v29 = vld [vmem:[#allocation11 + $0x47c] sm:$0xf0]  ;;  %v10751_v14 = vor.u32 %v13050_v39, %v10748_v19 }
 0x3a3   :  { %v14162_v25 = vpack.c.bf16 %v4675_v6, %v4667_v13  ;;  %v11059_v2 = vor.u32 %v13127_v63, %v11056_v40  ;;  %7616 = vmatpush.bf16.msrb.mxu3 %v12427_v44  ;;  %v10720_v23 = vld [vmem:[#allocation11 + $0x8c] sm:$0xf0]  ;;  %v13099_v6 = vld [vmem:[#allocation11 + $0x234] sm:$0xf]  ;;  %v4450_v56 = vadd.f32 %v4449_v8, %v1196_v18  ;;  %v11227_v63 = vor.u32 %v13169_v10, %v11224_v29  ;;  %v11196_v13 = vld [vmem:[#allocation11 + $0x444] sm:$0xf0] }
 0x3a4   :  { %7605 = vmatpush.bf16.msrb.mxu2 %v12119_v35  ;;  %7579 = vmatpush.bf16.msrb.mxu0 %v11615_v36  ;;  %v10835_v35 = vor.u32 %v13071_v47, %v10832_v1  ;;  %v11028_v36 = vld [vmem:[#allocation11 + $0x2f4] sm:$0xf0]  ;;  %v13043_v47 = vld [vmem:[#allocation11 + $0x74] sm:$0xf]  ;;  %v10944_v1 = vld [vmem:[#allocation11 + $0x24c] sm:$0xf0] }
 0x3a5   :  { %v11031_v55 = vor.u32 %v13120_v50, %v11028_v36  ;;  %v13459_v40 = vld [vmem:[#allocation11 + $0xd70] sm:$0xf0]  ;;  %v10947_v51 = vor.u32 %v13099_v6, %v10944_v1  ;;  %v13036_v3 = vld [vmem:[#allocation11 + $0x3c] sm:$0xf]  ;;  %v10916_v36 = vld [vmem:[#allocation11 + $0x214] sm:$0xf0] }
 0x3a6   :  { %7593 = vmatpush.bf16.msrb.mxu1 %v11839_v59  ;;  %v13183_v59 = vld [vmem:[#allocation11 + $0x4d4] sm:$0xf]  ;;  %v13092_v50 = vld [vmem:[#allocation11 + $0x1fc] sm:$0xf]  ;;  %v11168_v8 = vld [vmem:[#allocation11 + $0x40c] sm:$0xf0] }
 0x3a7   :  { %v13029_v17 = vld [vmem:[#allocation11 + $0x4] sm:$0xf]  ;;  %v10664_v21 = vld [vmem:[#allocation11 + $0x1c] sm:$0xf0]  ;;  %v10919_v4 = vor.u32 %v13092_v50, %v10916_v36  ;;  %v12314_v39 = vld [vmem:[#allocation11 + $0xce8] sm:$0xf] }
 0x3a8   :  { %7606 = vmatpush.bf16.msrb.mxu2 %v12091_v41  ;;  %7580 = vmatpush.bf16.msrb.mxu0 %v11587_v48  ;;  %v10776_v41 = vld [vmem:[#allocation11 + $0xfc] sm:$0xf0]  ;;  %v11283_v48 = vor.u32 %v13183_v59, %v11280_v30  ;;  %v4477_v31 = vpop.f32.mrf.mxu2  ;;  %v13452_v30 = vld [vmem:[#allocation11 + $0xd38] sm:$0xf0]  ;;  %v13445_v19 = vld [vmem:[#allocation11 + $0xd00] sm:$0xf0]  ;;  %v10667_v10 = vor.u32 %v13029_v17, %v10664_v21 }
 0x3a9   :  { %v10779_v26 = vor.u32 %v13057_v43, %v10776_v41  ;;  %v12342_v59 = vld [vmem:[#allocation11 + $0xd20] sm:$0xf]  ;;  %v13351_v6 = vld [vmem:[#allocation11 + $0xa14] sm:$0xf]  ;;  %v13438_v1 = vld [vmem:[#allocation11 + $0xcc8] sm:$0xf0] }
 0x3aa   :  { %7594 = vmatpush.bf16.msrb.mxu1 %v11811_v46  ;;  %v11252_v46 = vld [vmem:[#allocation11 + $0x4b4] sm:$0xf0]  ;;  %v4463_v37 = vpop.f32.mrf.mxu1  ;;  %v10888_v7 = vld [vmem:[#allocation11 + $0x1dc] sm:$0xf0]  ;;  %v13431_v50 = vld [vmem:[#allocation11 + $0xc90] sm:$0xf0] }
 0x3ab   :  { %v11255_v38 = vor.u32 %v13176_v12, %v11252_v46  ;;  %v13302_v12 = vld [vmem:[#allocation11 + $0x88c] sm:$0xf]  ;;  %v11756_v46 = vld [vmem:[#allocation11 + $0x8a4] sm:$0xf0]  ;;  %v13344_v36 = vld [vmem:[#allocation11 + $0x9dc] sm:$0xf] }
 0x3ac   :  { %7607 = vmatpush.bf16.msrb.mxu2 %v12063_v9  ;;  %7581 = vmatpush.bf16.msrb.mxu0 %v11559_v45  ;;  %v12398_v9 = vld [vmem:[#allocation11 + $0xd90] sm:$0xf] }
 0x3ad   :  { %v12399_v45 = vor.u32 %v13466_v0, %v12398_v9  ;;  %v12315_v9 = vor.u32 %v13445_v19, %v12314_v39 }
 0x3ae   :  { %7595 = vmatpush.bf16.msrb.mxu1 %v11783_v58  ;;  %v4503_v58 = vpop.f32.mrf.mxu0 }
 0x3af   :  { %7582 = vmatmul.bf16.vlgmr.msrb.gmra.mxu0 %v14160_v5  ;;  %7617 = vmatpush.bf16.msrb.mxu3 %v12399_v45  ;;  %v11759_v45 = vor.u32 %v13302_v12, %v11756_v46  ;;  %v11896_v12 = vld [vmem:[#allocation11 + $0x9bc] sm:$0xf0] }
 0x3b0   :  { %7630 = vmatpush.bf16.msra.mxu0 %v10863_v28  ;;  %7608 = vmatpush.bf16.msrb.mxu2 %v12035_v62  ;;  %v10975_v28 = vor.u32 %v13106_v49, %v10972_v16  ;;  %v12370_v62 = vld [vmem:[#allocation11 + $0xd58] sm:$0xf]  ;;  %v13148_v16 = vld [vmem:[#allocation11 + $0x3bc] sm:$0xf] }
 0x3b1   :  { %7596 = vmatmul.bf16.vlgmr.msrb.gmra.mxu1 %v14162_v25  ;;  %v12371_v53 = vor.u32 %v13459_v40, %v12370_v62  ;;  %v13141_v62 = vld [vmem:[#allocation11 + $0x384] sm:$0xf]  ;;  %v11112_v40 = vld [vmem:[#allocation11 + $0x39c] sm:$0xf0] }
 0x3b2   :  { %7644 = vmatpush.bf16.msra.mxu1 %v11087_v20  ;;  %v4462_v20 = vadd.f32 %v4461_v57, %v4448_v61  ;;  %v4464_v57 = vadd.f32 %v4463_v37, %v4450_v56  ;;  %v4517_v18 = vpop.f32.mrf.mxu1  ;;  %v11980_v61 = vld [vmem:[#allocation11 + $0xa64] sm:$0xf0]  ;;  %v12286_v56 = vld [vmem:[#allocation11 + $0xcb0] sm:$0xf] }
 0x3b3   :  { %7618 = vmatpush.bf16.msrb.mxu3 %v12371_v53 }
 0x3b4   :  { %7631 = vmatpush.bf16.msra.mxu0 %v10835_v35  ;;  %7609 = vmatpush.bf16.msrb.mxu2 %v12007_v27  ;;  %v4476_v15 = vadd.f32 %v4475_v42, %v4462_v20  ;;  %v4491_v35 = vpop.f32.mrf.mxu3  ;;  %v10692_v27 = vld [vmem:[#allocation11 + $0x54] sm:$0xf0]  ;;  %v4478_v43 = vadd.f32 %v4477_v31, %v4464_v57  ;;  %v12287_v31 = vor.u32 %v13438_v1, %v12286_v56  ;;  %v13267_v56 = vld [vmem:[#allocation11 + $0x774] sm:$0xf]  ;;  %v11616_v1 = vld [vmem:[#allocation11 + $0x78c] sm:$0xf0] }
 0x3b5   :  { %v10695_v41 = vor.u32 %v13036_v3, %v10692_v27  ;;  %v11115_v3 = vor.u32 %v13141_v62, %v11112_v40  ;;  %v12258_v27 = vld [vmem:[#allocation11 + $0xc78] sm:$0xf]  ;;  %v11840_v62 = vld [vmem:[#allocation11 + $0x94c] sm:$0xf0]  ;;  %v13232_v40 = vld [vmem:[#allocation11 + $0x65c] sm:$0xf] }
 0x3b6   :  { %7645 = vmatpush.bf16.msra.mxu1 %v11059_v2  ;;  %v10723_v2 = vor.u32 %v13043_v47, %v10720_v23  ;;  %v4490_v42 = vadd.f32 %v14167_v60, %v4476_v15  ;;  %v4505_v49 = vpop.f32.mrf.mxu0  ;;  %v4531_v60 = vpop.f32.mrf.mxu2  ;;  %v4492_v0 = vadd.f32 %v4491_v35, %v4478_v43  ;;  %v13288_v15 = vld [vmem:[#allocation11 + $0x81c] sm:$0xf]  ;;  %v13281_v43 = vld [vmem:[#allocation11 + $0x7e4] sm:$0xf] }
 0x3b8   :  { %7658 = vmatpush.bf16.msra.mxu2 %v11311_v52  ;;  %7632 = vmatpush.bf16.msra.mxu0 %v10807_v24  ;;  %v11199_v52 = vor.u32 %v13162_v32, %v11196_v13  ;;  %v13155_v24 = vld [vmem:[#allocation11 + $0x3f4] sm:$0xf]  ;;  %v4504_v44 = vadd.f32 %v4503_v58, %v4490_v42  ;;  %v11728_v58 = vld [vmem:[#allocation11 + $0x86c] sm:$0xf0]  ;;  %v4506_v47 = vadd.f32 %v4505_v49, %v4492_v0  ;;  %v12204_v42 = vld [vmem:[#allocation11 + $0xc24] sm:$0xf0] }
 0x3b9   :  { %v13274_v0 = vld [vmem:[#allocation11 + $0x7ac] sm:$0xf] }
 0x3ba   :  { %7646 = vmatpush.bf16.msra.mxu1 %v11031_v55  ;;  %v12343_v55 = vor.u32 %v13452_v30, %v12342_v59  ;;  %v4519_v13 = vpop.f32.mrf.mxu1  ;;  %v12259_v59 = vor.u32 %v13431_v50, %v12258_v27  ;;  %v13316_v27 = vld [vmem:[#allocation11 + $0x8fc] sm:$0xf]  ;;  %v11812_v50 = vld [vmem:[#allocation11 + $0x914] sm:$0xf0] }
 0x3bb   :  { %v4520_v35 = vadd.f32 %v4519_v13, %v4506_v47 }
 0x3bc   :  { %7659 = vmatpush.bf16.msra.mxu2 %v11283_v48  ;;  %7633 = vmatpush.bf16.msra.mxu0 %v10779_v26  ;;  %v13085_v48 = vld [vmem:[#allocation11 + $0x1c4] sm:$0xf]  ;;  %v13358_v26 = vld [vmem:[#allocation11 + $0xa4c] sm:$0xf]  ;;  %v4545_v37 = vpop.f32.mrf.mxu3 }
 0x3bd   :  { %7619 = vmatpush.bf16.msrb.mxu3 %v12343_v55  ;;  %v10891_v29 = vor.u32 %v13085_v48, %v10888_v7  ;;  %v11983_v23 = vor.u32 %v13358_v26, %v11980_v61  ;;  %v13337_v48 = vld [vmem:[#allocation11 + $0x9a4] sm:$0xf]  ;;  %v13424_v7 = vld [vmem:[#allocation11 + $0xc58] sm:$0xf0]  ;;  %v11532_v26 = vld [vmem:[#allocation11 + $0x6e4] sm:$0xf0] }
 0x3be   :  { %7647 = vmatpush.bf16.msra.mxu1 %v11003_v11  ;;  %v11171_v11 = vor.u32 %v13155_v24, %v11168_v8  ;;  %v4533_v57 = vpop.f32.mrf.mxu2  ;;  %v13414_v24 = vld [vmem:[#allocation11 + $0xc0c] sm:$0xf]  ;;  %v13407_v61 = vld [vmem:[#allocation11 + $0xbd4] sm:$0xf] }
 0x3bf   :  { %v12207_v49 = vor.u32 %v13414_v24, %v12204_v42  ;;  %v12092_v24 = vld [vmem:[#allocation11 + $0xb44] sm:$0xf0]  ;;  %v11815_v42 = vor.u32 %v13316_v27, %v11812_v50 }
 0x3c0   :  { %7660 = vmatpush.bf16.msra.mxu2 %v11255_v38  ;;  %7634 = vmatpush.bf16.msra.mxu0 %v10751_v14  ;;  %v11140_v38 = vld [vmem:[#allocation11 + $0x3d4] sm:$0xf0]  ;;  %v13295_v14 = vld [vmem:[#allocation11 + $0x854] sm:$0xf] }
 0x3c1   :  { %7620 = vmatpush.bf16.msrb.mxu3 %v12315_v9  ;;  %v11143_v20 = vor.u32 %v13148_v16, %v11140_v38  ;;  %v11731_v53 = vor.u32 %v13295_v14, %v11728_v58  ;;  %v12176_v16 = vld [vmem:[#allocation11 + $0xbec] sm:$0xf0]  ;;  %v11899_v9 = vor.u32 %v13337_v48, %v11896_v12  ;;  %v13218_v48 = vld [vmem:[#allocation11 + $0x5ec] sm:$0xf] }
 0x3c2   :  { %7648 = vmatpush.bf16.msra.mxu1 %v10975_v28  ;;  %v4518_v28 = vadd.f32 %v4517_v18, %v4504_v44  ;;  %v4534_v18 = vadd.f32 %v4533_v57, %v4520_v35  ;;  %v13246_v44 = vld [vmem:[#allocation11 + $0x6cc] sm:$0xf]  ;;  %v11504_v14 = vld [vmem:[#allocation11 + $0x6ac] sm:$0xf0]  ;;  %v12120_v35 = vld [vmem:[#allocation11 + $0xb7c] sm:$0xf0] }
 0x3c3   :  { %v11535_v19 = vor.u32 %v13246_v44, %v11532_v26  ;;  %v13225_v57 = vld [vmem:[#allocation11 + $0x624] sm:$0xf]  ;;  %v13138_v12 = vld [vmem:[#allocation11 + $0x368] sm:$0xf0]  ;;  %v14176_v44 = vpop.f32.mrf.mxu0 }
 0x3c4   :  { %7661 = vmatpush.bf16.msra.mxu2 %v11227_v63  ;;  %7635 = vmatpush.bf16.msra.mxu0 %v10723_v2  ;;  %v11952_v63 = vld [vmem:[#allocation11 + $0xa2c] sm:$0xf0]  ;;  %v4532_v32 = vadd.f32 %v4531_v60, %v4518_v28  ;;  %v4547_v8 = vpop.f32.mrf.mxu3  ;;  %v12179_v28 = vor.u32 %v13407_v61, %v12176_v16  ;;  %v10838_v61 = vld [vmem:[#allocation11 + $0x158] sm:$0xf] }
 0x3c5   :  { %v11955_v2 = vor.u32 %v13351_v6, %v11952_v63  ;;  %7621 = vmatpush.bf16.msrb.mxu3 %v12287_v31  ;;  %v4548_v17 = vadd.f32 %v4547_v8, %v4534_v18  ;;  %v12148_v6 = vld [vmem:[#allocation11 + $0xbb4] sm:$0xf0]  ;;  %v13323_v63 = vld [vmem:[#allocation11 + $0x934] sm:$0xf]  ;;  %v13253_v8 = vld [vmem:[#allocation11 + $0x704] sm:$0xf] }
 0x3c6   :  { %7649 = vmatpush.bf16.msra.mxu1 %v10947_v51  ;;  %v11700_v51 = vld [vmem:[#allocation11 + $0x834] sm:$0xf0]  ;;  %v4546_v30 = vadd.f32 %v4545_v37, %v4532_v32  ;;  %v11644_v37 = vld [vmem:[#allocation11 + $0x7c4] sm:$0xf0]  ;;  %v4587_v27 = vpop.f32.mrf.mxu2 }
 0x3c7   :  { %v11703_v55 = vor.u32 %v13288_v15, %v11700_v51  ;;  %v4676_v39 = vmax.f32 %v4548_v17, 0.0  ;;  %v11647_v47 = vor.u32 %v13274_v0, %v11644_v37  ;;  %v11476_v31 = vld [vmem:[#allocation11 + $0x674] sm:$0xf0]  ;;  %v13393_v15 = vld [vmem:[#allocation11 + $0xb64] sm:$0xf] }
 0x3c8   :  { %7662 = vmatpush.bf16.msra.mxu2 %v11199_v52  ;;  %7636 = vmatpush.bf16.msra.mxu0 %v10695_v41  ;;  %v11924_v52 = vld [vmem:[#allocation11 + $0x9f4] sm:$0xf0]  ;;  %v11672_v41 = vld [vmem:[#allocation11 + $0x7fc] sm:$0xf0]  ;;  %v11479_v32 = vor.u32 %v13232_v40, %v11476_v31  ;;  %v13260_v51 = vld [vmem:[#allocation11 + $0x73c] sm:$0xf] }
 0x3c9   :  { %v11927_v21 = vor.u32 %v13344_v36, %v11924_v52  ;;  %7622 = vmatpush.bf16.msrb.mxu3 %v12259_v59  ;;  %v11675_v60 = vor.u32 %v13281_v43, %v11672_v41  ;;  %v11448_v36 = vld [vmem:[#allocation11 + $0x63c] sm:$0xf0]  ;;  %v13386_v52 = vld [vmem:[#allocation11 + $0xb2c] sm:$0xf]  ;;  %v13309_v43 = vld [vmem:[#allocation11 + $0x8c4] sm:$0xf] }
 0x3ca   :  { %7650 = vmatpush.bf16.msra.mxu1 %v10919_v4  ;;  %v12230_v4 = vld [vmem:[#allocation11 + $0xc40] sm:$0xf]  ;;  %v11451_v59 = vor.u32 %v13225_v57, %v11448_v36  ;;  %v10866_v17 = vld [vmem:[#allocation11 + $0x190] sm:$0xf]  ;;  %v12095_v26 = vor.u32 %v13386_v52, %v12092_v24  ;;  %v13211_v0 = vld [vmem:[#allocation11 + $0x5b4] sm:$0xf] }
 0x3cb   :  { %v12231_v46 = vor.u32 %v13424_v7, %v12230_v4  ;;  %v11784_v41 = vld [vmem:[#allocation11 + $0x8dc] sm:$0xf0]  ;;  %v11420_v4 = vld [vmem:[#allocation11 + $0x604] sm:$0xf0]  ;;  %v11090_v7 = vld [vmem:[#allocation11 + $0x350] sm:$0xf] }
 0x3cc   :  { %7663 = vmatpush.bf16.msra.mxu2 %v11171_v11  ;;  %7637 = vmatpush.bf16.msra.mxu0 %v10667_v10  ;;  %v4668_v11 = vmax.f32 %v4546_v30, 0.0  ;;  %v13330_v10 = vld [vmem:[#allocation11 + $0x96c] sm:$0xf]  ;;  %v12123_v30 = vor.u32 %v13393_v15, %v12120_v35  ;;  %v11091_v16 = vor.u32 %v13138_v12, %v11090_v7  ;;  %v11392_v37 = vld [vmem:[#allocation11 + $0x5cc] sm:$0xf0] }
 0x3cd   :  { %7623 = vmatpush.bf16.msrb.mxu3 %v12231_v46  ;;  %v11423_v46 = vor.u32 %v13218_v48, %v11420_v4  ;;  %v13124_v40 = vld [vmem:[#allocation11 + $0x2f8] sm:$0xf0]  ;;  %v11314_v35 = vld [vmem:[#allocation11 + $0x510] sm:$0xf]  ;;  %v13061_v57 = vld [vmem:[#allocation11 + $0x100] sm:$0xf0] }
 0x3ce   :  { %7651 = vmatpush.bf16.msra.mxu1 %v10891_v29  ;;  %v14173_v38 = vpack.c.bf16 %v4676_v39, %v4668_v11  ;;  %v11868_v29 = vld [vmem:[#allocation11 + $0x984] sm:$0xf0]  ;;  %v11787_v39 = vor.u32 %v13309_v43, %v11784_v41  ;;  %v13197_v36 = vld [vmem:[#allocation11 + $0x544] sm:$0xf]  ;;  %v11336_v52 = vld [vmem:[#allocation11 + $0x55c] sm:$0xf0] }
 0x3cf   :  { %7638 = vmatmul.bf16.vlgmr.msra.gmra.mxu0 %v14109_v54  ;;  %v11006_v24 = vld [vmem:[#allocation11 + $0x2a8] sm:$0xf]  ;;  %v13187_v48 = vld [vmem:[#allocation11 + $0x4f0] sm:$0xf0]  ;;  %v10754_v4 = vld [vmem:[#allocation11 + $0xb0] sm:$0xf] }
 0x3d0   :  { %7686 = vmatpush.bf16.msrb.mxu0 %v11759_v45  ;;  %7664 = vmatpush.bf16.msra.mxu2 %v11143_v20  ;;  %v13239_v45 = vld [vmem:[#allocation11 + $0x694] sm:$0xf]  ;;  %v11871_v20 = vor.u32 %v13330_v10, %v11868_v29  ;;  %v11062_v10 = vld [vmem:[#allocation11 + $0x318] sm:$0xf]  ;;  %v13054_v7 = vld [vmem:[#allocation11 + $0xc8] sm:$0xf0] }
 0x3d1   :  { %7652 = vmatmul.bf16.vlgmr.msra.gmra.mxu1 %v14120_v34  ;;  %7610 = vmatmul.bf16.vlgmr.msrb.gmra.mxu2 %v14173_v38  ;;  %v11507_v58 = vor.u32 %v13239_v45, %v11504_v14  ;;  %v13131_v29 = vld [vmem:[#allocation11 + $0x330] sm:$0xf0]  ;;  %v11395_v45 = vor.u32 %v13211_v0, %v11392_v37 }
 0x3d2   :  { %7700 = vmatpush.bf16.msrb.mxu1 %v11983_v23  ;;  %7672 = vmatpush.bf16.msra.mxu3 %v11535_v19  ;;  %v13400_v23 = vld [vmem:[#allocation11 + $0xb9c] sm:$0xf]  ;;  %v13047_v0 = vld [vmem:[#allocation11 + $0x90] sm:$0xf0] }
 0x3d3   :  { %v12151_v13 = vor.u32 %v13400_v23, %v12148_v6  ;;  %v10810_v23 = vld [vmem:[#allocation11 + $0x120] sm:$0xf]  ;;  %v14179_v6 = vpop.f32.mrf.mxu1 }
 0x3d4   :  { %7687 = vmatpush.bf16.msrb.mxu0 %v11731_v53  ;;  %7665 = vmatpush.bf16.msra.mxu2 %v11115_v3  ;;  %v11619_v53 = vor.u32 %v13267_v56, %v11616_v1  ;;  %v11588_v3 = vld [vmem:[#allocation11 + $0x754] sm:$0xf0]  ;;  %v13068_v56 = vld [vmem:[#allocation11 + $0x138] sm:$0xf0] }
 0x3d5   :  { %v11591_v18 = vor.u32 %v13260_v51, %v11588_v3  ;;  %v13204_v1 = vld [vmem:[#allocation11 + $0x57c] sm:$0xf]  ;;  %v10811_v15 = vor.u32 %v13068_v56, %v10810_v23  ;;  %v10782_v51 = vld [vmem:[#allocation11 + $0xe8] sm:$0xf]  ;;  %v4561_v3 = vpop.f32.mrf.mxu0 }
 0x3d6   :  { %7701 = vmatpush.bf16.msrb.mxu1 %v11955_v2  ;;  %7673 = vmatpush.bf16.msra.mxu3 %v11507_v58  ;;  %v11843_v2 = vor.u32 %v13323_v63, %v11840_v62  ;;  %v11364_v63 = vld [vmem:[#allocation11 + $0x594] sm:$0xf0]  ;;  %v11034_v62 = vld [vmem:[#allocation11 + $0x2e0] sm:$0xf]  ;;  %v10783_v41 = vor.u32 %v13061_v57, %v10782_v51  ;;  %v11230_v23 = vld [vmem:[#allocation11 + $0x468] sm:$0xf] }
 0x3d7   :  { %v11367_v31 = vor.u32 %v13204_v1, %v11364_v63  ;;  %v11035_v50 = vor.u32 %v13124_v40, %v11034_v62  ;;  %v10698_v1 = vld [vmem:[#allocation11 + $0x40] sm:$0xf]  ;;  %v13040_v63 = vld [vmem:[#allocation11 + $0x58] sm:$0xf0] }
 0x3d8   :  { %7688 = vmatpush.bf16.msrb.mxu0 %v11703_v55  ;;  %7714 = vmatpush.bf16.msrb.mxu2 %v12207_v49  ;;  %v11560_v55 = vld [vmem:[#allocation11 + $0x71c] sm:$0xf0]  ;;  %v13379_v49 = vld [vmem:[#allocation11 + $0xaf4] sm:$0xf]  ;;  %v13096_v40 = vld [vmem:[#allocation11 + $0x218] sm:$0xf0] }
 0x3d9   :  { %v11563_v11 = vor.u32 %v13253_v8, %v11560_v55  ;;  %v13117_v8 = vld [vmem:[#allocation11 + $0x2c0] sm:$0xf0]  ;;  %v11339_v55 = vor.u32 %v13197_v36, %v11336_v52  ;;  %v11762_v52 = vld [vmem:[#allocation11 + $0x890] sm:$0xf] }
 0x3da   :  { %7702 = vmatpush.bf16.msrb.mxu1 %v11927_v21  ;;  %7674 = vmatpush.bf16.msra.mxu3 %v11479_v32  ;;  %v13082_v21 = vld [vmem:[#allocation11 + $0x1a8] sm:$0xf0]  ;;  %v13089_v36 = vld [vmem:[#allocation11 + $0x1e0] sm:$0xf0] }
 0x3db   :  { %v10867_v19 = vor.u32 %v13082_v21, %v10866_v17  ;;  %v11286_v17 = vld [vmem:[#allocation11 + $0x4d8] sm:$0xf]  ;;  %v11007_v21 = vor.u32 %v13117_v8, %v11006_v24  ;;  %v11986_v8 = vld [vmem:[#allocation11 + $0xa50] sm:$0xf] }
 0x3dc   :  { %7689 = vmatpush.bf16.msrb.mxu0 %v11675_v60  ;;  %7715 = vmatpush.bf16.msrb.mxu2 %v12179_v28  ;;  %v12064_v60 = vld [vmem:[#allocation11 + $0xb0c] sm:$0xf0]  ;;  %v13372_v28 = vld [vmem:[#allocation11 + $0xabc] sm:$0xf] }
 0x3dd   :  { %v12067_v14 = vor.u32 %v13379_v49, %v12064_v60  ;;  %v11258_v49 = vld [vmem:[#allocation11 + $0x4a0] sm:$0xf] }
 0x3de   :  { %7703 = vmatpush.bf16.msrb.mxu1 %v11899_v9  ;;  %7675 = vmatpush.bf16.msra.mxu3 %v11451_v59  ;;  %v13075_v9 = vld [vmem:[#allocation11 + $0x170] sm:$0xf0]  ;;  %v13522_v59 = vld [vmem:[#allocation10] sm:$0xff] }
 0x3df   :  { %v10839_v58 = vor.u32 %v13075_v9, %v10838_v61  ;;  %v10726_v9 = vld [vmem:[#allocation11 + $0x78] sm:$0xf] }
 0x3e0   :  { %7690 = vmatpush.bf16.msrb.mxu0 %v11647_v47  ;;  %7716 = vmatpush.bf16.msrb.mxu2 %v12151_v13  ;;  %v12036_v47 = vld [vmem:[#allocation11 + $0xad4] sm:$0xf0]  ;;  %v13365_v13 = vld [vmem:[#allocation11 + $0xa84] sm:$0xf] }
 0x3e1   :  { %7666 = vmatmul.bf16.vlgmr.msra.gmra.mxu2 %v14129_v22  ;;  %v12039_v32 = vor.u32 %v13372_v28, %v12036_v47  ;;  %v10727_v47 = vor.u32 %v13047_v0, %v10726_v9  ;;  %v11146_v9 = vld [vmem:[#allocation11 + $0x3c0] sm:$0xf]  ;;  %v13152_v0 = vld [vmem:[#allocation11 + $0x3d8] sm:$0xf0] }
 0x3e2   :  { %7704 = vmatpush.bf16.msrb.mxu1 %v11871_v20  ;;  %7676 = vmatpush.bf16.msra.mxu3 %v11423_v46  ;;  %v11063_v20 = vor.u32 %v13131_v29, %v11062_v10  ;;  %v10978_v46 = vld [vmem:[#allocation11 + $0x270] sm:$0xf]  ;;  %v13103_v29 = vld [vmem:[#allocation11 + $0x250] sm:$0xf0] }
 0x3e4   :  { %7691 = vmatpush.bf16.msrb.mxu0 %v11619_v53  ;;  %7717 = vmatpush.bf16.msrb.mxu2 %v12123_v30  ;;  %v12008_v53 = vld [vmem:[#allocation11 + $0xa9c] sm:$0xf0]  ;;  %v1197_v30 = vperm.slane %v13522_v59, 7  ;;  %v13306_v59 = vld [vmem:[#allocation11 + $0x8a8] sm:$0xf0] }
 0x3e6   :  { %7705 = vmatpush.bf16.msrb.mxu1 %v11843_v2  ;;  %7677 = vmatpush.bf16.msra.mxu3 %v11395_v45  ;;  %v13194_v2 = vld [vmem:[#allocation11 + $0x528] sm:$0xf0]  ;;  %v4560_v12 = vadd.f32 %v14176_v44, %v1197_v30  ;;  %v4562_v10 = vadd.f32 %v4561_v3, %v1197_v30  ;;  %v10950_v44 = vld [vmem:[#allocation11 + $0x238] sm:$0xf]  ;;  %v4589_v45 = vpop.f32.mrf.mxu2  ;;  %v10670_v3 = vld [vmem:[#allocation11 + $0x8] sm:$0xf] }
 0x3e7   :  { %v11315_v43 = vor.u32 %v13194_v2, %v11314_v35  ;;  %v10951_v56 = vor.u32 %v13103_v29, %v10950_v44  ;;  %v11202_v35 = vld [vmem:[#allocation11 + $0x430] sm:$0xf]  ;;  %v13166_v2 = vld [vmem:[#allocation11 + $0x448] sm:$0xf0]  ;;  %v11706_v44 = vld [vmem:[#allocation11 + $0x820] sm:$0xf] }
 0x3e8   :  { %7692 = vmatpush.bf16.msrb.mxu0 %v11591_v18  ;;  %7718 = vmatpush.bf16.msrb.mxu2 %v12095_v26  ;;  %v4601_v18 = vpop.f32.mrf.mxu3  ;;  %v13110_v26 = vld [vmem:[#allocation11 + $0x288] sm:$0xf0]  ;;  %v4574_v37 = vadd.f32 %v14179_v6, %v4560_v12  ;;  %v10922_v6 = vld [vmem:[#allocation11 + $0x200] sm:$0xf]  ;;  %v13292_v29 = vld [vmem:[#allocation11 + $0x838] sm:$0xf0] }
 0x3e9   :  { %v10979_v61 = vor.u32 %v13110_v26, %v10978_v46  ;;  %v10923_v51 = vor.u32 %v13096_v40, %v10922_v6  ;;  %v11734_v26 = vld [vmem:[#allocation11 + $0x858] sm:$0xf]  ;;  %v12428_v6 = vld [vmem:[#allocation11 + $0xde4] sm:$0xf0] }
 0x3ea   :  { %7706 = vmatpush.bf16.msrb.mxu1 %v11815_v42  ;;  %7678 = vmatpush.bf16.msra.mxu3 %v11367_v31  ;;  %v12011_v42 = vor.u32 %v13365_v13, %v12008_v53 }
 0x3ec   :  { %7693 = vmatpush.bf16.msrb.mxu0 %v11563_v11  ;;  %7719 = vmatpush.bf16.msrb.mxu2 %v12067_v14  ;;  %v4575_v11 = vpop.f32.mrf.mxu1  ;;  %v4615_v60 = vpop.f32.mrf.mxu0  ;;  %v4588_v14 = vadd.f32 %v4587_v27, %v4574_v37  ;;  %v13033_v27 = vld [vmem:[#allocation11 + $0x20] sm:$0xf0] }
 0x3ed   :  { %v4576_v62 = vadd.f32 %v4575_v11, %v4562_v10  ;;  %v13299_v11 = vld [vmem:[#allocation11 + $0x870] sm:$0xf0] }
 0x3ee   :  { %7707 = vmatpush.bf16.msrb.mxu1 %v11787_v39  ;;  %7679 = vmatpush.bf16.msra.mxu3 %v11339_v55  ;;  %v11287_v39 = vor.u32 %v13187_v48, %v11286_v17  ;;  %v4602_v13 = vadd.f32 %v4601_v18, %v4588_v14  ;;  %v13362_v55 = vld [vmem:[#allocation11 + $0xa68] sm:$0xf0]  ;;  %v11174_v48 = vld [vmem:[#allocation11 + $0x3f8] sm:$0xf]  ;;  %v11930_v14 = vld [vmem:[#allocation11 + $0x9e0] sm:$0xf] }
 0x3ef   :  { %7694 = vmatmul.bf16.vlgmr.msrb.gmra.mxu0 %v14160_v5  ;;  %v4590_v53 = vadd.f32 %v4589_v45, %v4576_v62  ;;  %v11987_v46 = vor.u32 %v13362_v55, %v11986_v8  ;;  %v13470_v62 = vld [vmem:[#allocation11 + $0xdcc] sm:$0xf]  ;;  %v12182_v8 = vld [vmem:[#allocation11 + $0xbd8] sm:$0xf]  ;;  %v13411_v55 = vld [vmem:[#allocation11 + $0xbf0] sm:$0xf0] }
 0x3f0   :  { %7742 = vmatpush.bf16.msra.mxu0 %v10867_v19  ;;  %7720 = vmatpush.bf16.msrb.mxu2 %v12039_v32  ;;  %v10755_v19 = vor.u32 %v13054_v7, %v10754_v4  ;;  %v4616_v57 = vadd.f32 %v4615_v60, %v4602_v13  ;;  %v13159_v4 = vld [vmem:[#allocation11 + $0x410] sm:$0xf0]  ;;  %v13418_v13 = vld [vmem:[#allocation11 + $0xc28] sm:$0xf0] }
 0x3f1   :  { %7708 = vmatmul.bf16.vlgmr.msrb.gmra.mxu1 %v14162_v25  ;;  %v11175_v60 = vor.u32 %v13159_v4, %v11174_v48  ;;  %v13456_v48 = vld [vmem:[#allocation11 + $0xd5c] sm:$0xf]  ;;  %v12372_v4 = vld [vmem:[#allocation11 + $0xd74] sm:$0xf0] }
 0x3f2   :  { %7756 = vmatpush.bf16.msra.mxu1 %v11091_v16  ;;  %v13180_v16 = vld [vmem:[#allocation11 + $0x4b8] sm:$0xf0] }
 0x3f3   :  { %v11259_v28 = vor.u32 %v13180_v16, %v11258_v49  ;;  %v11735_v16 = vor.u32 %v13299_v11, %v11734_v26  ;;  %v13404_v26 = vld [vmem:[#allocation11 + $0xbb8] sm:$0xf0]  ;;  %v11622_v11 = vld [vmem:[#allocation11 + $0x778] sm:$0xf] }
 0x3f4   :  { %7743 = vmatpush.bf16.msra.mxu0 %v10839_v58  ;;  %7721 = vmatpush.bf16.msrb.mxu2 %v12011_v42  ;;  %v4603_v58 = vpop.f32.mrf.mxu3  ;;  %v4629_v31 = vpop.f32.mrf.mxu1 }
 0x3f5   :  { %v4617_v30 = vpop.f32.mrf.mxu0  ;;  %v4604_v18 = vadd.f32 %v4603_v58, %v4590_v53  ;;  %v4630_v7 = vadd.f32 %v4629_v31, %v4616_v57  ;;  %v13348_v58 = vld [vmem:[#allocation11 + $0x9f8] sm:$0xf0]  ;;  %v11678_v53 = vld [vmem:[#allocation11 + $0x7e8] sm:$0xf] }
 0x3f6   :  { %7757 = vmatpush.bf16.msra.mxu1 %v11063_v20  ;;  %v13173_v20 = vld [vmem:[#allocation11 + $0x480] sm:$0xf0]  ;;  %v11931_v31 = vor.u32 %v13348_v58, %v11930_v14  ;;  %v11818_v14 = vld [vmem:[#allocation11 + $0x900] sm:$0xf]  ;;  %v13320_v58 = vld [vmem:[#allocation11 + $0x918] sm:$0xf0] }
 0x3f7   :  { %7722 = vmatmul.bf16.vlgmr.msrb.gmra.mxu2 %v14173_v38  ;;  %v11231_v32 = vor.u32 %v13173_v20, %v11230_v23  ;;  %v4618_v12 = vadd.f32 %v4617_v30, %v4604_v18  ;;  %v11147_v23 = vor.u32 %v13152_v0, %v11146_v9  ;;  %v11118_v20 = vld [vmem:[#allocation11 + $0x388] sm:$0xf]  ;;  %v11650_v18 = vld [vmem:[#allocation11 + $0x7b0] sm:$0xf]  ;;  %v12344_v9 = vld [vmem:[#allocation11 + $0xd3c] sm:$0xf0] }
 0x3f8   :  { %7744 = vmatpush.bf16.msra.mxu0 %v10811_v15  ;;  %7770 = vmatpush.bf16.msra.mxu2 %v11315_v43  ;;  %v10699_v15 = vor.u32 %v13040_v63, %v10698_v1  ;;  %v11203_v43 = vor.u32 %v13166_v2, %v11202_v35  ;;  %v11707_v1 = vor.u32 %v13292_v29, %v11706_v44  ;;  %v13145_v63 = vld [vmem:[#allocation11 + $0x3a0] sm:$0xf0]  ;;  %v11902_v35 = vld [vmem:[#allocation11 + $0x9a8] sm:$0xf]  ;;  %v11594_v29 = vld [vmem:[#allocation11 + $0x740] sm:$0xf] }
 0x3f9   :  { %v13341_v2 = vld [vmem:[#allocation11 + $0x9c0] sm:$0xf0] }
 0x3fa   :  { %7758 = vmatpush.bf16.msra.mxu1 %v11035_v50  ;;  %v10894_v50 = vld [vmem:[#allocation11 + $0x1c8] sm:$0xf]  ;;  %v4643_v24 = vpop.f32.mrf.mxu2  ;;  %v13397_v44 = vld [vmem:[#allocation11 + $0xb80] sm:$0xf0] }
 0x3fb   :  { %v10895_v17 = vor.u32 %v13089_v36, %v10894_v50  ;;  %v4644_v49 = vadd.f32 %v4643_v24, %v4630_v7  ;;  %v12431_v50 = vor.u32 %v13470_v62, %v12428_v6  ;;  %v13463_v36 = vld [vmem:[#allocation11 + $0xd94] sm:$0xf]  ;;  %v11903_v24 = vor.u32 %v13341_v2, %v11902_v35  ;;  %v13390_v62 = vld [vmem:[#allocation11 + $0xb48] sm:$0xf0]  ;;  %v11566_v6 = vld [vmem:[#allocation11 + $0x708] sm:$0xf] }
 0x3fc   :  { %7745 = vmatpush.bf16.msra.mxu0 %v10783_v41  ;;  %7771 = vmatpush.bf16.msra.mxu2 %v11287_v39  ;;  %v4657_v42 = vpop.f32.mrf.mxu3  ;;  %v10671_v41 = vor.u32 %v13033_v27, %v10670_v3  ;;  %v11958_v39 = vld [vmem:[#allocation11 + $0xa18] sm:$0xf]  ;;  %v11119_v27 = vor.u32 %v13145_v63, %v11118_v20  ;;  %v12316_v20 = vld [vmem:[#allocation11 + $0xd04] sm:$0xf0]  ;;  %v11819_v63 = vor.u32 %v13320_v58, %v11818_v14  ;;  %v11092_v35 = vld [vmem:[#allocation11 + $0x36c] sm:$0xf0] }
 0x3fd   :  { %v13058_v14 = vld [vmem:[#allocation11 + $0xec] sm:$0xf]  ;;  %v10784_v58 = vld [vmem:[#allocation11 + $0x104] sm:$0xf0] }
 0x3fe   :  { %7759 = vmatpush.bf16.msra.mxu1 %v11007_v21  ;;  %v11763_v21 = vor.u32 %v13306_v59, %v11762_v52  ;;  %v12400_v52 = vld [vmem:[#allocation11 + $0xdac] sm:$0xf0] }
 0x400   :  { %7746 = vmatpush.bf16.msra.mxu0 %v10755_v19  ;;  %7772 = vmatpush.bf16.msra.mxu2 %v11259_v28  ;;  %v13355_v19 = vld [vmem:[#allocation11 + $0xa30] sm:$0xf0]  ;;  %v4658_v28 = vadd.f32 %v4657_v42, %v4644_v49  ;;  %v13278_v42 = vld [vmem:[#allocation11 + $0x7c8] sm:$0xf0] }
 0x401   :  { %v11959_v10 = vor.u32 %v13355_v19, %v11958_v39  ;;  %v11651_v7 = vor.u32 %v13278_v42, %v11650_v18  ;;  %v13271_v39 = vld [vmem:[#allocation11 + $0x790] sm:$0xf0]  ;;  %v11846_v19 = vld [vmem:[#allocation11 + $0x938] sm:$0xf]  ;;  %v13128_v18 = vld [vmem:[#allocation11 + $0x31c] sm:$0xf] }
 0x402   :  { %7760 = vmatpush.bf16.msra.mxu1 %v10979_v61  ;;  %v4631_v61 = vpop.f32.mrf.mxu1  ;;  %v4645_v45 = vpop.f32.mrf.mxu2  ;;  %v13327_v49 = vld [vmem:[#allocation11 + $0x950] sm:$0xf0]  ;;  %v11623_v0 = vor.u32 %v13271_v39, %v11622_v11  ;;  %v11064_v42 = vld [vmem:[#allocation11 + $0x334] sm:$0xf0]  ;;  %v13121_v11 = vld [vmem:[#allocation11 + $0x2e4] sm:$0xf] }
 0x403   :  { %v4632_v37 = vadd.f32 %v4631_v61, %v4618_v12  ;;  %v11036_v39 = vld [vmem:[#allocation11 + $0x2fc] sm:$0xf0] }
 0x404   :  { %7747 = vmatpush.bf16.msra.mxu0 %v10727_v47  ;;  %7773 = vmatpush.bf16.msra.mxu2 %v11231_v32  ;;  %v12210_v32 = vld [vmem:[#allocation11 + $0xc10] sm:$0xf] }
 0x405   :  { %v4646_v47 = vadd.f32 %v4645_v45, %v4632_v37  ;;  %v12211_v57 = vor.u32 %v13418_v13, %v12210_v32  ;;  %v11847_v37 = vor.u32 %v13327_v49, %v11846_v19  ;;  %v13264_v45 = vld [vmem:[#allocation11 + $0x758] sm:$0xf0]  ;;  %v13313_v32 = vld [vmem:[#allocation11 + $0x8e0] sm:$0xf0]  ;;  %v13079_v13 = vld [vmem:[#allocation11 + $0x194] sm:$0xf] }
 0x406   :  { %7761 = vmatpush.bf16.msra.mxu1 %v10951_v56  ;;  %v4659_v56 = vpop.f32.mrf.mxu3  ;;  %v13421_v49 = vld [vmem:[#allocation11 + $0xc44] sm:$0xf] }
 0x407   :  { %v4660_v40 = vadd.f32 %v4659_v56, %v4646_v47  ;;  %v12098_v56 = vld [vmem:[#allocation11 + $0xb30] sm:$0xf] }
 0x408   :  { %7748 = vmatpush.bf16.msra.mxu0 %v10699_v15  ;;  %7774 = vmatpush.bf16.msra.mxu2 %v11203_v43  ;;  %v13285_v15 = vld [vmem:[#allocation11 + $0x800] sm:$0xf0]  ;;  %v11874_v43 = vld [vmem:[#allocation11 + $0x970] sm:$0xf] }
 0x409   :  { %v4677_v3 = vmax.f32 %v4660_v40, 0.0  ;;  %v11679_v30 = vor.u32 %v13285_v15, %v11678_v53  ;;  %v13257_v40 = vld [vmem:[#allocation11 + $0x720] sm:$0xf0]  ;;  %v10868_v53 = vld [vmem:[#allocation11 + $0x1ac] sm:$0xf0] }
 0x40a   :  { %7762 = vmatpush.bf16.msra.mxu1 %v10923_v51  ;;  %v4669_v51 = vmax.f32 %v4658_v28, 0.0  ;;  %v13135_v15 = vld [vmem:[#allocation11 + $0x354] sm:$0xf] }
 0x40c   :  { %7749 = vmatpush.bf16.msra.mxu0 %v10671_v41  ;;  %7775 = vmatpush.bf16.msra.mxu2 %v11175_v60  ;;  %v14188_v59 = vpack.c.bf16 %v4677_v3, %v4669_v51  ;;  %v13334_v41 = vld [vmem:[#allocation11 + $0x988] sm:$0xf0]  ;;  %v12375_v60 = vor.u32 %v13456_v48, %v12372_v4  ;;  %v12099_v51 = vor.u32 %v13390_v62, %v12098_v56  ;;  %v11510_v62 = vld [vmem:[#allocation11 + $0x698] sm:$0xf] }
 0x40d   :  { %v11875_v12 = vor.u32 %v13334_v41, %v11874_v43  ;;  %v11567_v3 = vor.u32 %v13257_v40, %v11566_v6  ;;  %v11067_v4 = vor.u32 %v13128_v18, %v11064_v42  ;;  %v13243_v6 = vld [vmem:[#allocation11 + $0x6b0] sm:$0xf0]  ;;  %v13184_v40 = vld [vmem:[#allocation11 + $0x4dc] sm:$0xf] }
 0x40e   :  { %7763 = vmatpush.bf16.msra.mxu1 %v10895_v17  ;;  %7624 = vmatmul.bf16.vlgmr.msrb.gmra.mxu3 %v14188_v59  ;;  %v12403_v17 = vor.u32 %v13463_v36, %v12400_v52  ;;  %v10871_v36 = vor.u32 %v13079_v13, %v10868_v53  ;;  %v11095_v52 = vor.u32 %v13135_v15, %v11092_v35  ;;  %v13051_v13 = vld [vmem:[#allocation11 + $0xb4] sm:$0xf]  ;;  %v10756_v53 = vld [vmem:[#allocation11 + $0xcc] sm:$0xf0] }
 0x40f   :  { %7750 = vmatmul.bf16.vlgmr.msra.gmra.mxu0 %v14109_v54  ;;  %7728 = vmatpush.bf16.msrb.mxu3 %v12431_v50  ;;  %v13435_v50 = vld [vmem:[#allocation11 + $0xcb4] sm:$0xf]  ;;  %v10980_v35 = vld [vmem:[#allocation11 + $0x28c] sm:$0xf0] }
 0x410   :  { %7798 = vmatpush.bf16.msrb.mxu0 %v11763_v21  ;;  %7776 = vmatpush.bf16.msra.mxu2 %v11147_v23  ;;  %v12183_v21 = vor.u32 %v13411_v55, %v12182_v8  ;;  %v13442_v23 = vld [vmem:[#allocation11 + $0xcec] sm:$0xf]  ;;  %v13072_v8 = vld [vmem:[#allocation11 + $0x15c] sm:$0xf]  ;;  %v10840_v55 = vld [vmem:[#allocation11 + $0x174] sm:$0xf0] }
 0x411   :  { %7764 = vmatmul.bf16.vlgmr.msra.gmra.mxu1 %v14120_v34  ;;  %v12319_v2 = vor.u32 %v13442_v23, %v12316_v20  ;;  %v10843_v48 = vor.u32 %v13072_v8, %v10840_v55  ;;  %v11008_v23 = vld [vmem:[#allocation11 + $0x2c4] sm:$0xf0]  ;;  %v13107_v15 = vld [vmem:[#allocation11 + $0x274] sm:$0xf]  ;;  %v13100_v8 = vld [vmem:[#allocation11 + $0x23c] sm:$0xf] }
 0x412   :  { %7812 = vmatpush.bf16.msrb.mxu1 %v11987_v46  ;;  %v12154_v46 = vld [vmem:[#allocation11 + $0xba0] sm:$0xf]  ;;  %v10952_v55 = vld [vmem:[#allocation11 + $0x254] sm:$0xf0] }
 0x413   :  { %7729 = vmatpush.bf16.msrb.mxu3 %v12403_v17  ;;  %v12155_v61 = vor.u32 %v13404_v26, %v12154_v46  ;;  %v13428_v17 = vld [vmem:[#allocation11 + $0xc7c] sm:$0xf]  ;;  %v13065_v46 = vld [vmem:[#allocation11 + $0x124] sm:$0xf]  ;;  %v10812_v26 = vld [vmem:[#allocation11 + $0x13c] sm:$0xf0] }
 0x414   :  { %7799 = vmatpush.bf16.msrb.mxu0 %v11735_v16  ;;  %7777 = vmatpush.bf16.msra.mxu2 %v11119_v27  ;;  %v13449_v16 = vld [vmem:[#allocation11 + $0xd24] sm:$0xf] }
 0x415   :  { %v12347_v28 = vor.u32 %v13449_v16, %v12344_v9  ;;  %v12014_v16 = vld [vmem:[#allocation11 + $0xa88] sm:$0xf]  ;;  %v13369_v9 = vld [vmem:[#allocation11 + $0xaa0] sm:$0xf0] }
 0x416   :  { %7813 = vmatpush.bf16.msrb.mxu1 %v11959_v10  ;;  %v12126_v10 = vld [vmem:[#allocation11 + $0xb68] sm:$0xf]  ;;  %v12015_v20 = vor.u32 %v13369_v9, %v12014_v16  ;;  %v11204_v16 = vld [vmem:[#allocation11 + $0x44c] sm:$0xf0] }
 0x417   :  { %7778 = vmatmul.bf16.vlgmr.msra.gmra.mxu2 %v14129_v22  ;;  %7730 = vmatpush.bf16.msrb.mxu3 %v12375_v60  ;;  %v12127_v47 = vor.u32 %v13397_v44, %v12126_v10  ;;  %v11538_v10 = vld [vmem:[#allocation11 + $0x6d0] sm:$0xf]  ;;  %v13250_v44 = vld [vmem:[#allocation11 + $0x6e8] sm:$0xf0] }
 0x418   :  { %7800 = vmatpush.bf16.msrb.mxu0 %v11707_v1  ;;  %7826 = vmatpush.bf16.msrb.mxu2 %v12211_v57  ;;  %v11595_v1 = vor.u32 %v13264_v45, %v11594_v29  ;;  %v12288_v57 = vld [vmem:[#allocation11 + $0xccc] sm:$0xf0]  ;;  %v13191_v29 = vld [vmem:[#allocation11 + $0x514] sm:$0xf]  ;;  %v11539_v56 = vor.u32 %v13250_v44, %v11538_v10  ;;  %v13086_v10 = vld [vmem:[#allocation11 + $0x1cc] sm:$0xf] }
 0x419   :  { %v12291_v43 = vor.u32 %v13435_v50, %v12288_v57  ;;  %v11316_v45 = vld [vmem:[#allocation11 + $0x52c] sm:$0xf0]  ;;  %v13236_v50 = vld [vmem:[#allocation11 + $0x678] sm:$0xf0]  ;;  %v13177_v57 = vld [vmem:[#allocation11 + $0x4a4] sm:$0xf] }
 0x41a   :  { %7814 = vmatpush.bf16.msrb.mxu1 %v11931_v31  ;;  %v11790_v31 = vld [vmem:[#allocation11 + $0x8c8] sm:$0xf] }
 0x41b   :  { %7731 = vmatpush.bf16.msrb.mxu3 %v12347_v28  ;;  %v11791_v27 = vor.u32 %v13313_v32, %v11790_v31  ;;  %v11288_v32 = vld [vmem:[#allocation11 + $0x4f4] sm:$0xf0]  ;;  %v10896_v44 = vld [vmem:[#allocation11 + $0x1e4] sm:$0xf0] }
 0x41c   :  { %7801 = vmatpush.bf16.msrb.mxu0 %v11679_v30  ;;  %7827 = vmatpush.bf16.msrb.mxu2 %v12183_v21  ;;  %v12070_v30 = vld [vmem:[#allocation11 + $0xaf8] sm:$0xf] }
 0x41d   :  { %v12260_v21 = vld [vmem:[#allocation11 + $0xc94] sm:$0xf0] }
 0x41e   :  { %7815 = vmatpush.bf16.msrb.mxu1 %v11903_v24  ;;  %v13383_v24 = vld [vmem:[#allocation11 + $0xb10] sm:$0xf0]  ;;  %7680 = vmatmul.bf16.vlgmr.msra.gmra.mxu3 %v14139_v33  ;;  %v12263_v19 = vor.u32 %v13428_v17, %v12260_v21  ;;  %v13229_v17 = vld [vmem:[#allocation11 + $0x640] sm:$0xf0]  ;;  %v13170_v21 = vld [vmem:[#allocation11 + $0x46c] sm:$0xf] }
 0x41f   :  { %7732 = vmatpush.bf16.msrb.mxu3 %v12319_v2  ;;  %v12071_v41 = vor.u32 %v13383_v24, %v12070_v30  ;;  %v11511_v2 = vor.u32 %v13243_v6, %v11510_v62  ;;  %v13044_v30 = vld [vmem:[#allocation11 + $0x7c] sm:$0xf]  ;;  %v10728_v24 = vld [vmem:[#allocation11 + $0x94] sm:$0xf0] }
 0x420   :  { %7802 = vmatpush.bf16.msrb.mxu0 %v11651_v7  ;;  %7828 = vmatpush.bf16.msrb.mxu2 %v12155_v61  ;;  %v12042_v7 = vld [vmem:[#allocation11 + $0xac0] sm:$0xf]  ;;  %v13156_v62 = vld [vmem:[#allocation11 + $0x3fc] sm:$0xf]  ;;  %v11176_v6 = vld [vmem:[#allocation11 + $0x414] sm:$0xf0] }
 0x421   :  { %v12232_v61 = vld [vmem:[#allocation11 + $0xc5c] sm:$0xf0] }
 0x422   :  { %7816 = vmatpush.bf16.msrb.mxu1 %v11875_v12  ;;  %v13376_v12 = vld [vmem:[#allocation11 + $0xad8] sm:$0xf0]  ;;  %v12235_v28 = vor.u32 %v13421_v49, %v12232_v61  ;;  %v13163_v61 = vld [vmem:[#allocation11 + $0x434] sm:$0xf] }
 0x423   :  { %7733 = vmatpush.bf16.msrb.mxu3 %v12291_v43  ;;  %v12043_v60 = vor.u32 %v13376_v12, %v12042_v7  ;;  %v10731_v43 = vor.u32 %v13044_v30, %v10728_v24  ;;  %v13037_v7 = vld [vmem:[#allocation11 + $0x44] sm:$0xf]  ;;  %v10700_v12 = vld [vmem:[#allocation11 + $0x5c] sm:$0xf0] }
 0x424   :  { %7803 = vmatpush.bf16.msrb.mxu0 %v11623_v0  ;;  %7829 = vmatpush.bf16.msrb.mxu2 %v12127_v47  ;;  %v10815_v0 = vor.u32 %v13065_v46, %v10812_v26  ;;  %v13114_v47 = vld [vmem:[#allocation11 + $0x2ac] sm:$0xf]  ;;  %v13093_v46 = vld [vmem:[#allocation11 + $0x204] sm:$0xf]  ;;  %v10924_v26 = vld [vmem:[#allocation11 + $0x21c] sm:$0xf0]  ;;  %v10703_v49 = vor.u32 %v13037_v7, %v10700_v12 }
 0x425   :  { %v11011_v31 = vor.u32 %v13114_v47, %v11008_v23  ;;  %v10927_v9 = vor.u32 %v13093_v46, %v10924_v26  ;;  %v11207_v47 = vor.u32 %v13163_v61, %v11204_v16  ;;  %v13345_v24 = vld [vmem:[#allocation11 + $0x9e4] sm:$0xf]  ;;  %v12212_v12 = vld [vmem:[#allocation11 + $0xc2c] sm:$0xf0]  ;;  %v13282_v46 = vld [vmem:[#allocation11 + $0x7ec] sm:$0xf] }
 0x426   :  { %7817 = vmatpush.bf16.msrb.mxu1 %v11847_v37  ;;  %v11039_v37 = vor.u32 %v13121_v11, %v11036_v39  ;;  %v11426_v39 = vld [vmem:[#allocation11 + $0x5f0] sm:$0xf]  ;;  %v11680_v26 = vld [vmem:[#allocation11 + $0x804] sm:$0xf0] }
 0x427   :  { %7734 = vmatpush.bf16.msrb.mxu3 %v12263_v19  ;;  %v11683_v16 = vor.u32 %v13282_v46, %v11680_v26  ;;  %v11098_v26 = vld [vmem:[#allocation11 + $0x358] sm:$0xf] }
 0x428   :  { %7804 = vmatpush.bf16.msrb.mxu0 %v11595_v1  ;;  %7830 = vmatpush.bf16.msrb.mxu2 %v12099_v51  ;;  %v11319_v1 = vor.u32 %v13191_v29, %v11316_v45  ;;  %v11291_v51 = vor.u32 %v13184_v40, %v11288_v32  ;;  %v13303_v29 = vld [vmem:[#allocation11 + $0x894] sm:$0xf]  ;;  %v11764_v45 = vld [vmem:[#allocation11 + $0x8ac] sm:$0xf0]  ;;  %v11736_v32 = vld [vmem:[#allocation11 + $0x874] sm:$0xf0] }
 0x42a   :  { %7818 = vmatpush.bf16.msrb.mxu1 %v11819_v63  ;;  %v10787_v63 = vor.u32 %v13058_v14, %v10784_v58  ;;  %v13359_v58 = vld [vmem:[#allocation11 + $0xa54] sm:$0xf] }
 0x42b   :  { %7735 = vmatpush.bf16.msrb.mxu3 %v12235_v28  ;;  %v11988_v28 = vld [vmem:[#allocation11 + $0xa6c] sm:$0xf0] }
 0x42c   :  { %7805 = vmatpush.bf16.msrb.mxu0 %v11567_v3  ;;  %7831 = vmatpush.bf16.msrb.mxu2 %v12071_v41  ;;  %v10759_v3 = vor.u32 %v13051_v13, %v10756_v53  ;;  %v11454_v41 = vld [vmem:[#allocation11 + $0x628] sm:$0xf]  ;;  %v11991_v40 = vor.u32 %v13359_v58, %v11988_v28  ;;  %v13352_v53 = vld [vmem:[#allocation11 + $0xa1c] sm:$0xf]  ;;  %v11876_v58 = vld [vmem:[#allocation11 + $0x98c] sm:$0xf0] }
 0x42d   :  { %v11455_v11 = vor.u32 %v13229_v17, %v11454_v41  ;;  %v11120_v41 = vld [vmem:[#allocation11 + $0x3a4] sm:$0xf0] }
 0x42e   :  { %7819 = vmatpush.bf16.msrb.mxu1 %v11791_v27  ;;  %v11482_v27 = vld [vmem:[#allocation11 + $0x660] sm:$0xf]  ;;  %7736 = vmatmul.bf16.vlgmr.msrb.gmra.mxu3 %v14188_v59 }
 0x42f   :  { %7806 = vmatmul.bf16.vlgmr.msrb.gmra.mxu0 %v14160_v5  ;;  %7784 = vmatpush.bf16.msra.mxu3 %v11539_v56  ;;  %v11483_v18 = vor.u32 %v13236_v50, %v11482_v27  ;;  %v13215_v56 = vld [vmem:[#allocation11 + $0x5d0] sm:$0xf0]  ;;  %v13149_v27 = vld [vmem:[#allocation11 + $0x3c4] sm:$0xf]  ;;  %v11148_v50 = vld [vmem:[#allocation11 + $0x3dc] sm:$0xf0] }
 0x430   :  { %7854 = vmatpush.bf16.msra.mxu0 %v10871_v36  ;;  %7832 = vmatpush.bf16.msrb.mxu2 %v12043_v60  ;;  %v10983_v36 = vor.u32 %v13107_v15, %v10980_v35  ;;  %v13222_v60 = vld [vmem:[#allocation11 + $0x608] sm:$0xf0]  ;;  %v11960_v15 = vld [vmem:[#allocation11 + $0xa34] sm:$0xf0]  ;;  %v11179_v35 = vor.u32 %v13156_v62, %v11176_v6  ;;  %v12156_v62 = vld [vmem:[#allocation11 + $0xbbc] sm:$0xf0] }
 0x431   :  { %7820 = vmatmul.bf16.vlgmr.msrb.gmra.mxu1 %v14162_v25  ;;  %v11427_v14 = vor.u32 %v13222_v60, %v11426_v39  ;;  %v13338_v39 = vld [vmem:[#allocation11 + $0x9ac] sm:$0xf]  ;;  %v13268_v6 = vld [vmem:[#allocation11 + $0x77c] sm:$0xf] }
 0x432   :  { %7868 = vmatpush.bf16.msra.mxu1 %v11095_v52  ;;  %v11260_v52 = vld [vmem:[#allocation11 + $0x4bc] sm:$0xf0] }
 0x433   :  { %7785 = vmatpush.bf16.msra.mxu3 %v11511_v2  ;;  %v11263_v42 = vor.u32 %v13177_v57, %v11260_v52  ;;  %v11370_v2 = vld [vmem:[#allocation11 + $0x580] sm:$0xf]  ;;  %v11963_v57 = vor.u32 %v13352_v53, %v11960_v15 }
 0x434   :  { %7855 = vmatpush.bf16.msra.mxu0 %v10843_v48  ;;  %7833 = vmatpush.bf16.msrb.mxu2 %v12015_v20  ;;  %v10955_v48 = vor.u32 %v13100_v8, %v10952_v55  ;;  %v11398_v20 = vld [vmem:[#allocation11 + $0x5b8] sm:$0xf]  ;;  %v11708_v52 = vld [vmem:[#allocation11 + $0x83c] sm:$0xf0]  ;;  %v11342_v55 = vld [vmem:[#allocation11 + $0x548] sm:$0xf] }
 0x435   :  { %v11399_v13 = vor.u32 %v13215_v56, %v11398_v20  ;;  %v11932_v8 = vld [vmem:[#allocation11 + $0x9fc] sm:$0xf0]  ;;  %v13460_v56 = vld [vmem:[#allocation11 + $0xd78] sm:$0xf0] }
 0x436   :  { %7869 = vmatpush.bf16.msra.mxu1 %v11067_v4  ;;  %v11232_v4 = vld [vmem:[#allocation11 + $0x484] sm:$0xf0]  ;;  %v11935_v7 = vor.u32 %v13345_v24, %v11932_v8  ;;  %v12378_v20 = vld [vmem:[#allocation11 + $0xd60] sm:$0xf]  ;;  %v12322_v24 = vld [vmem:[#allocation11 + $0xcf0] sm:$0xf] }
 0x437   :  { %7834 = vmatmul.bf16.vlgmr.msrb.gmra.mxu2 %v14173_v38  ;;  %7786 = vmatpush.bf16.msra.mxu3 %v11483_v18  ;;  %v11235_v19 = vor.u32 %v13170_v21, %v11232_v4  ;;  %v11151_v18 = vor.u32 %v13149_v27, %v11148_v50  ;;  %v12434_v21 = vld [vmem:[#allocation11 + $0xdd0] sm:$0xf]  ;;  %v13415_v4 = vld [vmem:[#allocation11 + $0xc14] sm:$0xf]  ;;  %v12128_v27 = vld [vmem:[#allocation11 + $0xb84] sm:$0xf0] }
 0x438   :  { %7856 = vmatpush.bf16.msra.mxu0 %v10815_v0  ;;  %7882 = vmatpush.bf16.msra.mxu2 %v11319_v1  ;;  %v13030_v0 = vld [vmem:[#allocation11 + $0xc] sm:$0xf]  ;;  %v10899_v1 = vor.u32 %v13086_v10, %v10896_v44  ;;  %v12215_v61 = vor.u32 %v13415_v4, %v12212_v12  ;;  %v12184_v44 = vld [vmem:[#allocation11 + $0xbf4] sm:$0xf0]  ;;  %v13261_v50 = vld [vmem:[#allocation11 + $0x744] sm:$0xf] }
 0x439   :  { %v11792_v4 = vld [vmem:[#allocation11 + $0x8e4] sm:$0xf0]  ;;  %v13083_v12 = vld [vmem:[#allocation11 + $0x1b0] sm:$0xf0] }
 0x43a   :  { %7870 = vmatpush.bf16.msra.mxu1 %v11039_v37  ;;  %v10672_v37 = vld [vmem:[#allocation11 + $0x24] sm:$0xf0] }
 0x43b   :  { %7787 = vmatpush.bf16.msra.mxu3 %v11455_v11  ;;  %v10675_v23 = vor.u32 %v13030_v0, %v10672_v37  ;;  %v13467_v0 = vld [vmem:[#allocation11 + $0xdb0] sm:$0xf0]  ;;  %v13408_v37 = vld [vmem:[#allocation11 + $0xbdc] sm:$0xf] }
 0x43c   :  { %7857 = vmatpush.bf16.msra.mxu0 %v10787_v63  ;;  %7883 = vmatpush.bf16.msra.mxu2 %v11291_v51  ;;  %v11767_v63 = vor.u32 %v13303_v29, %v11764_v45  ;;  %v13208_v51 = vld [vmem:[#allocation11 + $0x598] sm:$0xf0]  ;;  %v13275_v29 = vld [vmem:[#allocation11 + $0x7b4] sm:$0xf]  ;;  %v11652_v45 = vld [vmem:[#allocation11 + $0x7cc] sm:$0xf0] }
 0x43d   :  { %v11371_v30 = vor.u32 %v13208_v51, %v11370_v2  ;;  %v13453_v2 = vld [vmem:[#allocation11 + $0xd40] sm:$0xf0]  ;;  %v13394_v51 = vld [vmem:[#allocation11 + $0xb6c] sm:$0xf] }
 0x43e   :  { %7871 = vmatpush.bf16.msra.mxu1 %v11011_v31  ;;  %v13296_v31 = vld [vmem:[#allocation11 + $0x85c] sm:$0xf]  ;;  %v12131_v8 = vor.u32 %v13394_v51, %v12128_v27  ;;  %v13247_v51 = vld [vmem:[#allocation11 + $0x6d4] sm:$0xf]  ;;  %v11322_v27 = vld [vmem:[#allocation11 + $0x518] sm:$0xf] }
 0x43f   :  { %7788 = vmatpush.bf16.msra.mxu3 %v11427_v14  ;;  %v13331_v14 = vld [vmem:[#allocation11 + $0x974] sm:$0xf] }
 0x440   :  { %7858 = vmatpush.bf16.msra.mxu0 %v10759_v3  ;;  %7884 = vmatpush.bf16.msra.mxu2 %v11263_v42  ;;  %v11739_v3 = vor.u32 %v13296_v31, %v11736_v32  ;;  %v13201_v42 = vld [vmem:[#allocation11 + $0x560] sm:$0xf0]  ;;  %v13324_v31 = vld [vmem:[#allocation11 + $0x93c] sm:$0xf]  ;;  %v11848_v32 = vld [vmem:[#allocation11 + $0x954] sm:$0xf0] }
 0x441   :  { %v11343_v11 = vor.u32 %v13201_v42, %v11342_v55  ;;  %v13387_v42 = vld [vmem:[#allocation11 + $0xb34] sm:$0xf] }
 0x442   :  { %7872 = vmatpush.bf16.msra.mxu1 %v10983_v36  ;;  %v13289_v36 = vld [vmem:[#allocation11 + $0x824] sm:$0xf] }
 0x443   :  { %7789 = vmatpush.bf16.msra.mxu3 %v11399_v13  ;;  %v11711_v17 = vor.u32 %v13289_v36, %v11708_v52  ;;  %v12379_v13 = vor.u32 %v13460_v56, %v12378_v20  ;;  %v13317_v36 = vld [vmem:[#allocation11 + $0x904] sm:$0xf]  ;;  %v11820_v52 = vld [vmem:[#allocation11 + $0x91c] sm:$0xf0] }
 0x444   :  { %7859 = vmatpush.bf16.msra.mxu0 %v10731_v43  ;;  %7885 = vmatpush.bf16.msra.mxu2 %v11235_v19  ;;  %v13142_v43 = vld [vmem:[#allocation11 + $0x38c] sm:$0xf]  ;;  %v11904_v19 = vld [vmem:[#allocation11 + $0x9c4] sm:$0xf0]  ;;  %v13373_v20 = vld [vmem:[#allocation11 + $0xac4] sm:$0xf] }
 0x445   :  { %v11907_v10 = vor.u32 %v13338_v39, %v11904_v19  ;;  %v12044_v56 = vld [vmem:[#allocation11 + $0xadc] sm:$0xf0] }
 0x446   :  { %7873 = vmatpush.bf16.msra.mxu1 %v10955_v48  ;;  %v13474_v48 = vld [vmem:[#allocation11 + $0xde8] sm:$0xf0] }
 0x447   :  { %7790 = vmatpush.bf16.msra.mxu3 %v11371_v30  ;;  %v12435_v60 = vor.u32 %v13474_v48, %v12434_v21  ;;  %v11568_v21 = vld [vmem:[#allocation11 + $0x724] sm:$0xf0]  ;;  %v13310_v48 = vld [vmem:[#allocation11 + $0x8cc] sm:$0xf] }
 0x448   :  { %7860 = vmatpush.bf16.msra.mxu0 %v10703_v49  ;;  %7886 = vmatpush.bf16.msra.mxu2 %v11207_v47  ;;  %v11123_v49 = vor.u32 %v13142_v43, %v11120_v41  ;;  %v12187_v47 = vor.u32 %v13408_v37, %v12184_v44  ;;  %v12100_v43 = vld [vmem:[#allocation11 + $0xb4c] sm:$0xf0]  ;;  %v11823_v41 = vor.u32 %v13317_v36, %v11820_v52  ;;  %v13076_v44 = vld [vmem:[#allocation11 + $0x178] sm:$0xf0]  ;;  %v13062_v52 = vld [vmem:[#allocation11 + $0x108] sm:$0xf0] }
 0x449   :  { %v12103_v39 = vor.u32 %v13387_v42, %v12100_v43  ;;  %v10790_v36 = vld [vmem:[#allocation11 + $0xf0] sm:$0xf] }
 0x44a   :  { %7874 = vmatpush.bf16.msra.mxu1 %v10927_v9  ;;  %v12406_v9 = vld [vmem:[#allocation11 + $0xd98] sm:$0xf]  ;;  %v10791_v43 = vor.u32 %v13062_v52, %v10790_v36  ;;  %v13307_v36 = vld [vmem:[#allocation11 + $0x8b0] sm:$0xf0] }
 0x44b   :  { %7791 = vmatpush.bf16.msra.mxu3 %v11343_v11  ;;  %v12407_v28 = vor.u32 %v13467_v0, %v12406_v9  ;;  %v13139_v11 = vld [vmem:[#allocation11 + $0x370] sm:$0xf0]  ;;  %v13380_v9 = vld [vmem:[#allocation11 + $0xafc] sm:$0xf]  ;;  %v12072_v0 = vld [vmem:[#allocation11 + $0xb14] sm:$0xf0] }
 0x44c   :  { %7861 = vmatpush.bf16.msra.mxu0 %v10675_v23  ;;  %7887 = vmatpush.bf16.msra.mxu2 %v11179_v35  ;;  %v11655_v23 = vor.u32 %v13275_v29, %v11652_v45  ;;  %v12350_v35 = vld [vmem:[#allocation11 + $0xd28] sm:$0xf]  ;;  %v11099_v37 = vor.u32 %v13139_v11, %v11098_v26  ;;  %v11070_v45 = vld [vmem:[#allocation11 + $0x320] sm:$0xf]  ;;  %v13111_v26 = vld [vmem:[#allocation11 + $0x290] sm:$0xf0] }
 0x44d   :  { %v12351_v30 = vor.u32 %v13453_v2, %v12350_v35  ;;  %v12016_v35 = vld [vmem:[#allocation11 + $0xaa4] sm:$0xf0] }
 0x44e   :  { %7875 = vmatpush.bf16.msra.mxu1 %v10899_v1  ;;  %v13401_v1 = vld [vmem:[#allocation11 + $0xba4] sm:$0xf]  ;;  %7792 = vmatmul.bf16.vlgmr.msra.gmra.mxu3 %v14139_v33 }
 0x44f   :  { %7862 = vmatmul.bf16.vlgmr.msra.gmra.mxu0 %v14109_v54  ;;  %7840 = vmatpush.bf16.msrb.mxu3 %v12435_v60  ;;  %v12159_v53 = vor.u32 %v13401_v1, %v12156_v62  ;;  %v13439_v60 = vld [vmem:[#allocation11 + $0xcd0] sm:$0xf0]  ;;  %v13069_v62 = vld [vmem:[#allocation11 + $0x140] sm:$0xf0] }
 0x450   :  { %7910 = vmatpush.bf16.msrb.mxu0 %v11767_v63  ;;  %7888 = vmatpush.bf16.msra.mxu2 %v11151_v18  ;;  %v11879_v63 = vor.u32 %v13331_v14, %v11876_v58  ;;  %v13446_v18 = vld [vmem:[#allocation11 + $0xd08] sm:$0xf0]  ;;  %v13132_v14 = vld [vmem:[#allocation11 + $0x338] sm:$0xf0]  ;;  %v12075_v58 = vor.u32 %v13380_v9, %v12072_v0  ;;  %v13181_v9 = vld [vmem:[#allocation11 + $0x4c0] sm:$0xf0] }
 0x451   :  { %7876 = vmatmul.bf16.vlgmr.msra.gmra.mxu1 %v14120_v34  ;;  %v12323_v46 = vor.u32 %v13446_v18, %v12322_v24  ;;  %v11071_v1 = vor.u32 %v13132_v14, %v11070_v45  ;;  %v11014_v24 = vld [vmem:[#allocation11 + $0x2b0] sm:$0xf]  ;;  %v10734_v0 = vld [vmem:[#allocation11 + $0x80] sm:$0xf] }
 0x452   :  { %7924 = vmatpush.bf16.msrb.mxu1 %v11991_v40  ;;  %v11624_v40 = vld [vmem:[#allocation11 + $0x794] sm:$0xf0] }
 0x453   :  { %7841 = vmatpush.bf16.msrb.mxu3 %v12407_v28  ;;  %v11627_v15 = vor.u32 %v13268_v6, %v11624_v40  ;;  %v12266_v28 = vld [vmem:[#allocation11 + $0xc80] sm:$0xf]  ;;  %v11042_v40 = vld [vmem:[#allocation11 + $0x2e8] sm:$0xf] }
 0x454   :  { %7911 = vmatpush.bf16.msrb.mxu0 %v11739_v3  ;;  %7889 = vmatpush.bf16.msra.mxu2 %v11123_v49  ;;  %v11851_v3 = vor.u32 %v13324_v31, %v11848_v32  ;;  %v12294_v49 = vld [vmem:[#allocation11 + $0xcb8] sm:$0xf]  ;;  %v13125_v31 = vld [vmem:[#allocation11 + $0x300] sm:$0xf0]  ;;  %v12238_v32 = vld [vmem:[#allocation11 + $0xc48] sm:$0xf] }
 0x455   :  { %v12295_v29 = vor.u32 %v13439_v60, %v12294_v49  ;;  %v13233_v49 = vld [vmem:[#allocation11 + $0x664] sm:$0xf]  ;;  %v11484_v60 = vld [vmem:[#allocation11 + $0x67c] sm:$0xf0] }
 0x456   :  { %7925 = vmatpush.bf16.msrb.mxu1 %v11963_v57  ;;  %v11596_v57 = vld [vmem:[#allocation11 + $0x75c] sm:$0xf0] }
 0x457   :  { %7890 = vmatmul.bf16.vlgmr.msra.gmra.mxu2 %v14129_v22  ;;  %7842 = vmatpush.bf16.msrb.mxu3 %v12379_v13  ;;  %v11599_v55 = vor.u32 %v13261_v50, %v11596_v57  ;;  %v12047_v13 = vor.u32 %v13373_v20, %v12044_v56  ;;  %v11043_v50 = vor.u32 %v13125_v31, %v11042_v40  ;;  %v13195_v57 = vld [vmem:[#allocation11 + $0x530] sm:$0xf0]  ;;  %v13174_v20 = vld [vmem:[#allocation11 + $0x488] sm:$0xf0]  ;;  %v10706_v56 = vld [vmem:[#allocation11 + $0x48] sm:$0xf]  ;;  %v14205_v31 = vpop.f32.mrf.mxu0 }
 0x458   :  { %7912 = vmatpush.bf16.msrb.mxu0 %v11711_v17  ;;  %7938 = vmatpush.bf16.msrb.mxu2 %v12215_v61  ;;  %v13254_v17 = vld [vmem:[#allocation11 + $0x70c] sm:$0xf]  ;;  %v11795_v61 = vor.u32 %v13310_v48, %v11792_v4  ;;  %v11323_v42 = vor.u32 %v13195_v57, %v11322_v27  ;;  %v13188_v4 = vld [vmem:[#allocation11 + $0x4f8] sm:$0xf0]  ;;  %v13219_v40 = vld [vmem:[#allocation11 + $0x5f4] sm:$0xf] }
 0x459   :  { %v11571_v19 = vor.u32 %v13254_v17, %v11568_v21  ;;  %v11512_v17 = vld [vmem:[#allocation11 + $0x6b4] sm:$0xf0]  ;;  %v11294_v21 = vld [vmem:[#allocation11 + $0x4e0] sm:$0xf]  ;;  %v10902_v27 = vld [vmem:[#allocation11 + $0x1d0] sm:$0xf] }
 0x45a   :  { %7926 = vmatpush.bf16.msrb.mxu1 %v11935_v7  ;;  %v10874_v7 = vld [vmem:[#allocation11 + $0x198] sm:$0xf] }
 0x45b   :  { %7843 = vmatpush.bf16.msrb.mxu3 %v12351_v30  ;;  %v11770_v57 = vld [vmem:[#allocation11 + $0x898] sm:$0xf] }
 0x45c   :  { %7913 = vmatpush.bf16.msrb.mxu0 %v11683_v16  ;;  %7939 = vmatpush.bf16.msrb.mxu2 %v12187_v47  ;;  %v10875_v16 = vor.u32 %v13083_v12, %v10874_v7  ;;  %v13432_v47 = vld [vmem:[#allocation11 + $0xc98] sm:$0xf0]  ;;  %v10762_v7 = vld [vmem:[#allocation11 + $0xb8] sm:$0xf]  ;;  %v13055_v12 = vld [vmem:[#allocation11 + $0xd0] sm:$0xf0] }
 0x45d   :  { %v12267_v6 = vor.u32 %v13432_v47, %v12266_v28  ;;  %v11456_v28 = vld [vmem:[#allocation11 + $0x644] sm:$0xf0]  ;;  %v11238_v47 = vld [vmem:[#allocation11 + $0x470] sm:$0xf] }
 0x45e   :  { %7927 = vmatpush.bf16.msrb.mxu1 %v11907_v10  ;;  %v10846_v10 = vld [vmem:[#allocation11 + $0x160] sm:$0xf] }
 0x45f   :  { %7844 = vmatpush.bf16.msrb.mxu3 %v12323_v46  ;;  %v10986_v46 = vld [vmem:[#allocation11 + $0x278] sm:$0xf] }
 0x460   :  { %7914 = vmatpush.bf16.msrb.mxu0 %v11655_v23  ;;  %7940 = vmatpush.bf16.msrb.mxu2 %v12159_v53  ;;  %v10847_v23 = vor.u32 %v13076_v44, %v10846_v10  ;;  %v13425_v53 = vld [vmem:[#allocation11 + $0xc60] sm:$0xf0]  ;;  %v10958_v10 = vld [vmem:[#allocation11 + $0x240] sm:$0xf]  ;;  %v13104_v44 = vld [vmem:[#allocation11 + $0x258] sm:$0xf0] }
 0x461   :  { %v12239_v30 = vor.u32 %v13425_v53, %v12238_v32  ;;  %v11239_v32 = vor.u32 %v13174_v20, %v11238_v47  ;;  %v11428_v53 = vld [vmem:[#allocation11 + $0x60c] sm:$0xf0]  ;;  %v13198_v47 = vld [vmem:[#allocation11 + $0x54c] sm:$0xf]  ;;  %v11344_v20 = vld [vmem:[#allocation11 + $0x564] sm:$0xf0] }
 0x462   :  { %7928 = vmatpush.bf16.msrb.mxu1 %v11879_v63  ;;  %v10818_v63 = vld [vmem:[#allocation11 + $0x128] sm:$0xf]  ;;  %v11431_v52 = vor.u32 %v13219_v40, %v11428_v53  ;;  %v12218_v40 = vld [vmem:[#allocation11 + $0xc18] sm:$0xf] }
 0x463   :  { %7845 = vmatpush.bf16.msrb.mxu3 %v12295_v29  ;;  %v10819_v2 = vor.u32 %v13069_v62, %v10818_v63  ;;  %v11487_v29 = vor.u32 %v13233_v49, %v11484_v60  ;;  %v10930_v63 = vld [vmem:[#allocation11 + $0x208] sm:$0xf]  ;;  %v13097_v62 = vld [vmem:[#allocation11 + $0x220] sm:$0xf0] }
 0x464   :  { %7915 = vmatpush.bf16.msrb.mxu0 %v11627_v15  ;;  %7941 = vmatpush.bf16.msrb.mxu2 %v12131_v8  ;;  %v13366_v15 = vld [vmem:[#allocation11 + $0xa8c] sm:$0xf]  ;;  %v13205_v60 = vld [vmem:[#allocation11 + $0x584] sm:$0xf] }
 0x465   :  { %v13118_v8 = vld [vmem:[#allocation11 + $0x2c8] sm:$0xf0] }
 0x466   :  { %7929 = vmatpush.bf16.msrb.mxu1 %v11851_v3  ;;  %v11540_v3 = vld [vmem:[#allocation11 + $0x6ec] sm:$0xf0]  ;;  %v11015_v48 = vor.u32 %v13118_v8, %v11014_v24  ;;  %v13363_v24 = vld [vmem:[#allocation11 + $0xa70] sm:$0xf0]  ;;  %v14207_v8 = vpop.f32.mrf.mxu1 }
 0x467   :  { %7846 = vmatpush.bf16.msrb.mxu3 %v12267_v6  ;;  %v11543_v18 = vor.u32 %v13247_v51, %v11540_v3  ;;  %v10678_v51 = vld [vmem:[#allocation11 + $0x10] sm:$0xf]  ;;  %v13034_v3 = vld [vmem:[#allocation11 + $0x28] sm:$0xf0] }
 0x468   :  { %7916 = vmatpush.bf16.msrb.mxu0 %v11599_v55  ;;  %7942 = vmatpush.bf16.msrb.mxu2 %v12103_v39  ;;  %v12019_v55 = vor.u32 %v13366_v15, %v12016_v35  ;;  %v11295_v39 = vor.u32 %v13188_v4, %v11294_v21  ;;  %v11210_v15 = vld [vmem:[#allocation11 + $0x438] sm:$0xf]  ;;  %v13167_v35 = vld [vmem:[#allocation11 + $0x450] sm:$0xf0]  ;;  %v11771_v21 = vor.u32 %v13307_v36, %v11770_v57  ;;  %v13160_v4 = vld [vmem:[#allocation11 + $0x418] sm:$0xf0]  ;;  %v7569_v57 = vpop.f32.mrf.mxu3 }
 0x46a   :  { %7930 = vmatpush.bf16.msrb.mxu1 %v11823_v41  ;;  %v13240_v41 = vld [vmem:[#allocation11 + $0x69c] sm:$0xf] }
 0x46b   :  { %7847 = vmatpush.bf16.msrb.mxu3 %v12239_v30  ;;  %v11515_v11 = vor.u32 %v13240_v41, %v11512_v17  ;;  %v11994_v30 = vld [vmem:[#allocation11 + $0xa58] sm:$0xf] }
 0x46c   :  { %7917 = vmatpush.bf16.msrb.mxu0 %v11571_v19  ;;  %7943 = vmatpush.bf16.msrb.mxu2 %v12075_v58  ;;  %v10763_v19 = vor.u32 %v13055_v12, %v10762_v7  ;;  %v13226_v58 = vld [vmem:[#allocation11 + $0x62c] sm:$0xf]  ;;  %v11400_v41 = vld [vmem:[#allocation11 + $0x5d4] sm:$0xf0]  ;;  %v11995_v7 = vor.u32 %v13363_v24, %v11994_v30  ;;  %v11742_v12 = vld [vmem:[#allocation11 + $0x860] sm:$0xf] }
 0x46d   :  { %v11459_v6 = vor.u32 %v13226_v58, %v11456_v28  ;;  %v11938_v58 = vld [vmem:[#allocation11 + $0x9e8] sm:$0xf]  ;;  %v13349_v28 = vld [vmem:[#allocation11 + $0xa00] sm:$0xf0] }
 0x46e   :  { %7931 = vmatpush.bf16.msrb.mxu1 %v11795_v61  ;;  %v11266_v61 = vld [vmem:[#allocation11 + $0x4a8] sm:$0xf]  ;;  %7848 = vmatmul.bf16.vlgmr.msrb.gmra.mxu3 %v14188_v59  ;;  %v11939_v53 = vor.u32 %v13349_v28, %v11938_v58 }
 0x46f   :  { %7918 = vmatmul.bf16.vlgmr.msrb.gmra.mxu0 %v14160_v5  ;;  %7896 = vmatpush.bf16.msra.mxu3 %v11543_v18  ;;  %v11267_v45 = vor.u32 %v13181_v9, %v11266_v61  ;;  %v11211_v18 = vor.u32 %v13167_v35, %v11210_v15  ;;  %v11372_v61 = vld [vmem:[#allocation11 + $0x59c] sm:$0xf0]  ;;  %v11154_v9 = vld [vmem:[#allocation11 + $0x3c8] sm:$0xf]  ;;  %v13419_v15 = vld [vmem:[#allocation11 + $0xc30] sm:$0xf0] }
 0x470   :  { %7966 = vmatpush.bf16.msra.mxu0 %v10875_v16  ;;  %7944 = vmatpush.bf16.msrb.mxu2 %v12047_v13  ;;  %v10987_v16 = vor.u32 %v13111_v26, %v10986_v46  ;;  %v13300_v46 = vld [vmem:[#allocation11 + $0x878] sm:$0xf0]  ;;  %v14211_v26 = vld [vmem:[#allocation13] sm:$0xff]  ;;  %v11686_v35 = vld [vmem:[#allocation11 + $0x7f0] sm:$0xf]  ;;  %v12219_v30 = vor.u32 %v13419_v15, %v12218_v40 }
 0x471   :  { %7932 = vmatmul.bf16.vlgmr.msrb.gmra.mxu1 %v14162_v25  ;;  %v13265_v40 = vld [vmem:[#allocation11 + $0x760] sm:$0xf0]  ;;  %v11826_v15 = vld [vmem:[#allocation11 + $0x908] sm:$0xf] }
 0x472   :  { %7980 = vmatpush.bf16.msra.mxu1 %v11099_v37  ;;  %v13048_v37 = vld [vmem:[#allocation11 + $0x98] sm:$0xf0] }
 0x473   :  { %7897 = vmatpush.bf16.msra.mxu3 %v11515_v11  ;;  %v10735_v14 = vor.u32 %v13048_v37, %v10734_v0  ;;  %v13153_v0 = vld [vmem:[#allocation11 + $0x3e0] sm:$0xf0]  ;;  %v5200_v37 = vperm.slane %v14211_v26, 0 }
 0x474   :  { %7967 = vmatpush.bf16.msra.mxu0 %v10847_v23  ;;  %7945 = vmatpush.bf16.msrb.mxu2 %v12019_v55  ;;  %v10959_v23 = vor.u32 %v13104_v44, %v10958_v10  ;;  %v14209_v55 = vpop.f32.mrf.mxu2  ;;  %v14214_v10 = vpop.f32.mrf.mxu0 }
 0x476   :  { %7981 = vmatpush.bf16.msra.mxu1 %v11071_v1  ;;  %v13041_v1 = vld [vmem:[#allocation11 + $0x60] sm:$0xf0] }
 0x477   :  { %7946 = vmatmul.bf16.vlgmr.msrb.gmra.mxu2 %v14173_v38  ;;  %7898 = vmatpush.bf16.msra.mxu3 %v11487_v29  ;;  %v10707_v13 = vor.u32 %v13041_v1, %v10706_v56  ;;  %v11714_v29 = vld [vmem:[#allocation11 + $0x828] sm:$0xf]  ;;  %v11126_v56 = vld [vmem:[#allocation11 + $0x390] sm:$0xf]  ;;  %v13146_v1 = vld [vmem:[#allocation11 + $0x3a8] sm:$0xf0] }
 0x478   :  { %7968 = vmatpush.bf16.msra.mxu0 %v10819_v2  ;;  %7994 = vmatpush.bf16.msra.mxu2 %v11323_v42  ;;  %v10931_v2 = vor.u32 %v13097_v62, %v10930_v63  ;;  %v10679_v42 = vor.u32 %v13034_v3, %v10678_v51  ;;  %v13471_v62 = vld [vmem:[#allocation11 + $0xdd4] sm:$0xf]  ;;  %v7528_v51 = vadd.f32 %v14205_v31, %v5200_v37 }
 0x479   :  { %v11347_v3 = vor.u32 %v13198_v47, %v11344_v20  ;;  %v11127_v36 = vor.u32 %v13146_v1, %v11126_v56  ;;  %v13279_v31 = vld [vmem:[#allocation11 + $0x7d0] sm:$0xf0]  ;;  %v12134_v20 = vld [vmem:[#allocation11 + $0xb70] sm:$0xf]  ;;  %v7571_v1 = vpop.f32.mrf.mxu3 }
 0x47a   :  { %7982 = vmatpush.bf16.msra.mxu1 %v11043_v50  ;;  %v13090_v50 = vld [vmem:[#allocation11 + $0x1e8] sm:$0xf0] }
 0x47b   :  { %7899 = vmatpush.bf16.msra.mxu3 %v11459_v6  ;;  %v10903_v17 = vor.u32 %v13090_v50, %v10902_v27  ;;  %v12436_v6 = vld [vmem:[#allocation11 + $0xdec] sm:$0xf0]  ;;  %v13342_v50 = vld [vmem:[#allocation11 + $0x9c8] sm:$0xf0] }
 0x47c   :  { %7969 = vmatpush.bf16.msra.mxu0 %v10791_v43  ;;  %7995 = vmatpush.bf16.msra.mxu2 %v11295_v39  ;;  %v13212_v43 = vld [vmem:[#allocation11 + $0x5bc] sm:$0xf]  ;;  %v11966_v39 = vld [vmem:[#allocation11 + $0xa20] sm:$0xf]  ;;  %v11910_v27 = vld [vmem:[#allocation11 + $0x9b0] sm:$0xf] }
 0x47d   :  { %v11403_v11 = vor.u32 %v13212_v43, %v11400_v41  ;;  %v12190_v43 = vld [vmem:[#allocation11 + $0xbe0] sm:$0xf]  ;;  %v7583_v41 = vpop.f32.mrf.mxu0 }
 0x47e   :  { %7983 = vmatpush.bf16.msra.mxu1 %v11015_v48  ;;  %v11182_v48 = vld [vmem:[#allocation11 + $0x400] sm:$0xf] }
 0x47f   :  { %7900 = vmatpush.bf16.msra.mxu3 %v11431_v52  ;;  %v11183_v49 = vor.u32 %v13160_v4, %v11182_v48  ;;  %v12439_v52 = vor.u32 %v13471_v62, %v12436_v6  ;;  %v11658_v48 = vld [vmem:[#allocation11 + $0x7b8] sm:$0xf]  ;;  %v7542_v4 = vadd.f32 %v14207_v8, %v7528_v51  ;;  %v13398_v62 = vld [vmem:[#allocation11 + $0xb88] sm:$0xf0]  ;;  %v11602_v6 = vld [vmem:[#allocation11 + $0x748] sm:$0xf] }
 0x480   :  { %7970 = vmatpush.bf16.msra.mxu0 %v10763_v19  ;;  %7996 = vmatpush.bf16.msra.mxu2 %v11267_v45  ;;  %v13356_v19 = vld [vmem:[#allocation11 + $0xa38] sm:$0xf0]  ;;  %v13293_v45 = vld [vmem:[#allocation11 + $0x840] sm:$0xf0] }
 0x481   :  { %v11967_v44 = vor.u32 %v13356_v19, %v11966_v39  ;;  %v11715_v63 = vor.u32 %v13293_v45, %v11714_v29  ;;  %v11659_v19 = vor.u32 %v13279_v31, %v11658_v48  ;;  %v11630_v29 = vld [vmem:[#allocation11 + $0x780] sm:$0xf] }
 0x482   :  { %7984 = vmatpush.bf16.msra.mxu1 %v10987_v16  ;;  %v11743_v16 = vor.u32 %v13300_v46, %v11742_v12  ;;  %v13335_v12 = vld [vmem:[#allocation11 + $0x990] sm:$0xf0]  ;;  %v11854_v45 = vld [vmem:[#allocation11 + $0x940] sm:$0xf] }
 0x483   :  { %7901 = vmatpush.bf16.msra.mxu3 %v11403_v11  ;;  %v7556_v11 = vadd.f32 %v14209_v55, %v7542_v4  ;;  %v13272_v55 = vld [vmem:[#allocation11 + $0x798] sm:$0xf0] }
 0x484   :  { %7971 = vmatpush.bf16.msra.mxu0 %v10735_v14  ;;  %7997 = vmatpush.bf16.msra.mxu2 %v11239_v32  ;;  %v11375_v14 = vor.u32 %v13205_v60, %v11372_v61  ;;  %v14218_v32 = vpop.f32.mrf.mxu1  ;;  %v12380_v60 = vld [vmem:[#allocation11 + $0xd7c] sm:$0xf0]  ;;  %v12162_v61 = vld [vmem:[#allocation11 + $0xba8] sm:$0xf] }
 0x485   :  { %v7570_v28 = vadd.f32 %v7569_v57, %v7556_v11  ;;  %v7585_v51 = vpop.f32.mrf.mxu0  ;;  %v11603_v57 = vor.u32 %v13265_v40, %v11602_v6  ;;  %v13066_v40 = vld [vmem:[#allocation11 + $0x12c] sm:$0xf] }
 0x486   :  { %7985 = vmatpush.bf16.msra.mxu1 %v10959_v23  ;;  %v11155_v23 = vor.u32 %v13153_v0, %v11154_v9 }
 0x487   :  { %7902 = vmatpush.bf16.msra.mxu3 %v11375_v14  ;;  %v13328_v14 = vld [vmem:[#allocation11 + $0x958] sm:$0xf0] }
 0x488   :  { %7972 = vmatpush.bf16.msra.mxu0 %v10707_v13  ;;  %7998 = vmatpush.bf16.msra.mxu2 %v11211_v18  ;;  %v14220_v13 = vpop.f32.mrf.mxu2  ;;  %v13464_v18 = vld [vmem:[#allocation11 + $0xd9c] sm:$0xf] }
 0x48a   :  { %7986 = vmatpush.bf16.msra.mxu1 %v10931_v2  ;;  %v13286_v2 = vld [vmem:[#allocation11 + $0x808] sm:$0xf0] }
 0x48b   :  { %v11687_v24 = vor.u32 %v13286_v2, %v11686_v35  ;;  %7903 = vmatpush.bf16.msra.mxu3 %v11347_v3  ;;  %v13321_v35 = vld [vmem:[#allocation11 + $0x920] sm:$0xf0] }
 0x48c   :  { %7973 = vmatpush.bf16.msra.mxu0 %v10679_v42  ;;  %7999 = vmatpush.bf16.msra.mxu2 %v11183_v49  ;;  %v12408_v42 = vld [vmem:[#allocation11 + $0xdb4] sm:$0xf0]  ;;  %v13457_v49 = vld [vmem:[#allocation11 + $0xd64] sm:$0xf]  ;;  %v7597_v8 = vpop.f32.mrf.mxu1 }
 0x48d   :  { %v12411_v46 = vor.u32 %v13464_v18, %v12408_v42  ;;  %v12383_v58 = vor.u32 %v13457_v49, %v12380_v60  ;;  %v13258_v18 = vld [vmem:[#allocation11 + $0x728] sm:$0xf0]  ;;  %v11798_v42 = vld [vmem:[#allocation11 + $0x8d0] sm:$0xf]  ;;  %v12296_v49 = vld [vmem:[#allocation11 + $0xcd4] sm:$0xf0] }
 0x48e   :  { %7987 = vmatpush.bf16.msra.mxu1 %v10903_v17  ;;  %v11911_v17 = vor.u32 %v13342_v50, %v11910_v27  ;;  %7904 = vmatmul.bf16.vlgmr.msra.gmra.mxu3 %v14139_v33  ;;  %v13443_v27 = vld [vmem:[#allocation11 + $0xcf4] sm:$0xf]  ;;  %v12135_v50 = vor.u32 %v13398_v62, %v12134_v20  ;;  %v5201_v62 = vperm.slane %v14211_v26, 1 }
 0x48f   :  { %7974 = vmatmul.bf16.vlgmr.msra.gmra.mxu0 %v14109_v54  ;;  %7952 = vmatpush.bf16.msrb.mxu3 %v12439_v52  ;;  %v13391_v52 = vld [vmem:[#allocation11 + $0xb50] sm:$0xf0] }
 0x490   :  { %8022 = vmatpush.bf16.msrb.mxu0 %v11771_v21  ;;  %8000 = vmatpush.bf16.msra.mxu2 %v11155_v23  ;;  %v13412_v21 = vld [vmem:[#allocation11 + $0xbf8] sm:$0xf0]  ;;  %v7611_v9 = vpop.f32.mrf.mxu2  ;;  %v12352_v23 = vld [vmem:[#allocation11 + $0xd44] sm:$0xf0] }
 0x491   :  { %7988 = vmatmul.bf16.vlgmr.msra.gmra.mxu1 %v14120_v34  ;;  %v12191_v39 = vor.u32 %v13412_v21, %v12190_v43  ;;  %v7625_v60 = vpop.f32.mrf.mxu3 }
 0x492   :  { %8036 = vmatpush.bf16.msrb.mxu1 %v11995_v7  ;;  %v11882_v7 = vld [vmem:[#allocation11 + $0x978] sm:$0xf] }
 0x493   :  { %v11883_v0 = vor.u32 %v13335_v12, %v11882_v7  ;;  %7953 = vmatpush.bf16.msrb.mxu3 %v12411_v46  ;;  %v13136_v7 = vld [vmem:[#allocation11 + $0x35c] sm:$0xf]  ;;  %v11100_v12 = vld [vmem:[#allocation11 + $0x374] sm:$0xf0] }
 0x494   :  { %8023 = vmatpush.bf16.msrb.mxu0 %v11743_v16  ;;  %8001 = vmatpush.bf16.msra.mxu2 %v11127_v36  ;;  %v7530_v16 = vadd.f32 %v14214_v10, %v5200_v37  ;;  %v11631_v37 = vor.u32 %v13272_v55, %v11630_v29  ;;  %v13450_v10 = vld [vmem:[#allocation11 + $0xd2c] sm:$0xf]  ;;  %v12106_v36 = vld [vmem:[#allocation11 + $0xb38] sm:$0xf]  ;;  %v7599_v48 = vpop.f32.mrf.mxu1  ;;  %v11103_v55 = vor.u32 %v13136_v7, %v11100_v12  ;;  %v13115_v7 = vld [vmem:[#allocation11 + $0x2b4] sm:$0xf] }
 0x495   :  { %v12355_v3 = vor.u32 %v13450_v10, %v12352_v23  ;;  %v12107_v11 = vor.u32 %v13391_v52, %v12106_v36  ;;  %v13429_v10 = vld [vmem:[#allocation11 + $0xc84] sm:$0xf]  ;;  %v12268_v23 = vld [vmem:[#allocation11 + $0xc9c] sm:$0xf0]  ;;  %v13370_v36 = vld [vmem:[#allocation11 + $0xaa8] sm:$0xf0] }
 0x496   :  { %8037 = vmatpush.bf16.msrb.mxu1 %v11967_v44  ;;  %v13405_v44 = vld [vmem:[#allocation11 + $0xbc0] sm:$0xf0]  ;;  %v7544_v56 = vadd.f32 %v14218_v32, %v7530_v16  ;;  %v12324_v32 = vld [vmem:[#allocation11 + $0xd0c] sm:$0xf0] }
 0x497   :  { %8002 = vmatmul.bf16.vlgmr.msra.gmra.mxu2 %v14129_v22  ;;  %v12163_v47 = vor.u32 %v13405_v44, %v12162_v61  ;;  %7954 = vmatpush.bf16.msrb.mxu3 %v12383_v58  ;;  %v12327_v4 = vor.u32 %v13443_v27, %v12324_v32  ;;  %v7639_v58 = vpop.f32.mrf.mxu0  ;;  %v12022_v32 = vld [vmem:[#allocation11 + $0xa90] sm:$0xf] }
 0x498   :  { %8024 = vmatpush.bf16.msrb.mxu0 %v11715_v63  ;;  %8050 = vmatpush.bf16.msrb.mxu2 %v12219_v30  ;;  %v11855_v63 = vor.u32 %v13328_v14, %v11854_v45  ;;  %v7558_v2 = vadd.f32 %v14220_v13, %v7544_v56  ;;  %v11827_v30 = vor.u32 %v13321_v35, %v11826_v15  ;;  %v10876_v13 = vld [vmem:[#allocation11 + $0x1b4] sm:$0xf0]  ;;  %v7613_v31 = vpop.f32.mrf.mxu2  ;;  %v13073_v45 = vld [vmem:[#allocation11 + $0x164] sm:$0xf]  ;;  %v10848_v14 = vld [vmem:[#allocation11 + $0x17c] sm:$0xf0] }
 0x499   :  { %v10851_v20 = vor.u32 %v13073_v45, %v10848_v14  ;;  %v12050_v56 = vld [vmem:[#allocation11 + $0xac8] sm:$0xf]  ;;  %v12271_v35 = vor.u32 %v13429_v10, %v12268_v23  ;;  %v11016_v12 = vld [vmem:[#allocation11 + $0x2cc] sm:$0xf0]  ;;  %v13108_v45 = vld [vmem:[#allocation11 + $0x27c] sm:$0xf] }
 0x49a   :  { %8038 = vmatpush.bf16.msrb.mxu1 %v11939_v53  ;;  %v7584_v53 = vadd.f32 %v7583_v41, %v7570_v28  ;;  %v13314_v41 = vld [vmem:[#allocation11 + $0x8e8] sm:$0xf0]  ;;  %v7572_v21 = vadd.f32 %v7571_v1, %v7558_v2  ;;  %v13129_v28 = vld [vmem:[#allocation11 + $0x324] sm:$0xf]  ;;  %v10988_v14 = vld [vmem:[#allocation11 + $0x294] sm:$0xf0] }
 0x49b   :  { %7955 = vmatpush.bf16.msrb.mxu3 %v12355_v3  ;;  %v11799_v61 = vor.u32 %v13314_v41, %v11798_v42  ;;  %v13377_v1 = vld [vmem:[#allocation11 + $0xae0] sm:$0xf0]  ;;  %v13122_v2 = vld [vmem:[#allocation11 + $0x2ec] sm:$0xf]  ;;  %v13251_v42 = vld [vmem:[#allocation11 + $0x6f0] sm:$0xf0] }
 0x49c   :  { %8025 = vmatpush.bf16.msrb.mxu0 %v11687_v24  ;;  %8051 = vmatpush.bf16.msrb.mxu2 %v12191_v39  ;;  %v11574_v24 = vld [vmem:[#allocation11 + $0x710] sm:$0xf]  ;;  %v7598_v43 = vadd.f32 %v7597_v8, %v7584_v53  ;;  %v12078_v8 = vld [vmem:[#allocation11 + $0xb00] sm:$0xf]  ;;  %v7586_v44 = vadd.f32 %v7585_v51, %v7572_v21  ;;  %v10820_v53 = vld [vmem:[#allocation11 + $0x144] sm:$0xf0]  ;;  %v7653_v15 = vpop.f32.mrf.mxu1 }
 0x49d   :  { %v11575_v39 = vor.u32 %v13258_v18, %v11574_v24  ;;  %v11044_v51 = vld [vmem:[#allocation11 + $0x304] sm:$0xf0]  ;;  %v13422_v3 = vld [vmem:[#allocation11 + $0xc4c] sm:$0xf]  ;;  %v10823_v24 = vor.u32 %v13066_v40, %v10820_v53  ;;  %v11546_v18 = vld [vmem:[#allocation11 + $0x6d8] sm:$0xf] }
 0x49e   :  { %8039 = vmatpush.bf16.msrb.mxu1 %v11911_v17  ;;  %v13080_v17 = vld [vmem:[#allocation11 + $0x19c] sm:$0xf]  ;;  %v7612_v46 = vadd.f32 %v7611_v9, %v7598_v43  ;;  %v11324_v21 = vld [vmem:[#allocation11 + $0x534] sm:$0xf0]  ;;  %v11490_v23 = vld [vmem:[#allocation11 + $0x668] sm:$0xf] }
 0x49f   :  { %v10879_v16 = vor.u32 %v13080_v17, %v10876_v13  ;;  %7956 = vmatpush.bf16.msrb.mxu3 %v12327_v4  ;;  %v13192_v43 = vld [vmem:[#allocation11 + $0x51c] sm:$0xf]  ;;  %v11047_v13 = vor.u32 %v13122_v2, %v11044_v51  ;;  %v11268_v40 = vld [vmem:[#allocation11 + $0x4c4] sm:$0xf0]  ;;  %v13045_v53 = vld [vmem:[#allocation11 + $0x84] sm:$0xf] }
 0x4a0   :  { %8026 = vmatpush.bf16.msrb.mxu0 %v11659_v19  ;;  %8052 = vmatpush.bf16.msrb.mxu2 %v12163_v47  ;;  %v13436_v19 = vld [vmem:[#allocation11 + $0xcbc] sm:$0xf]  ;;  %v7626_v29 = vadd.f32 %v7625_v60, %v7612_v46  ;;  %v11072_v47 = vld [vmem:[#allocation11 + $0x33c] sm:$0xf0]  ;;  %v7667_v52 = vpop.f32.mrf.mxu2  ;;  %v7640_v46 = vadd.f32 %v7639_v58, %v5201_v62  ;;  %v13101_v2 = vld [vmem:[#allocation11 + $0x244] sm:$0xf] }
 0x4a1   :  { %v12299_v9 = vor.u32 %v13436_v19, %v12296_v49  ;;  %v11075_v6 = vor.u32 %v13129_v28, %v11072_v47  ;;  %v7641_v19 = vpop.f32.mrf.mxu0  ;;  %v11327_v49 = vor.u32 %v13192_v43, %v11324_v21  ;;  %v10960_v51 = vld [vmem:[#allocation11 + $0x25c] sm:$0xf0]  ;;  %v13038_v43 = vld [vmem:[#allocation11 + $0x4c] sm:$0xf] }
 0x4a2   :  { %8040 = vmatpush.bf16.msrb.mxu1 %v11883_v0  ;;  %v13384_v0 = vld [vmem:[#allocation11 + $0xb18] sm:$0xf0]  ;;  %13493 = vtanh.f32 %v7626_v29  ;;  %v7654_v58 = vadd.f32 %v7653_v15, %v7640_v46  ;;  %v10736_v15 = vld [vmem:[#allocation11 + $0x9c] sm:$0xf0] }
 0x4a3   :  { %7957 = vmatpush.bf16.msrb.mxu3 %v12299_v9  ;;  %v13052_v29 = vld [vmem:[#allocation11 + $0xbc] sm:$0xf] }
 0x4a4   :  { %8027 = vmatpush.bf16.msrb.mxu0 %v11631_v37  ;;  %8053 = vmatpush.bf16.msrb.mxu2 %v12135_v50  ;;  %v12079_v37 = vor.u32 %v13384_v0, %v12078_v8  ;;  %v12051_v50 = vor.u32 %v13377_v1, %v12050_v56  ;;  %v13185_v8 = vld [vmem:[#allocation11 + $0x4e4] sm:$0xf]  ;;  %v11019_v0 = vor.u32 %v13115_v7, %v11016_v12  ;;  %v7655_v28 = vpop.f32.mrf.mxu1  ;;  %v13178_v56 = vld [vmem:[#allocation11 + $0x4ac] sm:$0xf] }
 0x4a6   :  { %8041 = vmatpush.bf16.msrb.mxu1 %v11855_v63  ;;  %v7600_v63 = vadd.f32 %v7599_v48, %v7586_v44  ;;  %v13059_v48 = vld [vmem:[#allocation11 + $0xf4] sm:$0xf]  ;;  %v11296_v44 = vld [vmem:[#allocation11 + $0x4fc] sm:$0xf0] }
 0x4a7   :  { %7958 = vmatpush.bf16.msrb.mxu3 %v12271_v35 }
 0x4a8   :  { %8028 = vmatpush.bf16.msrb.mxu0 %v11603_v57  ;;  %8054 = vmatpush.bf16.msrb.mxu2 %v12107_v11  ;;  %v7614_v27 = vadd.f32 %v7613_v31, %v7600_v63  ;;  %v12240_v57 = vld [vmem:[#allocation11 + $0xc64] sm:$0xf0]  ;;  %v13494_v41 = vpop.eup %13493  ;;  %v10792_v31 = vld [vmem:[#allocation11 + $0x10c] sm:$0xf0]  ;;  %v12023_v11 = vor.u32 %v13370_v36, %v12022_v32  ;;  %v7668_v63 = vadd.f32 %v7667_v52, %v7654_v58  ;;  %v7669_v35 = vpop.f32.mrf.mxu2  ;;  %v13360_v58 = vld [vmem:[#allocation11 + $0xa5c] sm:$0xf] }
 0x4a9   :  { %8316 = vst [vmem:[#allocation14] sm:$0xff] %v13494_v41  ;;  %v12243_v4 = vor.u32 %v13422_v3, %v12240_v57  ;;  %v10795_v60 = vor.u32 %v13059_v48, %v10792_v31  ;;  %v7642_v3 = vadd.f32 %v7641_v19, %v5201_v62  ;;  %v7695_v57 = vpop.f32.mrf.mxu0  ;;  %v11271_v32 = vor.u32 %v13178_v56, %v11268_v40  ;;  %v11462_v52 = vld [vmem:[#allocation11 + $0x630] sm:$0xf]  ;;  %v10708_v41 = vld [vmem:[#allocation11 + $0x64] sm:$0xf0] }
 0x4aa   :  { %8042 = vmatpush.bf16.msrb.mxu1 %v11827_v30  ;;  %v7627_v30 = vpop.f32.mrf.mxu3  ;;  %v10739_v36 = vor.u32 %v13045_v53, %v10736_v15  ;;  %v11434_v31 = vld [vmem:[#allocation11 + $0x5f8] sm:$0xf]  ;;  %v10711_v46 = vor.u32 %v13038_v43, %v10708_v41  ;;  %v13297_v53 = vld [vmem:[#allocation11 + $0x864] sm:$0xf]  ;;  %v11744_v15 = vld [vmem:[#allocation11 + $0x87c] sm:$0xf0] }
 0x4ab   :  { %v7628_v17 = vadd.f32 %v7627_v30, %v7614_v27  ;;  %7959 = vmatpush.bf16.msrb.mxu3 %v12243_v4  ;;  %v13230_v30 = vld [vmem:[#allocation11 + $0x648] sm:$0xf0]  ;;  %v7656_v21 = vadd.f32 %v7655_v28, %v7642_v3  ;;  %v11212_v19 = vld [vmem:[#allocation11 + $0x454] sm:$0xf0]  ;;  %v13353_v3 = vld [vmem:[#allocation11 + $0xa24] sm:$0xf] }
 0x4ac   :  { %8029 = vmatpush.bf16.msrb.mxu0 %v11575_v39  ;;  %8055 = vmatpush.bf16.msrb.mxu2 %v12079_v37  ;;  %v11547_v39 = vor.u32 %v13251_v42, %v11546_v18  ;;  %v11299_v37 = vor.u32 %v13185_v8, %v11296_v44  ;;  %v10963_v18 = vor.u32 %v13101_v2, %v10960_v51  ;;  %v11240_v42 = vld [vmem:[#allocation11 + $0x48c] sm:$0xf0]  ;;  %v7709_v4 = vpop.f32.mrf.mxu1  ;;  %v13087_v8 = vld [vmem:[#allocation11 + $0x1d4] sm:$0xf]  ;;  %v13304_v44 = vld [vmem:[#allocation11 + $0x89c] sm:$0xf] }
 0x4ad   :  { %13495 = vtanh.f32 %v7628_v17  ;;  %v13094_v17 = vld [vmem:[#allocation11 + $0x20c] sm:$0xf]  ;;  %v11463_v48 = vor.u32 %v13230_v30, %v11462_v52  ;;  %v11747_v30 = vor.u32 %v13297_v53, %v11744_v15  ;;  %v13332_v53 = vld [vmem:[#allocation11 + $0x97c] sm:$0xf]  ;;  %v11884_v15 = vld [vmem:[#allocation11 + $0x994] sm:$0xf0] }
 0x4ae   :  { %8043 = vmatpush.bf16.msrb.mxu1 %v11799_v61  ;;  %v11518_v61 = vld [vmem:[#allocation11 + $0x6a0] sm:$0xf]  ;;  %7960 = vmatmul.bf16.vlgmr.msrb.gmra.mxu3 %v14188_v59  ;;  %v13290_v41 = vld [vmem:[#allocation11 + $0x82c] sm:$0xf] }
 0x4af   :  { %8030 = vmatmul.bf16.vlgmr.msrb.gmra.mxu0 %v14160_v5  ;;  %8008 = vmatpush.bf16.msra.mxu3 %v11547_v39  ;;  %v13164_v39 = vld [vmem:[#allocation11 + $0x43c] sm:$0xf] }
 0x4b0   :  { %8078 = vmatpush.bf16.msra.mxu0 %v10879_v16  ;;  %8056 = vmatpush.bf16.msrb.mxu2 %v12051_v50  ;;  %v13244_v16 = vld [vmem:[#allocation11 + $0x6b8] sm:$0xf0]  ;;  %v7723_v28 = vpop.f32.mrf.mxu2 }
 0x4b1   :  { %8044 = vmatmul.bf16.vlgmr.msrb.gmra.mxu1 %v14162_v25  ;;  %v11519_v9 = vor.u32 %v13244_v16, %v11518_v61  ;;  %v13031_v61 = vld [vmem:[#allocation11 + $0x14] sm:$0xf]  ;;  %v10680_v16 = vld [vmem:[#allocation11 + $0x2c] sm:$0xf0] }
 0x4b2   :  { %8092 = vmatpush.bf16.msra.mxu1 %v11103_v55  ;;  %v10764_v55 = vld [vmem:[#allocation11 + $0xd4] sm:$0xf0]  ;;  %v7681_v47 = vpop.f32.mrf.mxu3 }
 0x4b3   :  { %v10767_v10 = vor.u32 %v13052_v29, %v10764_v55  ;;  %v13496_v1 = vpop.eup %13495  ;;  %v7682_v27 = vadd.f32 %v7681_v47, %v7668_v63  ;;  %8009 = vmatpush.bf16.msra.mxu3 %v11519_v9  ;;  %v11772_v29 = vld [vmem:[#allocation11 + $0x8b4] sm:$0xf0]  ;;  %v11215_v47 = vor.u32 %v13164_v39, %v11212_v19  ;;  %v11184_v63 = vld [vmem:[#allocation11 + $0x41c] sm:$0xf0]  ;;  %v13475_v19 = vld [vmem:[#allocation11 + $0xdf0] sm:$0xf0] }
 0x4b4   :  { %8079 = vmatpush.bf16.msra.mxu0 %v10851_v20  ;;  %8057 = vmatpush.bf16.msrb.mxu2 %v12023_v11  ;;  %v13237_v20 = vld [vmem:[#allocation11 + $0x680] sm:$0xf0]  ;;  %8323 = vst [vmem:[#allocation14 + $0x38] sm:$0xff] %v13496_v1  ;;  %v13223_v11 = vld [vmem:[#allocation11 + $0x610] sm:$0xf0]  ;;  %v11775_v56 = vor.u32 %v13304_v44, %v11772_v29 }
 0x4b5   :  { %v11491_v50 = vor.u32 %v13237_v20, %v11490_v23  ;;  %v7696_v62 = vadd.f32 %v7695_v57, %v7682_v27  ;;  %v11996_v9 = vld [vmem:[#allocation11 + $0xa74] sm:$0xf0]  ;;  %v13216_v23 = vld [vmem:[#allocation11 + $0x5d8] sm:$0xf0]  ;;  %v13157_v1 = vld [vmem:[#allocation11 + $0x404] sm:$0xf] }
 0x4b6   :  { %8093 = vmatpush.bf16.msra.mxu1 %v11075_v6  ;;  %v10991_v6 = vor.u32 %v13108_v45, %v10988_v14  ;;  %v11435_v45 = vor.u32 %v13223_v11, %v11434_v31  ;;  %v11999_v40 = vor.u32 %v13360_v58, %v11996_v9  ;;  %v11968_v27 = vld [vmem:[#allocation11 + $0xa3c] sm:$0xf0]  ;;  %v11187_v57 = vor.u32 %v13157_v1, %v11184_v63  ;;  %v11350_v31 = vld [vmem:[#allocation11 + $0x550] sm:$0xf]  ;;  %v12442_v39 = vld [vmem:[#allocation11 + $0xdd8] sm:$0xf] }
 0x4b7   :  { %8058 = vmatmul.bf16.vlgmr.msrb.gmra.mxu2 %v14173_v38  ;;  %8010 = vmatpush.bf16.msra.mxu3 %v11491_v50  ;;  %v7710_v14 = vadd.f32 %v7709_v4, %v7696_v62  ;;  %v11971_v43 = vor.u32 %v13353_v3, %v11968_v27  ;;  %v13346_v62 = vld [vmem:[#allocation11 + $0x9ec] sm:$0xf]  ;;  %v12443_v9 = vor.u32 %v13475_v19, %v12442_v39  ;;  %v12192_v1 = vld [vmem:[#allocation11 + $0xbfc] sm:$0xf0]  ;;  %v12386_v3 = vld [vmem:[#allocation11 + $0xd68] sm:$0xf] }
 0x4b8   :  { %8080 = vmatpush.bf16.msra.mxu0 %v10823_v24  ;;  %8106 = vmatpush.bf16.msra.mxu2 %v11327_v49  ;;  %v13171_v24 = vld [vmem:[#allocation11 + $0x474] sm:$0xf]  ;;  %v7670_v49 = vadd.f32 %v7669_v35, %v7656_v21  ;;  %v13461_v27 = vld [vmem:[#allocation11 + $0xd80] sm:$0xf0] }
 0x4b9   :  { %v11243_v12 = vor.u32 %v13171_v24, %v11240_v42  ;;  %v7724_v2 = vadd.f32 %v7723_v28, %v7710_v14  ;;  %v13150_v24 = vld [vmem:[#allocation11 + $0x3cc] sm:$0xf]  ;;  %v7711_v42 = vpop.f32.mrf.mxu1  ;;  %v12414_v28 = vld [vmem:[#allocation11 + $0xda0] sm:$0xf] }
 0x4ba   :  { %8094 = vmatpush.bf16.msra.mxu1 %v11047_v13  ;;  %v10932_v13 = vld [vmem:[#allocation11 + $0x224] sm:$0xf0]  ;;  %v7683_v7 = vpop.f32.mrf.mxu3 }
 0x4bb   :  { %v7684_v55 = vadd.f32 %v7683_v7, %v7670_v49  ;;  %8011 = vmatpush.bf16.msra.mxu3 %v11463_v48  ;;  %v11940_v48 = vld [vmem:[#allocation11 + $0xa04] sm:$0xf0]  ;;  %v13202_v7 = vld [vmem:[#allocation11 + $0x568] sm:$0xf0]  ;;  %v13416_v49 = vld [vmem:[#allocation11 + $0xc1c] sm:$0xf] }
 0x4bc   :  { %8081 = vmatpush.bf16.msra.mxu0 %v10795_v60  ;;  %8107 = vmatpush.bf16.msra.mxu2 %v11299_v37  ;;  %v10935_v60 = vor.u32 %v13094_v17, %v10932_v13  ;;  %v10683_v37 = vor.u32 %v13031_v61, %v10680_v16  ;;  %v11716_v17 = vld [vmem:[#allocation11 + $0x844] sm:$0xf0]  ;;  %v11943_v61 = vor.u32 %v13346_v62, %v11940_v48  ;;  %v12220_v16 = vld [vmem:[#allocation11 + $0xc34] sm:$0xf0]  ;;  %v12136_v62 = vld [vmem:[#allocation11 + $0xb8c] sm:$0xf0] }
 0x4bd   :  { %v11719_v11 = vor.u32 %v13290_v41, %v11716_v17  ;;  %v11351_v29 = vor.u32 %v13202_v7, %v11350_v31  ;;  %v13262_v31 = vld [vmem:[#allocation11 + $0x74c] sm:$0xf] }
 0x4be   :  { %8095 = vmatpush.bf16.msra.mxu1 %v11019_v0  ;;  %v10904_v0 = vld [vmem:[#allocation11 + $0x1ec] sm:$0xf0]  ;;  %v13318_v7 = vld [vmem:[#allocation11 + $0x90c] sm:$0xf] }
 0x4bf   :  { %v10907_v20 = vor.u32 %v13087_v8, %v10904_v0  ;;  %8012 = vmatpush.bf16.msra.mxu3 %v11435_v45  ;;  %v13283_v8 = vld [vmem:[#allocation11 + $0x7f4] sm:$0xf]  ;;  %v11688_v0 = vld [vmem:[#allocation11 + $0x80c] sm:$0xf0] }
 0x4c0   :  { %8082 = vmatpush.bf16.msra.mxu0 %v10767_v10  ;;  %8108 = vmatpush.bf16.msra.mxu2 %v11271_v32  ;;  %v11406_v10 = vld [vmem:[#allocation11 + $0x5c0] sm:$0xf]  ;;  %v11378_v32 = vld [vmem:[#allocation11 + $0x588] sm:$0xf]  ;;  %v11912_v45 = vld [vmem:[#allocation11 + $0x9cc] sm:$0xf0] }
 0x4c1   :  { %v11407_v51 = vor.u32 %v13216_v23, %v11406_v10  ;;  %v12223_v10 = vor.u32 %v13416_v49, %v12220_v16  ;;  %v11691_v23 = vor.u32 %v13283_v8, %v11688_v0  ;;  %v13447_v49 = vld [vmem:[#allocation11 + $0xd10] sm:$0xf0]  ;;  %v11576_v0 = vld [vmem:[#allocation11 + $0x72c] sm:$0xf0] }
 0x4c2   :  { %8096 = vmatpush.bf16.msra.mxu1 %v10991_v6  ;;  %v7697_v6 = vpop.f32.mrf.mxu0  ;;  %v7737_v50 = vpop.f32.mrf.mxu3  ;;  %v13255_v8 = vld [vmem:[#allocation11 + $0x714] sm:$0xf] }
 0x4c3   :  { %v7698_v35 = vadd.f32 %v7697_v6, %v7684_v55  ;;  %v7738_v52 = vadd.f32 %v7737_v50, %v7724_v2  ;;  %8013 = vmatpush.bf16.msra.mxu3 %v11407_v51  ;;  %v13339_v55 = vld [vmem:[#allocation11 + $0x9b4] sm:$0xf]  ;;  %v13276_v6 = vld [vmem:[#allocation11 + $0x7bc] sm:$0xf]  ;;  %v13402_v50 = vld [vmem:[#allocation11 + $0xbac] sm:$0xf] }
 0x4c4   :  { %8083 = vmatpush.bf16.msra.mxu0 %v10739_v36  ;;  %8109 = vmatpush.bf16.msra.mxu2 %v11243_v12  ;;  %v13209_v36 = vld [vmem:[#allocation11 + $0x5a0] sm:$0xf0]  ;;  %v13143_v12 = vld [vmem:[#allocation11 + $0x394] sm:$0xf]  ;;  %v11915_v63 = vor.u32 %v13339_v55, %v11912_v45  ;;  %v10882_v55 = vld [vmem:[#allocation11 + $0x1a0] sm:$0xf] }
 0x4c5   :  { %13497 = vtanh.f32 %v7738_v52  ;;  %v11379_v13 = vor.u32 %v13209_v36, %v11378_v32  ;;  %v7712_v21 = vadd.f32 %v7711_v42, %v7698_v35  ;;  %v12164_v32 = vld [vmem:[#allocation11 + $0xbc4] sm:$0xf0]  ;;  %v13269_v36 = vld [vmem:[#allocation11 + $0x784] sm:$0xf]  ;;  %v11632_v52 = vld [vmem:[#allocation11 + $0x79c] sm:$0xf0] }
 0x4c6   :  { %8097 = vmatpush.bf16.msra.mxu1 %v10963_v18  ;;  %v11156_v18 = vld [vmem:[#allocation11 + $0x3e4] sm:$0xf0]  ;;  %v12358_v42 = vld [vmem:[#allocation11 + $0xd30] sm:$0xf]  ;;  %v12167_v41 = vor.u32 %v13402_v50, %v12164_v32  ;;  %v11635_v17 = vor.u32 %v13269_v36, %v11632_v52  ;;  %v13084_v45 = vld [vmem:[#allocation11 + $0x1b8] sm:$0xf0] }
 0x4c7   :  { %v11159_v4 = vor.u32 %v13150_v24, %v11156_v18  ;;  %8014 = vmatpush.bf16.msra.mxu3 %v11379_v13  ;;  %v11856_v24 = vld [vmem:[#allocation11 + $0x95c] sm:$0xf0]  ;;  %v12387_v18 = vor.u32 %v13461_v27, %v12386_v3  ;;  %v13454_v13 = vld [vmem:[#allocation11 + $0xd48] sm:$0xf0]  ;;  %v12274_v3 = vld [vmem:[#allocation11 + $0xc88] sm:$0xf] }
 0x4c8   :  { %8084 = vmatpush.bf16.msra.mxu0 %v10711_v46  ;;  %8110 = vmatpush.bf16.msra.mxu2 %v11215_v47  ;;  %v11128_v46 = vld [vmem:[#allocation11 + $0x3ac] sm:$0xf0]  ;;  %v13433_v27 = vld [vmem:[#allocation11 + $0xca0] sm:$0xf0]  ;;  %v12052_v32 = vld [vmem:[#allocation11 + $0xae4] sm:$0xf0] }
 0x4c9   :  { %v11131_v58 = vor.u32 %v13143_v12, %v11128_v46  ;;  %v11828_v12 = vld [vmem:[#allocation11 + $0x924] sm:$0xf0]  ;;  %v12359_v46 = vor.u32 %v13454_v13, %v12358_v42  ;;  %v5202_v36 = vperm.slane %v14211_v26, 2  ;;  %v12275_v42 = vor.u32 %v13433_v27, %v12274_v3  ;;  %v13182_v27 = vld [vmem:[#allocation11 + $0x4c8] sm:$0xf0] }
 0x4ca   :  { %8098 = vmatpush.bf16.msra.mxu1 %v10935_v60  ;;  %v7725_v60 = vpop.f32.mrf.mxu2  ;;  %v7739_v14 = vpop.f32.mrf.mxu3  ;;  %v11831_v16 = vor.u32 %v13318_v7, %v11828_v12  ;;  %v11548_v7 = vld [vmem:[#allocation11 + $0x6f4] sm:$0xf0]  ;;  %v11330_v12 = vld [vmem:[#allocation11 + $0x520] sm:$0xf]  ;;  %v13098_v26 = vld [vmem:[#allocation11 + $0x228] sm:$0xf0] }
 0x4cb   :  { %v7726_v44 = vadd.f32 %v7725_v60, %v7712_v21  ;;  %v13498_v47 = vpop.eup %13497  ;;  %8015 = vmatpush.bf16.msra.mxu3 %v11351_v29  ;;  %v13395_v21 = vld [vmem:[#allocation11 + $0xb74] sm:$0xf]  ;;  %v13388_v60 = vld [vmem:[#allocation11 + $0xb3c] sm:$0xf]  ;;  %v11800_v29 = vld [vmem:[#allocation11 + $0x8ec] sm:$0xf0] }
 0x4cc   :  { %8085 = vmatpush.bf16.msra.mxu0 %v10683_v37  ;;  %8111 = vmatpush.bf16.msra.mxu2 %v11187_v57  ;;  %8317 = vst [vmem:[#allocation14 + $0x8] sm:$0xff] %v13498_v47  ;;  %v11887_v57 = vor.u32 %v13332_v53, %v11884_v15  ;;  %v12139_v39 = vor.u32 %v13395_v21, %v12136_v62  ;;  %v7751_v53 = vpop.f32.mrf.mxu0  ;;  %v13426_v21 = vld [vmem:[#allocation11 + $0xc68] sm:$0xf0]  ;;  %v13367_v62 = vld [vmem:[#allocation11 + $0xa94] sm:$0xf] }
 0x4cd   :  { %v7740_v37 = vadd.f32 %v7739_v14, %v7726_v44  ;;  %v13311_v44 = vld [vmem:[#allocation11 + $0x8d4] sm:$0xf]  ;;  %v11579_v47 = vor.u32 %v13255_v8, %v11576_v0  ;;  %v7752_v8 = vadd.f32 %v7751_v53, %v5202_v36 }
 0x4ce   :  { %8099 = vmatpush.bf16.msra.mxu1 %v10907_v20  ;;  %v13468_v20 = vld [vmem:[#allocation11 + $0xdb8] sm:$0xf0]  ;;  %8016 = vmatmul.bf16.vlgmr.msra.gmra.mxu3 %v14139_v33 }
 0x4cf   :  { %8086 = vmatmul.bf16.vlgmr.msra.gmra.mxu0 %v14109_v54  ;;  %13499 = vtanh.f32 %v7740_v37  ;;  %8064 = vmatpush.bf16.msrb.mxu3 %v12443_v9  ;;  %v12415_v35 = vor.u32 %v13468_v20, %v12414_v28  ;;  %v13140_v9 = vld [vmem:[#allocation11 + $0x378] sm:$0xf0]  ;;  %v12302_v37 = vld [vmem:[#allocation11 + $0xcc0] sm:$0xf]  ;;  %v10883_v20 = vor.u32 %v13084_v45, %v10882_v55 }
 0x4d0   :  { %8134 = vmatpush.bf16.msrb.mxu0 %v11775_v56  ;;  %8112 = vmatpush.bf16.msra.mxu2 %v11159_v4  ;;  %v13409_v56 = vld [vmem:[#allocation11 + $0xbe4] sm:$0xf]  ;;  %v11604_v4 = vld [vmem:[#allocation11 + $0x764] sm:$0xf0] }
 0x4d1   :  { %8100 = vmatmul.bf16.vlgmr.msra.gmra.mxu1 %v14120_v34  ;;  %v12195_v2 = vor.u32 %v13409_v56, %v12192_v1  ;;  %v11607_v19 = vor.u32 %v13262_v31, %v11604_v4  ;;  %v13381_v56 = vld [vmem:[#allocation11 + $0xb04] sm:$0xf]  ;;  %v12080_v1 = vld [vmem:[#allocation11 + $0xb1c] sm:$0xf0]  ;;  %v13248_v4 = vld [vmem:[#allocation11 + $0x6dc] sm:$0xf] }
 0x4d2   :  { %8148 = vmatpush.bf16.msrb.mxu1 %v11999_v40  ;;  %v11660_v40 = vld [vmem:[#allocation11 + $0x7d4] sm:$0xf0] }
 0x4d3   :  { %v11663_v51 = vor.u32 %v13276_v6, %v11660_v40  ;;  %8065 = vmatpush.bf16.msrb.mxu3 %v12415_v35  ;;  %v10854_v6 = vld [vmem:[#allocation11 + $0x168] sm:$0xf]  ;;  %v13077_v40 = vld [vmem:[#allocation11 + $0x180] sm:$0xf0] }
 0x4d4   :  { %8135 = vmatpush.bf16.msrb.mxu0 %v11747_v30  ;;  %8113 = vmatpush.bf16.msra.mxu2 %v11131_v58  ;;  %v13325_v30 = vld [vmem:[#allocation11 + $0x944] sm:$0xf]  ;;  %v11106_v58 = vld [vmem:[#allocation11 + $0x360] sm:$0xf]  ;;  %v11078_v35 = vld [vmem:[#allocation11 + $0x328] sm:$0xf]  ;;  %v10855_v50 = vor.u32 %v13077_v40, %v10854_v6 }
 0x4d5   :  { %v11859_v48 = vor.u32 %v13325_v30, %v11856_v24  ;;  %v10826_v30 = vld [vmem:[#allocation11 + $0x130] sm:$0xf]  ;;  %v13070_v24 = vld [vmem:[#allocation11 + $0x148] sm:$0xf0] }
 0x4d6   :  { %8149 = vmatpush.bf16.msrb.mxu1 %v11971_v43  ;;  %v13500_v43 = vpop.eup %13499  ;;  %v10827_v31 = vor.u32 %v13070_v24, %v10826_v30 }
 0x4d7   :  { %8114 = vmatmul.bf16.vlgmr.msra.gmra.mxu2 %v14129_v22  ;;  %8324 = vst [vmem:[#allocation14 + $0x40] sm:$0xff] %v13500_v43  ;;  %8066 = vmatpush.bf16.msrb.mxu3 %v12387_v18  ;;  %v7765_v18 = vpop.f32.mrf.mxu1  ;;  %v11050_v43 = vld [vmem:[#allocation11 + $0x2f0] sm:$0xf] }
 0x4d8   :  { %8136 = vmatpush.bf16.msrb.mxu0 %v11719_v11  ;;  %8162 = vmatpush.bf16.msrb.mxu2 %v12223_v10  ;;  %v12330_v11 = vld [vmem:[#allocation11 + $0xcf8] sm:$0xf]  ;;  %v13440_v10 = vld [vmem:[#allocation11 + $0xcd8] sm:$0xf0] }
 0x4d9   :  { %v12331_v14 = vor.u32 %v13447_v49, %v12330_v11  ;;  %v12303_v15 = vor.u32 %v13440_v10, %v12302_v37  ;;  %v13196_v11 = vld [vmem:[#allocation11 + $0x538] sm:$0xf0]  ;;  %v7779_v49 = vpop.f32.mrf.mxu2  ;;  %v10770_v37 = vld [vmem:[#allocation11 + $0xc0] sm:$0xf] }
 0x4da   :  { %8150 = vmatpush.bf16.msrb.mxu1 %v11943_v61  ;;  %v12108_v61 = vld [vmem:[#allocation11 + $0xb54] sm:$0xf0]  ;;  %v11331_v55 = vor.u32 %v13196_v11, %v11330_v12  ;;  %v13056_v10 = vld [vmem:[#allocation11 + $0xd8] sm:$0xf0]  ;;  %v10938_v12 = vld [vmem:[#allocation11 + $0x210] sm:$0xf] }
 0x4db   :  { %8067 = vmatpush.bf16.msrb.mxu3 %v12359_v46  ;;  %v12111_v28 = vor.u32 %v13388_v60, %v12108_v61  ;;  %v11022_v61 = vld [vmem:[#allocation11 + $0x2b8] sm:$0xf]  ;;  %v10771_v53 = vor.u32 %v13056_v10, %v10770_v37 }
 0x4dc   :  { %8137 = vmatpush.bf16.msrb.mxu0 %v11691_v23  ;;  %8163 = vmatpush.bf16.msrb.mxu2 %v12195_v2  ;;  %v11803_v23 = vor.u32 %v13311_v44, %v11800_v29  ;;  %v13133_v2 = vld [vmem:[#allocation11 + $0x340] sm:$0xf0]  ;;  %v11551_v44 = vor.u32 %v13248_v4, %v11548_v7  ;;  %v7753_v29 = vpop.f32.mrf.mxu0  ;;  %v10714_v4 = vld [vmem:[#allocation11 + $0x50] sm:$0xf]  ;;  %v13042_v7 = vld [vmem:[#allocation11 + $0x68] sm:$0xf0] }
 0x4dd   :  { %v11079_v52 = vor.u32 %v13133_v2, %v11078_v35  ;;  %v11492_v35 = vld [vmem:[#allocation11 + $0x684] sm:$0xf0]  ;;  %v11274_v2 = vld [vmem:[#allocation11 + $0x4b0] sm:$0xf]  ;;  %v7754_v30 = vadd.f32 %v7753_v29, %v5202_v36  ;;  %v10939_v29 = vor.u32 %v13098_v26, %v10938_v12 }
 0x4de   :  { %8151 = vmatpush.bf16.msrb.mxu1 %v11915_v63  ;;  %v11107_v63 = vor.u32 %v13140_v9, %v11106_v58  ;;  %v11520_v58 = vld [vmem:[#allocation11 + $0x6bc] sm:$0xf0]  ;;  %v11302_v9 = vld [vmem:[#allocation11 + $0x4e8] sm:$0xf] }
 0x4df   :  { %8068 = vmatpush.bf16.msrb.mxu3 %v12331_v14  ;;  %v13241_v14 = vld [vmem:[#allocation11 + $0x6a4] sm:$0xf]  ;;  %v7767_v6 = vpop.f32.mrf.mxu1 }
 0x4e0   :  { %8138 = vmatpush.bf16.msrb.mxu0 %v11663_v51  ;;  %8164 = vmatpush.bf16.msrb.mxu2 %v12167_v41  ;;  %v12083_v51 = vor.u32 %v13381_v56, %v12080_v1  ;;  %v13126_v41 = vld [vmem:[#allocation11 + $0x308] sm:$0xf0]  ;;  %v13112_v56 = vld [vmem:[#allocation11 + $0x298] sm:$0xf0]  ;;  %v7766_v1 = vadd.f32 %v7765_v18, %v7752_v8  ;;  %v7768_v36 = vadd.f32 %v7767_v6, %v7754_v30  ;;  %v11218_v8 = vld [vmem:[#allocation11 + $0x440] sm:$0xf] }
 0x4e1   :  { %v11051_v46 = vor.u32 %v13126_v41, %v11050_v43  ;;  %v11275_v41 = vor.u32 %v13182_v27, %v11274_v2  ;;  %v13213_v6 = vld [vmem:[#allocation11 + $0x5c4] sm:$0xf]  ;;  %v11750_v27 = vld [vmem:[#allocation11 + $0x868] sm:$0xf] }
 0x4e2   :  { %8152 = vmatpush.bf16.msrb.mxu1 %v11887_v57  ;;  %v13374_v57 = vld [vmem:[#allocation11 + $0xacc] sm:$0xf]  ;;  %v13161_v2 = vld [vmem:[#allocation11 + $0x420] sm:$0xf0]  ;;  %v11974_v30 = vld [vmem:[#allocation11 + $0xa28] sm:$0xf] }
 0x4e3   :  { %8069 = vmatpush.bf16.msrb.mxu3 %v12303_v15  ;;  %v12055_v13 = vor.u32 %v13374_v57, %v12052_v32  ;;  %v13234_v15 = vld [vmem:[#allocation11 + $0x66c] sm:$0xf]  ;;  %v13049_v57 = vld [vmem:[#allocation11 + $0xa0] sm:$0xf0]  ;;  %v10966_v32 = vld [vmem:[#allocation11 + $0x248] sm:$0xf] }
 0x4e4   :  { %8139 = vmatpush.bf16.msrb.mxu0 %v11635_v17  ;;  %8165 = vmatpush.bf16.msrb.mxu2 %v12139_v39  ;;  %v12246_v17 = vld [vmem:[#allocation11 + $0xc50] sm:$0xf]  ;;  %v10798_v39 = vld [vmem:[#allocation11 + $0xf8] sm:$0xf]  ;;  %v11495_v18 = vor.u32 %v13234_v15, %v11492_v35  ;;  %v7807_v43 = vpop.f32.mrf.mxu0  ;;  %v11190_v35 = vld [vmem:[#allocation11 + $0x408] sm:$0xf] }
 0x4e5   :  { %v12247_v60 = vor.u32 %v13426_v21, %v12246_v17  ;;  %v11464_v21 = vld [vmem:[#allocation11 + $0x64c] sm:$0xf0] }
 0x4e6   :  { %8153 = vmatpush.bf16.msrb.mxu1 %v11859_v48  ;;  %v12024_v48 = vld [vmem:[#allocation11 + $0xaac] sm:$0xf0] }
 0x4e7   :  { %8070 = vmatpush.bf16.msrb.mxu3 %v12275_v42  ;;  %v12027_v0 = vor.u32 %v13367_v62, %v12024_v48  ;;  %v7781_v42 = vpop.f32.mrf.mxu2  ;;  %v11246_v62 = vld [vmem:[#allocation11 + $0x478] sm:$0xf] }
 0x4e8   :  { %8140 = vmatpush.bf16.msrb.mxu0 %v11607_v19  ;;  %8166 = vmatpush.bf16.msrb.mxu2 %v12111_v28  ;;  %v13063_v19 = vld [vmem:[#allocation11 + $0x110] sm:$0xf0] }
 0x4e9   :  { %v10799_v45 = vor.u32 %v13063_v19, %v10798_v39  ;;  %v13220_v39 = vld [vmem:[#allocation11 + $0x5fc] sm:$0xf]  ;;  %v7821_v19 = vpop.f32.mrf.mxu1 }
 0x4ea   :  { %8154 = vmatpush.bf16.msrb.mxu1 %v11831_v16  ;;  %v13119_v16 = vld [vmem:[#allocation11 + $0x2d0] sm:$0xf0] }
 0x4eb   :  { %v11023_v28 = vor.u32 %v13119_v16, %v11022_v61  ;;  %8071 = vmatpush.bf16.msrb.mxu3 %v12247_v60  ;;  %v10715_v61 = vor.u32 %v13042_v7, %v10714_v4  ;;  %v11436_v16 = vld [vmem:[#allocation11 + $0x614] sm:$0xf0]  ;;  %v11722_v4 = vld [vmem:[#allocation11 + $0x830] sm:$0xf]  ;;  %v13294_v7 = vld [vmem:[#allocation11 + $0x848] sm:$0xf0] }
 0x4ec   :  { %8141 = vmatpush.bf16.msrb.mxu0 %v11579_v47  ;;  %8167 = vmatpush.bf16.msrb.mxu2 %v12083_v51  ;;  %v13189_v47 = vld [vmem:[#allocation11 + $0x500] sm:$0xf0]  ;;  %v7780_v51 = vadd.f32 %v7779_v49, %v7766_v1  ;;  %v11439_v37 = vor.u32 %v13220_v39, %v11436_v16  ;;  %v13472_v16 = vld [vmem:[#allocation11 + $0xddc] sm:$0xf] }
 0x4ed   :  { %v11303_v40 = vor.u32 %v13189_v47, %v11302_v9  ;;  %v11778_v9 = vld [vmem:[#allocation11 + $0x8a0] sm:$0xf] }
 0x4ee   :  { %8155 = vmatpush.bf16.msrb.mxu1 %v11803_v23  ;;  %v7793_v23 = vpop.f32.mrf.mxu3  ;;  %8072 = vmatmul.bf16.vlgmr.msrb.gmra.mxu3 %v14188_v59 }
 0x4ef   :  { %8142 = vmatmul.bf16.vlgmr.msrb.gmra.mxu0 %v14160_v5  ;;  %8120 = vmatpush.bf16.msra.mxu3 %v11551_v44  ;;  %v7794_v24 = vadd.f32 %v7793_v23, %v7780_v51  ;;  %v7782_v44 = vadd.f32 %v7781_v42, %v7768_v36  ;;  %v12002_v23 = vld [vmem:[#allocation11 + $0xa60] sm:$0xf]  ;;  %v7809_v51 = vpop.f32.mrf.mxu0  ;;  %v11191_v42 = vor.u32 %v13161_v2, %v11190_v35  ;;  %v11946_v36 = vld [vmem:[#allocation11 + $0x9f0] sm:$0xf]  ;;  %v13280_v35 = vld [vmem:[#allocation11 + $0x7d8] sm:$0xf0] }
 0x4f0   :  { %8190 = vmatpush.bf16.msra.mxu0 %v10883_v20  ;;  %8168 = vmatpush.bf16.msrb.mxu2 %v12055_v13  ;;  %v10994_v20 = vld [vmem:[#allocation11 + $0x280] sm:$0xf]  ;;  %v13227_v13 = vld [vmem:[#allocation11 + $0x634] sm:$0xf] }
 0x4f1   :  { %8156 = vmatmul.bf16.vlgmr.msrb.gmra.mxu1 %v14162_v25  ;;  %v10995_v3 = vor.u32 %v13112_v56, %v10994_v20  ;;  %v11467_v11 = vor.u32 %v13227_v13, %v11464_v21  ;;  %v13364_v20 = vld [vmem:[#allocation11 + $0xa78] sm:$0xf0]  ;;  %v7835_v56 = vpop.f32.mrf.mxu2  ;;  %v11162_v21 = vld [vmem:[#allocation11 + $0x3d0] sm:$0xf]  ;;  %v11890_v2 = vld [vmem:[#allocation11 + $0x980] sm:$0xf] }
 0x4f2   :  { %8204 = vmatpush.bf16.msra.mxu1 %v11107_v63  ;;  %v11523_v63 = vor.u32 %v13241_v14, %v11520_v58  ;;  %v10910_v14 = vld [vmem:[#allocation11 + $0x1d8] sm:$0xf]  ;;  %v13091_v58 = vld [vmem:[#allocation11 + $0x1f0] sm:$0xf0] }
 0x4f4   :  { %8191 = vmatpush.bf16.msra.mxu0 %v10855_v50  ;;  %8169 = vmatpush.bf16.msrb.mxu2 %v12027_v0  ;;  %v10742_v50 = vld [vmem:[#allocation11 + $0x88] sm:$0xf]  ;;  %v13168_v0 = vld [vmem:[#allocation11 + $0x458] sm:$0xf0] }
 0x4f5   :  { %8121 = vmatpush.bf16.msra.mxu3 %v11523_v63  ;;  %v10743_v17 = vor.u32 %v13049_v57, %v10742_v50  ;;  %v11219_v1 = vor.u32 %v13168_v0, %v11218_v8  ;;  %v13301_v50 = vld [vmem:[#allocation11 + $0x880] sm:$0xf0]  ;;  %v12444_v8 = vld [vmem:[#allocation11 + $0xdf4] sm:$0xf0]  ;;  %v12226_v0 = vld [vmem:[#allocation11 + $0xc20] sm:$0xf] }
 0x4f6   :  { %8205 = vmatpush.bf16.msra.mxu1 %v11079_v52  ;;  %v13105_v52 = vld [vmem:[#allocation11 + $0x260] sm:$0xf0]  ;;  %v7795_v49 = vpop.f32.mrf.mxu3  ;;  %v11751_v13 = vor.u32 %v13301_v50, %v11750_v27 }
 0x4f7   :  { %8170 = vmatmul.bf16.vlgmr.msrb.gmra.mxu2 %v14173_v38  ;;  %v10967_v48 = vor.u32 %v13105_v52, %v10966_v32  ;;  %v7796_v47 = vadd.f32 %v7795_v49, %v7782_v44  ;;  %v11134_v49 = vld [vmem:[#allocation11 + $0x398] sm:$0xf] }
 0x4f8   :  { %8192 = vmatpush.bf16.msra.mxu0 %v10827_v31  ;;  %8218 = vmatpush.bf16.msra.mxu2 %v11331_v55  ;;  %v13175_v31 = vld [vmem:[#allocation11 + $0x490] sm:$0xf0]  ;;  %v10686_v55 = vld [vmem:[#allocation11 + $0x18] sm:$0xf] }
 0x4f9   :  { %8122 = vmatpush.bf16.msra.mxu3 %v11495_v18  ;;  %v11247_v60 = vor.u32 %v13175_v31, %v11246_v62  ;;  %v7810_v57 = vadd.f32 %v7809_v51, %v7796_v47  ;;  %v13154_v62 = vld [vmem:[#allocation11 + $0x3e8] sm:$0xf0]  ;;  %v7837_v44 = vpop.f32.mrf.mxu2  ;;  %v13336_v51 = vld [vmem:[#allocation11 + $0x998] sm:$0xf0] }
 0x4fa   :  { %8206 = vmatpush.bf16.msra.mxu1 %v11051_v46  ;;  %v7808_v46 = vadd.f32 %v7807_v43, %v7794_v24  ;;  %v13357_v24 = vld [vmem:[#allocation11 + $0xa40] sm:$0xf0]  ;;  %v13206_v43 = vld [vmem:[#allocation11 + $0x58c] sm:$0xf]  ;;  %v11163_v39 = vor.u32 %v13154_v62, %v11162_v21 }
 0x4fb   :  { %v11975_v31 = vor.u32 %v13357_v24, %v11974_v30  ;;  %v11891_v30 = vor.u32 %v13336_v51, %v11890_v2  ;;  %v13406_v24 = vld [vmem:[#allocation11 + $0xbc8] sm:$0xf0]  ;;  %v13423_v2 = vld [vmem:[#allocation11 + $0xc54] sm:$0xf]  ;;  %v12248_v51 = vld [vmem:[#allocation11 + $0xc6c] sm:$0xf0] }
 0x4fc   :  { %8193 = vmatpush.bf16.msra.mxu0 %v10799_v45  ;;  %8219 = vmatpush.bf16.msra.mxu2 %v11303_v40  ;;  %v13035_v45 = vld [vmem:[#allocation11 + $0x30] sm:$0xf0]  ;;  %v7822_v10 = vadd.f32 %v7821_v19, %v7808_v46  ;;  %v11408_v40 = vld [vmem:[#allocation11 + $0x5dc] sm:$0xf0]  ;;  %v13350_v46 = vld [vmem:[#allocation11 + $0xa08] sm:$0xf0] }
 0x4fd   :  { %8123 = vmatpush.bf16.msra.mxu3 %v11467_v11  ;;  %v10687_v63 = vor.u32 %v13035_v45, %v10686_v55  ;;  %v11411_v52 = vor.u32 %v13213_v6, %v11408_v40  ;;  %v13199_v11 = vld [vmem:[#allocation11 + $0x554] sm:$0xf]  ;;  %v11352_v19 = vld [vmem:[#allocation11 + $0x56c] sm:$0xf0]  ;;  %v11694_v55 = vld [vmem:[#allocation11 + $0x7f8] sm:$0xf] }
 0x4fe   :  { %8207 = vmatpush.bf16.msra.mxu1 %v11023_v28  ;;  %v13308_v28 = vld [vmem:[#allocation11 + $0x8b8] sm:$0xf0]  ;;  %v7836_v32 = vadd.f32 %v7835_v56, %v7822_v10  ;;  %v7849_v18 = vpop.f32.mrf.mxu3  ;;  %v13287_v45 = vld [vmem:[#allocation11 + $0x810] sm:$0xf0]  ;;  %v13465_v10 = vld [vmem:[#allocation11 + $0xda4] sm:$0xf] }
 0x4ff   :  { %v11779_v15 = vor.u32 %v13308_v28, %v11778_v9  ;;  %v13343_v9 = vld [vmem:[#allocation11 + $0x9d0] sm:$0xf0]  ;;  %v12198_v6 = vld [vmem:[#allocation11 + $0xbe8] sm:$0xf]  ;;  %v13413_v40 = vld [vmem:[#allocation11 + $0xc00] sm:$0xf0] }
 0x500   :  { %8194 = vmatpush.bf16.msra.mxu0 %v10771_v53  ;;  %8220 = vmatpush.bf16.msra.mxu2 %v11275_v41  ;;  %v10911_v53 = vor.u32 %v13091_v58, %v10910_v14  ;;  %v11380_v41 = vld [vmem:[#allocation11 + $0x5a4] sm:$0xf0]  ;;  %v11355_v58 = vor.u32 %v13199_v11, %v11352_v19  ;;  %v12199_v27 = vor.u32 %v13413_v40, %v12198_v6  ;;  %v14260_v6 = vld [vmem:[#allocation13] sm:$0xff] }
 0x501   :  { %8124 = vmatpush.bf16.msra.mxu3 %v11439_v37  ;;  %v11383_v12 = vor.u32 %v13206_v43, %v11380_v41  ;;  %v12447_v37 = vor.u32 %v13472_v16, %v12444_v8  ;;  %v11862_v43 = vld [vmem:[#allocation11 + $0x948] sm:$0xf]  ;;  %v13329_v41 = vld [vmem:[#allocation11 + $0x960] sm:$0xf0]  ;;  %v13392_v8 = vld [vmem:[#allocation11 + $0xb58] sm:$0xf0] }
 0x502   :  { %8208 = vmatpush.bf16.msra.mxu1 %v10995_v3  ;;  %v12003_v3 = vor.u32 %v13364_v20, %v12002_v23  ;;  %v5203_v40 = vperm.slane %v14260_v6, 3 }
 0x504   :  { %8195 = vmatpush.bf16.msra.mxu0 %v10743_v17  ;;  %8221 = vmatpush.bf16.msra.mxu2 %v11247_v60  ;;  %v7850_v17 = vadd.f32 %v7849_v18, %v7836_v32  ;;  %v13147_v60 = vld [vmem:[#allocation11 + $0x3b0] sm:$0xf0]  ;;  %v12388_v32 = vld [vmem:[#allocation11 + $0xd84] sm:$0xf0] }
 0x505   :  { %8125 = vmatpush.bf16.msra.mxu3 %v11411_v52  ;;  %v11135_v47 = vor.u32 %v13147_v60, %v11134_v49  ;;  %v12170_v52 = vld [vmem:[#allocation11 + $0xbb0] sm:$0xf]  ;;  %v11638_v18 = vld [vmem:[#allocation11 + $0x788] sm:$0xf]  ;;  %v13444_v49 = vld [vmem:[#allocation11 + $0xcfc] sm:$0xf] }
 0x506   :  { %8209 = vmatpush.bf16.msra.mxu1 %v10967_v48  ;;  %v7823_v48 = vpop.f32.mrf.mxu1  ;;  %13501 = vtanh.f32 %v7850_v17  ;;  %v7851_v28 = vpop.f32.mrf.mxu3  ;;  %v12171_v62 = vor.u32 %v13406_v24, %v12170_v52  ;;  %v12332_v60 = vld [vmem:[#allocation11 + $0xd14] sm:$0xf0]  ;;  %v12251_v52 = vor.u32 %v13423_v2, %v12248_v51 }
 0x507   :  { %v7824_v26 = vadd.f32 %v7823_v48, %v7810_v57  ;;  %v13458_v57 = vld [vmem:[#allocation11 + $0xd6c] sm:$0xf] }
 0x508   :  { %8196 = vmatpush.bf16.msra.mxu0 %v10715_v61  ;;  %8222 = vmatpush.bf16.msra.mxu2 %v11219_v1  ;;  %v11723_v61 = vor.u32 %v13294_v7, %v11722_v4  ;;  %v11695_v1 = vor.u32 %v13287_v45, %v11694_v55  ;;  %v12391_v17 = vor.u32 %v13458_v57, %v12388_v32  ;;  %v12142_v4 = vld [vmem:[#allocation11 + $0xb78] sm:$0xf]  ;;  %v13399_v7 = vld [vmem:[#allocation11 + $0xb90] sm:$0xf0]  ;;  %v13252_v57 = vld [vmem:[#allocation11 + $0x6f8] sm:$0xf0]  ;;  %v7891_v32 = vpop.f32.mrf.mxu2 }
 0x509   :  { %8126 = vmatpush.bf16.msra.mxu3 %v11383_v12  ;;  %v7838_v14 = vadd.f32 %v7837_v44, %v7824_v26  ;;  %v11863_v12 = vor.u32 %v13329_v41, %v11862_v43  ;;  %v11610_v26 = vld [vmem:[#allocation11 + $0x750] sm:$0xf]  ;;  %v13259_v44 = vld [vmem:[#allocation11 + $0x730] sm:$0xf0]  ;;  %v12335_v55 = vor.u32 %v13444_v49, %v12332_v60  ;;  %v13245_v43 = vld [vmem:[#allocation11 + $0x6c0] sm:$0xf0] }
 0x50a   :  { %8210 = vmatpush.bf16.msra.mxu1 %v10939_v29  ;;  %v13420_v29 = vld [vmem:[#allocation11 + $0xc38] sm:$0xf0]  ;;  %v11442_v60 = vld [vmem:[#allocation11 + $0x600] sm:$0xf] }
 0x50b   :  { %v7852_v20 = vadd.f32 %v7851_v28, %v7838_v14  ;;  %v12227_v56 = vor.u32 %v13420_v29, %v12226_v0  ;;  %v11582_v0 = vld [vmem:[#allocation11 + $0x718] sm:$0xf]  ;;  %v13315_v29 = vld [vmem:[#allocation11 + $0x8f0] sm:$0xf0]  ;;  %v12086_v28 = vld [vmem:[#allocation11 + $0xb08] sm:$0xf] }
 0x50c   :  { %8197 = vmatpush.bf16.msra.mxu0 %v10687_v63  ;;  %8223 = vmatpush.bf16.msra.mxu2 %v11191_v42  ;;  %v13502_v23 = vpop.eup %13501  ;;  %v12416_v63 = vld [vmem:[#allocation11 + $0xdbc] sm:$0xf0]  ;;  %v13273_v42 = vld [vmem:[#allocation11 + $0x7a0] sm:$0xf0]  ;;  %v11583_v14 = vor.u32 %v13259_v44, %v11582_v0 }
 0x50d   :  { %8318 = vst [vmem:[#allocation14 + $0x10] sm:$0xff] %v13502_v23  ;;  %13503 = vtanh.f32 %v7852_v20  ;;  %8127 = vmatpush.bf16.msra.mxu3 %v11355_v58  ;;  %v11639_v48 = vor.u32 %v13273_v42, %v11638_v18  ;;  %v13437_v58 = vld [vmem:[#allocation11 + $0xcc4] sm:$0xf]  ;;  %v13430_v20 = vld [vmem:[#allocation11 + $0xc8c] sm:$0xf] }
 0x50e   :  { %8211 = vmatpush.bf16.msra.mxu1 %v10911_v53 }
 0x50f   :  { %8198 = vmatmul.bf16.vlgmr.msra.gmra.mxu0 %v14109_v54  ;;  %v11947_v54 = vor.u32 %v13350_v46, %v11946_v36  ;;  %v13266_v36 = vld [vmem:[#allocation11 + $0x768] sm:$0xf0]  ;;  %v11834_v46 = vld [vmem:[#allocation11 + $0x910] sm:$0xf] }
 0x510   :  { %8246 = vmatpush.bf16.msrb.mxu0 %v11779_v15  ;;  %8224 = vmatpush.bf16.msra.mxu2 %v11163_v39  ;;  %v11666_v15 = vld [vmem:[#allocation11 + $0x7c0] sm:$0xf]  ;;  %v12143_v39 = vor.u32 %v13399_v7, %v12142_v4  ;;  %v11611_v19 = vor.u32 %v13266_v36, %v11610_v26  ;;  %v11470_v36 = vld [vmem:[#allocation11 + $0x638] sm:$0xf] }
 0x511   :  { %8212 = vmatmul.bf16.vlgmr.msra.gmra.mxu1 %v14120_v34  ;;  %v11918_v34 = vld [vmem:[#allocation11 + $0x9b8] sm:$0xf]  ;;  %8176 = vmatpush.bf16.msrb.mxu3 %v12447_v37  ;;  %v11667_v50 = vor.u32 %v13280_v35, %v11666_v15  ;;  %v7863_v37 = vpop.f32.mrf.mxu0  ;;  %v7905_v41 = vpop.f32.mrf.mxu3 }
 0x512   :  { %8260 = vmatpush.bf16.msrb.mxu1 %v12003_v3  ;;  %v11919_v53 = vor.u32 %v13343_v9, %v11918_v34  ;;  %v12419_v3 = vor.u32 %v13465_v10, %v12416_v63  ;;  %8128 = vmatmul.bf16.vlgmr.msra.gmra.mxu3 %v14139_v33  ;;  %v12304_v34 = vld [vmem:[#allocation11 + $0xcdc] sm:$0xf0]  ;;  %v13378_v63 = vld [vmem:[#allocation11 + $0xae8] sm:$0xf0] }
 0x513   :  { %v13504_v21 = vpop.eup %13503  ;;  %v12307_v10 = vor.u32 %v13437_v58, %v12304_v34 }
 0x514   :  { %8247 = vmatpush.bf16.msrb.mxu0 %v11751_v13  ;;  %8225 = vmatpush.bf16.msra.mxu2 %v11135_v47  ;;  %v13451_v13 = vld [vmem:[#allocation11 + $0xd34] sm:$0xf]  ;;  %8325 = vst [vmem:[#allocation14 + $0x48] sm:$0xff] %v13504_v21  ;;  %v13385_v47 = vld [vmem:[#allocation11 + $0xb20] sm:$0xf0] }
 0x515   :  { %8177 = vmatpush.bf16.msrb.mxu3 %v12419_v3  ;;  %v12087_v23 = vor.u32 %v13385_v47, %v12086_v28  ;;  %v12030_v3 = vld [vmem:[#allocation11 + $0xa98] sm:$0xf]  ;;  %v11498_v21 = vld [vmem:[#allocation11 + $0x670] sm:$0xf]  ;;  %v13210_v28 = vld [vmem:[#allocation11 + $0x5a8] sm:$0xf0] }
 0x516   :  { %8261 = vmatpush.bf16.msrb.mxu1 %v11975_v31  ;;  %v12360_v31 = vld [vmem:[#allocation11 + $0xd4c] sm:$0xf0] }
 0x517   :  { %8226 = vmatmul.bf16.vlgmr.msra.gmra.mxu2 %v14129_v22  ;;  %v13322_v22 = vld [vmem:[#allocation11 + $0x928] sm:$0xf0]  ;;  %v12363_v11 = vor.u32 %v13451_v13, %v12360_v31 }
 0x518   :  { %8248 = vmatpush.bf16.msrb.mxu0 %v11723_v61  ;;  %8274 = vmatpush.bf16.msrb.mxu2 %v12227_v56  ;;  %v12114_v61 = vld [vmem:[#allocation11 + $0xb40] sm:$0xf]  ;;  %v11835_v16 = vor.u32 %v13322_v22, %v11834_v46  ;;  %v12276_v56 = vld [vmem:[#allocation11 + $0xca4] sm:$0xf0]  ;;  %v13231_v46 = vld [vmem:[#allocation11 + $0x650] sm:$0xf0] }
 0x519   :  { %8178 = vmatpush.bf16.msrb.mxu3 %v12391_v17  ;;  %v12115_v45 = vor.u32 %v13392_v8, %v12114_v61  ;;  %v12279_v15 = vor.u32 %v13430_v20, %v12276_v56  ;;  %v7865_v42 = vpop.f32.mrf.mxu0  ;;  %v7907_v49 = vpop.f32.mrf.mxu3  ;;  %v13224_v61 = vld [vmem:[#allocation11 + $0x618] sm:$0xf0]  ;;  %v11358_v20 = vld [vmem:[#allocation11 + $0x558] sm:$0xf]  ;;  %v13203_v56 = vld [vmem:[#allocation11 + $0x570] sm:$0xf0] }
 0x51a   :  { %8262 = vmatpush.bf16.msrb.mxu1 %v11947_v54  ;;  %v11806_v54 = vld [vmem:[#allocation11 + $0x8d8] sm:$0xf]  ;;  %v7866_v31 = vadd.f32 %v7865_v42, %v5203_v40  ;;  %v13455_v42 = vld [vmem:[#allocation11 + $0xd50] sm:$0xf0] }
 0x51b   :  { %v11807_v9 = vor.u32 %v13315_v29, %v11806_v54  ;;  %v11414_v54 = vld [vmem:[#allocation11 + $0x5c8] sm:$0xf]  ;;  %v13217_v29 = vld [vmem:[#allocation11 + $0x5e0] sm:$0xf0] }
 0x51c   :  { %8249 = vmatpush.bf16.msrb.mxu0 %v11695_v1  ;;  %8275 = vmatpush.bf16.msrb.mxu2 %v12199_v27  ;;  %v12058_v1 = vld [vmem:[#allocation11 + $0xad0] sm:$0xf]  ;;  %v13371_v27 = vld [vmem:[#allocation11 + $0xab0] sm:$0xf0]  ;;  %v11415_v58 = vor.u32 %v13217_v29, %v11414_v54 }
 0x51d   :  { %8179 = vmatpush.bf16.msrb.mxu3 %v12363_v11  ;;  %v12059_v35 = vor.u32 %v13378_v63, %v12058_v1  ;;  %v12031_v24 = vor.u32 %v13371_v27, %v12030_v3  ;;  %v12450_v1 = vld [vmem:[#allocation11 + $0xde0] sm:$0xf]  ;;  %v13476_v63 = vld [vmem:[#allocation11 + $0xdf8] sm:$0xf0]  ;;  %v12422_v27 = vld [vmem:[#allocation11 + $0xda8] sm:$0xf] }
 0x51e   :  { %8263 = vmatpush.bf16.msrb.mxu1 %v11919_v53  ;;  %v7877_v53 = vpop.f32.mrf.mxu1  ;;  %v12451_v2 = vor.u32 %v13476_v63, %v12450_v1 }
 0x520   :  { %8250 = vmatpush.bf16.msrb.mxu0 %v11667_v50  ;;  %8276 = vmatpush.bf16.msrb.mxu2 %v12171_v62  ;;  %v11554_v50 = vld [vmem:[#allocation11 + $0x6e0] sm:$0xf]  ;;  %v13238_v62 = vld [vmem:[#allocation11 + $0x688] sm:$0xf0] }
 0x521   :  { %8180 = vmatpush.bf16.msrb.mxu3 %v12335_v55  ;;  %v11555_v18 = vor.u32 %v13252_v57, %v11554_v50  ;;  %v11499_v7 = vor.u32 %v13238_v62, %v11498_v21  ;;  %v7919_v26 = vpop.f32.mrf.mxu0  ;;  %v13469_v50 = vld [vmem:[#allocation11 + $0xdc0] sm:$0xf0] }
 0x522   :  { %8264 = vmatpush.bf16.msrb.mxu1 %v11891_v30  ;;  %v7864_v30 = vadd.f32 %v7863_v37, %v5203_v40  ;;  %v12423_v57 = vor.u32 %v13469_v50, %v12422_v27 }
 0x524   :  { %8251 = vmatpush.bf16.msrb.mxu0 %v11639_v48  ;;  %8277 = vmatpush.bf16.msrb.mxu2 %v12143_v39  ;;  %v11471_v39 = vor.u32 %v13231_v46, %v11470_v36 }
 0x525   :  { %8181 = vmatpush.bf16.msrb.mxu3 %v12307_v10 }
 0x526   :  { %8265 = vmatpush.bf16.msrb.mxu1 %v11863_v12  ;;  %v7879_v13 = vpop.f32.mrf.mxu1  ;;  %v7893_v12 = vpop.f32.mrf.mxu2 }
 0x527   :  { %v7880_v22 = vadd.f32 %v7879_v13, %v7866_v31  ;;  %v13441_v13 = vld [vmem:[#allocation11 + $0xce0] sm:$0xf0]  ;;  %v13434_v31 = vld [vmem:[#allocation11 + $0xca8] sm:$0xf0] }
 0x528   :  { %8252 = vmatpush.bf16.msrb.mxu0 %v11611_v19  ;;  %8278 = vmatpush.bf16.msrb.mxu2 %v12115_v45 }
 0x529   :  { %8182 = vmatpush.bf16.msrb.mxu3 %v12279_v15  ;;  %v7921_v55 = vpop.f32.mrf.mxu0  ;;  %v11359_v15 = vor.u32 %v13203_v56, %v11358_v20 }
 0x52a   :  { %8266 = vmatpush.bf16.msrb.mxu1 %v11835_v16  ;;  %v7894_v16 = vadd.f32 %v7893_v12, %v7880_v22  ;;  %v12254_v12 = vld [vmem:[#allocation11 + $0xc58] sm:$0xf] }
 0x52c   :  { %8253 = vmatpush.bf16.msrb.mxu0 %v11583_v14  ;;  %8279 = vmatpush.bf16.msrb.mxu2 %v12087_v23  ;;  %v7908_v8 = vadd.f32 %v7907_v49, %v7894_v16 }
 0x52d   :  { %8183 = vmatpush.bf16.msrb.mxu3 %v12251_v52  ;;  %v13462_v52 = vld [vmem:[#allocation11 + $0xd88] sm:$0xf0] }
 0x52e   :  { %8267 = vmatpush.bf16.msrb.mxu1 %v11807_v9  ;;  %v7933_v19 = vpop.f32.mrf.mxu1  ;;  %v7947_v44 = vpop.f32.mrf.mxu2  ;;  %v7922_v45 = vadd.f32 %v7921_v55, %v7908_v8  ;;  %v11386_v9 = vld [vmem:[#allocation11 + $0x590] sm:$0xf] }
 0x52f   :  { %8254 = vmatmul.bf16.vlgmr.msrb.gmra.mxu0 %v14160_v5  ;;  %v11526_v5 = vld [vmem:[#allocation11 + $0x6a8] sm:$0xf]  ;;  %v11387_v10 = vor.u32 %v13210_v28, %v11386_v9 }
 0x530   :  { %8280 = vmatpush.bf16.msrb.mxu2 %v12059_v35  ;;  %v11527_v17 = vor.u32 %v13245_v43, %v11526_v5  ;;  %8184 = vmatmul.bf16.vlgmr.msrb.gmra.mxu3 %v14188_v59  ;;  %v12338_v43 = vld [vmem:[#allocation11 + $0xd00] sm:$0xf] }
 0x531   :  { %8268 = vmatmul.bf16.vlgmr.msrb.gmra.mxu1 %v14162_v25  ;;  %v7878_v25 = vadd.f32 %v7877_v53, %v7864_v30  ;;  %8232 = vmatpush.bf16.msra.mxu3 %v11555_v18  ;;  %v7961_v34 = vpop.f32.mrf.mxu3  ;;  %v12366_v18 = vld [vmem:[#allocation11 + $0xd38] sm:$0xf]  ;;  %v7975_v21 = vpop.f32.mrf.mxu0 }
 0x532   :  { %v12367_v5 = vor.u32 %v13455_v42, %v12366_v18 }
 0x533   :  { %v7892_v48 = vadd.f32 %v7891_v32, %v7878_v25  ;;  %v12394_v32 = vld [vmem:[#allocation11 + $0xd70] sm:$0xf] }
 0x534   :  { %8281 = vmatpush.bf16.msrb.mxu2 %v12031_v24  ;;  %v12395_v30 = vor.u32 %v13462_v52, %v12394_v32 }
 0x535   :  { %v7906_v4 = vadd.f32 %v7905_v41, %v7892_v48  ;;  %8233 = vmatpush.bf16.msra.mxu3 %v11527_v17  ;;  %v13448_v41 = vld [vmem:[#allocation11 + $0xd18] sm:$0xf0]  ;;  %v12310_v17 = vld [vmem:[#allocation11 + $0xcc8] sm:$0xf]  ;;  %v12282_v48 = vld [vmem:[#allocation11 + $0xc90] sm:$0xf] }
 0x536   :  { %v7935_v37 = vpop.f32.mrf.mxu1  ;;  %v7949_v40 = vpop.f32.mrf.mxu2  ;;  %v12339_v25 = vor.u32 %v13448_v41, %v12338_v43  ;;  %v12311_v62 = vor.u32 %v13441_v13, %v12310_v17 }
 0x537   :  { %8282 = vmatmul.bf16.vlgmr.msrb.gmra.mxu2 %v14173_v38  ;;  %v7920_v11 = vadd.f32 %v7919_v26, %v7906_v4  ;;  %v11443_v38 = vor.u32 %v13224_v61, %v11442_v60  ;;  %v7936_v23 = vadd.f32 %v7935_v37, %v7922_v45  ;;  %v12283_v4 = vor.u32 %v13434_v31, %v12282_v48  ;;  %v13427_v26 = vld [vmem:[#allocation11 + $0xc70] sm:$0xf0] }
 0x538   :  { %v12255_v46 = vor.u32 %v13427_v26, %v12254_v12 }
 0x539   :  { %8234 = vmatpush.bf16.msra.mxu3 %v11499_v7  ;;  %v7934_v0 = vadd.f32 %v7933_v19, %v7920_v11  ;;  %v7950_v53 = vadd.f32 %v7949_v40, %v7936_v23  ;;  %v7963_v35 = vpop.f32.mrf.mxu3  ;;  %v5204_v7 = vperm.slane %v14260_v6, 4  ;;  %v7977_v11 = vpop.f32.mrf.mxu0 }
 0x53b   :  { %v7948_v14 = vadd.f32 %v7947_v44, %v7934_v0  ;;  %v7964_v3 = vadd.f32 %v7963_v35, %v7950_v53  ;;  %v7976_v22 = vadd.f32 %v7975_v21, %v5204_v7  ;;  %v7978_v61 = vadd.f32 %v7977_v11, %v5204_v7 }
 0x53c   :  { %v5205_v35 = vperm.slane %v14260_v6, 5 }
 0x53d   :  { %8235 = vmatpush.bf16.msra.mxu3 %v11471_v39  ;;  %v7962_v47 = vadd.f32 %v7961_v34, %v7948_v14 }
 0x53e   :  { %v8003_v36 = vpop.f32.mrf.mxu2 }
 0x53f   :  { %13505 = vtanh.f32 %v7962_v47 }
 0x540   :  { %13507 = vtanh.f32 %v7964_v3 }
 0x541   :  { %8236 = vmatpush.bf16.msra.mxu3 %v11443_v38  ;;  %v8031_v38 = vpop.f32.mrf.mxu0 }
 0x545   :  { %8237 = vmatpush.bf16.msra.mxu3 %v11415_v58  ;;  %v13506_v51 = vpop.eup %13505 }
 0x546   :  { %8319 = vst [vmem:[#allocation14 + $0x18] sm:$0xff] %v13506_v51  ;;  %v13508_v24 = vpop.eup %13507  ;;  %v8005_v8 = vpop.f32.mrf.mxu2 }
 0x547   :  { %8326 = vst [vmem:[#allocation14 + $0x50] sm:$0xff] %v13508_v24 }
 0x549   :  { %8238 = vmatpush.bf16.msra.mxu3 %v11387_v10  ;;  %v8033_v34 = vpop.f32.mrf.mxu0 }
 0x54d   :  { %8239 = vmatpush.bf16.msra.mxu3 %v11359_v15 }
 0x54e   :  { %v8059_v58 = vpop.f32.mrf.mxu2 }
 0x550   :  { %8240 = vmatmul.bf16.vlgmr.msra.gmra.mxu3 %v14139_v33  ;;  %v7989_v33 = vpop.f32.mrf.mxu1 }
 0x551   :  { %8288 = vmatpush.bf16.msrb.mxu3 %v12451_v2  ;;  %v8017_v39 = vpop.f32.mrf.mxu3  ;;  %v7990_v19 = vadd.f32 %v7989_v33, %v7976_v22  ;;  %v8087_v53 = vpop.f32.mrf.mxu0 }
 0x552   :  { %v8088_v51 = vadd.f32 %v8087_v53, %v5205_v35 }
 0x553   :  { %v8004_v60 = vadd.f32 %v8003_v36, %v7990_v19 }
 0x555   :  { %8289 = vmatpush.bf16.msrb.mxu3 %v12423_v57  ;;  %v8018_v16 = vadd.f32 %v8017_v39, %v8004_v60  ;;  %v5206_v60 = vperm.slane %v14260_v6, 6 }
 0x556   :  { %v8061_v23 = vpop.f32.mrf.mxu2 }
 0x557   :  { %v8032_v44 = vadd.f32 %v8031_v38, %v8018_v16 }
 0x558   :  { %v7991_v49 = vpop.f32.mrf.mxu1 }
 0x559   :  { %8290 = vmatpush.bf16.msrb.mxu3 %v12395_v30  ;;  %v7992_v0 = vadd.f32 %v7991_v49, %v7978_v61  ;;  %v8019_v29 = vpop.f32.mrf.mxu3  ;;  %v8089_v3 = vpop.f32.mrf.mxu0 }
 0x55a   :  { %v8090_v52 = vadd.f32 %v8089_v3, %v5205_v35 }
 0x55b   :  { %v8006_v55 = vadd.f32 %v8005_v8, %v7992_v0 }
 0x55d   :  { %8291 = vmatpush.bf16.msrb.mxu3 %v12367_v5  ;;  %v8020_v45 = vadd.f32 %v8019_v29, %v8006_v55 }
 0x55e   :  { %v8115_v2 = vpop.f32.mrf.mxu2 }
 0x55f   :  { %v8034_v9 = vadd.f32 %v8033_v34, %v8020_v45 }
 0x560   :  { %v8045_v54 = vpop.f32.mrf.mxu1 }
 0x561   :  { %8292 = vmatpush.bf16.msrb.mxu3 %v12339_v25  ;;  %v8046_v14 = vadd.f32 %v8045_v54, %v8032_v44 }
 0x563   :  { %v8060_v28 = vadd.f32 %v8059_v58, %v8046_v14 }
 0x565   :  { %8293 = vmatpush.bf16.msrb.mxu3 %v12311_v62 }
 0x566   :  { %v8117_v24 = vpop.f32.mrf.mxu2 }
 0x568   :  { %v8047_v10 = vpop.f32.mrf.mxu1 }
 0x569   :  { %8294 = vmatpush.bf16.msrb.mxu3 %v12283_v4 }
 0x56c   :  { %v8143_v18 = vpop.f32.mrf.mxu0 }
 0x56d   :  { %8295 = vmatpush.bf16.msrb.mxu3 %v12255_v46 }
 0x570   :  { %8296 = vmatmul.bf16.vlgmr.msrb.gmra.mxu3 %v14188_v59  ;;  %v8048_v59 = vadd.f32 %v8047_v10, %v8034_v9  ;;  %v8101_v15 = vpop.f32.mrf.mxu1 }
 0x571   :  { %v8073_v47 = vpop.f32.mrf.mxu3  ;;  %v8102_v50 = vadd.f32 %v8101_v15, %v8088_v51 }
 0x572   :  { %v8074_v37 = vadd.f32 %v8073_v47, %v8060_v28  ;;  %v8062_v20 = vadd.f32 %v8061_v23, %v8048_v59 }
 0x573   :  { %v8116_v32 = vadd.f32 %v8115_v2, %v8102_v50 }
 0x574   :  { %13509 = vtanh.f32 %v8074_v37  ;;  %v8145_v62 = vpop.f32.mrf.mxu0 }
 0x578   :  { %v8103_v57 = vpop.f32.mrf.mxu1 }
 0x579   :  { %v8075_v56 = vpop.f32.mrf.mxu3  ;;  %v8104_v42 = vadd.f32 %v8103_v57, %v8090_v52 }
 0x57a   :  { %v13510_v1 = vpop.eup %13509  ;;  %v8076_v63 = vadd.f32 %v8075_v56, %v8062_v20  ;;  %v8171_v21 = vpop.f32.mrf.mxu2 }
 0x57b   :  { %8320 = vst [vmem:[#allocation14 + $0x20] sm:$0xff] %v13510_v1  ;;  %v8118_v25 = vadd.f32 %v8117_v24, %v8104_v42 }
 0x57c   :  { %13511 = vtanh.f32 %v8076_v63 }
 0x580   :  { %v8157_v43 = vpop.f32.mrf.mxu1 }
 0x582   :  { %v13512_v40 = vpop.eup %13511  ;;  %v8173_v26 = vpop.f32.mrf.mxu2 }
 0x583   :  { %8327 = vst [vmem:[#allocation14 + $0x58] sm:$0xff] %v13512_v40 }
 0x588   :  { %v8159_v7 = vpop.f32.mrf.mxu1 }
 0x58c   :  { %v8199_v19 = vpop.f32.mrf.mxu0 }
 0x58d   :  { %v8200_v16 = vadd.f32 %v8199_v19, %v5206_v60 }
 0x590   :  { %v8213_v49 = vpop.f32.mrf.mxu1 }
 0x591   :  { %v8214_v0 = vadd.f32 %v8213_v49, %v8200_v16 }
 0x594   :  { %v8201_v8 = vpop.f32.mrf.mxu0 }
 0x595   :  { %v8129_v27 = vpop.f32.mrf.mxu3  ;;  %v8202_v29 = vadd.f32 %v8201_v8, %v5206_v60 }
 0x596   :  { %v8130_v30 = vadd.f32 %v8129_v27, %v8116_v32 }
 0x598   :  { %v8144_v5 = vadd.f32 %v8143_v18, %v8130_v30  ;;  %v8215_v44 = vpop.f32.mrf.mxu1 }
 0x599   :  { %v8216_v58 = vadd.f32 %v8215_v44, %v8202_v29 }
 0x59a   :  { %v8158_v13 = vadd.f32 %v8157_v43, %v8144_v5  ;;  %v8227_v61 = vpop.f32.mrf.mxu2 }
 0x59b   :  { %v8228_v54 = vadd.f32 %v8227_v61, %v8214_v0 }
 0x59c   :  { %v8172_v31 = vadd.f32 %v8171_v21, %v8158_v13 }
 0x59d   :  { %v8131_v41 = vpop.f32.mrf.mxu3 }
 0x59e   :  { %v8132_v17 = vadd.f32 %v8131_v41, %v8118_v25 }
 0x5a0   :  { %v8146_v48 = vadd.f32 %v8145_v62, %v8132_v17 }
 0x5a2   :  { %v8160_v12 = vadd.f32 %v8159_v7, %v8146_v48  ;;  %v8229_v45 = vpop.f32.mrf.mxu2 }
 0x5a3   :  { %v8230_v47 = vadd.f32 %v8229_v45, %v8216_v58 }
 0x5a4   :  { %v8174_v36 = vadd.f32 %v8173_v26, %v8160_v12 }
 0x5ac   :  { %v8255_v14 = vpop.f32.mrf.mxu0 }
 0x5ae   :  { %v8269_v9 = vpop.f32.mrf.mxu1 }
 0x5b3   :  { %v8185_v33 = vpop.f32.mrf.mxu3 }
 0x5b4   :  { %v8186_v4 = vadd.f32 %v8185_v33, %v8172_v31  ;;  %v8257_v6 = vpop.f32.mrf.mxu0 }
 0x5b6   :  { %13513 = vtanh.f32 %v8186_v4  ;;  %v8271_v63 = vpop.f32.mrf.mxu1 }
 0x5ba   :  { %v8283_v59 = vpop.f32.mrf.mxu2 }
 0x5bb   :  { %v8187_v46 = vpop.f32.mrf.mxu3 }
 0x5bc   :  { %v13514_v22 = vpop.eup %13513  ;;  %v8188_v11 = vadd.f32 %v8187_v46, %v8174_v36 }
 0x5bd   :  { %8321 = vst [vmem:[#allocation14 + $0x28] sm:$0xff] %v13514_v22 }
 0x5be   :  { %13515 = vtanh.f32 %v8188_v11 }
 0x5c2   :  { %v8285_v53 = vpop.f32.mrf.mxu2 }
 0x5c4   :  { %v13516_v39 = vpop.eup %13515 }
 0x5c5   :  { %8328 = vst [vmem:[#allocation14 + $0x60] sm:$0xff] %v13516_v39 }
 0x5d3   :  { %v8241_v38 = vpop.f32.mrf.mxu3 }
 0x5d4   :  { %v8242_v55 = vadd.f32 %v8241_v38, %v8228_v54 }
 0x5d6   :  { %v8256_v34 = vadd.f32 %v8255_v14, %v8242_v55 }
 0x5d8   :  { %v8270_v10 = vadd.f32 %v8269_v9, %v8256_v34 }
 0x5da   :  { %v8284_v20 = vadd.f32 %v8283_v59, %v8270_v10 }
 0x5db   :  { %v8243_v28 = vpop.f32.mrf.mxu3 }
 0x5dc   :  { %v8244_v37 = vadd.f32 %v8243_v28, %v8230_v47 }
 0x5de   :  { %v8258_v23 = vadd.f32 %v8257_v6, %v8244_v37 }
 0x5e0   :  { %v8272_v40 = vadd.f32 %v8271_v63, %v8258_v23 }
 0x5e2   :  { %v8286_v15 = vadd.f32 %v8285_v53, %v8272_v40 }
 0x5f3   :  { %v8297_v56 = vpop.f32.mrf.mxu3 }
 0x5f4   :  { %v8298_v1 = vadd.f32 %v8297_v56, %v8284_v20 }
 0x5f6   :  { %13517 = vtanh.f32 %v8298_v1 }
 0x5fb   :  { %v8299_v35 = vpop.f32.mrf.mxu3 }
 0x5fc   :  { %v13518_v2 = vpop.eup %13517  ;;  %v8300_v51 = vadd.f32 %v8299_v35, %v8286_v15 }
 0x5fd   :  { %8322 = vst [vmem:[#allocation14 + $0x30] sm:$0xff] %v13518_v2 }
 0x5fe   :  { %13519 = vtanh.f32 %v8300_v51 }
 0x604   :  { %v13520_v3 = vpop.eup %13519 }
 0x605   :  { %8329 = vst [vmem:[#allocation14 + $0x68] sm:$0xff] %v13520_v3 }
 0x606   :  { %8342 = dma.vmem_to_hbm [thread:$0]  %s8335_s6, 1792, %s8337_s1, [#allocation4], %s13740_s16, %s13740_s16, %s13741_s17  }
 0x607   :  { %13724 = dma.done.wait [#allocation4], 1792  }
 0x608   :  { %13725 = vsyncadd [#allocation4], 4294965504 }
 0x609   :  { %8347 = vsyncpa [#allocation3], 1 }
 0x60a   :  { %8348 = vsyncpa [#allocation6], 1 }
 0x60b   :  { %8349 = vsyncpa [#allocation9], 1 }
 0x60c   :  { %8350 = vsyncpa [#allocation12], 1 }
 0x60d   :  { %8351 = vsyncpa [#allocation4], 1 }

</bundles_post_ra>
